<compile_context>
chip_gen: v7x
topology: tpu7x:2x2x1
jax: 0.10.0
libtpu: 0.0.40
codegen_flags: <defaults>
</compile_context>

<pallas_src>
import math

import jax
import jax.numpy as jnp
from jax.experimental import pallas as pl
from jax.experimental.pallas import tpu as pltpu

EPS = 1e-5
ENCODER_WIDTH = 256
LATENT_SPACE_WIDTH = 256
LANES = 128


def _round_up(x, m):
    return (x + m - 1) // m * m


# ---------------------------------------------------------------------------
# Pallas kernels
# ---------------------------------------------------------------------------
def _mm(a, b):
    """MXU matmul: bf16 operands, f32 accumulation."""
    return jnp.dot(a.astype(jnp.bfloat16), b.astype(jnp.bfloat16),
                   preferred_element_type=jnp.float32)


def _bn_silu(y, g, beta):
    """Train-mode BatchNorm over rows (biased var) folded to one FMA, + SiLU."""
    mean = jnp.mean(y, axis=0, keepdims=True)
    var = jnp.mean(jnp.square(y - mean), axis=0, keepdims=True)
    scale = g * jax.lax.rsqrt(var + EPS)
    shift = beta - mean * scale
    z = y * scale + shift
    return z * jax.nn.sigmoid(z)


def _matmul_bn_silu_kernel(x_ref, w_ref, g_ref, beta_ref, o_ref):
    # NOTE: conv/linear bias omitted — a per-channel constant added before
    # train-mode BN is exactly cancelled by the mean subtraction.
    y = _mm(x_ref[...], w_ref[...])
    o_ref[...] = _bn_silu(y, g_ref[...], beta_ref[...])


def _head_kernel(x_ref, wp_ref, gp_ref, bp_ref,
                 w1_ref, g1_ref, b1_ref,
                 w2_ref, bias2_ref, o_ref):
    """Fused head: Linear->BN->SiLU -> Linear->BN->SiLU -> Linear+bias."""
    h = _bn_silu(_mm(x_ref[...], wp_ref[...]), gp_ref[...], bp_ref[...])
    h = _bn_silu(_mm(h, w1_ref[...]), g1_ref[...], b1_ref[...])
    o_ref[...] = _mm(h, w2_ref[...]) + bias2_ref[...]


def _full2d(shape):
    return pl.BlockSpec(shape, lambda i: (0, 0))


_CP = pltpu.CompilerParams(dimension_semantics=("arbitrary",))


def fused_matmul_bn_silu(x, w, g, beta):
    M, K = x.shape
    N = w.shape[1]
    return pl.pallas_call(
        _matmul_bn_silu_kernel,
        out_shape=jax.ShapeDtypeStruct((M, N), jnp.float32),
        grid=(1,),
        in_specs=[_full2d((M, K)), _full2d((K, N)),
                  _full2d((1, N)), _full2d((1, N))],
        out_specs=_full2d((M, N)),
        compiler_params=_CP,
    )(x, w, g, beta)


def fused_head(enc, process, out1, out2):
    wp, gp, bp = process
    w1, g1, b1 = out1
    w2, b2 = out2
    M, E = enc.shape
    Np = w2.shape[1]            # padded (lane-dense) output width
    return pl.pallas_call(
        _head_kernel,
        out_shape=jax.ShapeDtypeStruct((M, Np), jnp.float32),
        grid=(1,),
        in_specs=[
            _full2d((M, E)),
            _full2d((E, LATENT_SPACE_WIDTH)),
            _full2d((1, LATENT_SPACE_WIDTH)), _full2d((1, LATENT_SPACE_WIDTH)),
            _full2d((LATENT_SPACE_WIDTH, 256)),
            _full2d((1, 256)), _full2d((1, 256)),
            _full2d((256, Np)), _full2d((1, Np)),
        ],
        out_specs=_full2d((M, Np)),
        compiler_params=_CP,
    )(enc, wp, gp, bp, w1, g1, b1, w2, b2)


# ---------------------------------------------------------------------------
# Glue: NHWC im2col for 3x3 / stride 2 / pad 1 (no transposes per layer)
# ---------------------------------------------------------------------------
def _im2col_3x3_s2_p1_nhwc(x):
    N, H, W, C = x.shape
    Ho, Wo = H // 2, W // 2
    xp = jnp.pad(x, ((0, 0), (1, 1), (1, 1), (0, 0)))
    taps = [xp[:, kh:kh + 2 * Ho:2, kw:kw + 2 * Wo:2, :]
            for kh in range(3) for kw in range(3)]
    # column order = (kh, kw, Cin); weights are permuted to match at init.
    patches = jnp.concatenate(taps, axis=-1).reshape(N * Ho * Wo, 9 * C)
    return patches.astype(jnp.bfloat16), (N, Ho, Wo)


def encoder_apply(enc_params, x_nhwc):
    """5x (Conv3x3 s2 p1 -> BN2d(train) -> SiLU), activations kept NHWC."""
    cur = x_nhwc
    for (w2d, g, beta) in enc_params:
        patches, (N, Ho, Wo) = _im2col_3x3_s2_p1_nhwc(cur)
        cout = w2d.shape[1]
        y = fused_matmul_bn_silu(patches, w2d, g, beta)   # (N*Ho*Wo, Cout) f32
        cur = y.reshape(N, Ho, Wo, cout)
    return cur


def _encode_and_flatten(enc_params, xs):
    """PyTorch: cat([encoder(x_i).flatten(start_dim=1)], dim=1) (NCHW flatten)."""
    if len({x.shape for x in xs}) == 1 and len(xs) > 1:
        # Batch every input through the shared encoder in one pass.
        b = xs[0].shape[0]
        xb = jnp.concatenate(xs, axis=0)                        # (len(xs)*b,1,H,W)
        e = encoder_apply(enc_params, xb.transpose(0, 2, 3, 1))  # NHWC
        ef = e.transpose(0, 3, 1, 2).reshape(e.shape[0], -1)     # NCHW flatten order
        return jnp.concatenate([ef[i * b:(i + 1) * b] for i in range(len(xs))],
                               axis=1)
    flats = []
    for x in xs:
        e = encoder_apply(enc_params, x.transpose(0, 2, 3, 1))
        flats.append(e.transpose(0, 3, 1, 2).reshape(e.shape[0], -1))
    return jnp.concatenate(flats, axis=1)


def network_apply(params, xs, output_channels):
    enc = _encode_and_flatten(params["encoder"], xs)
    out_padded = fused_head(enc, params["process"], params["out1"],
                            params["out2"])
    return out_padded[:, :output_channels]


# ---------------------------------------------------------------------------
# Deterministic parameter initialization (shapes from the nn.Module __init__)
# ---------------------------------------------------------------------------
def init_params(key, input_shapes, output_channels):
    channels = [1, 16, 32, 64, 128, ENCODER_WIDTH]
    enc_params = []
    for i in range(5):
        cin, cout = channels[i], channels[i + 1]
        key, kw = jax.random.split(key)
        bound = 1.0 / math.sqrt(cin * 9)
        w = jax.random.uniform(kw, (cout, cin, 3, 3), jnp.float32, -bound, bound)
        # (kh, kw, Cin)-major rows to match the NHWC im2col column order.
        w2d = w.transpose(2, 3, 1, 0).reshape(cin * 9, cout).astype(jnp.bfloat16)
        # conv bias omitted: cancelled exactly by train-mode BatchNorm.
        enc_params.append((w2d,
                           jnp.ones((1, cout), jnp.float32),
                           jnp.zeros((1, cout), jnp.float32)))

    # each (N,1,H,W) input contributes 256*(H//32)*(W//32) encoder elements
    encoder_elements = sum(
        ENCODER_WIDTH * (s[2] // 32) * (s[3] // 32) for s in input_shapes)

    def linear_w(k, fan_in, fan_out):
        bnd = 1.0 / math.sqrt(fan_in)
        return jax.random.uniform(k, (fan_in, fan_out), jnp.float32, -bnd, bnd)

    key, kp, ko1, ko2w, ko2b = jax.random.split(key, 5)
    process = (linear_w(kp, encoder_elements, LATENT_SPACE_WIDTH).astype(jnp.bfloat16),
               jnp.ones((1, LATENT_SPACE_WIDTH), jnp.float32),
               jnp.zeros((1, LATENT_SPACE_WIDTH), jnp.float32))
    out1 = (linear_w(ko1, LATENT_SPACE_WIDTH, 256).astype(jnp.bfloat16),
            jnp.ones((1, 256), jnp.float32),
            jnp.zeros((1, 256), jnp.float32))

    # final Linear: pad output to a lane-dense multiple of 128, slice outside.
    n_pad = _round_up(output_channels, LANES)
    bnd = 1.0 / math.sqrt(256)
    w2 = jax.random.uniform(ko2w, (256, output_channels), jnp.float32, -bnd, bnd)
    b2 = jax.random.uniform(ko2b, (1, output_channels), jnp.float32, -bnd, bnd)
    w2p = jnp.zeros((256, n_pad), jnp.float32).at[:, :output_channels].set(w2)
    b2p = jnp.zeros((1, n_pad), jnp.float32).at[:, :output_channels].set(b2)
    out2 = (w2p.astype(jnp.bfloat16), b2p)

    return {"encoder": enc_params, "process": process,
            "out1": out1, "out2": out2}


# ---------------------------------------------------------------------------
if __name__ == "__main__":
    key = jax.random.PRNGKey(0)
    batch, H, W = 2, 32, 32          # single-channel images, multiple of 32
    output_channels = 10

    key, kx0, kx1, kp = jax.random.split(key, 4)
    x0 = jax.random.normal(kx0, (batch, 1, H, W), jnp.float32)
    x1 = jax.random.normal(kx1, (batch, 1, H, W), jnp.float32)

    params = init_params(kp, [x0.shape, x1.shape], output_channels)

    apply_fn = jax.jit(lambda p, a, b: network_apply(p, [a, b], output_channels))
    out = apply_fn(params, x0, x1)
    out = jax.block_until_ready(out)
    assert out.shape == (batch, output_channels)
    print("KERNEL_OK")
</pallas_src>

<mosaic_0001>
module attributes {stable_mosaic.version = 11 : i64} {
  func.func @_matmul_bn_silu_kernel(%arg0: i32, %arg1: memref<1024x9xbf16, #tpu.memory_space<vmem>>, %arg2: memref<9x16xbf16, #tpu.memory_space<vmem>>, %arg3: memref<1x16xf32, #tpu.memory_space<vmem>>, %arg4: memref<1x16xf32, #tpu.memory_space<vmem>>, %arg5: memref<1024x16xf32, #tpu.memory_space<vmem>>) attributes {dimension_semantics = [#tpu.dimension_semantics<arbitrary>], iteration_bounds = array<i64: 1>, scalar_prefetch = 0 : i64, scratch_operands = 0 : i64, tpu.core_type = #tpu.core_type<tc>, window_params = [{pipeline_mode = #tpu.pipeline_mode<synchronous>, transform_indices = @transform_0, window_bounds = array<i64: 1024, 9>}, {pipeline_mode = #tpu.pipeline_mode<synchronous>, transform_indices = @transform_1, window_bounds = array<i64: 9, 16>}, {pipeline_mode = #tpu.pipeline_mode<synchronous>, transform_indices = @transform_2, window_bounds = array<i64: 1, 16>}, {pipeline_mode = #tpu.pipeline_mode<synchronous>, transform_indices = @transform_3, window_bounds = array<i64: 1, 16>}, {pipeline_mode = #tpu.pipeline_mode<synchronous>, transform_indices = @transform_4, window_bounds = array<i64: 1024, 16>}]} {
    %c0 = arith.constant 0 : index
    %c0_0 = arith.constant 0 : index
    %0 = vector.load %arg1[%c0, %c0_0] : memref<1024x9xbf16, #tpu.memory_space<vmem>>, vector<1024x9xbf16>
    %c0_1 = arith.constant 0 : index
    %c0_2 = arith.constant 0 : index
    %1 = vector.load %arg2[%c0_1, %c0_2] : memref<9x16xbf16, #tpu.memory_space<vmem>>, vector<9x16xbf16>
    %cst = arith.constant dense<0.000000e+00> : vector<1024x16xf32>
    %2 = tpu.matmul %0, %1, %cst {dimension_numbers = #tpu.dot_dimension_numbers<[1], [0], [0], [1], [0, 0, 1, 1], [], []>} : vector<1024x9xbf16>, vector<9x16xbf16>, vector<1024x16xf32> -> vector<1024x16xf32>
    %c0_3 = arith.constant 0 : index
    %c0_4 = arith.constant 0 : index
    %3 = vector.load %arg3[%c0_3, %c0_4] : memref<1x16xf32, #tpu.memory_space<vmem>>, vector<1x16xf32>
    %c0_5 = arith.constant 0 : index
    %c0_6 = arith.constant 0 : index
    %4 = vector.load %arg4[%c0_5, %c0_6] : memref<1x16xf32, #tpu.memory_space<vmem>>, vector<1x16xf32>
    %cst_7 = arith.constant dense<0.000000e+00> : vector<16xf32>
    %5 = vector.multi_reduction <add>, %2, %cst_7 [0] : vector<1024x16xf32> to vector<16xf32>
    %6 = vector.shape_cast %5 : vector<16xf32> to vector<1x16xf32>
    %cst_8 = arith.constant 1.024000e+03 : f32
    %7 = vector.broadcast %cst_8 : f32 to vector<1x16xf32>
    %8 = arith.divf %6, %7 : vector<1x16xf32>
    %9 = vector.broadcast %8 : vector<1x16xf32> to vector<1024x16xf32>
    %10 = arith.subf %2, %9 : vector<1024x16xf32>
    %11 = arith.mulf %10, %10 : vector<1024x16xf32>
    %cst_9 = arith.constant dense<0.000000e+00> : vector<16xf32>
    %12 = vector.multi_reduction <add>, %11, %cst_9 [0] : vector<1024x16xf32> to vector<16xf32>
    %13 = vector.shape_cast %12 : vector<16xf32> to vector<1x16xf32>
    %cst_10 = arith.constant 1.024000e+03 : f32
    %14 = vector.broadcast %cst_10 : f32 to vector<1x16xf32>
    %15 = arith.divf %13, %14 : vector<1x16xf32>
    %cst_11 = arith.constant 9.99999974E-6 : f32
    %16 = vector.broadcast %cst_11 : f32 to vector<1x16xf32>
    %17 = arith.addf %15, %16 : vector<1x16xf32>
    %18 = math.rsqrt %17 : vector<1x16xf32>
    %19 = arith.mulf %3, %18 : vector<1x16xf32>
    %20 = arith.mulf %8, %19 : vector<1x16xf32>
    %21 = arith.subf %4, %20 : vector<1x16xf32>
    %22 = vector.broadcast %19 : vector<1x16xf32> to vector<1024x16xf32>
    %23 = arith.mulf %2, %22 : vector<1024x16xf32>
    %24 = vector.broadcast %21 : vector<1x16xf32> to vector<1024x16xf32>
    %25 = arith.addf %23, %24 : vector<1024x16xf32>
    %26 = arith.negf %25 : vector<1024x16xf32>
    %27 = math.exp %26 : vector<1024x16xf32>
    %cst_12 = arith.constant 1.000000e+00 : f32
    %28 = vector.broadcast %cst_12 : f32 to vector<1024x16xf32>
    %29 = arith.addf %28, %27 : vector<1024x16xf32>
    %30 = arith.divf %28, %29 : vector<1024x16xf32>
    %31 = arith.mulf %25, %30 : vector<1024x16xf32>
    %c0_13 = arith.constant 0 : index
    %c0_14 = arith.constant 0 : index
    %32 = vector.load %arg5[%c0_13, %c0_14] : memref<1024x16xf32, #tpu.memory_space<vmem>>, vector<1024x16xf32>
    tpu.vector_store %arg5[%c0_13, %c0_14], %31 {strides = array<i32>} : memref<1024x16xf32, #tpu.memory_space<vmem>>, vector<1024x16xf32>,
    return
  }
  func.func @transform_0(%arg0: i32) -> (i32, i32) {
    %c0_i32 = arith.constant 0 : i32
    %c0_i32_0 = arith.constant 0 : i32
    %c0_i32_1 = arith.constant 0 : i32
    return %c0_i32, %c0_i32_0 : i32, i32
  }
  func.func @transform_1(%arg0: i32) -> (i32, i32) {
    %c0_i32 = arith.constant 0 : i32
    %c0_i32_0 = arith.constant 0 : i32
    %c0_i32_1 = arith.constant 0 : i32
    return %c0_i32, %c0_i32_0 : i32, i32
  }
  func.func @transform_2(%arg0: i32) -> (i32, i32) {
    %c0_i32 = arith.constant 0 : i32
    %c0_i32_0 = arith.constant 0 : i32
    %c0_i32_1 = arith.constant 0 : i32
    return %c0_i32, %c0_i32_0 : i32, i32
  }
  func.func @transform_3(%arg0: i32) -> (i32, i32) {
    %c0_i32 = arith.constant 0 : i32
    %c0_i32_0 = arith.constant 0 : i32
    %c0_i32_1 = arith.constant 0 : i32
    return %c0_i32, %c0_i32_0 : i32, i32
  }
  func.func @transform_4(%arg0: i32) -> (i32, i32) {
    %c0_i32 = arith.constant 0 : i32
    %c0_i32_0 = arith.constant 0 : i32
    %c0_i32_1 = arith.constant 0 : i32
    return %c0_i32, %c0_i32_0 : i32, i32
  }
}

module attributes {stable_mosaic.version = 11 : i64} {
  func.func @_matmul_bn_silu_kernel(%arg0: i32, %arg1: memref<256x144xbf16, #tpu.memory_space<vmem>>, %arg2: memref<144x32xbf16, #tpu.memory_space<vmem>>, %arg3: memref<1x32xf32, #tpu.memory_space<vmem>>, %arg4: memref<1x32xf32, #tpu.memory_space<vmem>>, %arg5: memref<256x32xf32, #tpu.memory_space<vmem>>) attributes {dimension_semantics = [#tpu.dimension_semantics<arbitrary>], iteration_bounds = array<i64: 1>, scalar_prefetch = 0 : i64, scratch_operands = 0 : i64, tpu.core_type = #tpu.core_type<tc>, window_params = [{pipeline_mode = #tpu.pipeline_mode<synchronous>, transform_indices = @transform_0, window_bounds = array<i64: 256, 144>}, {pipeline_mode = #tpu.pipeline_mode<synchronous>, transform_indices = @transform_1, window_bounds = array<i64: 144, 32>}, {pipeline_mode = #tpu.pipeline_mode<synchronous>, transform_indices = @transform_2, window_bounds = array<i64: 1, 32>}, {pipeline_mode = #tpu.pipeline_mode<synchronous>, transform_indices = @transform_3, window_bounds = array<i64: 1, 32>}, {pipeline_mode = #tpu.pipeline_mode<synchronous>, transform_indices = @transform_4, window_bounds = array<i64: 256, 32>}]} {
    %c0 = arith.constant 0 : index
    %c0_0 = arith.constant 0 : index
    %0 = vector.load %arg1[%c0, %c0_0] : memref<256x144xbf16, #tpu.memory_space<vmem>>, vector<256x144xbf16>
    %c0_1 = arith.constant 0 : index
    %c0_2 = arith.constant 0 : index
    %1 = vector.load %arg2[%c0_1, %c0_2] : memref<144x32xbf16, #tpu.memory_space<vmem>>, vector<144x32xbf16>
    %cst = arith.constant dense<0.000000e+00> : vector<256x32xf32>
    %2 = tpu.matmul %0, %1, %cst {dimension_numbers = #tpu.dot_dimension_numbers<[1], [0], [0], [1], [0, 0, 1, 1], [], []>} : vector<256x144xbf16>, vector<144x32xbf16>, vector<256x32xf32> -> vector<256x32xf32>
    %c0_3 = arith.constant 0 : index
    %c0_4 = arith.constant 0 : index
    %3 = vector.load %arg3[%c0_3, %c0_4] : memref<1x32xf32, #tpu.memory_space<vmem>>, vector<1x32xf32>
    %c0_5 = arith.constant 0 : index
    %c0_6 = arith.constant 0 : index
    %4 = vector.load %arg4[%c0_5, %c0_6] : memref<1x32xf32, #tpu.memory_space<vmem>>, vector<1x32xf32>
    %cst_7 = arith.constant dense<0.000000e+00> : vector<32xf32>
    %5 = vector.multi_reduction <add>, %2, %cst_7 [0] : vector<256x32xf32> to vector<32xf32>
    %6 = vector.shape_cast %5 : vector<32xf32> to vector<1x32xf32>
    %cst_8 = arith.constant 2.560000e+02 : f32
    %7 = vector.broadcast %cst_8 : f32 to vector<1x32xf32>
    %8 = arith.divf %6, %7 : vector<1x32xf32>
    %9 = vector.broadcast %8 : vector<1x32xf32> to vector<256x32xf32>
    %10 = arith.subf %2, %9 : vector<256x32xf32>
    %11 = arith.mulf %10, %10 : vector<256x32xf32>
    %cst_9 = arith.constant dense<0.000000e+00> : vector<32xf32>
    %12 = vector.multi_reduction <add>, %11, %cst_9 [0] : vector<256x32xf32> to vector<32xf32>
    %13 = vector.shape_cast %12 : vector<32xf32> to vector<1x32xf32>
    %cst_10 = arith.constant 2.560000e+02 : f32
    %14 = vector.broadcast %cst_10 : f32 to vector<1x32xf32>
    %15 = arith.divf %13, %14 : vector<1x32xf32>
    %cst_11 = arith.constant 9.99999974E-6 : f32
    %16 = vector.broadcast %cst_11 : f32 to vector<1x32xf32>
    %17 = arith.addf %15, %16 : vector<1x32xf32>
    %18 = math.rsqrt %17 : vector<1x32xf32>
    %19 = arith.mulf %3, %18 : vector<1x32xf32>
    %20 = arith.mulf %8, %19 : vector<1x32xf32>
    %21 = arith.subf %4, %20 : vector<1x32xf32>
    %22 = vector.broadcast %19 : vector<1x32xf32> to vector<256x32xf32>
    %23 = arith.mulf %2, %22 : vector<256x32xf32>
    %24 = vector.broadcast %21 : vector<1x32xf32> to vector<256x32xf32>
    %25 = arith.addf %23, %24 : vector<256x32xf32>
    %26 = arith.negf %25 : vector<256x32xf32>
    %27 = math.exp %26 : vector<256x32xf32>
    %cst_12 = arith.constant 1.000000e+00 : f32
    %28 = vector.broadcast %cst_12 : f32 to vector<256x32xf32>
    %29 = arith.addf %28, %27 : vector<256x32xf32>
    %30 = arith.divf %28, %29 : vector<256x32xf32>
    %31 = arith.mulf %25, %30 : vector<256x32xf32>
    %c0_13 = arith.constant 0 : index
    %c0_14 = arith.constant 0 : index
    %32 = vector.load %arg5[%c0_13, %c0_14] : memref<256x32xf32, #tpu.memory_space<vmem>>, vector<256x32xf32>
    tpu.vector_store %arg5[%c0_13, %c0_14], %31 {strides = array<i32>} : memref<256x32xf32, #tpu.memory_space<vmem>>, vector<256x32xf32>,
    return
  }
  func.func @transform_0(%arg0: i32) -> (i32, i32) {
    %c0_i32 = arith.constant 0 : i32
    %c0_i32_0 = arith.constant 0 : i32
    %c0_i32_1 = arith.constant 0 : i32
    return %c0_i32, %c0_i32_0 : i32, i32
  }
  func.func @transform_1(%arg0: i32) -> (i32, i32) {
    %c0_i32 = arith.constant 0 : i32
    %c0_i32_0 = arith.constant 0 : i32
    %c0_i32_1 = arith.constant 0 : i32
    return %c0_i32, %c0_i32_0 : i32, i32
  }
  func.func @transform_2(%arg0: i32) -> (i32, i32) {
    %c0_i32 = arith.constant 0 : i32
    %c0_i32_0 = arith.constant 0 : i32
    %c0_i32_1 = arith.constant 0 : i32
    return %c0_i32, %c0_i32_0 : i32, i32
  }
  func.func @transform_3(%arg0: i32) -> (i32, i32) {
    %c0_i32 = arith.constant 0 : i32
    %c0_i32_0 = arith.constant 0 : i32
    %c0_i32_1 = arith.constant 0 : i32
    return %c0_i32, %c0_i32_0 : i32, i32
  }
  func.func @transform_4(%arg0: i32) -> (i32, i32) {
    %c0_i32 = arith.constant 0 : i32
    %c0_i32_0 = arith.constant 0 : i32
    %c0_i32_1 = arith.constant 0 : i32
    return %c0_i32, %c0_i32_0 : i32, i32
  }
}

module attributes {stable_mosaic.version = 11 : i64} {
  func.func @_matmul_bn_silu_kernel(%arg0: i32, %arg1: memref<64x288xbf16, #tpu.memory_space<vmem>>, %arg2: memref<288x64xbf16, #tpu.memory_space<vmem>>, %arg3: memref<1x64xf32, #tpu.memory_space<vmem>>, %arg4: memref<1x64xf32, #tpu.memory_space<vmem>>, %arg5: memref<64x64xf32, #tpu.memory_space<vmem>>) attributes {dimension_semantics = [#tpu.dimension_semantics<arbitrary>], iteration_bounds = array<i64: 1>, scalar_prefetch = 0 : i64, scratch_operands = 0 : i64, tpu.core_type = #tpu.core_type<tc>, window_params = [{pipeline_mode = #tpu.pipeline_mode<synchronous>, transform_indices = @transform_0, window_bounds = array<i64: 64, 288>}, {pipeline_mode = #tpu.pipeline_mode<synchronous>, transform_indices = @transform_1, window_bounds = array<i64: 288, 64>}, {pipeline_mode = #tpu.pipeline_mode<synchronous>, transform_indices = @transform_2, window_bounds = array<i64: 1, 64>}, {pipeline_mode = #tpu.pipeline_mode<synchronous>, transform_indices = @transform_3, window_bounds = array<i64: 1, 64>}, {pipeline_mode = #tpu.pipeline_mode<synchronous>, transform_indices = @transform_4, window_bounds = array<i64: 64, 64>}]} {
    %c0 = arith.constant 0 : index
    %c0_0 = arith.constant 0 : index
    %0 = vector.load %arg1[%c0, %c0_0] : memref<64x288xbf16, #tpu.memory_space<vmem>>, vector<64x288xbf16>
    %c0_1 = arith.constant 0 : index
    %c0_2 = arith.constant 0 : index
    %1 = vector.load %arg2[%c0_1, %c0_2] : memref<288x64xbf16, #tpu.memory_space<vmem>>, vector<288x64xbf16>
    %cst = arith.constant dense<0.000000e+00> : vector<64x64xf32>
    %2 = tpu.matmul %0, %1, %cst {dimension_numbers = #tpu.dot_dimension_numbers<[1], [0], [0], [1], [0, 0, 1, 1], [], []>} : vector<64x288xbf16>, vector<288x64xbf16>, vector<64x64xf32> -> vector<64x64xf32>
    %c0_3 = arith.constant 0 : index
    %c0_4 = arith.constant 0 : index
    %3 = vector.load %arg3[%c0_3, %c0_4] : memref<1x64xf32, #tpu.memory_space<vmem>>, vector<1x64xf32>
    %c0_5 = arith.constant 0 : index
    %c0_6 = arith.constant 0 : index
    %4 = vector.load %arg4[%c0_5, %c0_6] : memref<1x64xf32, #tpu.memory_space<vmem>>, vector<1x64xf32>
    %cst_7 = arith.constant dense<0.000000e+00> : vector<64xf32>
    %5 = vector.multi_reduction <add>, %2, %cst_7 [0] : vector<64x64xf32> to vector<64xf32>
    %6 = vector.shape_cast %5 : vector<64xf32> to vector<1x64xf32>
    %cst_8 = arith.constant 6.400000e+01 : f32
    %7 = vector.broadcast %cst_8 : f32 to vector<1x64xf32>
    %8 = arith.divf %6, %7 : vector<1x64xf32>
    %9 = vector.broadcast %8 : vector<1x64xf32> to vector<64x64xf32>
    %10 = arith.subf %2, %9 : vector<64x64xf32>
    %11 = arith.mulf %10, %10 : vector<64x64xf32>
    %cst_9 = arith.constant dense<0.000000e+00> : vector<64xf32>
    %12 = vector.multi_reduction <add>, %11, %cst_9 [0] : vector<64x64xf32> to vector<64xf32>
    %13 = vector.shape_cast %12 : vector<64xf32> to vector<1x64xf32>
    %cst_10 = arith.constant 6.400000e+01 : f32
    %14 = vector.broadcast %cst_10 : f32 to vector<1x64xf32>
    %15 = arith.divf %13, %14 : vector<1x64xf32>
    %cst_11 = arith.constant 9.99999974E-6 : f32
    %16 = vector.broadcast %cst_11 : f32 to vector<1x64xf32>
    %17 = arith.addf %15, %16 : vector<1x64xf32>
    %18 = math.rsqrt %17 : vector<1x64xf32>
    %19 = arith.mulf %3, %18 : vector<1x64xf32>
    %20 = arith.mulf %8, %19 : vector<1x64xf32>
    %21 = arith.subf %4, %20 : vector<1x64xf32>
    %22 = vector.broadcast %19 : vector<1x64xf32> to vector<64x64xf32>
    %23 = arith.mulf %2, %22 : vector<64x64xf32>
    %24 = vector.broadcast %21 : vector<1x64xf32> to vector<64x64xf32>
    %25 = arith.addf %23, %24 : vector<64x64xf32>
    %26 = arith.negf %25 : vector<64x64xf32>
    %27 = math.exp %26 : vector<64x64xf32>
    %cst_12 = arith.constant 1.000000e+00 : f32
    %28 = vector.broadcast %cst_12 : f32 to vector<64x64xf32>
    %29 = arith.addf %28, %27 : vector<64x64xf32>
    %30 = arith.divf %28, %29 : vector<64x64xf32>
    %31 = arith.mulf %25, %30 : vector<64x64xf32>
    %c0_13 = arith.constant 0 : index
    %c0_14 = arith.constant 0 : index
    %32 = vector.load %arg5[%c0_13, %c0_14] : memref<64x64xf32, #tpu.memory_space<vmem>>, vector<64x64xf32>
    tpu.vector_store %arg5[%c0_13, %c0_14], %31 {strides = array<i32>} : memref<64x64xf32, #tpu.memory_space<vmem>>, vector<64x64xf32>,
    return
  }
  func.func @transform_0(%arg0: i32) -> (i32, i32) {
    %c0_i32 = arith.constant 0 : i32
    %c0_i32_0 = arith.constant 0 : i32
    %c0_i32_1 = arith.constant 0 : i32
    return %c0_i32, %c0_i32_0 : i32, i32
  }
  func.func @transform_1(%arg0: i32) -> (i32, i32) {
    %c0_i32 = arith.constant 0 : i32
    %c0_i32_0 = arith.constant 0 : i32
    %c0_i32_1 = arith.constant 0 : i32
    return %c0_i32, %c0_i32_0 : i32, i32
  }
  func.func @transform_2(%arg0: i32) -> (i32, i32) {
    %c0_i32 = arith.constant 0 : i32
    %c0_i32_0 = arith.constant 0 : i32
    %c0_i32_1 = arith.constant 0 : i32
    return %c0_i32, %c0_i32_0 : i32, i32
  }
  func.func @transform_3(%arg0: i32) -> (i32, i32) {
    %c0_i32 = arith.constant 0 : i32
    %c0_i32_0 = arith.constant 0 : i32
    %c0_i32_1 = arith.constant 0 : i32
    return %c0_i32, %c0_i32_0 : i32, i32
  }
  func.func @transform_4(%arg0: i32) -> (i32, i32) {
    %c0_i32 = arith.constant 0 : i32
    %c0_i32_0 = arith.constant 0 : i32
    %c0_i32_1 = arith.constant 0 : i32
    return %c0_i32, %c0_i32_0 : i32, i32
  }
}

module attributes {stable_mosaic.version = 11 : i64} {
  func.func @_matmul_bn_silu_kernel(%arg0: i32, %arg1: memref<16x576xbf16, #tpu.memory_space<vmem>>, %arg2: memref<576x128xbf16, #tpu.memory_space<vmem>>, %arg3: memref<1x128xf32, #tpu.memory_space<vmem>>, %arg4: memref<1x128xf32, #tpu.memory_space<vmem>>, %arg5: memref<16x128xf32, #tpu.memory_space<vmem>>) attributes {dimension_semantics = [#tpu.dimension_semantics<arbitrary>], iteration_bounds = array<i64: 1>, scalar_prefetch = 0 : i64, scratch_operands = 0 : i64, tpu.core_type = #tpu.core_type<tc>, window_params = [{pipeline_mode = #tpu.pipeline_mode<synchronous>, transform_indices = @transform_0, window_bounds = array<i64: 16, 576>}, {pipeline_mode = #tpu.pipeline_mode<synchronous>, transform_indices = @transform_1, window_bounds = array<i64: 576, 128>}, {pipeline_mode = #tpu.pipeline_mode<synchronous>, transform_indices = @transform_2, window_bounds = array<i64: 1, 128>}, {pipeline_mode = #tpu.pipeline_mode<synchronous>, transform_indices = @transform_3, window_bounds = array<i64: 1, 128>}, {pipeline_mode = #tpu.pipeline_mode<synchronous>, transform_indices = @transform_4, window_bounds = array<i64: 16, 128>}]} {
    %c0 = arith.constant 0 : index
    %c0_0 = arith.constant 0 : index
    %0 = vector.load %arg1[%c0, %c0_0] : memref<16x576xbf16, #tpu.memory_space<vmem>>, vector<16x576xbf16>
    %c0_1 = arith.constant 0 : index
    %c0_2 = arith.constant 0 : index
    %1 = vector.load %arg2[%c0_1, %c0_2] : memref<576x128xbf16, #tpu.memory_space<vmem>>, vector<576x128xbf16>
    %cst = arith.constant dense<0.000000e+00> : vector<16x128xf32>
    %2 = tpu.matmul %0, %1, %cst {dimension_numbers = #tpu.dot_dimension_numbers<[1], [0], [0], [1], [0, 0, 1, 1], [], []>} : vector<16x576xbf16>, vector<576x128xbf16>, vector<16x128xf32> -> vector<16x128xf32>
    %c0_3 = arith.constant 0 : index
    %c0_4 = arith.constant 0 : index
    %3 = vector.load %arg3[%c0_3, %c0_4] : memref<1x128xf32, #tpu.memory_space<vmem>>, vector<1x128xf32>
    %c0_5 = arith.constant 0 : index
    %c0_6 = arith.constant 0 : index
    %4 = vector.load %arg4[%c0_5, %c0_6] : memref<1x128xf32, #tpu.memory_space<vmem>>, vector<1x128xf32>
    %cst_7 = arith.constant dense<0.000000e+00> : vector<128xf32>
    %5 = vector.multi_reduction <add>, %2, %cst_7 [0] : vector<16x128xf32> to vector<128xf32>
    %6 = vector.shape_cast %5 : vector<128xf32> to vector<1x128xf32>
    %cst_8 = arith.constant 1.600000e+01 : f32
    %7 = vector.broadcast %cst_8 : f32 to vector<1x128xf32>
    %8 = arith.divf %6, %7 : vector<1x128xf32>
    %9 = vector.broadcast %8 : vector<1x128xf32> to vector<16x128xf32>
    %10 = arith.subf %2, %9 : vector<16x128xf32>
    %11 = arith.mulf %10, %10 : vector<16x128xf32>
    %cst_9 = arith.constant dense<0.000000e+00> : vector<128xf32>
    %12 = vector.multi_reduction <add>, %11, %cst_9 [0] : vector<16x128xf32> to vector<128xf32>
    %13 = vector.shape_cast %12 : vector<128xf32> to vector<1x128xf32>
    %cst_10 = arith.constant 1.600000e+01 : f32
    %14 = vector.broadcast %cst_10 : f32 to vector<1x128xf32>
    %15 = arith.divf %13, %14 : vector<1x128xf32>
    %cst_11 = arith.constant 9.99999974E-6 : f32
    %16 = vector.broadcast %cst_11 : f32 to vector<1x128xf32>
    %17 = arith.addf %15, %16 : vector<1x128xf32>
    %18 = math.rsqrt %17 : vector<1x128xf32>
    %19 = arith.mulf %3, %18 : vector<1x128xf32>
    %20 = arith.mulf %8, %19 : vector<1x128xf32>
    %21 = arith.subf %4, %20 : vector<1x128xf32>
    %22 = vector.broadcast %19 : vector<1x128xf32> to vector<16x128xf32>
    %23 = arith.mulf %2, %22 : vector<16x128xf32>
    %24 = vector.broadcast %21 : vector<1x128xf32> to vector<16x128xf32>
    %25 = arith.addf %23, %24 : vector<16x128xf32>
    %26 = arith.negf %25 : vector<16x128xf32>
    %27 = math.exp %26 : vector<16x128xf32>
    %cst_12 = arith.constant 1.000000e+00 : f32
    %28 = vector.broadcast %cst_12 : f32 to vector<16x128xf32>
    %29 = arith.addf %28, %27 : vector<16x128xf32>
    %30 = arith.divf %28, %29 : vector<16x128xf32>
    %31 = arith.mulf %25, %30 : vector<16x128xf32>
    %c0_13 = arith.constant 0 : index
    %c0_14 = arith.constant 0 : index
    %32 = vector.load %arg5[%c0_13, %c0_14] : memref<16x128xf32, #tpu.memory_space<vmem>>, vector<16x128xf32>
    tpu.vector_store %arg5[%c0_13, %c0_14], %31 {strides = array<i32>} : memref<16x128xf32, #tpu.memory_space<vmem>>, vector<16x128xf32>,
    return
  }
  func.func @transform_0(%arg0: i32) -> (i32, i32) {
    %c0_i32 = arith.constant 0 : i32
    %c0_i32_0 = arith.constant 0 : i32
    %c0_i32_1 = arith.constant 0 : i32
    return %c0_i32, %c0_i32_0 : i32, i32
  }
  func.func @transform_1(%arg0: i32) -> (i32, i32) {
    %c0_i32 = arith.constant 0 : i32
    %c0_i32_0 = arith.constant 0 : i32
    %c0_i32_1 = arith.constant 0 : i32
    return %c0_i32, %c0_i32_0 : i32, i32
  }
  func.func @transform_2(%arg0: i32) -> (i32, i32) {
    %c0_i32 = arith.constant 0 : i32
    %c0_i32_0 = arith.constant 0 : i32
    %c0_i32_1 = arith.constant 0 : i32
    return %c0_i32, %c0_i32_0 : i32, i32
  }
  func.func @transform_3(%arg0: i32) -> (i32, i32) {
    %c0_i32 = arith.constant 0 : i32
    %c0_i32_0 = arith.constant 0 : i32
    %c0_i32_1 = arith.constant 0 : i32
    return %c0_i32, %c0_i32_0 : i32, i32
  }
  func.func @transform_4(%arg0: i32) -> (i32, i32) {
    %c0_i32 = arith.constant 0 : i32
    %c0_i32_0 = arith.constant 0 : i32
    %c0_i32_1 = arith.constant 0 : i32
    return %c0_i32, %c0_i32_0 : i32, i32
  }
}

module attributes {stable_mosaic.version = 11 : i64} {
  func.func @_matmul_bn_silu_kernel(%arg0: i32, %arg1: memref<4x1152xbf16, #tpu.memory_space<vmem>>, %arg2: memref<1152x256xbf16, #tpu.memory_space<vmem>>, %arg3: memref<1x256xf32, #tpu.memory_space<vmem>>, %arg4: memref<1x256xf32, #tpu.memory_space<vmem>>, %arg5: memref<4x256xf32, #tpu.memory_space<vmem>>) attributes {dimension_semantics = [#tpu.dimension_semantics<arbitrary>], iteration_bounds = array<i64: 1>, scalar_prefetch = 0 : i64, scratch_operands = 0 : i64, tpu.core_type = #tpu.core_type<tc>, window_params = [{pipeline_mode = #tpu.pipeline_mode<synchronous>, transform_indices = @transform_0, window_bounds = array<i64: 4, 1152>}, {pipeline_mode = #tpu.pipeline_mode<synchronous>, transform_indices = @transform_1, window_bounds = array<i64: 1152, 256>}, {pipeline_mode = #tpu.pipeline_mode<synchronous>, transform_indices = @transform_2, window_bounds = array<i64: 1, 256>}, {pipeline_mode = #tpu.pipeline_mode<synchronous>, transform_indices = @transform_3, window_bounds = array<i64: 1, 256>}, {pipeline_mode = #tpu.pipeline_mode<synchronous>, transform_indices = @transform_4, window_bounds = array<i64: 4, 256>}]} {
    %c0 = arith.constant 0 : index
    %c0_0 = arith.constant 0 : index
    %0 = vector.load %arg1[%c0, %c0_0] : memref<4x1152xbf16, #tpu.memory_space<vmem>>, vector<4x1152xbf16>
    %c0_1 = arith.constant 0 : index
    %c0_2 = arith.constant 0 : index
    %1 = vector.load %arg2[%c0_1, %c0_2] : memref<1152x256xbf16, #tpu.memory_space<vmem>>, vector<1152x256xbf16>
    %cst = arith.constant dense<0.000000e+00> : vector<4x256xf32>
    %2 = tpu.matmul %0, %1, %cst {dimension_numbers = #tpu.dot_dimension_numbers<[1], [0], [0], [1], [0, 0, 1, 1], [], []>} : vector<4x1152xbf16>, vector<1152x256xbf16>, vector<4x256xf32> -> vector<4x256xf32>
    %c0_3 = arith.constant 0 : index
    %c0_4 = arith.constant 0 : index
    %3 = vector.load %arg3[%c0_3, %c0_4] : memref<1x256xf32, #tpu.memory_space<vmem>>, vector<1x256xf32>
    %c0_5 = arith.constant 0 : index
    %c0_6 = arith.constant 0 : index
    %4 = vector.load %arg4[%c0_5, %c0_6] : memref<1x256xf32, #tpu.memory_space<vmem>>, vector<1x256xf32>
    %cst_7 = arith.constant dense<0.000000e+00> : vector<256xf32>
    %5 = vector.multi_reduction <add>, %2, %cst_7 [0] : vector<4x256xf32> to vector<256xf32>
    %6 = vector.shape_cast %5 : vector<256xf32> to vector<1x256xf32>
    %cst_8 = arith.constant 4.000000e+00 : f32
    %7 = vector.broadcast %cst_8 : f32 to vector<1x256xf32>
    %8 = arith.divf %6, %7 : vector<1x256xf32>
    %9 = vector.broadcast %8 : vector<1x256xf32> to vector<4x256xf32>
    %10 = arith.subf %2, %9 : vector<4x256xf32>
    %11 = arith.mulf %10, %10 : vector<4x256xf32>
    %cst_9 = arith.constant dense<0.000000e+00> : vector<256xf32>
    %12 = vector.multi_reduction <add>, %11, %cst_9 [0] : vector<4x256xf32> to vector<256xf32>
    %13 = vector.shape_cast %12 : vector<256xf32> to vector<1x256xf32>
    %cst_10 = arith.constant 4.000000e+00 : f32
    %14 = vector.broadcast %cst_10 : f32 to vector<1x256xf32>
    %15 = arith.divf %13, %14 : vector<1x256xf32>
    %cst_11 = arith.constant 9.99999974E-6 : f32
    %16 = vector.broadcast %cst_11 : f32 to vector<1x256xf32>
    %17 = arith.addf %15, %16 : vector<1x256xf32>
    %18 = math.rsqrt %17 : vector<1x256xf32>
    %19 = arith.mulf %3, %18 : vector<1x256xf32>
    %20 = arith.mulf %8, %19 : vector<1x256xf32>
    %21 = arith.subf %4, %20 : vector<1x256xf32>
    %22 = vector.broadcast %19 : vector<1x256xf32> to vector<4x256xf32>
    %23 = arith.mulf %2, %22 : vector<4x256xf32>
    %24 = vector.broadcast %21 : vector<1x256xf32> to vector<4x256xf32>
    %25 = arith.addf %23, %24 : vector<4x256xf32>
    %26 = arith.negf %25 : vector<4x256xf32>
    %27 = math.exp %26 : vector<4x256xf32>
    %cst_12 = arith.constant 1.000000e+00 : f32
    %28 = vector.broadcast %cst_12 : f32 to vector<4x256xf32>
    %29 = arith.addf %28, %27 : vector<4x256xf32>
    %30 = arith.divf %28, %29 : vector<4x256xf32>
    %31 = arith.mulf %25, %30 : vector<4x256xf32>
    %c0_13 = arith.constant 0 : index
    %c0_14 = arith.constant 0 : index
    %32 = vector.load %arg5[%c0_13, %c0_14] : memref<4x256xf32, #tpu.memory_space<vmem>>, vector<4x256xf32>
    tpu.vector_store %arg5[%c0_13, %c0_14], %31 {strides = array<i32>} : memref<4x256xf32, #tpu.memory_space<vmem>>, vector<4x256xf32>,
    return
  }
  func.func @transform_0(%arg0: i32) -> (i32, i32) {
    %c0_i32 = arith.constant 0 : i32
    %c0_i32_0 = arith.constant 0 : i32
    %c0_i32_1 = arith.constant 0 : i32
    return %c0_i32, %c0_i32_0 : i32, i32
  }
  func.func @transform_1(%arg0: i32) -> (i32, i32) {
    %c0_i32 = arith.constant 0 : i32
    %c0_i32_0 = arith.constant 0 : i32
    %c0_i32_1 = arith.constant 0 : i32
    return %c0_i32, %c0_i32_0 : i32, i32
  }
  func.func @transform_2(%arg0: i32) -> (i32, i32) {
    %c0_i32 = arith.constant 0 : i32
    %c0_i32_0 = arith.constant 0 : i32
    %c0_i32_1 = arith.constant 0 : i32
    return %c0_i32, %c0_i32_0 : i32, i32
  }
  func.func @transform_3(%arg0: i32) -> (i32, i32) {
    %c0_i32 = arith.constant 0 : i32
    %c0_i32_0 = arith.constant 0 : i32
    %c0_i32_1 = arith.constant 0 : i32
    return %c0_i32, %c0_i32_0 : i32, i32
  }
  func.func @transform_4(%arg0: i32) -> (i32, i32) {
    %c0_i32 = arith.constant 0 : i32
    %c0_i32_0 = arith.constant 0 : i32
    %c0_i32_1 = arith.constant 0 : i32
    return %c0_i32, %c0_i32_0 : i32, i32
  }
}

module attributes {stable_mosaic.version = 11 : i64} {
  func.func @_head_kernel(%arg0: i32, %arg1: memref<2x512xf32, #tpu.memory_space<vmem>>, %arg2: memref<512x256xbf16, #tpu.memory_space<vmem>>, %arg3: memref<1x256xf32, #tpu.memory_space<vmem>>, %arg4: memref<1x256xf32, #tpu.memory_space<vmem>>, %arg5: memref<256x256xbf16, #tpu.memory_space<vmem>>, %arg6: memref<1x256xf32, #tpu.memory_space<vmem>>, %arg7: memref<1x256xf32, #tpu.memory_space<vmem>>, %arg8: memref<256x128xbf16, #tpu.memory_space<vmem>>, %arg9: memref<1x128xf32, #tpu.memory_space<vmem>>, %arg10: memref<2x128xf32, #tpu.memory_space<vmem>>) attributes {dimension_semantics = [#tpu.dimension_semantics<arbitrary>], iteration_bounds = array<i64: 1>, scalar_prefetch = 0 : i64, scratch_operands = 0 : i64, tpu.core_type = #tpu.core_type<tc>, window_params = [{pipeline_mode = #tpu.pipeline_mode<synchronous>, transform_indices = @transform_0, window_bounds = array<i64: 2, 512>}, {pipeline_mode = #tpu.pipeline_mode<synchronous>, transform_indices = @transform_1, window_bounds = array<i64: 512, 256>}, {pipeline_mode = #tpu.pipeline_mode<synchronous>, transform_indices = @transform_2, window_bounds = array<i64: 1, 256>}, {pipeline_mode = #tpu.pipeline_mode<synchronous>, transform_indices = @transform_3, window_bounds = array<i64: 1, 256>}, {pipeline_mode = #tpu.pipeline_mode<synchronous>, transform_indices = @transform_4, window_bounds = array<i64: 256, 256>}, {pipeline_mode = #tpu.pipeline_mode<synchronous>, transform_indices = @transform_5, window_bounds = array<i64: 1, 256>}, {pipeline_mode = #tpu.pipeline_mode<synchronous>, transform_indices = @transform_6, window_bounds = array<i64: 1, 256>}, {pipeline_mode = #tpu.pipeline_mode<synchronous>, transform_indices = @transform_7, window_bounds = array<i64: 256, 128>}, {pipeline_mode = #tpu.pipeline_mode<synchronous>, transform_indices = @transform_8, window_bounds = array<i64: 1, 128>}, {pipeline_mode = #tpu.pipeline_mode<synchronous>, transform_indices = @transform_9, window_bounds = array<i64: 2, 128>}]} {
    %c0 = arith.constant 0 : index
    %c0_0 = arith.constant 0 : index
    %0 = vector.load %arg1[%c0, %c0_0] : memref<2x512xf32, #tpu.memory_space<vmem>>, vector<2x512xf32>
    %c0_1 = arith.constant 0 : index
    %c0_2 = arith.constant 0 : index
    %1 = vector.load %arg2[%c0_1, %c0_2] : memref<512x256xbf16, #tpu.memory_space<vmem>>, vector<512x256xbf16>
    %2 = arith.truncf %0 : vector<2x512xf32> to vector<2x512xbf16>
    %cst = arith.constant dense<0.000000e+00> : vector<2x256xf32>
    %3 = tpu.matmul %2, %1, %cst {dimension_numbers = #tpu.dot_dimension_numbers<[1], [0], [0], [1], [0, 0, 1, 1], [], []>} : vector<2x512xbf16>, vector<512x256xbf16>, vector<2x256xf32> -> vector<2x256xf32>
    %c0_3 = arith.constant 0 : index
    %c0_4 = arith.constant 0 : index
    %4 = vector.load %arg3[%c0_3, %c0_4] : memref<1x256xf32, #tpu.memory_space<vmem>>, vector<1x256xf32>
    %c0_5 = arith.constant 0 : index
    %c0_6 = arith.constant 0 : index
    %5 = vector.load %arg4[%c0_5, %c0_6] : memref<1x256xf32, #tpu.memory_space<vmem>>, vector<1x256xf32>
    %cst_7 = arith.constant dense<0.000000e+00> : vector<256xf32>
    %6 = vector.multi_reduction <add>, %3, %cst_7 [0] : vector<2x256xf32> to vector<256xf32>
    %7 = vector.shape_cast %6 : vector<256xf32> to vector<1x256xf32>
    %cst_8 = arith.constant 2.000000e+00 : f32
    %8 = vector.broadcast %cst_8 : f32 to vector<1x256xf32>
    %9 = arith.divf %7, %8 : vector<1x256xf32>
    %10 = vector.broadcast %9 : vector<1x256xf32> to vector<2x256xf32>
    %11 = arith.subf %3, %10 : vector<2x256xf32>
    %12 = arith.mulf %11, %11 : vector<2x256xf32>
    %cst_9 = arith.constant dense<0.000000e+00> : vector<256xf32>
    %13 = vector.multi_reduction <add>, %12, %cst_9 [0] : vector<2x256xf32> to vector<256xf32>
    %14 = vector.shape_cast %13 : vector<256xf32> to vector<1x256xf32>
    %cst_10 = arith.constant 2.000000e+00 : f32
    %15 = vector.broadcast %cst_10 : f32 to vector<1x256xf32>
    %16 = arith.divf %14, %15 : vector<1x256xf32>
    %cst_11 = arith.constant 9.99999974E-6 : f32
    %17 = vector.broadcast %cst_11 : f32 to vector<1x256xf32>
    %18 = arith.addf %16, %17 : vector<1x256xf32>
    %19 = math.rsqrt %18 : vector<1x256xf32>
    %20 = arith.mulf %4, %19 : vector<1x256xf32>
    %21 = arith.mulf %9, %20 : vector<1x256xf32>
    %22 = arith.subf %5, %21 : vector<1x256xf32>
    %23 = vector.broadcast %20 : vector<1x256xf32> to vector<2x256xf32>
    %24 = arith.mulf %3, %23 : vector<2x256xf32>
    %25 = vector.broadcast %22 : vector<1x256xf32> to vector<2x256xf32>
    %26 = arith.addf %24, %25 : vector<2x256xf32>
    %27 = arith.negf %26 : vector<2x256xf32>
    %28 = math.exp %27 : vector<2x256xf32>
    %cst_12 = arith.constant 1.000000e+00 : f32
    %29 = vector.broadcast %cst_12 : f32 to vector<2x256xf32>
    %30 = arith.addf %29, %28 : vector<2x256xf32>
    %31 = arith.divf %29, %30 : vector<2x256xf32>
    %32 = arith.mulf %26, %31 : vector<2x256xf32>
    %c0_13 = arith.constant 0 : index
    %c0_14 = arith.constant 0 : index
    %33 = vector.load %arg5[%c0_13, %c0_14] : memref<256x256xbf16, #tpu.memory_space<vmem>>, vector<256x256xbf16>
    %34 = arith.truncf %32 : vector<2x256xf32> to vector<2x256xbf16>
    %cst_15 = arith.constant dense<0.000000e+00> : vector<2x256xf32>
    %35 = tpu.matmul %34, %33, %cst_15 {dimension_numbers = #tpu.dot_dimension_numbers<[1], [0], [0], [1], [0, 0, 1, 1], [], []>} : vector<2x256xbf16>, vector<256x256xbf16>, vector<2x256xf32> -> vector<2x256xf32>
    %c0_16 = arith.constant 0 : index
    %c0_17 = arith.constant 0 : index
    %36 = vector.load %arg6[%c0_16, %c0_17] : memref<1x256xf32, #tpu.memory_space<vmem>>, vector<1x256xf32>
    %c0_18 = arith.constant 0 : index
    %c0_19 = arith.constant 0 : index
    %37 = vector.load %arg7[%c0_18, %c0_19] : memref<1x256xf32, #tpu.memory_space<vmem>>, vector<1x256xf32>
    %cst_20 = arith.constant dense<0.000000e+00> : vector<256xf32>
    %38 = vector.multi_reduction <add>, %35, %cst_20 [0] : vector<2x256xf32> to vector<256xf32>
    %39 = vector.shape_cast %38 : vector<256xf32> to vector<1x256xf32>
    %cst_21 = arith.constant 2.000000e+00 : f32
    %40 = vector.broadcast %cst_21 : f32 to vector<1x256xf32>
    %41 = arith.divf %39, %40 : vector<1x256xf32>
    %42 = vector.broadcast %41 : vector<1x256xf32> to vector<2x256xf32>
    %43 = arith.subf %35, %42 : vector<2x256xf32>
    %44 = arith.mulf %43, %43 : vector<2x256xf32>
    %cst_22 = arith.constant dense<0.000000e+00> : vector<256xf32>
    %45 = vector.multi_reduction <add>, %44, %cst_22 [0] : vector<2x256xf32> to vector<256xf32>
    %46 = vector.shape_cast %45 : vector<256xf32> to vector<1x256xf32>
    %cst_23 = arith.constant 2.000000e+00 : f32
    %47 = vector.broadcast %cst_23 : f32 to vector<1x256xf32>
    %48 = arith.divf %46, %47 : vector<1x256xf32>
    %cst_24 = arith.constant 9.99999974E-6 : f32
    %49 = vector.broadcast %cst_24 : f32 to vector<1x256xf32>
    %50 = arith.addf %48, %49 : vector<1x256xf32>
    %51 = math.rsqrt %50 : vector<1x256xf32>
    %52 = arith.mulf %36, %51 : vector<1x256xf32>
    %53 = arith.mulf %41, %52 : vector<1x256xf32>
    %54 = arith.subf %37, %53 : vector<1x256xf32>
    %55 = vector.broadcast %52 : vector<1x256xf32> to vector<2x256xf32>
    %56 = arith.mulf %35, %55 : vector<2x256xf32>
    %57 = vector.broadcast %54 : vector<1x256xf32> to vector<2x256xf32>
    %58 = arith.addf %56, %57 : vector<2x256xf32>
    %59 = arith.negf %58 : vector<2x256xf32>
    %60 = math.exp %59 : vector<2x256xf32>
    %cst_25 = arith.constant 1.000000e+00 : f32
    %61 = vector.broadcast %cst_25 : f32 to vector<2x256xf32>
    %62 = arith.addf %61, %60 : vector<2x256xf32>
    %63 = arith.divf %61, %62 : vector<2x256xf32>
    %64 = arith.mulf %58, %63 : vector<2x256xf32>
    %c0_26 = arith.constant 0 : index
    %c0_27 = arith.constant 0 : index
    %65 = vector.load %arg8[%c0_26, %c0_27] : memref<256x128xbf16, #tpu.memory_space<vmem>>, vector<256x128xbf16>
    %66 = arith.truncf %64 : vector<2x256xf32> to vector<2x256xbf16>
    %cst_28 = arith.constant dense<0.000000e+00> : vector<2x128xf32>
    %67 = tpu.matmul %66, %65, %cst_28 {dimension_numbers = #tpu.dot_dimension_numbers<[1], [0], [0], [1], [0, 0, 1, 1], [], []>} : vector<2x256xbf16>, vector<256x128xbf16>, vector<2x128xf32> -> vector<2x128xf32>
    %c0_29 = arith.constant 0 : index
    %c0_30 = arith.constant 0 : index
    %68 = vector.load %arg9[%c0_29, %c0_30] : memref<1x128xf32, #tpu.memory_space<vmem>>, vector<1x128xf32>
    %69 = vector.broadcast %68 : vector<1x128xf32> to vector<2x128xf32>
    %70 = arith.addf %67, %69 : vector<2x128xf32>
    %c0_31 = arith.constant 0 : index
    %c0_32 = arith.constant 0 : index
    %71 = vector.load %arg10[%c0_31, %c0_32] : memref<2x128xf32, #tpu.memory_space<vmem>>, vector<2x128xf32>
    tpu.vector_store %arg10[%c0_31, %c0_32], %70 {strides = array<i32>} : memref<2x128xf32, #tpu.memory_space<vmem>>, vector<2x128xf32>,
    return
  }
  func.func @transform_0(%arg0: i32) -> (i32, i32) {
    %c0_i32 = arith.constant 0 : i32
    %c0_i32_0 = arith.constant 0 : i32
    %c0_i32_1 = arith.constant 0 : i32
    return %c0_i32, %c0_i32_0 : i32, i32
  }
  func.func @transform_1(%arg0: i32) -> (i32, i32) {
    %c0_i32 = arith.constant 0 : i32
    %c0_i32_0 = arith.constant 0 : i32
    %c0_i32_1 = arith.constant 0 : i32
    return %c0_i32, %c0_i32_0 : i32, i32
  }
  func.func @transform_2(%arg0: i32) -> (i32, i32) {
    %c0_i32 = arith.constant 0 : i32
    %c0_i32_0 = arith.constant 0 : i32
    %c0_i32_1 = arith.constant 0 : i32
    return %c0_i32, %c0_i32_0 : i32, i32
  }
  func.func @transform_3(%arg0: i32) -> (i32, i32) {
    %c0_i32 = arith.constant 0 : i32
    %c0_i32_0 = arith.constant 0 : i32
    %c0_i32_1 = arith.constant 0 : i32
    return %c0_i32, %c0_i32_0 : i32, i32
  }
  func.func @transform_4(%arg0: i32) -> (i32, i32) {
    %c0_i32 = arith.constant 0 : i32
    %c0_i32_0 = arith.constant 0 : i32
    %c0_i32_1 = arith.constant 0 : i32
    return %c0_i32, %c0_i32_0 : i32, i32
  }
  func.func @transform_5(%arg0: i32) -> (i32, i32) {
    %c0_i32 = arith.constant 0 : i32
    %c0_i32_0 = arith.constant 0 : i32
    %c0_i32_1 = arith.constant 0 : i32
    return %c0_i32, %c0_i32_0 : i32, i32
  }
  func.func @transform_6(%arg0: i32) -> (i32, i32) {
    %c0_i32 = arith.constant 0 : i32
    %c0_i32_0 = arith.constant 0 : i32
    %c0_i32_1 = arith.constant 0 : i32
    return %c0_i32, %c0_i32_0 : i32, i32
  }
  func.func @transform_7(%arg0: i32) -> (i32, i32) {
    %c0_i32 = arith.constant 0 : i32
    %c0_i32_0 = arith.constant 0 : i32
    %c0_i32_1 = arith.constant 0 : i32
    return %c0_i32, %c0_i32_0 : i32, i32
  }
  func.func @transform_8(%arg0: i32) -> (i32, i32) {
    %c0_i32 = arith.constant 0 : i32
    %c0_i32_0 = arith.constant 0 : i32
    %c0_i32_1 = arith.constant 0 : i32
    return %c0_i32, %c0_i32_0 : i32, i32
  }
  func.func @transform_9(%arg0: i32) -> (i32, i32) {
    %c0_i32 = arith.constant 0 : i32
    %c0_i32_0 = arith.constant 0 : i32
    %c0_i32_1 = arith.constant 0 : i32
    return %c0_i32, %c0_i32_0 : i32, i32
  }
}

</mosaic_0001>

<bundles_post_ra>
// kernel: _lambda_.6
= control target key start
LH: loop header
LB: loop body
LE: loop exit
PB: predicated region body
PF: predicated region fallthrough
CT: control target
= control target key end

     0   :  { %vm666_vm0 = vcmask 1043456   ;;  %vm667_vm1 = vcmask 1044480   ;;  %vm473_vm2 = vcmask 72704   ;;  %v4337_v1 = vmov 65535   ;;  %s7723_s1 = inlined_call_operand.vmem [shape: bf16[9,16], index: 1, kind: input, shape index: {}]   ;;  %s7724_s0 = inlined_call_operand.vmem [shape: bf16[1024,9], index: 0, kind: input, shape index: {}]   ;;  %s7725_s2 = inlined_call_operand.vmem [shape: f32[1,16], index: 2, kind: input, shape index: {}]   ;;  %s7726_s3 = inlined_call_operand.vmem [shape: f32[1,16], index: 3, kind: input, shape index: {}]   ;;  %s7727_s4 = inlined_call_operand.vmem [shape: f32[1024,16], index: 4, kind: output, shape index: {}]  }
   0x1   :  { %v3758_v0 = vld [vmem:[%s7723_s1] sm:$0x1f]   ;;  %v668_v2 = vsel %vm666_vm0, 4294967295, %v4337_v1  ;;  %v3760_v6 = vld [vmem:[%s7724_s0 + $0x8] sm:$0xff]   ;;  %v3761_v7 = vld [vmem:[%s7724_s0 + $0x10] sm:$0xff]   ;;  %vm1220_vm3 = vcmask 130048  }
   0x2   :  { %v3759_v3 = vld [vmem:[%s7724_s0] sm:$0xff]   ;;  %v669_v4 = vsel %vm667_vm1, %v668_v2, 0  ;;  %v3762_v8 = vld [vmem:[%s7724_s0 + $0x18] sm:$0xff]   ;;  %v3764_v10 = vld [vmem:[%s7724_s0 + $0x28] sm:$0xff]  }
   0x3   :  { %v671_v5 = vand.u32 %v3758_v0, %v669_v4  ;;  %3627 = vmatprep.mubr.msk.bf16.mxu0 %vm473_vm2, %v3759_v3  ;;  %v3763_v9 = vld [vmem:[%s7724_s0 + $0x20] sm:$0xff]   ;;  %v3765_v11 = vld [vmem:[%s7724_s0 + $0x30] sm:$0xff]   ;;  %v3766_v12 = vld [vmem:[%s7724_s0 + $0x38] sm:$0xff]  }
   0x4   :  { %v3767_v13 = vld [vmem:[%s7724_s0 + $0x40] sm:$0xff]   ;;  %v3792_v15 = vld [vmem:[%s7724_s0 + $0x108] sm:$0xff]   ;;  %v3793_v16 = vld [vmem:[%s7724_s0 + $0x110] sm:$0xff]  }
   0x5   :  { %3625 = vmatprep.subr.bf16.mxu0 %v671_v5  ;;  %3755 = vmatprep.subr.bf16.mxu1 %v671_v5  ;;  %v3791_v14 = vld [vmem:[%s7724_s0 + $0x100] sm:$0xff]   ;;  %v3768_v17 = vld [vmem:[%s7724_s0 + $0x48] sm:$0xff]   ;;  %v3769_v18 = vld [vmem:[%s7724_s0 + $0x50] sm:$0xff]  }
   0x6   :  { %3626 = vmatpush3.bf16.msra.mxu0 %v671_v5  ;;  %3756 = vmatpush3.bf16.msra.mxu1 %v671_v5  ;;  %v3794_v19 = vld [vmem:[%s7724_s0 + $0x118] sm:$0xff]   ;;  %v3795_v20 = vld [vmem:[%s7724_s0 + $0x120] sm:$0xff]   ;;  %v3796_v23 = vld [vmem:[%s7724_s0 + $0x128] sm:$0xff]  }
   0x7   :  { %3691 = vmatprep.mubr.msk.bf16.mxu1 %vm473_vm2, %v3791_v14  ;;  %v3770_v21 = vld [vmem:[%s7724_s0 + $0x58] sm:$0xff]   ;;  %v3771_v22 = vld [vmem:[%s7724_s0 + $0x60] sm:$0xff]   ;;  %v3797_v24 = vld [vmem:[%s7724_s0 + $0x130] sm:$0xff]  }
   0x8   :  { %v3772_v25 = vld [vmem:[%s7724_s0 + $0x68] sm:$0xff]   ;;  %v3773_v26 = vld [vmem:[%s7724_s0 + $0x70] sm:$0xff]   ;;  %v3798_v27 = vld [vmem:[%s7724_s0 + $0x138] sm:$0xff]  }
   0x9   :  { %3628 = vmatmul.mubr.msk.bf16.vlgmr.msra.gmra.mrb[0].mxu0 %vm473_vm2, %v3760_v6  ;;  %3692 = vmatmul.mubr.msk.bf16.vlgmr.msra.gmra.mrb[0].mxu1 %vm473_vm2, %v3792_v15  ;;  %v3799_v28 = vld [vmem:[%s7724_s0 + $0x140] sm:$0xff]   ;;  %v3774_v29 = vld [vmem:[%s7724_s0 + $0x78] sm:$0xff]   ;;  %v3800_v31 = vld [vmem:[%s7724_s0 + $0x148] sm:$0xff]  }
   0xa   :  { %3631 = vmatprep.mubr.msk.bf16.mxu0 %vm473_vm2, %v3761_v7  ;;  %3695 = vmatprep.mubr.msk.bf16.mxu1 %vm473_vm2, %v3793_v16  ;;  %v3775_v30 = vld [vmem:[%s7724_s0 + $0x80] sm:$0xff]   ;;  %v3801_v32 = vld [vmem:[%s7724_s0 + $0x150] sm:$0xff]   ;;  %v3776_v33 = vld [vmem:[%s7724_s0 + $0x88] sm:$0xff]  }
   0xb   :  { %v3777_v34 = vld [vmem:[%s7724_s0 + $0x90] sm:$0xff]   ;;  %v3802_v35 = vld [vmem:[%s7724_s0 + $0x158] sm:$0xff]   ;;  %v3803_v36 = vld [vmem:[%s7724_s0 + $0x160] sm:$0xff]  }
   0xc   :  { %v3778_v37 = vld [vmem:[%s7724_s0 + $0x98] sm:$0xff]   ;;  %v3779_v38 = vld [vmem:[%s7724_s0 + $0xa0] sm:$0xff]   ;;  %v3804_v39 = vld [vmem:[%s7724_s0 + $0x168] sm:$0xff]  }
   0xd   :  { %v3805_v40 = vld [vmem:[%s7724_s0 + $0x170] sm:$0xff]   ;;  %v3780_v41 = vld [vmem:[%s7724_s0 + $0xa8] sm:$0xff]   ;;  %v3806_v43 = vld [vmem:[%s7724_s0 + $0x178] sm:$0xff]  }
   0xe   :  { %v3781_v42 = vld [vmem:[%s7724_s0 + $0xb0] sm:$0xff]   ;;  %v3807_v44 = vld [vmem:[%s7724_s0 + $0x180] sm:$0xff]   ;;  %v3782_v45 = vld [vmem:[%s7724_s0 + $0xb8] sm:$0xff]  }
   0xf   :  { %v3783_v46 = vld [vmem:[%s7724_s0 + $0xc0] sm:$0xff]   ;;  %v3808_v47 = vld [vmem:[%s7724_s0 + $0x188] sm:$0xff]   ;;  %v3809_v48 = vld [vmem:[%s7724_s0 + $0x190] sm:$0xff]  }
  0x10   :  { %v3784_v49 = vld [vmem:[%s7724_s0 + $0xc8] sm:$0xff]   ;;  %v3785_v50 = vld [vmem:[%s7724_s0 + $0xd0] sm:$0xff]   ;;  %v3810_v51 = vld [vmem:[%s7724_s0 + $0x198] sm:$0xff]  }
  0x11   :  { %3632 = vmatmul.mubr.msk.bf16.gmra.mrb[4].mxu0 %vm473_vm2, %v3762_v8  ;;  %3696 = vmatmul.mubr.msk.bf16.gmra.mrb[4].mxu1 %vm473_vm2, %v3794_v19  ;;  %v3811_v52 = vld [vmem:[%s7724_s0 + $0x1a0] sm:$0xff]   ;;  %v3786_v53 = vld [vmem:[%s7724_s0 + $0xd8] sm:$0xff]   ;;  %v3812_v55 = vld [vmem:[%s7724_s0 + $0x1a8] sm:$0xff]  }
  0x12   :  { %3635 = vmatprep.mubr.msk.bf16.mxu0 %vm473_vm2, %v3763_v9  ;;  %3699 = vmatprep.mubr.msk.bf16.mxu1 %vm473_vm2, %v3795_v20  ;;  %v3787_v54 = vld [vmem:[%s7724_s0 + $0xe0] sm:$0xff]   ;;  %v3813_v56 = vld [vmem:[%s7724_s0 + $0x1b0] sm:$0xff]   ;;  %v3788_v57 = vld [vmem:[%s7724_s0 + $0xe8] sm:$0xff]  }
  0x13   :  { %v3789_v58 = vld [vmem:[%s7724_s0 + $0xf0] sm:$0xff]   ;;  %v3814_v59 = vld [vmem:[%s7724_s0 + $0x1b8] sm:$0xff]   ;;  %v3815_v60 = vld [vmem:[%s7724_s0 + $0x1c0] sm:$0xff]  }
  0x14   :  { %v3790_v61 = vld [vmem:[%s7724_s0 + $0xf8] sm:$0xff]   ;;  %v3816_v62 = vld [vmem:[%s7724_s0 + $0x1c8] sm:$0xff]   ;;  %v3817_v63 = vld [vmem:[%s7724_s0 + $0x1d0] sm:$0xff]  }
  0x15   :  { %v3818_v0 = vld [vmem:[%s7724_s0 + $0x1d8] sm:$0xff]   ;;  %v3819_v1 = vld [vmem:[%s7724_s0 + $0x1e0] sm:$0xff]   ;;  %v3820_v2 = vld [vmem:[%s7724_s0 + $0x1e8] sm:$0xff]  }
  0x16   :  { %v3821_v3 = vld [vmem:[%s7724_s0 + $0x1f0] sm:$0xff]   ;;  %v3822_v4 = vld [vmem:[%s7724_s0 + $0x1f8] sm:$0xff]  }
  0x19   :  { %3636 = vmatmul.mubr.msk.bf16.gmra.mrb[8].mxu0 %vm473_vm2, %v3764_v10  ;;  %3700 = vmatmul.mubr.msk.bf16.gmra.mrb[8].mxu1 %vm473_vm2, %v3796_v23 }
  0x1a   :  { %3639 = vmatprep.mubr.msk.bf16.mxu0 %vm473_vm2, %v3765_v11  ;;  %3703 = vmatprep.mubr.msk.bf16.mxu1 %vm473_vm2, %v3797_v24 }
  0x21   :  { %3640 = vmatmul.mubr.msk.bf16.gmra.mrb[12].mxu0 %vm473_vm2, %v3766_v12  ;;  %3704 = vmatmul.mubr.msk.bf16.gmra.mrb[12].mxu1 %vm473_vm2, %v3798_v27 }
  0x22   :  { %3643 = vmatprep.mubr.msk.bf16.mxu0 %vm473_vm2, %v3767_v13  ;;  %3707 = vmatprep.mubr.msk.bf16.mxu1 %vm473_vm2, %v3799_v28 }
  0x29   :  { %3644 = vmatmul.mubr.msk.bf16.gmra.mrb[16].mxu0 %vm473_vm2, %v3768_v17  ;;  %3708 = vmatmul.mubr.msk.bf16.gmra.mrb[16].mxu1 %vm473_vm2, %v3800_v31 }
  0x2a   :  { %3647 = vmatprep.mubr.msk.bf16.mxu0 %vm473_vm2, %v3769_v18  ;;  %3711 = vmatprep.mubr.msk.bf16.mxu1 %vm473_vm2, %v3801_v32 }
  0x31   :  { %3648 = vmatmul.mubr.msk.bf16.gmra.mrb[20].mxu0 %vm473_vm2, %v3770_v21  ;;  %3712 = vmatmul.mubr.msk.bf16.gmra.mrb[20].mxu1 %vm473_vm2, %v3802_v35 }
  0x32   :  { %3651 = vmatprep.mubr.msk.bf16.mxu0 %vm473_vm2, %v3771_v22  ;;  %3715 = vmatprep.mubr.msk.bf16.mxu1 %vm473_vm2, %v3803_v36 }
  0x39   :  { %3652 = vmatmul.mubr.msk.bf16.gmra.mrb[24].mxu0 %vm473_vm2, %v3772_v25  ;;  %3716 = vmatmul.mubr.msk.bf16.gmra.mrb[24].mxu1 %vm473_vm2, %v3804_v39 }
  0x3a   :  { %3655 = vmatprep.mubr.msk.bf16.mxu0 %vm473_vm2, %v3773_v26  ;;  %3719 = vmatprep.mubr.msk.bf16.mxu1 %vm473_vm2, %v3805_v40 }
  0x41   :  { %3656 = vmatmul.mubr.msk.bf16.gmra.mrb[28].mxu0 %vm473_vm2, %v3774_v29  ;;  %3720 = vmatmul.mubr.msk.bf16.gmra.mrb[28].mxu1 %vm473_vm2, %v3806_v43 }
  0x42   :  { %3659 = vmatprep.mubr.msk.bf16.mxu0 %vm473_vm2, %v3775_v30  ;;  %3723 = vmatprep.mubr.msk.bf16.mxu1 %vm473_vm2, %v3807_v44 }
  0x49   :  { %3660 = vmatmul.mubr.msk.bf16.gmra.mrb[32].mxu0 %vm473_vm2, %v3776_v33  ;;  %3724 = vmatmul.mubr.msk.bf16.gmra.mrb[32].mxu1 %vm473_vm2, %v3808_v47 }
  0x4a   :  { %3663 = vmatprep.mubr.msk.bf16.mxu0 %vm473_vm2, %v3777_v34  ;;  %3727 = vmatprep.mubr.msk.bf16.mxu1 %vm473_vm2, %v3809_v48 }
  0x51   :  { %3664 = vmatmul.mubr.msk.bf16.gmra.mrb[36].mxu0 %vm473_vm2, %v3778_v37  ;;  %3728 = vmatmul.mubr.msk.bf16.gmra.mrb[36].mxu1 %vm473_vm2, %v3810_v51 }
  0x52   :  { %3667 = vmatprep.mubr.msk.bf16.mxu0 %vm473_vm2, %v3779_v38  ;;  %3731 = vmatprep.mubr.msk.bf16.mxu1 %vm473_vm2, %v3811_v52 }
  0x59   :  { %3668 = vmatmul.mubr.msk.bf16.gmra.mrb[40].mxu0 %vm473_vm2, %v3780_v41  ;;  %3732 = vmatmul.mubr.msk.bf16.gmra.mrb[40].mxu1 %vm473_vm2, %v3812_v55 }
  0x5a   :  { %3671 = vmatprep.mubr.msk.bf16.mxu0 %vm473_vm2, %v3781_v42  ;;  %3735 = vmatprep.mubr.msk.bf16.mxu1 %vm473_vm2, %v3813_v56 }
  0x61   :  { %3672 = vmatmul.mubr.msk.bf16.gmra.mrb[44].mxu0 %vm473_vm2, %v3782_v45  ;;  %3736 = vmatmul.mubr.msk.bf16.gmra.mrb[44].mxu1 %vm473_vm2, %v3814_v59 }
  0x62   :  { %3675 = vmatprep.mubr.msk.bf16.mxu0 %vm473_vm2, %v3783_v46  ;;  %3739 = vmatprep.mubr.msk.bf16.mxu1 %vm473_vm2, %v3815_v60 }
  0x69   :  { %3676 = vmatmul.mubr.msk.bf16.gmra.mrb[48].mxu0 %vm473_vm2, %v3784_v49  ;;  %3740 = vmatmul.mubr.msk.bf16.gmra.mrb[48].mxu1 %vm473_vm2, %v3816_v62 }
  0x6a   :  { %3679 = vmatprep.mubr.msk.bf16.mxu0 %vm473_vm2, %v3785_v50  ;;  %3743 = vmatprep.mubr.msk.bf16.mxu1 %vm473_vm2, %v3817_v63 }
  0x71   :  { %3680 = vmatmul.mubr.msk.bf16.gmra.mrb[52].mxu0 %vm473_vm2, %v3786_v53  ;;  %3744 = vmatmul.mubr.msk.bf16.gmra.mrb[52].mxu1 %vm473_vm2, %v3818_v0 }
  0x72   :  { %3683 = vmatprep.mubr.msk.bf16.mxu0 %vm473_vm2, %v3787_v54  ;;  %3747 = vmatprep.mubr.msk.bf16.mxu1 %vm473_vm2, %v3819_v1 }
  0x79   :  { %3684 = vmatmul.mubr.msk.bf16.gmra.mrb[56].mxu0 %vm473_vm2, %v3788_v57  ;;  %3748 = vmatmul.mubr.msk.bf16.gmra.mrb[56].mxu1 %vm473_vm2, %v3820_v2 }
  0x7a   :  { %3687 = vmatprep.mubr.msk.bf16.mxu0 %vm473_vm2, %v3789_v58  ;;  %3751 = vmatprep.mubr.msk.bf16.mxu1 %vm473_vm2, %v3821_v3 }
  0x81   :  { %3688 = vmatmul.mubr.msk.bf16.gmra.mrb[60].mxu0 %vm473_vm2, %v3790_v61  ;;  %3752 = vmatmul.mubr.msk.bf16.gmra.mrb[60].mxu1 %vm473_vm2, %v3822_v4 }
  0xdc   :  { %v4622_v5 = vpop.f32.mrb[0].mxu0  ;;  %v4680_v46 = vpop.f32.mrb[0].mxu1 }
  0xdd   :  { %8035 = vst [vmem:[#allocation2_spill] sm:$0xff] %v4622_v5  ;;  %v4624_v6 = vpop.f32.mrb[1].mxu0  ;;  %v1224_v12 = vsel %vm1220_vm3, %v4622_v5, 0.0  ;;  %8051 = vst [vmem:[#allocation18_spill] sm:$0xff] %v4680_v46  ;;  %v4684_v48 = vpop.f32.mrb[1].mxu1 }
  0xde   :  { %8036 = vst [vmem:[#allocation3_spill] sm:$0xff] %v4624_v6  ;;  %v4626_v7 = vpop.f32.mrb[2].mxu0  ;;  %v1221_v9 = vsel %vm1220_vm3, %v4624_v6, 0.0  ;;  %8052 = vst [vmem:[#allocation19_spill] sm:$0xff] %v4684_v48  ;;  %v4686_v50 = vpop.f32.mrb[2].mxu1 }
  0xdf   :  { %8037 = vst [vmem:[#allocation4_spill] sm:$0xff] %v4626_v7  ;;  %v4628_v8 = vpop.f32.mrb[3].mxu0  ;;  %v1226_v14 = vsel %vm1220_vm3, %v4626_v7, 0.0  ;;  %8053 = vst [vmem:[#allocation20_spill] sm:$0xff] %v4686_v50  ;;  %v4690_v52 = vpop.f32.mrb[3].mxu1 }
  0xe0   :  { %8038 = vst [vmem:[#allocation5_spill] sm:$0xff] %v4628_v8  ;;  %v1222_v10 = vsel %vm1220_vm3, %v4628_v8, 0.0  ;;  %8054 = vst [vmem:[#allocation21_spill] sm:$0xff] %v4690_v52 }
  0xe1   :  { %v1223_v11 = vadd.f32 %v1222_v10, %v1221_v9 }
  0xe3   :  { %v1225_v13 = vadd.f32 %v1224_v12, %v1223_v11 }
  0xe4   :  { %v4638_v15 = vpop.f32.mrb[4].mxu0  ;;  %v4704_v62 = vpop.f32.mrb[4].mxu1 }
  0xe5   :  { %8039 = vst [vmem:[#allocation6_spill] sm:$0xff] %v4638_v15  ;;  %v1227_v16 = vadd.f32 %v1226_v14, %v1225_v13  ;;  %v4640_v17 = vpop.f32.mrb[5].mxu0  ;;  %v1232_v24 = vsel %vm1220_vm3, %v4638_v15, 0.0  ;;  %8059 = vst [vmem:[#allocation26_spill] sm:$0xff] %v4704_v62  ;;  %v4708_v0 = vpop.f32.mrb[5].mxu1 }
  0xe6   :  { %8040 = vst [vmem:[#allocation7_spill] sm:$0xff] %v4640_v17  ;;  %v1228_v18 = vsel %vm1220_vm3, %v4640_v17, 0.0  ;;  %v4644_v19 = vpop.f32.mrb[6].mxu0  ;;  %8060 = vst [vmem:[#allocation27_spill] sm:$0xff] %v4708_v0  ;;  %v4710_v2 = vpop.f32.mrb[6].mxu1 }
  0xe7   :  { %8041 = vst [vmem:[#allocation8_spill] sm:$0xff] %v4644_v19  ;;  %v1229_v20 = vadd.f32 %v1228_v18, %v1227_v16  ;;  %v4646_v21 = vpop.f32.mrb[7].mxu0  ;;  %v1234_v26 = vsel %vm1220_vm3, %v4644_v19, 0.0  ;;  %8061 = vst [vmem:[#allocation28_spill] sm:$0xff] %v4710_v2  ;;  %v4714_v4 = vpop.f32.mrb[7].mxu1 }
  0xe8   :  { %8042 = vst [vmem:[#allocation9_spill] sm:$0xff] %v4646_v21  ;;  %v1230_v22 = vsel %vm1220_vm3, %v4646_v21, 0.0  ;;  %8062 = vst [vmem:[#allocation29_spill] sm:$0xff] %v4714_v4 }
  0xe9   :  { %v1231_v23 = vadd.f32 %v1230_v22, %v1229_v20 }
  0xeb   :  { %v1233_v25 = vadd.f32 %v1232_v24, %v1231_v23 }
  0xec   :  { %v4654_v27 = vpop.f32.mrb[8].mxu0  ;;  %v4728_v22 = vpop.f32.mrb[8].mxu1 }
  0xed   :  { %8043 = vst [vmem:[#allocation10_spill] sm:$0xff] %v4654_v27  ;;  %v4656_v28 = vpop.f32.mrb[9].mxu0  ;;  %v1235_v29 = vadd.f32 %v1234_v26, %v1233_v25  ;;  %v1240_v36 = vsel %vm1220_vm3, %v4654_v27, 0.0  ;;  %8067 = vst [vmem:[#allocation34_spill] sm:$0xff] %v4728_v22  ;;  %v4732_v24 = vpop.f32.mrb[9].mxu1 }
  0xee   :  { %8044 = vst [vmem:[#allocation11_spill] sm:$0xff] %v4656_v28  ;;  %v1236_v30 = vsel %vm1220_vm3, %v4656_v28, 0.0  ;;  %v4660_v31 = vpop.f32.mrb[10].mxu0  ;;  %8068 = vst [vmem:[#allocation35_spill] sm:$0xff] %v4732_v24  ;;  %v4734_v26 = vpop.f32.mrb[10].mxu1 }
  0xef   :  { %8045 = vst [vmem:[#allocation12_spill] sm:$0xff] %v4660_v31  ;;  %v1237_v32 = vadd.f32 %v1236_v30, %v1235_v29  ;;  %v4662_v33 = vpop.f32.mrb[11].mxu0  ;;  %v1242_v38 = vsel %vm1220_vm3, %v4660_v31, 0.0  ;;  %8069 = vst [vmem:[#allocation36_spill] sm:$0xff] %v4734_v26  ;;  %v4738_v30 = vpop.f32.mrb[11].mxu1 }
  0xf0   :  { %8046 = vst [vmem:[#allocation13_spill] sm:$0xff] %v4662_v33  ;;  %v1238_v34 = vsel %vm1220_vm3, %v4662_v33, 0.0  ;;  %8070 = vst [vmem:[#allocation37_spill] sm:$0xff] %v4738_v30 }
  0xf1   :  { %v1239_v35 = vadd.f32 %v1238_v34, %v1237_v32 }
  0xf3   :  { %v1241_v37 = vadd.f32 %v1240_v36, %v1239_v35 }
  0xf4   :  { %v4670_v39 = vpop.f32.mrb[12].mxu0 }
  0xf5   :  { %8047 = vst [vmem:[#allocation14_spill] sm:$0xff] %v4670_v39  ;;  %v4672_v40 = vpop.f32.mrb[13].mxu0  ;;  %v1243_v41 = vadd.f32 %v1242_v38, %v1241_v37  ;;  %v1248_v51 = vsel %vm1220_vm3, %v4670_v39, 0.0 }
  0xf6   :  { %8048 = vst [vmem:[#allocation15_spill] sm:$0xff] %v4672_v40  ;;  %v1244_v42 = vsel %vm1220_vm3, %v4672_v40, 0.0  ;;  %v4676_v43 = vpop.f32.mrb[14].mxu0 }
  0xf7   :  { %8049 = vst [vmem:[#allocation16_spill] sm:$0xff] %v4676_v43  ;;  %v1245_v44 = vadd.f32 %v1244_v42, %v1243_v41  ;;  %v4678_v45 = vpop.f32.mrb[15].mxu0  ;;  %v1250_v54 = vsel %vm1220_vm3, %v4676_v43, 0.0 }
  0xf8   :  { %8050 = vst [vmem:[#allocation17_spill] sm:$0xff] %v4678_v45  ;;  %v1246_v47 = vsel %vm1220_vm3, %v4678_v45, 0.0 }
  0xf9   :  { %v1247_v49 = vadd.f32 %v1246_v47, %v1245_v44  ;;  %v4752_v47 = vpop.f32.mrb[12].mxu1 }
  0xfb   :  { %v1249_v53 = vadd.f32 %v1248_v51, %v1247_v49  ;;  %v4756_v51 = vpop.f32.mrb[13].mxu1 }
  0xfc   :  { %v4694_v55 = vpop.f32.mrb[16].mxu0 }
  0xfd   :  { %8055 = vst [vmem:[#allocation22_spill] sm:$0xff] %v4694_v55  ;;  %v4696_v56 = vpop.f32.mrb[17].mxu0  ;;  %v1251_v57 = vadd.f32 %v1250_v54, %v1249_v53  ;;  %v1256_v3 = vsel %vm1220_vm3, %v4694_v55, 0.0  ;;  %v4758_v54 = vpop.f32.mrb[14].mxu1 }
  0xfe   :  { %8056 = vst [vmem:[#allocation23_spill] sm:$0xff] %v4696_v56  ;;  %v1252_v58 = vsel %vm1220_vm3, %v4696_v56, 0.0  ;;  %v4700_v59 = vpop.f32.mrb[18].mxu0 }
  0xff   :  { %8057 = vst [vmem:[#allocation24_spill] sm:$0xff] %v4700_v59  ;;  %v1253_v60 = vadd.f32 %v1252_v58, %v1251_v57  ;;  %v4702_v61 = vpop.f32.mrb[19].mxu0  ;;  %v1258_v10 = vsel %vm1220_vm3, %v4700_v59, 0.0  ;;  %v4762_v58 = vpop.f32.mrb[15].mxu1 }
 0x100   :  { %8058 = vst [vmem:[#allocation25_spill] sm:$0xff] %v4702_v61  ;;  %v1254_v63 = vsel %vm1220_vm3, %v4702_v61, 0.0 }
 0x101   :  { %v1255_v1 = vadd.f32 %v1254_v63, %v1253_v60 }
 0x103   :  { %v1257_v9 = vadd.f32 %v1256_v3, %v1255_v1 }
 0x104   :  { %v4718_v11 = vpop.f32.mrb[20].mxu0 }
 0x105   :  { %8063 = vst [vmem:[#allocation30_spill] sm:$0xff] %v4718_v11  ;;  %v4720_v12 = vpop.f32.mrb[21].mxu0  ;;  %v1259_v13 = vadd.f32 %v1258_v10, %v1257_v9  ;;  %v1264_v29 = vsel %vm1220_vm3, %v4718_v11, 0.0 }
 0x106   :  { %8064 = vst [vmem:[#allocation31_spill] sm:$0xff] %v4720_v12  ;;  %v1260_v14 = vsel %vm1220_vm3, %v4720_v12, 0.0  ;;  %v4724_v16 = vpop.f32.mrb[22].mxu0 }
 0x107   :  { %8065 = vst [vmem:[#allocation32_spill] sm:$0xff] %v4724_v16  ;;  %v1261_v18 = vadd.f32 %v1260_v14, %v1259_v13  ;;  %v4726_v20 = vpop.f32.mrb[23].mxu0  ;;  %v1266_v34 = vsel %vm1220_vm3, %v4724_v16, 0.0 }
 0x108   :  { %8066 = vst [vmem:[#allocation33_spill] sm:$0xff] %v4726_v20  ;;  %v1262_v23 = vsel %vm1220_vm3, %v4726_v20, 0.0 }
 0x109   :  { %v1263_v25 = vadd.f32 %v1262_v23, %v1261_v18  ;;  %v4776_v23 = vpop.f32.mrb[16].mxu1 }
 0x10b   :  { %v1265_v32 = vadd.f32 %v1264_v29, %v1263_v25  ;;  %v4780_v29 = vpop.f32.mrb[17].mxu1 }
 0x10c   :  { %v4742_v35 = vpop.f32.mrb[24].mxu0 }
 0x10d   :  { %8071 = vst [vmem:[#allocation38_spill] sm:$0xff] %v4742_v35  ;;  %v4744_v36 = vpop.f32.mrb[25].mxu0  ;;  %v1267_v37 = vadd.f32 %v1266_v34, %v1265_v32  ;;  %v1272_v57 = vsel %vm1220_vm3, %v4742_v35, 0.0  ;;  %v4782_v34 = vpop.f32.mrb[18].mxu1 }
 0x10e   :  { %8072 = vst [vmem:[#allocation39_spill] sm:$0xff] %v4744_v36  ;;  %v1268_v38 = vsel %vm1220_vm3, %v4744_v36, 0.0  ;;  %v4748_v41 = vpop.f32.mrb[26].mxu0 }
 0x10f   :  { %8073 = vst [vmem:[#allocation40_spill] sm:$0xff] %v4748_v41  ;;  %v1269_v42 = vadd.f32 %v1268_v38, %v1267_v37  ;;  %v4750_v44 = vpop.f32.mrb[27].mxu0  ;;  %v1274_v63 = vsel %vm1220_vm3, %v4748_v41, 0.0  ;;  %v4786_v38 = vpop.f32.mrb[19].mxu1 }
 0x110   :  { %8074 = vst [vmem:[#allocation41_spill] sm:$0xff] %v4750_v44  ;;  %v1270_v49 = vsel %vm1220_vm3, %v4750_v44, 0.0 }
 0x111   :  { %v1271_v53 = vadd.f32 %v1270_v49, %v1269_v42 }
 0x113   :  { %v1273_v60 = vadd.f32 %v1272_v57, %v1271_v53 }
 0x114   :  { %v4766_v1 = vpop.f32.mrb[28].mxu0 }
 0x115   :  { %8075 = vst [vmem:[#allocation42_spill] sm:$0xff] %v4766_v1  ;;  %v4768_v3 = vpop.f32.mrb[29].mxu0  ;;  %v1275_v9 = vadd.f32 %v1274_v63, %v1273_v60  ;;  %v1280_v37 = vsel %vm1220_vm3, %v4766_v1, 0.0 }
 0x116   :  { %8076 = vst [vmem:[#allocation43_spill] sm:$0xff] %v4768_v3  ;;  %v1276_v10 = vsel %vm1220_vm3, %v4768_v3, 0.0  ;;  %v4772_v13 = vpop.f32.mrb[30].mxu0 }
 0x117   :  { %8077 = vst [vmem:[#allocation44_spill] sm:$0xff] %v4772_v13  ;;  %v1277_v14 = vadd.f32 %v1276_v10, %v1275_v9  ;;  %v4774_v18 = vpop.f32.mrb[31].mxu0  ;;  %v1282_v49 = vsel %vm1220_vm3, %v4772_v13, 0.0 }
 0x118   :  { %8078 = vst [vmem:[#allocation45_spill] sm:$0xff] %v4774_v18  ;;  %v1278_v25 = vsel %vm1220_vm3, %v4774_v18, 0.0 }
 0x119   :  { %v1279_v32 = vadd.f32 %v1278_v25, %v1277_v14  ;;  %v4800_v25 = vpop.f32.mrb[20].mxu1 }
 0x11b   :  { %v1281_v42 = vadd.f32 %v1280_v37, %v1279_v32  ;;  %v4804_v37 = vpop.f32.mrb[21].mxu1 }
 0x11c   :  { %v4790_v53 = vpop.f32.mrb[32].mxu0  ;;  %v4806_v1 = vpop.f32.mrb[22].mxu1 }
 0x11d   :  { %8079 = vst [vmem:[#allocation46_spill] sm:$0xff] %v4790_v53  ;;  %v4792_v57 = vpop.f32.mrb[33].mxu0  ;;  %v1283_v60 = vadd.f32 %v1282_v49, %v1281_v42  ;;  %v1288_v42 = vsel %vm1220_vm3, %v4790_v53, 0.0  ;;  %v4810_v49 = vpop.f32.mrb[23].mxu1 }
 0x11e   :  { %8080 = vst [vmem:[#allocation47_spill] sm:$0xff] %v4792_v57  ;;  %v1284_v63 = vsel %vm1220_vm3, %v4792_v57, 0.0  ;;  %v4796_v9 = vpop.f32.mrb[34].mxu0  ;;  %v4824_v53 = vpop.f32.mrb[24].mxu1 }
 0x11f   :  { %8081 = vst [vmem:[#allocation48_spill] sm:$0xff] %v4796_v9  ;;  %v1285_v10 = vadd.f32 %v1284_v63, %v1283_v60  ;;  %v4798_v14 = vpop.f32.mrb[35].mxu0  ;;  %v1290_v60 = vsel %vm1220_vm3, %v4796_v9, 0.0 }
 0x120   :  { %8082 = vst [vmem:[#allocation49_spill] sm:$0xff] %v4798_v14  ;;  %v1286_v32 = vsel %vm1220_vm3, %v4798_v14, 0.0 }
 0x121   :  { %v1287_v13 = vadd.f32 %v1286_v32, %v1285_v10 }
 0x123   :  { %v1289_v57 = vadd.f32 %v1288_v42, %v1287_v13  ;;  %v4828_v42 = vpop.f32.mrb[25].mxu1 }
 0x124   :  { %v4814_v63 = vpop.f32.mrb[36].mxu0  ;;  %v4830_v35 = vpop.f32.mrb[26].mxu1 }
 0x125   :  { %8083 = vst [vmem:[#allocation50_spill] sm:$0xff] %v4814_v63  ;;  %v4816_v18 = vpop.f32.mrb[37].mxu0  ;;  %v1291_v3 = vadd.f32 %v1290_v60, %v1289_v57  ;;  %v1296_v57 = vsel %vm1220_vm3, %v4814_v63, 0.0  ;;  %v4834_v60 = vpop.f32.mrb[27].mxu1 }
 0x126   :  { %8084 = vst [vmem:[#allocation51_spill] sm:$0xff] %v4816_v18  ;;  %v1292_v14 = vsel %vm1220_vm3, %v4816_v18, 0.0  ;;  %v4820_v10 = vpop.f32.mrb[38].mxu0  ;;  %v4848_v63 = vpop.f32.mrb[28].mxu1 }
 0x127   :  { %8085 = vst [vmem:[#allocation52_spill] sm:$0xff] %v4820_v10  ;;  %v1293_v32 = vadd.f32 %v1292_v14, %v1291_v3  ;;  %v4822_v41 = vpop.f32.mrb[39].mxu0  ;;  %v1298_v3 = vsel %vm1220_vm3, %v4820_v10, 0.0 }
 0x128   :  { %8086 = vst [vmem:[#allocation53_spill] sm:$0xff] %v4822_v41  ;;  %v1294_v13 = vsel %vm1220_vm3, %v4822_v41, 0.0 }
 0x129   :  { %v1295_v9 = vadd.f32 %v1294_v13, %v1293_v32 }
 0x12b   :  { %v1297_v18 = vadd.f32 %v1296_v57, %v1295_v9  ;;  %v4852_v57 = vpop.f32.mrb[29].mxu1 }
 0x12c   :  { %v4838_v14 = vpop.f32.mrb[40].mxu0  ;;  %v4854_v11 = vpop.f32.mrb[30].mxu1 }
 0x12d   :  { %8087 = vst [vmem:[#allocation54_spill] sm:$0xff] %v4838_v14  ;;  %v4840_v44 = vpop.f32.mrb[41].mxu0  ;;  %v1299_v36 = vadd.f32 %v1298_v3, %v1297_v18  ;;  %v1304_v18 = vsel %vm1220_vm3, %v4838_v14, 0.0  ;;  %v4858_v3 = vpop.f32.mrb[31].mxu1 }
 0x12e   :  { %8088 = vst [vmem:[#allocation55_spill] sm:$0xff] %v4840_v44  ;;  %v1300_v41 = vsel %vm1220_vm3, %v4840_v44, 0.0  ;;  %v4844_v32 = vpop.f32.mrb[42].mxu0  ;;  %v4872_v14 = vpop.f32.mrb[32].mxu1 }
 0x12f   :  { %8089 = vst [vmem:[#allocation56_spill] sm:$0xff] %v4844_v32  ;;  %v1301_v13 = vadd.f32 %v1300_v41, %v1299_v36  ;;  %v4846_v16 = vpop.f32.mrb[43].mxu0  ;;  %v1306_v36 = vsel %vm1220_vm3, %v4844_v32, 0.0 }
 0x130   :  { %8090 = vst [vmem:[#allocation57_spill] sm:$0xff] %v4846_v16  ;;  %v1302_v9 = vsel %vm1220_vm3, %v4846_v16, 0.0 }
 0x131   :  { %v1303_v10 = vadd.f32 %v1302_v9, %v1301_v13 }
 0x133   :  { %v1305_v44 = vadd.f32 %v1304_v18, %v1303_v10  ;;  %v4876_v18 = vpop.f32.mrb[33].mxu1 }
 0x134   :  { %v4862_v41 = vpop.f32.mrb[44].mxu0  ;;  %v4878_v55 = vpop.f32.mrb[34].mxu1 }
 0x135   :  { %8091 = vst [vmem:[#allocation58_spill] sm:$0xff] %v4862_v41  ;;  %v4864_v20 = vpop.f32.mrb[45].mxu0  ;;  %v1307_v12 = vadd.f32 %v1306_v36, %v1305_v44  ;;  %v1312_v44 = vsel %vm1220_vm3, %v4862_v41, 0.0  ;;  %v4882_v36 = vpop.f32.mrb[35].mxu1 }
 0x136   :  { %8092 = vst [vmem:[#allocation59_spill] sm:$0xff] %v4864_v20  ;;  %v1308_v16 = vsel %vm1220_vm3, %v4864_v20, 0.0  ;;  %v4868_v13 = vpop.f32.mrb[46].mxu0  ;;  %v4896_v41 = vpop.f32.mrb[36].mxu1 }
 0x137   :  { %8093 = vst [vmem:[#allocation60_spill] sm:$0xff] %v4868_v13  ;;  %v1309_v9 = vadd.f32 %v1308_v16, %v1307_v12  ;;  %v4870_v59 = vpop.f32.mrb[47].mxu0  ;;  %v1314_v12 = vsel %vm1220_vm3, %v4868_v13, 0.0 }
 0x138   :  { %8094 = vst [vmem:[#allocation61_spill] sm:$0xff] %v4870_v59  ;;  %v1310_v10 = vsel %vm1220_vm3, %v4870_v59, 0.0 }
 0x139   :  { %v1311_v32 = vadd.f32 %v1310_v10, %v1309_v9 }
 0x13b   :  { %v1313_v20 = vadd.f32 %v1312_v44, %v1311_v32  ;;  %v4900_v44 = vpop.f32.mrb[37].mxu1 }
 0x13c   :  { %v4886_v16 = vpop.f32.mrb[48].mxu0  ;;  %v4902_v39 = vpop.f32.mrb[38].mxu1 }
 0x13d   :  { %8095 = vst [vmem:[#allocation62_spill] sm:$0xff] %v4886_v16  ;;  %v4888_v61 = vpop.f32.mrb[49].mxu0  ;;  %v1315_v56 = vadd.f32 %v1314_v12, %v1313_v20  ;;  %v1320_v20 = vsel %vm1220_vm3, %v4886_v16, 0.0  ;;  %v4906_v12 = vpop.f32.mrb[39].mxu1 }
 0x13e   :  { %8096 = vst [vmem:[#allocation63_spill] sm:$0xff] %v4888_v61  ;;  %v1316_v59 = vsel %vm1220_vm3, %v4888_v61, 0.0  ;;  %v4892_v9 = vpop.f32.mrb[50].mxu0  ;;  %v4920_v16 = vpop.f32.mrb[40].mxu1 }
 0x13f   :  { %8097 = vst [vmem:[#allocation64_spill] sm:$0xff] %v4892_v9  ;;  %v1317_v10 = vadd.f32 %v1316_v59, %v1315_v56  ;;  %v4894_v43 = vpop.f32.mrb[51].mxu0  ;;  %v1322_v56 = vsel %vm1220_vm3, %v4892_v9, 0.0 }
 0x140   :  { %8098 = vst [vmem:[#allocation65_spill] sm:$0xff] %v4894_v43  ;;  %v1318_v32 = vsel %vm1220_vm3, %v4894_v43, 0.0 }
 0x141   :  { %v1319_v13 = vadd.f32 %v1318_v32, %v1317_v10 }
 0x143   :  { %v1321_v61 = vadd.f32 %v1320_v20, %v1319_v13  ;;  %v4924_v20 = vpop.f32.mrb[41].mxu1 }
 0x144   :  { %v4910_v59 = vpop.f32.mrb[52].mxu0  ;;  %v4926_v27 = vpop.f32.mrb[42].mxu1 }
 0x145   :  { %8099 = vst [vmem:[#allocation66_spill] sm:$0xff] %v4910_v59  ;;  %v4912_v45 = vpop.f32.mrb[53].mxu0  ;;  %v1323_v40 = vadd.f32 %v1322_v56, %v1321_v61  ;;  %v1328_v61 = vsel %vm1220_vm3, %v4910_v59, 0.0  ;;  %v4930_v56 = vpop.f32.mrb[43].mxu1 }
 0x146   :  { %8100 = vst [vmem:[#allocation67_spill] sm:$0xff] %v4912_v45  ;;  %v1324_v43 = vsel %vm1220_vm3, %v4912_v45, 0.0  ;;  %v4916_v10 = vpop.f32.mrb[54].mxu0  ;;  %v4944_v59 = vpop.f32.mrb[44].mxu1 }
 0x147   :  { %8101 = vst [vmem:[#allocation68_spill] sm:$0xff] %v4916_v10  ;;  %v1325_v32 = vadd.f32 %v1324_v43, %v1323_v40  ;;  %v4918_v31 = vpop.f32.mrb[55].mxu0  ;;  %v1330_v40 = vsel %vm1220_vm3, %v4916_v10, 0.0 }
 0x148   :  { %8102 = vst [vmem:[#allocation69_spill] sm:$0xff] %v4918_v31  ;;  %v1326_v13 = vsel %vm1220_vm3, %v4918_v31, 0.0 }
 0x149   :  { %v1327_v9 = vadd.f32 %v1326_v13, %v1325_v32 }
 0x14b   :  { %v1329_v45 = vadd.f32 %v1328_v61, %v1327_v9  ;;  %v4948_v61 = vpop.f32.mrb[45].mxu1 }
 0x14c   :  { %v4934_v43 = vpop.f32.mrb[56].mxu0  ;;  %8107 = vst [vmem:[#allocation74_spill] sm:$0xff] %v4948_v61  ;;  %v4950_v15 = vpop.f32.mrb[46].mxu1 }
 0x14d   :  { %8103 = vst [vmem:[#allocation70_spill] sm:$0xff] %v4934_v43  ;;  %v4936_v33 = vpop.f32.mrb[57].mxu0  ;;  %v1331_v28 = vadd.f32 %v1330_v40, %v1329_v45  ;;  %8108 = vst [vmem:[#allocation75_spill] sm:$0xff] %v4950_v15  ;;  %v1336_v45 = vsel %vm1220_vm3, %v4934_v43, 0.0  ;;  %v4954_v40 = vpop.f32.mrb[47].mxu1 }
 0x14e   :  { %8104 = vst [vmem:[#allocation71_spill] sm:$0xff] %v4936_v33  ;;  %v1332_v31 = vsel %vm1220_vm3, %v4936_v33, 0.0  ;;  %v4940_v32 = vpop.f32.mrb[58].mxu0  ;;  %v4968_v43 = vpop.f32.mrb[48].mxu1 }
 0x14f   :  { %8105 = vst [vmem:[#allocation72_spill] sm:$0xff] %v4940_v32  ;;  %v1333_v13 = vadd.f32 %v1332_v31, %v1331_v28  ;;  %v4942_v19 = vpop.f32.mrb[59].mxu0  ;;  %v1338_v28 = vsel %vm1220_vm3, %v4940_v32, 0.0 }
 0x150   :  { %8106 = vst [vmem:[#allocation73_spill] sm:$0xff] %v4942_v19  ;;  %v1334_v9 = vsel %vm1220_vm3, %v4942_v19, 0.0 }
 0x151   :  { %v1335_v10 = vadd.f32 %v1334_v9, %v1333_v13 }
 0x153   :  { %v1337_v33 = vadd.f32 %v1336_v45, %v1335_v10  ;;  %v4972_v45 = vpop.f32.mrb[49].mxu1 }
 0x154   :  { %v4958_v31 = vpop.f32.mrb[60].mxu0  ;;  %v4974_v5 = vpop.f32.mrb[50].mxu1 }
 0x155   :  { %8109 = vst [vmem:[#allocation76_spill] sm:$0xff] %v4958_v31  ;;  %v4960_v21 = vpop.f32.mrb[61].mxu0  ;;  %v1339_v17 = vadd.f32 %v1338_v28, %v1337_v33  ;;  %8113 = vst [vmem:[#allocation80_spill] sm:$0xff] %v4974_v5  ;;  %v1344_v33 = vsel %vm1220_vm3, %v4958_v31, 0.0  ;;  %v4978_v28 = vpop.f32.mrb[51].mxu1 }
 0x156   :  { %8110 = vst [vmem:[#allocation77_spill] sm:$0xff] %v4960_v21  ;;  %v1340_v19 = vsel %vm1220_vm3, %v4960_v21, 0.0  ;;  %v4964_v13 = vpop.f32.mrb[62].mxu0 }
 0x157   :  { %8111 = vst [vmem:[#allocation78_spill] sm:$0xff] %v4964_v13  ;;  %v1341_v9 = vadd.f32 %v1340_v19, %v1339_v17  ;;  %v4966_v7 = vpop.f32.mrb[63].mxu0  ;;  %v1346_v17 = vsel %vm1220_vm3, %v4964_v13, 0.0  ;;  %v1348_v19 = vsel %vm1220_vm3, %v4684_v48, 0.0 }
 0x158   :  { %8112 = vst [vmem:[#allocation79_spill] sm:$0xff] %v4966_v7  ;;  %v1342_v10 = vsel %vm1220_vm3, %v4966_v7, 0.0  ;;  %v4984_v7 = vpop.f32.mrb[52].mxu1 }
 0x159   :  { %v1343_v32 = vadd.f32 %v1342_v10, %v1341_v9  ;;  %8114 = vst [vmem:[#allocation81_spill] sm:$0xff] %v4984_v7  ;;  %v1350_v9 = vsel %vm1220_vm3, %v4690_v52, 0.0  ;;  %v4988_v10 = vpop.f32.mrb[53].mxu1 }
 0x15a   :  { %8115 = vst [vmem:[#allocation82_spill] sm:$0xff] %v4988_v10  ;;  %v4990_v31 = vpop.f32.mrb[54].mxu1 }
 0x15b   :  { %v1345_v21 = vadd.f32 %v1344_v33, %v1343_v32  ;;  %8116 = vst [vmem:[#allocation83_spill] sm:$0xff] %v4990_v31  ;;  %v1352_v32 = vsel %vm1220_vm3, %v4680_v46, 0.0  ;;  %v4994_v33 = vpop.f32.mrb[55].mxu1 }
 0x15c   :  { %8117 = vst [vmem:[#allocation84_spill] sm:$0xff] %v4994_v33  ;;  %v5000_v52 = vpop.f32.mrb[56].mxu1 }
 0x15d   :  { %v1347_v8 = vadd.f32 %v1346_v17, %v1345_v21  ;;  %v1354_v21 = vsel %vm1220_vm3, %v4686_v50, 0.0  ;;  %8118 = vst [vmem:[#allocation85_spill] sm:$0xff] %v5000_v52 }
 0x15f   :  { %v1349_v6 = vadd.f32 %v1348_v19, %v1347_v8  ;;  %v1356_v8 = vsel %vm1220_vm3, %v4708_v0, 0.0 }
 0x161   :  { %v1351_v5 = vadd.f32 %v1350_v9, %v1349_v6  ;;  %v1358_v6 = vsel %vm1220_vm3, %v4714_v4, 0.0  ;;  %v5004_v9 = vpop.f32.mrb[57].mxu1 }
 0x162   :  { %8119 = vst [vmem:[#allocation86_spill] sm:$0xff] %v5004_v9  ;;  %v5006_v46 = vpop.f32.mrb[58].mxu1 }
 0x163   :  { %v1353_v13 = vadd.f32 %v1352_v32, %v1351_v5  ;;  %8120 = vst [vmem:[#allocation87_spill] sm:$0xff] %v5006_v46  ;;  %v1360_v5 = vsel %vm1220_vm3, %v4704_v62, 0.0  ;;  %v5010_v32 = vpop.f32.mrb[59].mxu1 }
 0x164   :  { %8121 = vst [vmem:[#allocation88_spill] sm:$0xff] %v5010_v32  ;;  %v5016_v4 = vpop.f32.mrb[60].mxu1 }
 0x165   :  { %v1355_v17 = vadd.f32 %v1354_v21, %v1353_v13  ;;  %v1362_v13 = vsel %vm1220_vm3, %v4710_v2, 0.0  ;;  %v1364_v21 = vsel %vm1220_vm3, %v4732_v24, 0.0  ;;  %8122 = vst [vmem:[#allocation89_spill] sm:$0xff] %v5016_v4 }
 0x167   :  { %v1357_v19 = vadd.f32 %v1356_v8, %v1355_v17 }
 0x169   :  { %v1359_v48 = vadd.f32 %v1358_v6, %v1357_v19  ;;  %v1366_v19 = vsel %vm1220_vm3, %v4738_v30, 0.0  ;;  %v5020_v6 = vpop.f32.mrb[61].mxu1  ;;  %v1374_v30 = vsel %vm1220_vm3, %v4762_v58, 0.0 }
 0x16a   :  { %8123 = vst [vmem:[#allocation90_spill] sm:$0xff] %v5020_v6  ;;  %v5022_v62 = vpop.f32.mrb[62].mxu1 }
 0x16b   :  { %v1361_v50 = vadd.f32 %v1360_v5, %v1359_v48  ;;  %8124 = vst [vmem:[#allocation91_spill] sm:$0xff] %v5022_v62  ;;  %v1368_v48 = vsel %vm1220_vm3, %v4728_v22, 0.0  ;;  %v5026_v5 = vpop.f32.mrb[63].mxu1  ;;  %v1378_v22 = vsel %vm1220_vm3, %v4758_v54, 0.0 }
 0x16c   :  { %8125 = vst [vmem:[#allocation92_spill] sm:$0xff] %v5026_v5 }
 0x16d   :  { %v1363_v8 = vadd.f32 %v1362_v13, %v1361_v50  ;;  %v1370_v50 = vsel %vm1220_vm3, %v4734_v26, 0.0  ;;  %v1372_v13 = vsel %vm1220_vm3, %v4756_v51, 0.0 }
 0x16f   :  { %v1365_v17 = vadd.f32 %v1364_v21, %v1363_v8 }
 0x171   :  { %v1367_v0 = vadd.f32 %v1366_v19, %v1365_v17  ;;  %v1376_v19 = vsel %vm1220_vm3, %v4752_v47, 0.0 }
 0x173   :  { %v1369_v2 = vadd.f32 %v1368_v48, %v1367_v0  ;;  %v1380_v0 = vsel %vm1220_vm3, %v4780_v29, 0.0 }
 0x175   :  { %v1371_v21 = vadd.f32 %v1370_v50, %v1369_v2  ;;  %v1382_v2 = vsel %vm1220_vm3, %v4786_v38, 0.0 }
 0x177   :  { %v1373_v8 = vadd.f32 %v1372_v13, %v1371_v21  ;;  %v1384_v13 = vsel %vm1220_vm3, %v4776_v23, 0.0  ;;  %v1386_v21 = vsel %vm1220_vm3, %v4782_v34, 0.0 }
 0x179   :  { %v1375_v17 = vadd.f32 %v1374_v30, %v1373_v8  ;;  %v1388_v8 = vsel %vm1220_vm3, %v4804_v37, 0.0 }
 0x17b   :  { %v1377_v24 = vadd.f32 %v1376_v19, %v1375_v17 }
 0x17d   :  { %v1379_v48 = vadd.f32 %v1378_v22, %v1377_v24  ;;  %v1390_v22 = vsel %vm1220_vm3, %v4810_v49, 0.0 }
 0x17f   :  { %v1381_v26 = vadd.f32 %v1380_v0, %v1379_v48  ;;  %v1392_v0 = vsel %vm1220_vm3, %v4800_v25, 0.0  ;;  %v1394_v48 = vsel %vm1220_vm3, %v4806_v1, 0.0 }
 0x181   :  { %v1383_v50 = vadd.f32 %v1382_v2, %v1381_v26  ;;  %v1396_v2 = vsel %vm1220_vm3, %v4828_v42, 0.0 }
 0x183   :  { %v1385_v30 = vadd.f32 %v1384_v13, %v1383_v50 }
 0x185   :  { %v1387_v17 = vadd.f32 %v1386_v21, %v1385_v30  ;;  %v1398_v30 = vsel %vm1220_vm3, %v4834_v60, 0.0 }
 0x187   :  { %v1389_v19 = vadd.f32 %v1388_v8, %v1387_v17  ;;  %v1400_v8 = vsel %vm1220_vm3, %v4824_v53, 0.0 }
 0x189   :  { %v1391_v24 = vadd.f32 %v1390_v22, %v1389_v19  ;;  %v1402_v19 = vsel %vm1220_vm3, %v4830_v35, 0.0  ;;  %v1404_v22 = vsel %vm1220_vm3, %v4852_v57, 0.0 }
 0x18b   :  { %v1393_v26 = vadd.f32 %v1392_v0, %v1391_v24 }
 0x18d   :  { %v1395_v50 = vadd.f32 %v1394_v48, %v1393_v26  ;;  %v1406_v26 = vsel %vm1220_vm3, %v4858_v3, 0.0 }
 0x18f   :  { %v1397_v13 = vadd.f32 %v1396_v2, %v1395_v50  ;;  %v1408_v2 = vsel %vm1220_vm3, %v4848_v63, 0.0 }
 0x191   :  { %v1399_v21 = vadd.f32 %v1398_v30, %v1397_v13  ;;  %v1410_v13 = vsel %vm1220_vm3, %v4854_v11, 0.0  ;;  %v1412_v30 = vsel %vm1220_vm3, %v4876_v18, 0.0 }
 0x193   :  { %v1401_v17 = vadd.f32 %v1400_v8, %v1399_v21 }
 0x195   :  { %v1403_v24 = vadd.f32 %v1402_v19, %v1401_v17  ;;  %v1414_v17 = vsel %vm1220_vm3, %v4882_v36, 0.0 }
 0x197   :  { %v1405_v0 = vadd.f32 %v1404_v22, %v1403_v24  ;;  %v1416_v22 = vsel %vm1220_vm3, %v4872_v14, 0.0 }
 0x199   :  { %v1407_v48 = vadd.f32 %v1406_v26, %v1405_v0  ;;  %v1418_v0 = vsel %vm1220_vm3, %v4878_v55, 0.0  ;;  %v1420_v26 = vsel %vm1220_vm3, %v4900_v44, 0.0 }
 0x19b   :  { %v1409_v50 = vadd.f32 %v1408_v2, %v1407_v48 }
 0x19d   :  { %v1411_v21 = vadd.f32 %v1410_v13, %v1409_v50  ;;  %v1422_v50 = vsel %vm1220_vm3, %v4906_v12, 0.0 }
 0x19f   :  { %v1413_v8 = vadd.f32 %v1412_v30, %v1411_v21  ;;  %v1424_v30 = vsel %vm1220_vm3, %v4896_v41, 0.0 }
 0x1a1   :  { %v1415_v19 = vadd.f32 %v1414_v17, %v1413_v8  ;;  %v1426_v8 = vsel %vm1220_vm3, %v4902_v39, 0.0  ;;  %v1428_v17 = vsel %vm1220_vm3, %v4924_v20, 0.0 }
 0x1a3   :  { %v1417_v24 = vadd.f32 %v1416_v22, %v1415_v19 }
 0x1a5   :  { %v1419_v48 = vadd.f32 %v1418_v0, %v1417_v24  ;;  %v1430_v24 = vsel %vm1220_vm3, %v4930_v56, 0.0 }
 0x1a7   :  { %v1421_v2 = vadd.f32 %v1420_v26, %v1419_v48  ;;  %v1432_v26 = vsel %vm1220_vm3, %v4920_v16, 0.0 }
 0x1a9   :  { %v1423_v13 = vadd.f32 %v1422_v50, %v1421_v2  ;;  %v1434_v2 = vsel %vm1220_vm3, %v4926_v27, 0.0  ;;  %v1436_v50 = vsel %vm1220_vm3, %v4948_v61, 0.0 }
 0x1ab   :  { %v1425_v21 = vadd.f32 %v1424_v30, %v1423_v13 }
 0x1ad   :  { %v1427_v19 = vadd.f32 %v1426_v8, %v1425_v21  ;;  %v1438_v21 = vsel %vm1220_vm3, %v4954_v40, 0.0 }
 0x1af   :  { %v1429_v22 = vadd.f32 %v1428_v17, %v1427_v19  ;;  %v1440_v17 = vsel %vm1220_vm3, %v4944_v59, 0.0 }
 0x1b1   :  { %v1431_v0 = vadd.f32 %v1430_v24, %v1429_v22  ;;  %v1442_v22 = vsel %vm1220_vm3, %v4950_v15, 0.0  ;;  %v1444_v24 = vsel %vm1220_vm3, %v4972_v45, 0.0 }
 0x1b3   :  { %v1433_v48 = vadd.f32 %v1432_v26, %v1431_v0 }
 0x1b5   :  { %v1435_v13 = vadd.f32 %v1434_v2, %v1433_v48  ;;  %v1446_v48 = vsel %vm1220_vm3, %v4978_v28, 0.0 }
 0x1b7   :  { %v1437_v30 = vadd.f32 %v1436_v50, %v1435_v13  ;;  %v1448_v50 = vsel %vm1220_vm3, %v4968_v43, 0.0 }
 0x1b9   :  { %v1439_v8 = vadd.f32 %v1438_v21, %v1437_v30  ;;  %v8126_v30 = vld [vmem:[#allocation80_spill] sm:$0xff] }
 0x1ba   :  { %v1450_v21 = vsel %vm1220_vm3, %v8126_v30, 0.0 }
 0x1bb   :  { %v1441_v19 = vadd.f32 %v1440_v17, %v1439_v8  ;;  %v1452_v8 = vsel %vm1220_vm3, %v4988_v10, 0.0 }
 0x1bd   :  { %v1443_v0 = vadd.f32 %v1442_v22, %v1441_v19  ;;  %v1454_v19 = vsel %vm1220_vm3, %v4994_v33, 0.0 }
 0x1bf   :  { %v1445_v26 = vadd.f32 %v1444_v24, %v1443_v0  ;;  %v1456_v24 = vsel %vm1220_vm3, %v4984_v7, 0.0 }
 0x1c1   :  { %v1447_v2 = vadd.f32 %v1446_v48, %v1445_v26  ;;  %v1458_v26 = vsel %vm1220_vm3, %v4990_v31, 0.0  ;;  %v1460_v48 = vsel %vm1220_vm3, %v5004_v9, 0.0 }
 0x1c3   :  { %v1449_v13 = vadd.f32 %v1448_v50, %v1447_v2 }
 0x1c5   :  { %v1451_v17 = vadd.f32 %v1450_v21, %v1449_v13  ;;  %v1462_v13 = vsel %vm1220_vm3, %v5010_v32, 0.0 }
 0x1c7   :  { %v1453_v15 = vadd.f32 %v1452_v8, %v1451_v17  ;;  %v1464_v8 = vsel %vm1220_vm3, %v5000_v52, 0.0  ;;  %v1466_v17 = vsel %vm1220_vm3, %v5006_v46, 0.0 }
 0x1c9   :  { %v1455_v22 = vadd.f32 %v1454_v19, %v1453_v15  ;;  %v1468_v19 = vsel %vm1220_vm3, %v5020_v6, 0.0 }
 0x1cb   :  { %v1457_v0 = vadd.f32 %v1456_v24, %v1455_v22 }
 0x1cd   :  { %v1459_v2 = vadd.f32 %v1458_v26, %v1457_v0  ;;  %v1470_v0 = vsel %vm1220_vm3, %v5026_v5, 0.0 }
 0x1cf   :  { %v1461_v50 = vadd.f32 %v1460_v48, %v1459_v2  ;;  %v1472_v48 = vsel %vm1220_vm3, %v5016_v4, 0.0 }
 0x1d1   :  { %v1463_v21 = vadd.f32 %v1462_v13, %v1461_v50  ;;  %v1474_v50 = vsel %vm1220_vm3, %v5022_v62, 0.0 }
 0x1d3   :  { %v1465_v15 = vadd.f32 %v1464_v8, %v1463_v21 }
 0x1d5   :  { %v1467_v22 = vadd.f32 %v1466_v17, %v1465_v15  ;;  %v8127_v17 = vld [vmem:[#allocation3_spill] sm:$0xff] }
 0x1d7   :  { %v1469_v24 = vadd.f32 %v1468_v19, %v1467_v22  ;;  %v8128_v22 = vld [vmem:[#allocation5_spill] sm:$0xff] }
 0x1d9   :  { %v1471_v26 = vadd.f32 %v1470_v0, %v1469_v24  ;;  %v8129_v0 = vld [vmem:[#allocation2_spill] sm:$0xff] }
 0x1db   :  { %v1473_v2 = vadd.f32 %v1472_v48, %v1471_v26  ;;  %v8130_v48 = vld [vmem:[#allocation4_spill] sm:$0xff] }
 0x1dd   :  { %v1475_v13 = vadd.f32 %v1474_v50, %v1473_v2 }
 0x1df   :  { %v1476_v21 = vrot.slane %v1475_v13, 4 }
 0x1e1   :  { %v1477_v8 = vadd.f32 %v1476_v21, %v1475_v13 }
 0x1e3   :  { %v1478_v46 = vrot.slane %v1477_v8, 2 }
 0x1e5   :  { %v1479_v52 = vadd.f32 %v1478_v46, %v1477_v8  ;;  %v8131_v46 = vld [vmem:[#allocation7_spill] sm:$0xff] }
 0x1e7   :  { %v1480_v32 = vrot.slane %v1479_v52, 1 }
 0x1e9   :  { %v1481_v6 = vadd.f32 %v1480_v32, %v1479_v52  ;;  %v8132_v32 = vld [vmem:[#allocation9_spill] sm:$0xff] }
 0x1eb   :  { %v5134_v15 = vmul.f32 0.0009765625, %v1481_v6 }
 0x1ed   :  { %v1484_v19 = vsub.f32 %v8127_v17, %v5134_v15  ;;  %v1485_v24 = vsub.f32 %v8128_v22, %v5134_v15  ;;  %v1486_v26 = vsub.f32 %v8129_v0, %v5134_v15  ;;  %v1487_v2 = vsub.f32 %v8130_v48, %v5134_v15  ;;  %v8133_v0 = vld [vmem:[#allocation6_spill] sm:$0xff]  ;;  %v8134_v48 = vld [vmem:[#allocation8_spill] sm:$0xff] }
 0x1ee   :  { %v1488_v21 = vsub.f32 %v8131_v46, %v5134_v15  ;;  %v1489_v6 = vsub.f32 %v8132_v32, %v5134_v15  ;;  %v1490_v4 = vsub.f32 %v8133_v0, %v5134_v15  ;;  %v1491_v46 = vsub.f32 %v8134_v48, %v5134_v15 }
 0x1ef   :  { %v1612_v50 = vmul.f32 %v1484_v19, %v1484_v19  ;;  %v1613_v13 = vmul.f32 %v1485_v24, %v1485_v24  ;;  %v1614_v52 = vmul.f32 %v1486_v26, %v1486_v26  ;;  %v1615_v8 = vmul.f32 %v1487_v2, %v1487_v2  ;;  %v8135_v2 = vld [vmem:[#allocation11_spill] sm:$0xff] }
 0x1f0   :  { %v1616_v5 = vmul.f32 %v1488_v21, %v1488_v21  ;;  %v1617_v26 = vmul.f32 %v1489_v6, %v1489_v6  ;;  %v1618_v31 = vmul.f32 %v1490_v4, %v1490_v4  ;;  %v1619_v0 = vmul.f32 %v1491_v46, %v1491_v46 }
 0x1f1   :  { %v1740_v17 = vsel %vm1220_vm3, %v1612_v50, 0.0  ;;  %v1741_v22 = vsel %vm1220_vm3, %v1613_v13, 0.0  ;;  %v1743_v19 = vsel %vm1220_vm3, %v1614_v52, 0.0  ;;  %v1745_v9 = vsel %vm1220_vm3, %v1615_v8, 0.0  ;;  %v8136_v13 = vld [vmem:[#allocation13_spill] sm:$0xff] }
 0x1f2   :  { %v1742_v62 = vadd.f32 %v1741_v22, %v1740_v17  ;;  %v1492_v50 = vsub.f32 %v8135_v2, %v5134_v15  ;;  %v1747_v17 = vsel %vm1220_vm3, %v1616_v5, 0.0  ;;  %v1493_v21 = vsub.f32 %v8136_v13, %v5134_v15 }
 0x1f3   :  { %v1753_v5 = vsel %vm1220_vm3, %v1619_v0, 0.0 }
 0x1f4   :  { %v1744_v24 = vadd.f32 %v1743_v19, %v1742_v62  ;;  %v1749_v62 = vsel %vm1220_vm3, %v1617_v26, 0.0  ;;  %v8137_v19 = vld [vmem:[#allocation10_spill] sm:$0xff]  ;;  %v1620_v48 = vmul.f32 %v1492_v50, %v1492_v50  ;;  %v1621_v2 = vmul.f32 %v1493_v21, %v1493_v21 }
 0x1f5   :  { %v1494_v6 = vsub.f32 %v8137_v19, %v5134_v15 }
 0x1f6   :  { %v1746_v32 = vadd.f32 %v1745_v9, %v1744_v24  ;;  %v1751_v9 = vsel %vm1220_vm3, %v1618_v31, 0.0  ;;  %v8138_v24 = vld [vmem:[#allocation12_spill] sm:$0xff]  ;;  %v1755_v26 = vsel %vm1220_vm3, %v1620_v48, 0.0  ;;  %v1757_v31 = vsel %vm1220_vm3, %v1621_v2, 0.0 }
 0x1f7   :  { %v1495_v4 = vsub.f32 %v8138_v24, %v5134_v15  ;;  %v1622_v13 = vmul.f32 %v1494_v6, %v1494_v6 }
 0x1f8   :  { %v1748_v22 = vadd.f32 %v1747_v17, %v1746_v32  ;;  %v8139_v17 = vld [vmem:[#allocation15_spill] sm:$0xff] }
 0x1f9   :  { %v1496_v46 = vsub.f32 %v8139_v17, %v5134_v15  ;;  %v1623_v19 = vmul.f32 %v1495_v4, %v1495_v4  ;;  %v1759_v0 = vsel %vm1220_vm3, %v1622_v13, 0.0 }
 0x1fa   :  { %v1750_v52 = vadd.f32 %v1749_v62, %v1748_v22  ;;  %v8140_v62 = vld [vmem:[#allocation17_spill] sm:$0xff] }
 0x1fb   :  { %v1497_v50 = vsub.f32 %v8140_v62, %v5134_v15  ;;  %v1624_v24 = vmul.f32 %v1496_v46, %v1496_v46  ;;  %v1761_v48 = vsel %vm1220_vm3, %v1623_v19, 0.0 }
 0x1fc   :  { %v1752_v8 = vadd.f32 %v1751_v9, %v1750_v52  ;;  %v8141_v9 = vld [vmem:[#allocation14_spill] sm:$0xff] }
 0x1fd   :  { %v1498_v21 = vsub.f32 %v8141_v9, %v5134_v15  ;;  %v1625_v17 = vmul.f32 %v1497_v50, %v1497_v50  ;;  %v1763_v2 = vsel %vm1220_vm3, %v1624_v24, 0.0 }
 0x1fe   :  { %v1754_v32 = vadd.f32 %v1753_v5, %v1752_v8  ;;  %v8142_v5 = vld [vmem:[#allocation16_spill] sm:$0xff] }
 0x1ff   :  { %v1499_v6 = vsub.f32 %v8142_v5, %v5134_v15  ;;  %v1626_v62 = vmul.f32 %v1498_v21, %v1498_v21  ;;  %v1765_v13 = vsel %vm1220_vm3, %v1625_v17, 0.0 }
 0x200   :  { %v1756_v22 = vadd.f32 %v1755_v26, %v1754_v32  ;;  %v8143_v26 = vld [vmem:[#allocation23_spill] sm:$0xff] }
 0x201   :  { %v1500_v4 = vsub.f32 %v8143_v26, %v5134_v15  ;;  %v1627_v9 = vmul.f32 %v1499_v6, %v1499_v6  ;;  %v1767_v19 = vsel %vm1220_vm3, %v1626_v62, 0.0 }
 0x202   :  { %v1758_v52 = vadd.f32 %v1757_v31, %v1756_v22  ;;  %v8144_v31 = vld [vmem:[#allocation25_spill] sm:$0xff] }
 0x203   :  { %v1501_v46 = vsub.f32 %v8144_v31, %v5134_v15  ;;  %v1628_v5 = vmul.f32 %v1500_v4, %v1500_v4  ;;  %v1769_v24 = vsel %vm1220_vm3, %v1627_v9, 0.0 }
 0x204   :  { %v1760_v8 = vadd.f32 %v1759_v0, %v1758_v52  ;;  %v8145_v0 = vld [vmem:[#allocation22_spill] sm:$0xff] }
 0x205   :  { %v1502_v50 = vsub.f32 %v8145_v0, %v5134_v15  ;;  %v1629_v26 = vmul.f32 %v1501_v46, %v1501_v46  ;;  %v1771_v17 = vsel %vm1220_vm3, %v1628_v5, 0.0 }
 0x206   :  { %v1762_v32 = vadd.f32 %v1761_v48, %v1760_v8  ;;  %v8146_v48 = vld [vmem:[#allocation24_spill] sm:$0xff] }
 0x207   :  { %v1503_v21 = vsub.f32 %v8146_v48, %v5134_v15  ;;  %v1630_v31 = vmul.f32 %v1502_v50, %v1502_v50  ;;  %v1773_v62 = vsel %vm1220_vm3, %v1629_v26, 0.0 }
 0x208   :  { %v1764_v22 = vadd.f32 %v1763_v2, %v1762_v32  ;;  %v8147_v2 = vld [vmem:[#allocation31_spill] sm:$0xff] }
 0x209   :  { %v1504_v6 = vsub.f32 %v8147_v2, %v5134_v15  ;;  %v1631_v0 = vmul.f32 %v1503_v21, %v1503_v21  ;;  %v1775_v9 = vsel %vm1220_vm3, %v1630_v31, 0.0 }
 0x20a   :  { %v1766_v52 = vadd.f32 %v1765_v13, %v1764_v22  ;;  %v8148_v13 = vld [vmem:[#allocation33_spill] sm:$0xff] }
 0x20b   :  { %v1505_v4 = vsub.f32 %v8148_v13, %v5134_v15  ;;  %v1632_v48 = vmul.f32 %v1504_v6, %v1504_v6  ;;  %v1777_v5 = vsel %vm1220_vm3, %v1631_v0, 0.0 }
 0x20c   :  { %v1768_v8 = vadd.f32 %v1767_v19, %v1766_v52  ;;  %v8149_v19 = vld [vmem:[#allocation30_spill] sm:$0xff] }
 0x20d   :  { %v1506_v46 = vsub.f32 %v8149_v19, %v5134_v15  ;;  %v1633_v2 = vmul.f32 %v1505_v4, %v1505_v4  ;;  %v1779_v26 = vsel %vm1220_vm3, %v1632_v48, 0.0 }
 0x20e   :  { %v1770_v32 = vadd.f32 %v1769_v24, %v1768_v8  ;;  %v8150_v24 = vld [vmem:[#allocation32_spill] sm:$0xff] }
 0x20f   :  { %v1507_v50 = vsub.f32 %v8150_v24, %v5134_v15  ;;  %v1634_v13 = vmul.f32 %v1506_v46, %v1506_v46  ;;  %v1781_v31 = vsel %vm1220_vm3, %v1633_v2, 0.0 }
 0x210   :  { %v1772_v22 = vadd.f32 %v1771_v17, %v1770_v32  ;;  %v8151_v17 = vld [vmem:[#allocation39_spill] sm:$0xff] }
 0x211   :  { %v1508_v21 = vsub.f32 %v8151_v17, %v5134_v15  ;;  %v1635_v19 = vmul.f32 %v1507_v50, %v1507_v50  ;;  %v1783_v0 = vsel %vm1220_vm3, %v1634_v13, 0.0 }
 0x212   :  { %v1774_v52 = vadd.f32 %v1773_v62, %v1772_v22  ;;  %v8152_v62 = vld [vmem:[#allocation41_spill] sm:$0xff] }
 0x213   :  { %v1509_v6 = vsub.f32 %v8152_v62, %v5134_v15  ;;  %v1636_v24 = vmul.f32 %v1508_v21, %v1508_v21  ;;  %v1785_v48 = vsel %vm1220_vm3, %v1635_v19, 0.0 }
 0x214   :  { %v1776_v8 = vadd.f32 %v1775_v9, %v1774_v52  ;;  %v8153_v9 = vld [vmem:[#allocation38_spill] sm:$0xff] }
 0x215   :  { %v1510_v4 = vsub.f32 %v8153_v9, %v5134_v15  ;;  %v1637_v17 = vmul.f32 %v1509_v6, %v1509_v6  ;;  %v1787_v2 = vsel %vm1220_vm3, %v1636_v24, 0.0 }
 0x216   :  { %v1778_v32 = vadd.f32 %v1777_v5, %v1776_v8  ;;  %v8154_v5 = vld [vmem:[#allocation40_spill] sm:$0xff] }
 0x217   :  { %v1511_v46 = vsub.f32 %v8154_v5, %v5134_v15  ;;  %v1638_v62 = vmul.f32 %v1510_v4, %v1510_v4  ;;  %v1789_v13 = vsel %vm1220_vm3, %v1637_v17, 0.0 }
 0x218   :  { %v1780_v22 = vadd.f32 %v1779_v26, %v1778_v32  ;;  %v8155_v26 = vld [vmem:[#allocation43_spill] sm:$0xff] }
 0x219   :  { %v1512_v50 = vsub.f32 %v8155_v26, %v5134_v15  ;;  %v1639_v9 = vmul.f32 %v1511_v46, %v1511_v46  ;;  %v1791_v19 = vsel %vm1220_vm3, %v1638_v62, 0.0 }
 0x21a   :  { %v1782_v52 = vadd.f32 %v1781_v31, %v1780_v22  ;;  %v8156_v31 = vld [vmem:[#allocation45_spill] sm:$0xff] }
 0x21b   :  { %v1513_v21 = vsub.f32 %v8156_v31, %v5134_v15  ;;  %v1640_v5 = vmul.f32 %v1512_v50, %v1512_v50  ;;  %v1793_v24 = vsel %vm1220_vm3, %v1639_v9, 0.0 }
 0x21c   :  { %v1784_v8 = vadd.f32 %v1783_v0, %v1782_v52  ;;  %v8157_v0 = vld [vmem:[#allocation42_spill] sm:$0xff] }
 0x21d   :  { %v1514_v6 = vsub.f32 %v8157_v0, %v5134_v15  ;;  %v1641_v26 = vmul.f32 %v1513_v21, %v1513_v21  ;;  %v1795_v17 = vsel %vm1220_vm3, %v1640_v5, 0.0 }
 0x21e   :  { %v1786_v32 = vadd.f32 %v1785_v48, %v1784_v8  ;;  %v8158_v48 = vld [vmem:[#allocation44_spill] sm:$0xff] }
 0x21f   :  { %v1515_v4 = vsub.f32 %v8158_v48, %v5134_v15  ;;  %v1642_v31 = vmul.f32 %v1514_v6, %v1514_v6  ;;  %v1797_v62 = vsel %vm1220_vm3, %v1641_v26, 0.0 }
 0x220   :  { %v1788_v22 = vadd.f32 %v1787_v2, %v1786_v32  ;;  %v8159_v2 = vld [vmem:[#allocation47_spill] sm:$0xff] }
 0x221   :  { %v1516_v46 = vsub.f32 %v8159_v2, %v5134_v15  ;;  %v1643_v0 = vmul.f32 %v1515_v4, %v1515_v4  ;;  %v1799_v9 = vsel %vm1220_vm3, %v1642_v31, 0.0 }
 0x222   :  { %v1790_v52 = vadd.f32 %v1789_v13, %v1788_v22  ;;  %v8160_v13 = vld [vmem:[#allocation49_spill] sm:$0xff] }
 0x223   :  { %v1517_v50 = vsub.f32 %v8160_v13, %v5134_v15  ;;  %v1644_v48 = vmul.f32 %v1516_v46, %v1516_v46  ;;  %v1801_v5 = vsel %vm1220_vm3, %v1643_v0, 0.0 }
 0x224   :  { %v1792_v8 = vadd.f32 %v1791_v19, %v1790_v52  ;;  %v8161_v19 = vld [vmem:[#allocation46_spill] sm:$0xff] }
 0x225   :  { %v1518_v21 = vsub.f32 %v8161_v19, %v5134_v15  ;;  %v1645_v2 = vmul.f32 %v1517_v50, %v1517_v50  ;;  %v1803_v26 = vsel %vm1220_vm3, %v1644_v48, 0.0 }
 0x226   :  { %v1794_v32 = vadd.f32 %v1793_v24, %v1792_v8  ;;  %v8162_v24 = vld [vmem:[#allocation48_spill] sm:$0xff] }
 0x227   :  { %v1519_v6 = vsub.f32 %v8162_v24, %v5134_v15  ;;  %v1646_v13 = vmul.f32 %v1518_v21, %v1518_v21  ;;  %v1805_v31 = vsel %vm1220_vm3, %v1645_v2, 0.0 }
 0x228   :  { %v1796_v22 = vadd.f32 %v1795_v17, %v1794_v32  ;;  %v8163_v17 = vld [vmem:[#allocation51_spill] sm:$0xff] }
 0x229   :  { %v1520_v4 = vsub.f32 %v8163_v17, %v5134_v15  ;;  %v1647_v19 = vmul.f32 %v1519_v6, %v1519_v6  ;;  %v1807_v0 = vsel %vm1220_vm3, %v1646_v13, 0.0 }
 0x22a   :  { %v1798_v52 = vadd.f32 %v1797_v62, %v1796_v22  ;;  %v8164_v62 = vld [vmem:[#allocation53_spill] sm:$0xff] }
 0x22b   :  { %v1521_v46 = vsub.f32 %v8164_v62, %v5134_v15  ;;  %v1648_v24 = vmul.f32 %v1520_v4, %v1520_v4  ;;  %v1809_v48 = vsel %vm1220_vm3, %v1647_v19, 0.0 }
 0x22c   :  { %v1800_v8 = vadd.f32 %v1799_v9, %v1798_v52  ;;  %v8165_v9 = vld [vmem:[#allocation50_spill] sm:$0xff] }
 0x22d   :  { %v1522_v50 = vsub.f32 %v8165_v9, %v5134_v15  ;;  %v1649_v17 = vmul.f32 %v1521_v46, %v1521_v46  ;;  %v1811_v2 = vsel %vm1220_vm3, %v1648_v24, 0.0 }
 0x22e   :  { %v1802_v32 = vadd.f32 %v1801_v5, %v1800_v8  ;;  %v8166_v5 = vld [vmem:[#allocation52_spill] sm:$0xff] }
 0x22f   :  { %v1523_v21 = vsub.f32 %v8166_v5, %v5134_v15  ;;  %v1650_v62 = vmul.f32 %v1522_v50, %v1522_v50  ;;  %v1813_v13 = vsel %vm1220_vm3, %v1649_v17, 0.0 }
 0x230   :  { %v1804_v22 = vadd.f32 %v1803_v26, %v1802_v32  ;;  %v8167_v26 = vld [vmem:[#allocation55_spill] sm:$0xff] }
 0x231   :  { %v1524_v6 = vsub.f32 %v8167_v26, %v5134_v15  ;;  %v1651_v9 = vmul.f32 %v1523_v21, %v1523_v21  ;;  %v1815_v19 = vsel %vm1220_vm3, %v1650_v62, 0.0 }
 0x232   :  { %v1806_v52 = vadd.f32 %v1805_v31, %v1804_v22  ;;  %v8168_v31 = vld [vmem:[#allocation57_spill] sm:$0xff] }
 0x233   :  { %v1525_v4 = vsub.f32 %v8168_v31, %v5134_v15  ;;  %v1652_v5 = vmul.f32 %v1524_v6, %v1524_v6  ;;  %v1817_v24 = vsel %vm1220_vm3, %v1651_v9, 0.0 }
 0x234   :  { %v1808_v8 = vadd.f32 %v1807_v0, %v1806_v52  ;;  %v8169_v0 = vld [vmem:[#allocation54_spill] sm:$0xff] }
 0x235   :  { %v1526_v46 = vsub.f32 %v8169_v0, %v5134_v15  ;;  %v1653_v26 = vmul.f32 %v1525_v4, %v1525_v4  ;;  %v1819_v17 = vsel %vm1220_vm3, %v1652_v5, 0.0 }
 0x236   :  { %v1810_v32 = vadd.f32 %v1809_v48, %v1808_v8  ;;  %v8170_v48 = vld [vmem:[#allocation56_spill] sm:$0xff] }
 0x237   :  { %v1527_v50 = vsub.f32 %v8170_v48, %v5134_v15  ;;  %v1654_v31 = vmul.f32 %v1526_v46, %v1526_v46  ;;  %v1821_v62 = vsel %vm1220_vm3, %v1653_v26, 0.0 }
 0x238   :  { %v1812_v22 = vadd.f32 %v1811_v2, %v1810_v32  ;;  %v8171_v2 = vld [vmem:[#allocation59_spill] sm:$0xff] }
 0x239   :  { %v1528_v21 = vsub.f32 %v8171_v2, %v5134_v15  ;;  %v1655_v0 = vmul.f32 %v1527_v50, %v1527_v50  ;;  %v1823_v9 = vsel %vm1220_vm3, %v1654_v31, 0.0 }
 0x23a   :  { %v1814_v52 = vadd.f32 %v1813_v13, %v1812_v22  ;;  %v8172_v13 = vld [vmem:[#allocation61_spill] sm:$0xff] }
 0x23b   :  { %v1529_v6 = vsub.f32 %v8172_v13, %v5134_v15  ;;  %v1656_v48 = vmul.f32 %v1528_v21, %v1528_v21  ;;  %v1825_v5 = vsel %vm1220_vm3, %v1655_v0, 0.0 }
 0x23c   :  { %v1816_v8 = vadd.f32 %v1815_v19, %v1814_v52  ;;  %v8173_v19 = vld [vmem:[#allocation58_spill] sm:$0xff] }
 0x23d   :  { %v1530_v4 = vsub.f32 %v8173_v19, %v5134_v15  ;;  %v1657_v2 = vmul.f32 %v1529_v6, %v1529_v6  ;;  %v1827_v26 = vsel %vm1220_vm3, %v1656_v48, 0.0 }
 0x23e   :  { %v1818_v32 = vadd.f32 %v1817_v24, %v1816_v8  ;;  %v8174_v24 = vld [vmem:[#allocation60_spill] sm:$0xff] }
 0x23f   :  { %v1531_v46 = vsub.f32 %v8174_v24, %v5134_v15  ;;  %v1658_v13 = vmul.f32 %v1530_v4, %v1530_v4  ;;  %v1829_v31 = vsel %vm1220_vm3, %v1657_v2, 0.0 }
 0x240   :  { %v1820_v22 = vadd.f32 %v1819_v17, %v1818_v32  ;;  %v8175_v17 = vld [vmem:[#allocation63_spill] sm:$0xff] }
 0x241   :  { %v1532_v50 = vsub.f32 %v8175_v17, %v5134_v15  ;;  %v1659_v19 = vmul.f32 %v1531_v46, %v1531_v46  ;;  %v1831_v0 = vsel %vm1220_vm3, %v1658_v13, 0.0 }
 0x242   :  { %v1822_v52 = vadd.f32 %v1821_v62, %v1820_v22  ;;  %v8176_v62 = vld [vmem:[#allocation65_spill] sm:$0xff] }
 0x243   :  { %v1533_v21 = vsub.f32 %v8176_v62, %v5134_v15  ;;  %v1660_v24 = vmul.f32 %v1532_v50, %v1532_v50  ;;  %v1833_v48 = vsel %vm1220_vm3, %v1659_v19, 0.0 }
 0x244   :  { %v1824_v8 = vadd.f32 %v1823_v9, %v1822_v52  ;;  %v8177_v9 = vld [vmem:[#allocation62_spill] sm:$0xff] }
 0x245   :  { %v1534_v6 = vsub.f32 %v8177_v9, %v5134_v15  ;;  %v1661_v17 = vmul.f32 %v1533_v21, %v1533_v21  ;;  %v1835_v2 = vsel %vm1220_vm3, %v1660_v24, 0.0 }
 0x246   :  { %v1826_v32 = vadd.f32 %v1825_v5, %v1824_v8  ;;  %v8178_v5 = vld [vmem:[#allocation64_spill] sm:$0xff] }
 0x247   :  { %v1535_v4 = vsub.f32 %v8178_v5, %v5134_v15  ;;  %v1662_v62 = vmul.f32 %v1534_v6, %v1534_v6  ;;  %v1837_v13 = vsel %vm1220_vm3, %v1661_v17, 0.0 }
 0x248   :  { %v1828_v22 = vadd.f32 %v1827_v26, %v1826_v32  ;;  %v8179_v26 = vld [vmem:[#allocation67_spill] sm:$0xff] }
 0x249   :  { %v1536_v46 = vsub.f32 %v8179_v26, %v5134_v15  ;;  %v1663_v9 = vmul.f32 %v1535_v4, %v1535_v4  ;;  %v1839_v19 = vsel %vm1220_vm3, %v1662_v62, 0.0 }
 0x24a   :  { %v1830_v52 = vadd.f32 %v1829_v31, %v1828_v22  ;;  %v8180_v31 = vld [vmem:[#allocation69_spill] sm:$0xff] }
 0x24b   :  { %v1537_v50 = vsub.f32 %v8180_v31, %v5134_v15  ;;  %v1664_v5 = vmul.f32 %v1536_v46, %v1536_v46  ;;  %v1841_v24 = vsel %vm1220_vm3, %v1663_v9, 0.0 }
 0x24c   :  { %v1832_v8 = vadd.f32 %v1831_v0, %v1830_v52  ;;  %v8181_v0 = vld [vmem:[#allocation66_spill] sm:$0xff] }
 0x24d   :  { %v1538_v21 = vsub.f32 %v8181_v0, %v5134_v15  ;;  %v1665_v26 = vmul.f32 %v1537_v50, %v1537_v50  ;;  %v1843_v17 = vsel %vm1220_vm3, %v1664_v5, 0.0 }
 0x24e   :  { %v1834_v32 = vadd.f32 %v1833_v48, %v1832_v8  ;;  %v8182_v48 = vld [vmem:[#allocation68_spill] sm:$0xff] }
 0x24f   :  { %v1539_v6 = vsub.f32 %v8182_v48, %v5134_v15  ;;  %v1666_v31 = vmul.f32 %v1538_v21, %v1538_v21  ;;  %v1845_v62 = vsel %vm1220_vm3, %v1665_v26, 0.0 }
 0x250   :  { %v1836_v22 = vadd.f32 %v1835_v2, %v1834_v32  ;;  %v8183_v2 = vld [vmem:[#allocation71_spill] sm:$0xff] }
 0x251   :  { %v1540_v4 = vsub.f32 %v8183_v2, %v5134_v15  ;;  %v1667_v0 = vmul.f32 %v1539_v6, %v1539_v6  ;;  %v1847_v9 = vsel %vm1220_vm3, %v1666_v31, 0.0 }
 0x252   :  { %v1838_v52 = vadd.f32 %v1837_v13, %v1836_v22  ;;  %v8184_v13 = vld [vmem:[#allocation73_spill] sm:$0xff] }
 0x253   :  { %v1541_v46 = vsub.f32 %v8184_v13, %v5134_v15  ;;  %v1668_v48 = vmul.f32 %v1540_v4, %v1540_v4  ;;  %v1849_v5 = vsel %vm1220_vm3, %v1667_v0, 0.0 }
 0x254   :  { %v1840_v8 = vadd.f32 %v1839_v19, %v1838_v52  ;;  %v8185_v19 = vld [vmem:[#allocation70_spill] sm:$0xff] }
 0x255   :  { %v1542_v50 = vsub.f32 %v8185_v19, %v5134_v15  ;;  %v1669_v2 = vmul.f32 %v1541_v46, %v1541_v46  ;;  %v1851_v26 = vsel %vm1220_vm3, %v1668_v48, 0.0 }
 0x256   :  { %v1842_v32 = vadd.f32 %v1841_v24, %v1840_v8  ;;  %v8186_v24 = vld [vmem:[#allocation72_spill] sm:$0xff] }
 0x257   :  { %v1543_v21 = vsub.f32 %v8186_v24, %v5134_v15  ;;  %v1670_v13 = vmul.f32 %v1542_v50, %v1542_v50  ;;  %v1853_v31 = vsel %vm1220_vm3, %v1669_v2, 0.0 }
 0x258   :  { %v1844_v22 = vadd.f32 %v1843_v17, %v1842_v32  ;;  %v8187_v17 = vld [vmem:[#allocation77_spill] sm:$0xff] }
 0x259   :  { %v1544_v6 = vsub.f32 %v8187_v17, %v5134_v15  ;;  %v1671_v19 = vmul.f32 %v1543_v21, %v1543_v21  ;;  %v1855_v0 = vsel %vm1220_vm3, %v1670_v13, 0.0 }
 0x25a   :  { %v1846_v52 = vadd.f32 %v1845_v62, %v1844_v22  ;;  %v8188_v62 = vld [vmem:[#allocation79_spill] sm:$0xff] }
 0x25b   :  { %v1545_v4 = vsub.f32 %v8188_v62, %v5134_v15  ;;  %v1672_v24 = vmul.f32 %v1544_v6, %v1544_v6  ;;  %v1857_v48 = vsel %vm1220_vm3, %v1671_v19, 0.0 }
 0x25c   :  { %v1848_v8 = vadd.f32 %v1847_v9, %v1846_v52  ;;  %v8189_v9 = vld [vmem:[#allocation76_spill] sm:$0xff] }
 0x25d   :  { %v1546_v46 = vsub.f32 %v8189_v9, %v5134_v15  ;;  %v1673_v17 = vmul.f32 %v1545_v4, %v1545_v4  ;;  %v1859_v2 = vsel %vm1220_vm3, %v1672_v24, 0.0 }
 0x25e   :  { %v1850_v32 = vadd.f32 %v1849_v5, %v1848_v8  ;;  %v8190_v5 = vld [vmem:[#allocation78_spill] sm:$0xff] }
 0x25f   :  { %v1547_v50 = vsub.f32 %v8190_v5, %v5134_v15  ;;  %v1674_v62 = vmul.f32 %v1546_v46, %v1546_v46  ;;  %v1861_v13 = vsel %vm1220_vm3, %v1673_v17, 0.0 }
 0x260   :  { %v1852_v22 = vadd.f32 %v1851_v26, %v1850_v32  ;;  %v8191_v26 = vld [vmem:[#allocation19_spill] sm:$0xff] }
 0x261   :  { %v1548_v21 = vsub.f32 %v8191_v26, %v5134_v15  ;;  %v1675_v9 = vmul.f32 %v1547_v50, %v1547_v50  ;;  %v1863_v19 = vsel %vm1220_vm3, %v1674_v62, 0.0 }
 0x262   :  { %v1854_v52 = vadd.f32 %v1853_v31, %v1852_v22  ;;  %v8192_v31 = vld [vmem:[#allocation21_spill] sm:$0xff] }
 0x263   :  { %v1549_v6 = vsub.f32 %v8192_v31, %v5134_v15  ;;  %v1676_v5 = vmul.f32 %v1548_v21, %v1548_v21  ;;  %v1865_v24 = vsel %vm1220_vm3, %v1675_v9, 0.0 }
 0x264   :  { %v1856_v8 = vadd.f32 %v1855_v0, %v1854_v52  ;;  %v8193_v0 = vld [vmem:[#allocation18_spill] sm:$0xff] }
 0x265   :  { %v1550_v4 = vsub.f32 %v8193_v0, %v5134_v15  ;;  %v1677_v26 = vmul.f32 %v1549_v6, %v1549_v6  ;;  %v1867_v17 = vsel %vm1220_vm3, %v1676_v5, 0.0 }
 0x266   :  { %v1858_v32 = vadd.f32 %v1857_v48, %v1856_v8  ;;  %v8194_v48 = vld [vmem:[#allocation20_spill] sm:$0xff] }
 0x267   :  { %v1551_v46 = vsub.f32 %v8194_v48, %v5134_v15  ;;  %v1678_v31 = vmul.f32 %v1550_v4, %v1550_v4  ;;  %v1869_v62 = vsel %vm1220_vm3, %v1677_v26, 0.0 }
 0x268   :  { %v1860_v22 = vadd.f32 %v1859_v2, %v1858_v32  ;;  %v8195_v2 = vld [vmem:[#allocation27_spill] sm:$0xff] }
 0x269   :  { %v1552_v50 = vsub.f32 %v8195_v2, %v5134_v15  ;;  %v1679_v0 = vmul.f32 %v1551_v46, %v1551_v46  ;;  %v1871_v9 = vsel %vm1220_vm3, %v1678_v31, 0.0 }
 0x26a   :  { %v1862_v52 = vadd.f32 %v1861_v13, %v1860_v22  ;;  %v8196_v13 = vld [vmem:[#allocation29_spill] sm:$0xff] }
 0x26b   :  { %v1553_v21 = vsub.f32 %v8196_v13, %v5134_v15  ;;  %v1680_v48 = vmul.f32 %v1552_v50, %v1552_v50  ;;  %v1873_v5 = vsel %vm1220_vm3, %v1679_v0, 0.0 }
 0x26c   :  { %v1864_v8 = vadd.f32 %v1863_v19, %v1862_v52  ;;  %v8197_v19 = vld [vmem:[#allocation26_spill] sm:$0xff] }
 0x26d   :  { %v1554_v6 = vsub.f32 %v8197_v19, %v5134_v15  ;;  %v1681_v2 = vmul.f32 %v1553_v21, %v1553_v21  ;;  %v1875_v26 = vsel %vm1220_vm3, %v1680_v48, 0.0 }
 0x26e   :  { %v1866_v32 = vadd.f32 %v1865_v24, %v1864_v8  ;;  %v8198_v24 = vld [vmem:[#allocation28_spill] sm:$0xff] }
 0x26f   :  { %v1555_v4 = vsub.f32 %v8198_v24, %v5134_v15  ;;  %v1682_v13 = vmul.f32 %v1554_v6, %v1554_v6  ;;  %v1877_v31 = vsel %vm1220_vm3, %v1681_v2, 0.0 }
 0x270   :  { %v1868_v22 = vadd.f32 %v1867_v17, %v1866_v32  ;;  %v8199_v17 = vld [vmem:[#allocation35_spill] sm:$0xff] }
 0x271   :  { %v1556_v46 = vsub.f32 %v8199_v17, %v5134_v15  ;;  %v1683_v19 = vmul.f32 %v1555_v4, %v1555_v4  ;;  %v1879_v0 = vsel %vm1220_vm3, %v1682_v13, 0.0  ;;  %v1560_v4 = vsub.f32 %v4756_v51, %v5134_v15 }
 0x272   :  { %v1870_v52 = vadd.f32 %v1869_v62, %v1868_v22  ;;  %v8200_v62 = vld [vmem:[#allocation37_spill] sm:$0xff] }
 0x273   :  { %v1557_v50 = vsub.f32 %v8200_v62, %v5134_v15  ;;  %v1684_v24 = vmul.f32 %v1556_v46, %v1556_v46  ;;  %v1881_v48 = vsel %vm1220_vm3, %v1683_v19, 0.0  ;;  %v1561_v46 = vsub.f32 %v4762_v58, %v5134_v15 }
 0x274   :  { %v1872_v8 = vadd.f32 %v1871_v9, %v1870_v52  ;;  %v8201_v9 = vld [vmem:[#allocation34_spill] sm:$0xff] }
 0x275   :  { %v1558_v21 = vsub.f32 %v8201_v9, %v5134_v15  ;;  %v1685_v17 = vmul.f32 %v1557_v50, %v1557_v50  ;;  %v1883_v2 = vsel %vm1220_vm3, %v1684_v24, 0.0  ;;  %v1562_v50 = vsub.f32 %v4752_v47, %v5134_v15 }
 0x276   :  { %v1874_v32 = vadd.f32 %v1873_v5, %v1872_v8  ;;  %v8202_v5 = vld [vmem:[#allocation36_spill] sm:$0xff] }
 0x277   :  { %v1559_v6 = vsub.f32 %v8202_v5, %v5134_v15  ;;  %v1885_v13 = vsel %vm1220_vm3, %v1685_v17, 0.0 }
 0x278   :  { %v1876_v22 = vadd.f32 %v1875_v26, %v1874_v32  ;;  %v1686_v26 = vmul.f32 %v1558_v21, %v1558_v21  ;;  %v1563_v21 = vsub.f32 %v4758_v54, %v5134_v15 }
 0x27a   :  { %v1878_v52 = vadd.f32 %v1877_v31, %v1876_v22  ;;  %v1687_v31 = vmul.f32 %v1559_v6, %v1559_v6  ;;  %v1887_v19 = vsel %vm1220_vm3, %v1686_v26, 0.0  ;;  %v1564_v6 = vsub.f32 %v4780_v29, %v5134_v15 }
 0x27c   :  { %v1880_v8 = vadd.f32 %v1879_v0, %v1878_v52  ;;  %v1688_v0 = vmul.f32 %v1560_v4, %v1560_v4  ;;  %v1889_v24 = vsel %vm1220_vm3, %v1687_v31, 0.0  ;;  %v1565_v4 = vsub.f32 %v4786_v38, %v5134_v15 }
 0x27e   :  { %v1882_v32 = vadd.f32 %v1881_v48, %v1880_v8  ;;  %v1689_v48 = vmul.f32 %v1561_v46, %v1561_v46  ;;  %v1891_v17 = vsel %vm1220_vm3, %v1688_v0, 0.0  ;;  %v1566_v46 = vsub.f32 %v4776_v23, %v5134_v15 }
 0x280   :  { %v1884_v22 = vadd.f32 %v1883_v2, %v1882_v32  ;;  %v1690_v2 = vmul.f32 %v1562_v50, %v1562_v50  ;;  %v1893_v26 = vsel %vm1220_vm3, %v1689_v48, 0.0  ;;  %v1567_v50 = vsub.f32 %v4782_v34, %v5134_v15 }
 0x282   :  { %v1886_v52 = vadd.f32 %v1885_v13, %v1884_v22  ;;  %v1691_v13 = vmul.f32 %v1563_v21, %v1563_v21  ;;  %v1895_v31 = vsel %vm1220_vm3, %v1690_v2, 0.0  ;;  %v1568_v21 = vsub.f32 %v4804_v37, %v5134_v15 }
 0x284   :  { %v1888_v8 = vadd.f32 %v1887_v19, %v1886_v52  ;;  %v1692_v19 = vmul.f32 %v1564_v6, %v1564_v6  ;;  %v1897_v0 = vsel %vm1220_vm3, %v1691_v13, 0.0  ;;  %v1569_v6 = vsub.f32 %v4810_v49, %v5134_v15 }
 0x286   :  { %v1890_v32 = vadd.f32 %v1889_v24, %v1888_v8  ;;  %v1693_v24 = vmul.f32 %v1565_v4, %v1565_v4  ;;  %v1899_v48 = vsel %vm1220_vm3, %v1692_v19, 0.0  ;;  %v1570_v4 = vsub.f32 %v4800_v25, %v5134_v15 }
 0x288   :  { %v1892_v22 = vadd.f32 %v1891_v17, %v1890_v32  ;;  %v1694_v17 = vmul.f32 %v1566_v46, %v1566_v46  ;;  %v1901_v2 = vsel %vm1220_vm3, %v1693_v24, 0.0  ;;  %v1571_v46 = vsub.f32 %v4806_v1, %v5134_v15 }
 0x28a   :  { %v1894_v52 = vadd.f32 %v1893_v26, %v1892_v22  ;;  %v1695_v26 = vmul.f32 %v1567_v50, %v1567_v50  ;;  %v1903_v13 = vsel %vm1220_vm3, %v1694_v17, 0.0  ;;  %v1572_v50 = vsub.f32 %v4828_v42, %v5134_v15 }
 0x28c   :  { %v1896_v8 = vadd.f32 %v1895_v31, %v1894_v52  ;;  %v1696_v31 = vmul.f32 %v1568_v21, %v1568_v21  ;;  %v1905_v19 = vsel %vm1220_vm3, %v1695_v26, 0.0  ;;  %v1573_v21 = vsub.f32 %v4834_v60, %v5134_v15 }
 0x28e   :  { %v1898_v32 = vadd.f32 %v1897_v0, %v1896_v8  ;;  %v1697_v0 = vmul.f32 %v1569_v6, %v1569_v6  ;;  %v1907_v24 = vsel %vm1220_vm3, %v1696_v31, 0.0  ;;  %v1574_v6 = vsub.f32 %v4824_v53, %v5134_v15 }
 0x290   :  { %v1900_v22 = vadd.f32 %v1899_v48, %v1898_v32  ;;  %v1698_v48 = vmul.f32 %v1570_v4, %v1570_v4  ;;  %v1909_v17 = vsel %vm1220_vm3, %v1697_v0, 0.0  ;;  %v1575_v4 = vsub.f32 %v4830_v35, %v5134_v15 }
 0x292   :  { %v1902_v52 = vadd.f32 %v1901_v2, %v1900_v22  ;;  %v1699_v2 = vmul.f32 %v1571_v46, %v1571_v46  ;;  %v1911_v26 = vsel %vm1220_vm3, %v1698_v48, 0.0  ;;  %v1576_v46 = vsub.f32 %v4852_v57, %v5134_v15 }
 0x294   :  { %v1904_v8 = vadd.f32 %v1903_v13, %v1902_v52  ;;  %v1700_v13 = vmul.f32 %v1572_v50, %v1572_v50  ;;  %v1913_v31 = vsel %vm1220_vm3, %v1699_v2, 0.0  ;;  %v1577_v50 = vsub.f32 %v4858_v3, %v5134_v15 }
 0x296   :  { %v1906_v32 = vadd.f32 %v1905_v19, %v1904_v8  ;;  %v1701_v19 = vmul.f32 %v1573_v21, %v1573_v21  ;;  %v1915_v0 = vsel %vm1220_vm3, %v1700_v13, 0.0  ;;  %v1578_v21 = vsub.f32 %v4848_v63, %v5134_v15 }
 0x298   :  { %v1908_v22 = vadd.f32 %v1907_v24, %v1906_v32  ;;  %v1702_v24 = vmul.f32 %v1574_v6, %v1574_v6  ;;  %v1917_v48 = vsel %vm1220_vm3, %v1701_v19, 0.0  ;;  %v1579_v6 = vsub.f32 %v4854_v11, %v5134_v15 }
 0x29a   :  { %v1910_v52 = vadd.f32 %v1909_v17, %v1908_v22  ;;  %v1703_v17 = vmul.f32 %v1575_v4, %v1575_v4  ;;  %v1919_v2 = vsel %vm1220_vm3, %v1702_v24, 0.0  ;;  %v1580_v4 = vsub.f32 %v4876_v18, %v5134_v15 }
 0x29c   :  { %v1912_v8 = vadd.f32 %v1911_v26, %v1910_v52  ;;  %v1704_v26 = vmul.f32 %v1576_v46, %v1576_v46  ;;  %v1921_v13 = vsel %vm1220_vm3, %v1703_v17, 0.0  ;;  %v1581_v46 = vsub.f32 %v4882_v36, %v5134_v15 }
 0x29e   :  { %v1914_v32 = vadd.f32 %v1913_v31, %v1912_v8  ;;  %v1705_v31 = vmul.f32 %v1577_v50, %v1577_v50  ;;  %v1923_v19 = vsel %vm1220_vm3, %v1704_v26, 0.0  ;;  %v1582_v50 = vsub.f32 %v4872_v14, %v5134_v15 }
 0x2a0   :  { %v1916_v22 = vadd.f32 %v1915_v0, %v1914_v32  ;;  %v1706_v0 = vmul.f32 %v1578_v21, %v1578_v21  ;;  %v1925_v24 = vsel %vm1220_vm3, %v1705_v31, 0.0  ;;  %v1583_v21 = vsub.f32 %v4878_v55, %v5134_v15 }
 0x2a2   :  { %v1918_v52 = vadd.f32 %v1917_v48, %v1916_v22  ;;  %v1707_v48 = vmul.f32 %v1579_v6, %v1579_v6  ;;  %v1927_v17 = vsel %vm1220_vm3, %v1706_v0, 0.0  ;;  %v1584_v6 = vsub.f32 %v4900_v44, %v5134_v15 }
 0x2a4   :  { %v1920_v8 = vadd.f32 %v1919_v2, %v1918_v52  ;;  %v1708_v2 = vmul.f32 %v1580_v4, %v1580_v4  ;;  %v1929_v26 = vsel %vm1220_vm3, %v1707_v48, 0.0  ;;  %v1585_v4 = vsub.f32 %v4906_v12, %v5134_v15 }
 0x2a6   :  { %v1922_v32 = vadd.f32 %v1921_v13, %v1920_v8  ;;  %v1709_v13 = vmul.f32 %v1581_v46, %v1581_v46  ;;  %v1931_v31 = vsel %vm1220_vm3, %v1708_v2, 0.0  ;;  %v1586_v46 = vsub.f32 %v4896_v41, %v5134_v15 }
 0x2a8   :  { %v1924_v22 = vadd.f32 %v1923_v19, %v1922_v32  ;;  %v1710_v19 = vmul.f32 %v1582_v50, %v1582_v50  ;;  %v1933_v0 = vsel %vm1220_vm3, %v1709_v13, 0.0  ;;  %v1587_v50 = vsub.f32 %v4902_v39, %v5134_v15 }
 0x2aa   :  { %v1926_v52 = vadd.f32 %v1925_v24, %v1924_v22  ;;  %v1711_v24 = vmul.f32 %v1583_v21, %v1583_v21  ;;  %v1935_v48 = vsel %vm1220_vm3, %v1710_v19, 0.0  ;;  %v1588_v21 = vsub.f32 %v4924_v20, %v5134_v15 }
 0x2ac   :  { %v1928_v8 = vadd.f32 %v1927_v17, %v1926_v52  ;;  %v1712_v17 = vmul.f32 %v1584_v6, %v1584_v6  ;;  %v1937_v2 = vsel %vm1220_vm3, %v1711_v24, 0.0  ;;  %v1589_v6 = vsub.f32 %v4930_v56, %v5134_v15 }
 0x2ae   :  { %v1930_v32 = vadd.f32 %v1929_v26, %v1928_v8  ;;  %v1713_v26 = vmul.f32 %v1585_v4, %v1585_v4  ;;  %v1939_v13 = vsel %vm1220_vm3, %v1712_v17, 0.0  ;;  %v1590_v4 = vsub.f32 %v4920_v16, %v5134_v15 }
 0x2b0   :  { %v1932_v22 = vadd.f32 %v1931_v31, %v1930_v32  ;;  %v1714_v31 = vmul.f32 %v1586_v46, %v1586_v46  ;;  %v1941_v19 = vsel %vm1220_vm3, %v1713_v26, 0.0  ;;  %v1591_v46 = vsub.f32 %v4926_v27, %v5134_v15 }
 0x2b2   :  { %v1934_v52 = vadd.f32 %v1933_v0, %v1932_v22  ;;  %v1715_v0 = vmul.f32 %v1587_v50, %v1587_v50  ;;  %v1943_v24 = vsel %vm1220_vm3, %v1714_v31, 0.0  ;;  %v1592_v50 = vsub.f32 %v4948_v61, %v5134_v15 }
 0x2b4   :  { %v1936_v8 = vadd.f32 %v1935_v48, %v1934_v52  ;;  %v1716_v48 = vmul.f32 %v1588_v21, %v1588_v21  ;;  %v1945_v17 = vsel %vm1220_vm3, %v1715_v0, 0.0  ;;  %v1593_v21 = vsub.f32 %v4954_v40, %v5134_v15 }
 0x2b6   :  { %v1938_v32 = vadd.f32 %v1937_v2, %v1936_v8  ;;  %v1717_v2 = vmul.f32 %v1589_v6, %v1589_v6  ;;  %v1947_v26 = vsel %vm1220_vm3, %v1716_v48, 0.0  ;;  %v1594_v6 = vsub.f32 %v4944_v59, %v5134_v15 }
 0x2b7   :  { %v1721_v61 = vmul.f32 %v1593_v21, %v1593_v21  ;;  %v1598_v21 = vsub.f32 %v4968_v43, %v5134_v15 }
 0x2b8   :  { %v1940_v22 = vadd.f32 %v1939_v13, %v1938_v32  ;;  %v1718_v13 = vmul.f32 %v1590_v4, %v1590_v4  ;;  %v1949_v31 = vsel %vm1220_vm3, %v1717_v2, 0.0 }
 0x2ba   :  { %v1942_v52 = vadd.f32 %v1941_v19, %v1940_v22  ;;  %v1719_v19 = vmul.f32 %v1591_v46, %v1591_v46  ;;  %v1951_v0 = vsel %vm1220_vm3, %v1718_v13, 0.0  ;;  %v1596_v46 = vsub.f32 %v4972_v45, %v5134_v15 }
 0x2bb   :  { %v1957_v13 = vsel %vm1220_vm3, %v1721_v61, 0.0 }
 0x2bc   :  { %v1944_v8 = vadd.f32 %v1943_v24, %v1942_v52  ;;  %v1720_v24 = vmul.f32 %v1592_v50, %v1592_v50  ;;  %v1953_v48 = vsel %vm1220_vm3, %v1719_v19, 0.0  ;;  %v1597_v50 = vsub.f32 %v4978_v28, %v5134_v15 }
 0x2be   :  { %v1946_v32 = vadd.f32 %v1945_v17, %v1944_v8  ;;  %v8203_v17 = vld [vmem:[#allocation75_spill] sm:$0xff]  ;;  %v1955_v2 = vsel %vm1220_vm3, %v1720_v24, 0.0 }
 0x2bf   :  { %v1595_v4 = vsub.f32 %v8203_v17, %v5134_v15 }
 0x2c0   :  { %v1948_v22 = vadd.f32 %v1947_v26, %v1946_v32  ;;  %v1722_v26 = vmul.f32 %v1594_v6, %v1594_v6  ;;  %v1599_v6 = vsub.f32 %v8126_v30, %v5134_v15 }
 0x2c2   :  { %v1950_v52 = vadd.f32 %v1949_v31, %v1948_v22  ;;  %v1723_v31 = vmul.f32 %v1595_v4, %v1595_v4  ;;  %v1959_v19 = vsel %vm1220_vm3, %v1722_v26, 0.0  ;;  %v1600_v4 = vsub.f32 %v4988_v10, %v5134_v15 }
 0x2c4   :  { %v1952_v8 = vadd.f32 %v1951_v0, %v1950_v52  ;;  %v1724_v0 = vmul.f32 %v1596_v46, %v1596_v46  ;;  %v1961_v24 = vsel %vm1220_vm3, %v1723_v31, 0.0  ;;  %v1601_v46 = vsub.f32 %v4994_v33, %v5134_v15 }
 0x2c6   :  { %v1954_v32 = vadd.f32 %v1953_v48, %v1952_v8  ;;  %v1725_v48 = vmul.f32 %v1597_v50, %v1597_v50  ;;  %v1963_v61 = vsel %vm1220_vm3, %v1724_v0, 0.0  ;;  %v1602_v50 = vsub.f32 %v4984_v7, %v5134_v15 }
 0x2c7   :  { %v1729_v10 = vmul.f32 %v1601_v46, %v1601_v46 }
 0x2c8   :  { %v1956_v22 = vadd.f32 %v1955_v2, %v1954_v32  ;;  %v1726_v2 = vmul.f32 %v1598_v21, %v1598_v21  ;;  %v1965_v26 = vsel %vm1220_vm3, %v1725_v48, 0.0  ;;  %v1730_v33 = vmul.f32 %v1602_v50, %v1602_v50 }
 0x2ca   :  { %v1958_v52 = vadd.f32 %v1957_v13, %v1956_v22  ;;  %v1727_v13 = vmul.f32 %v1599_v6, %v1599_v6  ;;  %v1967_v31 = vsel %vm1220_vm3, %v1726_v2, 0.0  ;;  %v1973_v2 = vsel %vm1220_vm3, %v1729_v10, 0.0 }
 0x2cc   :  { %v1960_v8 = vadd.f32 %v1959_v19, %v1958_v52  ;;  %v1728_v19 = vmul.f32 %v1600_v4, %v1600_v4  ;;  %v1969_v0 = vsel %vm1220_vm3, %v1727_v13, 0.0  ;;  %v1975_v13 = vsel %vm1220_vm3, %v1730_v33, 0.0 }
 0x2ce   :  { %v1962_v32 = vadd.f32 %v1961_v24, %v1960_v8  ;;  %v8204_v24 = vld [vmem:[#allocation83_spill] sm:$0xff]  ;;  %v1971_v48 = vsel %vm1220_vm3, %v1728_v19, 0.0 }
 0x2cf   :  { %v1603_v21 = vsub.f32 %v8204_v24, %v5134_v15 }
 0x2d0   :  { %v1964_v22 = vadd.f32 %v1963_v61, %v1962_v32  ;;  %v8205_v61 = vld [vmem:[#allocation86_spill] sm:$0xff] }
 0x2d1   :  { %v1604_v6 = vsub.f32 %v8205_v61, %v5134_v15  ;;  %v1731_v7 = vmul.f32 %v1603_v21, %v1603_v21 }
 0x2d2   :  { %v1966_v52 = vadd.f32 %v1965_v26, %v1964_v22  ;;  %v8206_v26 = vld [vmem:[#allocation88_spill] sm:$0xff] }
 0x2d3   :  { %v1605_v4 = vsub.f32 %v8206_v26, %v5134_v15  ;;  %v1732_v24 = vmul.f32 %v1604_v6, %v1604_v6  ;;  %v1977_v19 = vsel %vm1220_vm3, %v1731_v7, 0.0 }
 0x2d4   :  { %v1968_v8 = vadd.f32 %v1967_v31, %v1966_v52  ;;  %v8207_v31 = vld [vmem:[#allocation85_spill] sm:$0xff] }
 0x2d5   :  { %v1606_v46 = vsub.f32 %v8207_v31, %v5134_v15  ;;  %v1733_v61 = vmul.f32 %v1605_v4, %v1605_v4  ;;  %v1979_v10 = vsel %vm1220_vm3, %v1732_v24, 0.0 }
 0x2d6   :  { %v1970_v32 = vadd.f32 %v1969_v0, %v1968_v8  ;;  %v8208_v0 = vld [vmem:[#allocation87_spill] sm:$0xff] }
 0x2d7   :  { %v1607_v50 = vsub.f32 %v8208_v0, %v5134_v15  ;;  %v1734_v26 = vmul.f32 %v1606_v46, %v1606_v46  ;;  %v1981_v33 = vsel %vm1220_vm3, %v1733_v61, 0.0 }
 0x2d8   :  { %v1972_v22 = vadd.f32 %v1971_v48, %v1970_v32  ;;  %v8209_v48 = vld [vmem:[#allocation90_spill] sm:$0xff] }
 0x2d9   :  { %v1608_v21 = vsub.f32 %v8209_v48, %v5134_v15  ;;  %v1735_v31 = vmul.f32 %v1607_v50, %v1607_v50  ;;  %v1983_v7 = vsel %vm1220_vm3, %v1734_v26, 0.0 }
 0x2da   :  { %v1974_v52 = vadd.f32 %v1973_v2, %v1972_v22  ;;  %v8210_v2 = vld [vmem:[#allocation92_spill] sm:$0xff] }
 0x2db   :  { %v1609_v6 = vsub.f32 %v8210_v2, %v5134_v15  ;;  %v1736_v0 = vmul.f32 %v1608_v21, %v1608_v21  ;;  %v1985_v24 = vsel %vm1220_vm3, %v1735_v31, 0.0 }
 0x2dc   :  { %v1976_v8 = vadd.f32 %v1975_v13, %v1974_v52  ;;  %v8211_v13 = vld [vmem:[#allocation89_spill] sm:$0xff] }
 0x2dd   :  { %v1610_v4 = vsub.f32 %v8211_v13, %v5134_v15  ;;  %v1737_v48 = vmul.f32 %v1609_v6, %v1609_v6  ;;  %v1987_v50 = vsel %vm1220_vm3, %v1736_v0, 0.0  ;;  %v2008_v0 = vlaneseq }
 0x2de   :  { %v1978_v32 = vadd.f32 %v1977_v19, %v1976_v8  ;;  %v8212_v19 = vld [vmem:[#allocation91_spill] sm:$0xff] }
 0x2df   :  { %v1611_v46 = vsub.f32 %v8212_v19, %v5134_v15 }
 0x2e0   :  { %v1980_v22 = vadd.f32 %v1979_v10, %v1978_v32  ;;  %v1738_v10 = vmul.f32 %v1610_v4, %v1610_v4 }
 0x2e1   :  { %v1739_v61 = vmul.f32 %v1611_v46, %v1611_v46  ;;  %v5520_v46 = vshrl.u32 %v2008_v0, 7 }
 0x2e2   :  { %v1982_v52 = vadd.f32 %v1981_v33, %v1980_v22  ;;  %v1989_v22 = vsel %vm1220_vm3, %v1737_v48, 0.0  ;;  %v1991_v21 = vsel %vm1220_vm3, %v1738_v10, 0.0  ;;  %v1218_v48 = vld [vmem:[%s7725_s2] sm:$0x1] }
 0x2e3   :  { %v1993_v26 = vsel %vm1220_vm3, %v1739_v61, 0.0  ;;  %v8213_v61 = vld [vmem:[#allocation3_spill] sm:$0xff] }
 0x2e4   :  { %v1984_v8 = vadd.f32 %v1983_v7, %v1982_v52 }
 0x2e6   :  { %v1986_v32 = vadd.f32 %v1985_v24, %v1984_v8 }
 0x2e8   :  { %v1988_v2 = vadd.f32 %v1987_v50, %v1986_v32  ;;  %v8229_v50 = vld [vmem:[#allocation15_spill] sm:$0xff] }
 0x2ea   :  { %v1990_v33 = vadd.f32 %v1989_v22, %v1988_v2  ;;  %v7906_v2 = vsub.s32 0, %v5520_v46 }
 0x2ec   :  { %v1992_v13 = vadd.f32 %v1991_v21, %v1990_v33  ;;  %v8214_v33 = vld [vmem:[#allocation5_spill] sm:$0xff] }
 0x2ee   :  { %v1994_v52 = vadd.f32 %v1993_v26, %v1992_v13  ;;  %v8215_v26 = vld [vmem:[#allocation2_spill] sm:$0xff] }
 0x2f0   :  { %v1995_v7 = vrot.slane %v1994_v52, 4 }
 0x2f2   :  { %v1996_v19 = vadd.f32 %v1995_v7, %v1994_v52 }
 0x2f4   :  { %v1997_v6 = vrot.slane %v1996_v19, 2 }
 0x2f6   :  { %v1998_v30 = vadd.f32 %v1997_v6, %v1996_v19  ;;  %v5529_v19 = vld [vmem:[%s7726_s3] sm:$0x1]  ;;  %v8217_v6 = vld [vmem:[#allocation7_spill] sm:$0xff] }
 0x2f8   :  { %v1999_v31 = vrot.slane %v1998_v30, 1 }
 0x2fa   :  { %v2000_v8 = vadd.f32 %v1999_v31, %v1998_v30 }
 0x2fc   :  { %v2001_v4 = vmul.f32 0.0009765625, %v2000_v8  ;;  %v8218_v8 = vld [vmem:[#allocation9_spill] sm:$0xff] }
 0x2fe   :  { %v2002_v24 = vadd.f32 1e-05, %v2001_v4 }
 0x300   :  { %3823 = vrsqrt.f32 %v2002_v24  ;;  %v8219_v24 = vld [vmem:[#allocation6_spill] sm:$0xff] }
 0x30a   :  { %v3824_v32 = vpop.eup %3823 }
 0x30b   :  { %v2004_v13 = vmul.f32 %v3824_v32, %v1218_v48  ;;  %v8220_v48 = vld [vmem:[#allocation8_spill] sm:$0xff] }
 0x30d   :  { %v5532_v30 = vmul.f32 %v2004_v13, %v5134_v15  ;;  %v5536_v10 = vrot.slane %v2004_v13, %v7906_v2  ;;  %v8216_v15 = vld [vmem:[#allocation4_spill] sm:$0xff]  ;;  %v8221_v13 = vld [vmem:[#allocation11_spill] sm:$0xff]  ;;  %v8231_v2 = vld [vmem:[#allocation17_spill] sm:$0xff] }
 0x30f   :  { %v5542_v22 = vmul.f32 %v5536_v10, %v8213_v61  ;;  %v5546_v21 = vmul.f32 %v5536_v10, %v8214_v33  ;;  %v5550_v52 = vmul.f32 %v8215_v26, %v5536_v10  ;;  %v5554_v7 = vmul.f32 %v8216_v15, %v5536_v10  ;;  %v8223_v33 = vld [vmem:[#allocation13_spill] sm:$0xff]  ;;  %v8225_v15 = vld [vmem:[#allocation10_spill] sm:$0xff] }
 0x310   :  { %v5558_v31 = vmul.f32 %v5536_v10, %v8217_v6  ;;  %v5562_v4 = vmul.f32 %v5536_v10, %v8218_v8  ;;  %v5566_v0 = vmul.f32 %v8219_v24, %v5536_v10  ;;  %v5570_v32 = vmul.f32 %v8220_v48, %v5536_v10  ;;  %v8227_v8 = vld [vmem:[#allocation12_spill] sm:$0xff] }
 0x311   :  { %v5574_v61 = vmul.f32 %v5536_v10, %v8221_v13  ;;  %v5578_v26 = vmul.f32 %v5536_v10, %v8223_v33  ;;  %v5582_v6 = vmul.f32 %v8225_v15, %v5536_v10  ;;  %v5586_v24 = vmul.f32 %v8227_v8, %v5536_v10 }
 0x312   :  { %v5590_v48 = vmul.f32 %v5536_v10, %v8229_v50  ;;  %v5594_v13 = vmul.f32 %v5536_v10, %v8231_v2 }
 0x313   :  { %8222 = vst [vmem:[#allocation37_spill] sm:$0xff] %v5574_v61  ;;  %8224 = vst [vmem:[#allocation34_spill] sm:$0xff] %v5578_v26  ;;  %v8233_v61 = vld [vmem:[#allocation14_spill] sm:$0xff]  ;;  %v8235_v26 = vld [vmem:[#allocation16_spill] sm:$0xff] }
 0x314   :  { %8226 = vst [vmem:[#allocation36_spill] sm:$0xff] %v5582_v6  ;;  %8228 = vst [vmem:[#allocation75_spill] sm:$0xff] %v5586_v24  ;;  %v5598_v33 = vmul.f32 %v8233_v61, %v5536_v10  ;;  %v5602_v15 = vmul.f32 %v8235_v26, %v5536_v10  ;;  %v8237_v6 = vld [vmem:[#allocation23_spill] sm:$0xff]  ;;  %v8239_v24 = vld [vmem:[#allocation25_spill] sm:$0xff] }
 0x315   :  { %8230 = vst [vmem:[#allocation3_spill] sm:$0xff] %v5590_v48  ;;  %8232 = vst [vmem:[#allocation5_spill] sm:$0xff] %v5594_v13  ;;  %v5606_v8 = vmul.f32 %v5536_v10, %v8237_v6  ;;  %v5610_v50 = vmul.f32 %v5536_v10, %v8239_v24  ;;  %v8241_v48 = vld [vmem:[#allocation22_spill] sm:$0xff]  ;;  %v8243_v13 = vld [vmem:[#allocation24_spill] sm:$0xff] }
 0x316   :  { %8234 = vst [vmem:[#allocation2_spill] sm:$0xff] %v5598_v33  ;;  %8236 = vst [vmem:[#allocation4_spill] sm:$0xff] %v5602_v15  ;;  %v5614_v2 = vmul.f32 %v8241_v48, %v5536_v10  ;;  %v5618_v61 = vmul.f32 %v8243_v13, %v5536_v10  ;;  %v8245_v33 = vld [vmem:[#allocation31_spill] sm:$0xff]  ;;  %v8247_v15 = vld [vmem:[#allocation33_spill] sm:$0xff] }
 0x317   :  { %8238 = vst [vmem:[#allocation7_spill] sm:$0xff] %v5606_v8  ;;  %8240 = vst [vmem:[#allocation9_spill] sm:$0xff] %v5610_v50  ;;  %v5622_v26 = vmul.f32 %v5536_v10, %v8245_v33  ;;  %v5626_v6 = vmul.f32 %v5536_v10, %v8247_v15  ;;  %v8249_v8 = vld [vmem:[#allocation30_spill] sm:$0xff]  ;;  %v8251_v50 = vld [vmem:[#allocation32_spill] sm:$0xff] }
 0x318   :  { %8242 = vst [vmem:[#allocation6_spill] sm:$0xff] %v5614_v2  ;;  %8244 = vst [vmem:[#allocation8_spill] sm:$0xff] %v5618_v61  ;;  %v5630_v24 = vmul.f32 %v8249_v8, %v5536_v10  ;;  %v5634_v48 = vmul.f32 %v8251_v50, %v5536_v10  ;;  %v8253_v2 = vld [vmem:[#allocation39_spill] sm:$0xff]  ;;  %v8255_v61 = vld [vmem:[#allocation41_spill] sm:$0xff] }
 0x319   :  { %8246 = vst [vmem:[#allocation11_spill] sm:$0xff] %v5622_v26  ;;  %8248 = vst [vmem:[#allocation13_spill] sm:$0xff] %v5626_v6  ;;  %v5638_v13 = vmul.f32 %v5536_v10, %v8253_v2  ;;  %v5642_v33 = vmul.f32 %v5536_v10, %v8255_v61  ;;  %v8257_v26 = vld [vmem:[#allocation38_spill] sm:$0xff]  ;;  %v8259_v6 = vld [vmem:[#allocation40_spill] sm:$0xff] }
 0x31a   :  { %8250 = vst [vmem:[#allocation10_spill] sm:$0xff] %v5630_v24  ;;  %8252 = vst [vmem:[#allocation12_spill] sm:$0xff] %v5634_v48  ;;  %v5646_v15 = vmul.f32 %v8257_v26, %v5536_v10  ;;  %v5650_v8 = vmul.f32 %v8259_v6, %v5536_v10  ;;  %v8261_v24 = vld [vmem:[#allocation43_spill] sm:$0xff]  ;;  %v8263_v48 = vld [vmem:[#allocation45_spill] sm:$0xff] }
 0x31b   :  { %8254 = vst [vmem:[#allocation15_spill] sm:$0xff] %v5638_v13  ;;  %8256 = vst [vmem:[#allocation17_spill] sm:$0xff] %v5642_v33  ;;  %v5654_v50 = vmul.f32 %v5536_v10, %v8261_v24  ;;  %v5658_v2 = vmul.f32 %v5536_v10, %v8263_v48  ;;  %v8265_v13 = vld [vmem:[#allocation42_spill] sm:$0xff]  ;;  %v8267_v33 = vld [vmem:[#allocation44_spill] sm:$0xff] }
 0x31c   :  { %8258 = vst [vmem:[#allocation14_spill] sm:$0xff] %v5646_v15  ;;  %8260 = vst [vmem:[#allocation16_spill] sm:$0xff] %v5650_v8  ;;  %v5662_v61 = vmul.f32 %v8265_v13, %v5536_v10  ;;  %v5666_v26 = vmul.f32 %v8267_v33, %v5536_v10  ;;  %v8269_v15 = vld [vmem:[#allocation47_spill] sm:$0xff]  ;;  %v8271_v8 = vld [vmem:[#allocation49_spill] sm:$0xff] }
 0x31d   :  { %8262 = vst [vmem:[#allocation23_spill] sm:$0xff] %v5654_v50  ;;  %8264 = vst [vmem:[#allocation25_spill] sm:$0xff] %v5658_v2  ;;  %v5670_v6 = vmul.f32 %v5536_v10, %v8269_v15  ;;  %v5674_v24 = vmul.f32 %v5536_v10, %v8271_v8  ;;  %v8273_v50 = vld [vmem:[#allocation46_spill] sm:$0xff]  ;;  %v8275_v2 = vld [vmem:[#allocation48_spill] sm:$0xff] }
 0x31e   :  { %8266 = vst [vmem:[#allocation22_spill] sm:$0xff] %v5662_v61  ;;  %8268 = vst [vmem:[#allocation24_spill] sm:$0xff] %v5666_v26  ;;  %v5678_v48 = vmul.f32 %v8273_v50, %v5536_v10  ;;  %v5682_v13 = vmul.f32 %v8275_v2, %v5536_v10  ;;  %v8277_v61 = vld [vmem:[#allocation51_spill] sm:$0xff]  ;;  %v8279_v26 = vld [vmem:[#allocation53_spill] sm:$0xff] }
 0x31f   :  { %8270 = vst [vmem:[#allocation31_spill] sm:$0xff] %v5670_v6  ;;  %8272 = vst [vmem:[#allocation33_spill] sm:$0xff] %v5674_v24  ;;  %v5686_v33 = vmul.f32 %v5536_v10, %v8277_v61  ;;  %v5690_v15 = vmul.f32 %v5536_v10, %v8279_v26  ;;  %v8281_v6 = vld [vmem:[#allocation50_spill] sm:$0xff]  ;;  %v8283_v24 = vld [vmem:[#allocation52_spill] sm:$0xff] }
 0x320   :  { %8274 = vst [vmem:[#allocation30_spill] sm:$0xff] %v5678_v48  ;;  %8276 = vst [vmem:[#allocation32_spill] sm:$0xff] %v5682_v13  ;;  %v5694_v8 = vmul.f32 %v8281_v6, %v5536_v10  ;;  %v5698_v50 = vmul.f32 %v8283_v24, %v5536_v10  ;;  %v8285_v48 = vld [vmem:[#allocation55_spill] sm:$0xff]  ;;  %v8287_v13 = vld [vmem:[#allocation57_spill] sm:$0xff] }
 0x321   :  { %8278 = vst [vmem:[#allocation39_spill] sm:$0xff] %v5686_v33  ;;  %8280 = vst [vmem:[#allocation41_spill] sm:$0xff] %v5690_v15  ;;  %v5702_v2 = vmul.f32 %v5536_v10, %v8285_v48  ;;  %v5706_v61 = vmul.f32 %v5536_v10, %v8287_v13  ;;  %v8289_v33 = vld [vmem:[#allocation54_spill] sm:$0xff]  ;;  %v8291_v15 = vld [vmem:[#allocation56_spill] sm:$0xff] }
 0x322   :  { %8282 = vst [vmem:[#allocation38_spill] sm:$0xff] %v5694_v8  ;;  %8284 = vst [vmem:[#allocation40_spill] sm:$0xff] %v5698_v50  ;;  %v5710_v26 = vmul.f32 %v8289_v33, %v5536_v10  ;;  %v5714_v6 = vmul.f32 %v8291_v15, %v5536_v10  ;;  %v8293_v8 = vld [vmem:[#allocation59_spill] sm:$0xff]  ;;  %v8295_v50 = vld [vmem:[#allocation61_spill] sm:$0xff] }
 0x323   :  { %8286 = vst [vmem:[#allocation43_spill] sm:$0xff] %v5702_v2  ;;  %8288 = vst [vmem:[#allocation45_spill] sm:$0xff] %v5706_v61  ;;  %v5718_v24 = vmul.f32 %v5536_v10, %v8293_v8  ;;  %v5722_v48 = vmul.f32 %v5536_v10, %v8295_v50  ;;  %v8297_v2 = vld [vmem:[#allocation58_spill] sm:$0xff]  ;;  %v8299_v61 = vld [vmem:[#allocation60_spill] sm:$0xff] }
 0x324   :  { %8290 = vst [vmem:[#allocation42_spill] sm:$0xff] %v5710_v26  ;;  %8292 = vst [vmem:[#allocation44_spill] sm:$0xff] %v5714_v6  ;;  %v5726_v13 = vmul.f32 %v8297_v2, %v5536_v10  ;;  %v5730_v33 = vmul.f32 %v8299_v61, %v5536_v10  ;;  %v8301_v26 = vld [vmem:[#allocation63_spill] sm:$0xff]  ;;  %v8303_v6 = vld [vmem:[#allocation65_spill] sm:$0xff] }
 0x325   :  { %8294 = vst [vmem:[#allocation47_spill] sm:$0xff] %v5718_v24  ;;  %8296 = vst [vmem:[#allocation49_spill] sm:$0xff] %v5722_v48  ;;  %v5734_v15 = vmul.f32 %v5536_v10, %v8301_v26  ;;  %v5738_v8 = vmul.f32 %v5536_v10, %v8303_v6  ;;  %v8305_v24 = vld [vmem:[#allocation62_spill] sm:$0xff]  ;;  %v8307_v48 = vld [vmem:[#allocation64_spill] sm:$0xff] }
 0x326   :  { %8298 = vst [vmem:[#allocation46_spill] sm:$0xff] %v5726_v13  ;;  %8300 = vst [vmem:[#allocation48_spill] sm:$0xff] %v5730_v33  ;;  %v5742_v50 = vmul.f32 %v8305_v24, %v5536_v10  ;;  %v5746_v2 = vmul.f32 %v8307_v48, %v5536_v10  ;;  %v8309_v13 = vld [vmem:[#allocation67_spill] sm:$0xff]  ;;  %v8311_v33 = vld [vmem:[#allocation69_spill] sm:$0xff] }
 0x327   :  { %8302 = vst [vmem:[#allocation51_spill] sm:$0xff] %v5734_v15  ;;  %8304 = vst [vmem:[#allocation53_spill] sm:$0xff] %v5738_v8  ;;  %v5750_v61 = vmul.f32 %v5536_v10, %v8309_v13  ;;  %v5754_v26 = vmul.f32 %v5536_v10, %v8311_v33  ;;  %v8313_v15 = vld [vmem:[#allocation66_spill] sm:$0xff]  ;;  %v8315_v8 = vld [vmem:[#allocation68_spill] sm:$0xff] }
 0x328   :  { %8306 = vst [vmem:[#allocation50_spill] sm:$0xff] %v5742_v50  ;;  %8308 = vst [vmem:[#allocation52_spill] sm:$0xff] %v5746_v2  ;;  %v5758_v6 = vmul.f32 %v8313_v15, %v5536_v10  ;;  %v5762_v24 = vmul.f32 %v8315_v8, %v5536_v10  ;;  %v8317_v50 = vld [vmem:[#allocation71_spill] sm:$0xff]  ;;  %v8319_v2 = vld [vmem:[#allocation73_spill] sm:$0xff] }
 0x329   :  { %8310 = vst [vmem:[#allocation55_spill] sm:$0xff] %v5750_v61  ;;  %8312 = vst [vmem:[#allocation57_spill] sm:$0xff] %v5754_v26  ;;  %v5766_v48 = vmul.f32 %v5536_v10, %v8317_v50  ;;  %v5770_v13 = vmul.f32 %v5536_v10, %v8319_v2  ;;  %v8321_v61 = vld [vmem:[#allocation70_spill] sm:$0xff]  ;;  %v8323_v26 = vld [vmem:[#allocation72_spill] sm:$0xff] }
 0x32a   :  { %8314 = vst [vmem:[#allocation54_spill] sm:$0xff] %v5758_v6  ;;  %8316 = vst [vmem:[#allocation56_spill] sm:$0xff] %v5762_v24  ;;  %v5774_v33 = vmul.f32 %v8321_v61, %v5536_v10  ;;  %v5778_v15 = vmul.f32 %v8323_v26, %v5536_v10  ;;  %v8325_v6 = vld [vmem:[#allocation77_spill] sm:$0xff]  ;;  %v8327_v24 = vld [vmem:[#allocation79_spill] sm:$0xff] }
 0x32b   :  { %8318 = vst [vmem:[#allocation59_spill] sm:$0xff] %v5766_v48  ;;  %8320 = vst [vmem:[#allocation61_spill] sm:$0xff] %v5770_v13  ;;  %v5782_v8 = vmul.f32 %v5536_v10, %v8325_v6  ;;  %v5786_v50 = vmul.f32 %v5536_v10, %v8327_v24  ;;  %v8329_v48 = vld [vmem:[#allocation76_spill] sm:$0xff]  ;;  %v8331_v13 = vld [vmem:[#allocation78_spill] sm:$0xff] }
 0x32c   :  { %8322 = vst [vmem:[#allocation58_spill] sm:$0xff] %v5774_v33  ;;  %8324 = vst [vmem:[#allocation60_spill] sm:$0xff] %v5778_v15  ;;  %v5790_v2 = vmul.f32 %v8329_v48, %v5536_v10  ;;  %v5794_v61 = vmul.f32 %v8331_v13, %v5536_v10  ;;  %v8333_v33 = vld [vmem:[#allocation19_spill] sm:$0xff]  ;;  %v8335_v15 = vld [vmem:[#allocation21_spill] sm:$0xff] }
 0x32d   :  { %8326 = vst [vmem:[#allocation63_spill] sm:$0xff] %v5782_v8  ;;  %8328 = vst [vmem:[#allocation65_spill] sm:$0xff] %v5786_v50  ;;  %v5798_v26 = vmul.f32 %v5536_v10, %v8333_v33  ;;  %v5802_v6 = vmul.f32 %v5536_v10, %v8335_v15  ;;  %v8337_v8 = vld [vmem:[#allocation18_spill] sm:$0xff]  ;;  %v8339_v50 = vld [vmem:[#allocation20_spill] sm:$0xff] }
 0x32e   :  { %8330 = vst [vmem:[#allocation62_spill] sm:$0xff] %v5790_v2  ;;  %8332 = vst [vmem:[#allocation64_spill] sm:$0xff] %v5794_v61  ;;  %v5806_v24 = vmul.f32 %v8337_v8, %v5536_v10  ;;  %v5810_v48 = vmul.f32 %v8339_v50, %v5536_v10  ;;  %v8340_v2 = vld [vmem:[#allocation27_spill] sm:$0xff]  ;;  %v8341_v61 = vld [vmem:[#allocation29_spill] sm:$0xff] }
 0x32f   :  { %8334 = vst [vmem:[#allocation67_spill] sm:$0xff] %v5798_v26  ;;  %8336 = vst [vmem:[#allocation69_spill] sm:$0xff] %v5802_v6  ;;  %v5814_v13 = vmul.f32 %v5536_v10, %v8340_v2  ;;  %v5818_v33 = vmul.f32 %v5536_v10, %v8341_v61  ;;  %v8342_v26 = vld [vmem:[#allocation26_spill] sm:$0xff]  ;;  %v8343_v6 = vld [vmem:[#allocation28_spill] sm:$0xff]  ;;  %v5834_v2 = vmul.f32 %v5536_v10, %v8200_v62 }
 0x330   :  { %8338 = vst [vmem:[#allocation66_spill] sm:$0xff] %v5806_v24  ;;  %v5822_v15 = vmul.f32 %v8342_v26, %v5536_v10  ;;  %v5826_v8 = vmul.f32 %v8343_v6, %v5536_v10  ;;  %v8344_v24 = vld [vmem:[#allocation35_spill] sm:$0xff]  ;;  %v5838_v61 = vmul.f32 %v8201_v9, %v5536_v10  ;;  %v5842_v26 = vmul.f32 %v8202_v5, %v5536_v10 }
 0x331   :  { %v5830_v50 = vmul.f32 %v5536_v10, %v8344_v24  ;;  %v5846_v6 = vmul.f32 %v5536_v10, %v4756_v51  ;;  %v5850_v24 = vmul.f32 %v5536_v10, %v4762_v58  ;;  %v5854_v62 = vmul.f32 %v4752_v47, %v5536_v10 }
 0x332   :  { %v5858_v9 = vmul.f32 %v4758_v54, %v5536_v10  ;;  %v5862_v5 = vmul.f32 %v5536_v10, %v4780_v29  ;;  %v5866_v51 = vmul.f32 %v5536_v10, %v4786_v38  ;;  %v5870_v58 = vmul.f32 %v4776_v23, %v5536_v10 }
 0x333   :  { %v5874_v47 = vmul.f32 %v4782_v34, %v5536_v10  ;;  %v5878_v54 = vmul.f32 %v5536_v10, %v4804_v37  ;;  %v5882_v29 = vmul.f32 %v5536_v10, %v4810_v49  ;;  %v5886_v38 = vmul.f32 %v4800_v25, %v5536_v10 }
 0x334   :  { %v5890_v23 = vmul.f32 %v4806_v1, %v5536_v10  ;;  %v5894_v34 = vmul.f32 %v5536_v10, %v4828_v42  ;;  %v5898_v37 = vmul.f32 %v5536_v10, %v4834_v60  ;;  %v5902_v49 = vmul.f32 %v4824_v53, %v5536_v10 }
 0x335   :  { %v5906_v25 = vmul.f32 %v4830_v35, %v5536_v10  ;;  %v5910_v1 = vmul.f32 %v5536_v10, %v4852_v57  ;;  %v5914_v42 = vmul.f32 %v5536_v10, %v4858_v3  ;;  %v5918_v60 = vmul.f32 %v4848_v63, %v5536_v10 }
 0x336   :  { %v5922_v53 = vmul.f32 %v4854_v11, %v5536_v10  ;;  %v5926_v35 = vmul.f32 %v5536_v10, %v4876_v18  ;;  %v5930_v57 = vmul.f32 %v5536_v10, %v4882_v36  ;;  %v5934_v3 = vmul.f32 %v4872_v14, %v5536_v10 }
 0x337   :  { %v5938_v63 = vmul.f32 %v4878_v55, %v5536_v10  ;;  %v5942_v11 = vmul.f32 %v5536_v10, %v4900_v44  ;;  %v5946_v18 = vmul.f32 %v5536_v10, %v4906_v12  ;;  %v5950_v36 = vmul.f32 %v4896_v41, %v5536_v10 }
 0x338   :  { %v5954_v14 = vmul.f32 %v4902_v39, %v5536_v10  ;;  %v5958_v55 = vmul.f32 %v5536_v10, %v4924_v20  ;;  %v5962_v44 = vmul.f32 %v5536_v10, %v4930_v56  ;;  %v5966_v12 = vmul.f32 %v4920_v16, %v5536_v10 }
 0x339   :  { %8345 = vst [vmem:[#allocation68_spill] sm:$0xff] %v5950_v36  ;;  %v5970_v41 = vmul.f32 %v4926_v27, %v5536_v10  ;;  %v8346_v36 = vld [vmem:[#allocation74_spill] sm:$0xff]  ;;  %v5978_v20 = vmul.f32 %v5536_v10, %v4954_v40  ;;  %v5982_v56 = vmul.f32 %v4944_v59, %v5536_v10  ;;  %v5986_v16 = vmul.f32 %v8203_v17, %v5536_v10 }
 0x33a   :  { %v5974_v39 = vmul.f32 %v5536_v10, %v8346_v36  ;;  %v5990_v27 = vmul.f32 %v5536_v10, %v4972_v45  ;;  %v5994_v36 = vmul.f32 %v5536_v10, %v4978_v28  ;;  %v5998_v40 = vmul.f32 %v4968_v43, %v5536_v10 }
 0x33b   :  { %8347 = vst [vmem:[#allocation71_spill] sm:$0xff] %v5978_v20  ;;  %8348 = vst [vmem:[#allocation73_spill] sm:$0xff] %v5982_v56  ;;  %v8353_v20 = vld [vmem:[#allocation80_spill] sm:$0xff]  ;;  %v8355_v56 = vld [vmem:[#allocation82_spill] sm:$0xff] }
 0x33c   :  { %8349 = vst [vmem:[#allocation70_spill] sm:$0xff] %v5986_v16  ;;  %8350 = vst [vmem:[#allocation72_spill] sm:$0xff] %v5990_v27  ;;  %v6002_v59 = vmul.f32 %v8353_v20, %v5536_v10  ;;  %v6006_v17 = vmul.f32 %v5536_v10, %v8355_v56  ;;  %v8357_v16 = vld [vmem:[#allocation84_spill] sm:$0xff]  ;;  %v8359_v27 = vld [vmem:[#allocation81_spill] sm:$0xff] }
 0x33d   :  { %8351 = vst [vmem:[#allocation77_spill] sm:$0xff] %v5994_v36  ;;  %8352 = vst [vmem:[#allocation79_spill] sm:$0xff] %v5998_v40  ;;  %v6010_v45 = vmul.f32 %v5536_v10, %v8357_v16  ;;  %v6014_v28 = vmul.f32 %v8359_v27, %v5536_v10  ;;  %v8361_v36 = vld [vmem:[#allocation83_spill] sm:$0xff]  ;;  %v8363_v40 = vld [vmem:[#allocation86_spill] sm:$0xff] }
 0x33e   :  { %8354 = vst [vmem:[#allocation76_spill] sm:$0xff] %v6002_v59  ;;  %8356 = vst [vmem:[#allocation78_spill] sm:$0xff] %v6006_v17  ;;  %v6018_v43 = vmul.f32 %v8361_v36, %v5536_v10  ;;  %v6022_v20 = vmul.f32 %v5536_v10, %v8363_v40  ;;  %v8365_v59 = vld [vmem:[#allocation88_spill] sm:$0xff]  ;;  %v8367_v17 = vld [vmem:[#allocation85_spill] sm:$0xff] }
 0x33f   :  { %8358 = vst [vmem:[#allocation19_spill] sm:$0xff] %v6010_v45  ;;  %8360 = vst [vmem:[#allocation21_spill] sm:$0xff] %v6014_v28  ;;  %v6026_v56 = vmul.f32 %v5536_v10, %v8365_v59  ;;  %v6030_v16 = vmul.f32 %v8367_v17, %v5536_v10  ;;  %v8369_v45 = vld [vmem:[#allocation87_spill] sm:$0xff]  ;;  %v8371_v28 = vld [vmem:[#allocation90_spill] sm:$0xff] }
 0x340   :  { %8362 = vst [vmem:[#allocation18_spill] sm:$0xff] %v6018_v43  ;;  %8364 = vst [vmem:[#allocation20_spill] sm:$0xff] %v6022_v20  ;;  %v6034_v27 = vmul.f32 %v8369_v45, %v5536_v10  ;;  %v6038_v36 = vmul.f32 %v5536_v10, %v8371_v28  ;;  %v8372_v43 = vld [vmem:[#allocation92_spill] sm:$0xff]  ;;  %v8373_v20 = vld [vmem:[#allocation89_spill] sm:$0xff]  ;;  %v8376_v45 = vsub.f32 %v5529_v19, %v5532_v30 }
 0x341   :  { %8366 = vst [vmem:[#allocation27_spill] sm:$0xff] %v6026_v56  ;;  %8368 = vst [vmem:[#allocation29_spill] sm:$0xff] %v6030_v16  ;;  %v6042_v40 = vmul.f32 %v5536_v10, %v8372_v43  ;;  %v6046_v59 = vmul.f32 %v8373_v20, %v5536_v10  ;;  %v8374_v56 = vld [vmem:[#allocation91_spill] sm:$0xff]  ;;  %v8375_v16 = vsub.s32 0, %v5520_v46 }
 0x342   :  { %8370 = vst [vmem:[#allocation26_spill] sm:$0xff] %v6034_v27  ;;  %v6050_v17 = vmul.f32 %v8374_v56, %v5536_v10  ;;  %v8389_v56 = vld [vmem:[#allocation36_spill] sm:$0xff] }
 0x343   :  { %v6057_v27 = vrot.slane %v8376_v45, %v8375_v16  ;;  %v8391_v16 = vld [vmem:[#allocation75_spill] sm:$0xff] }
 0x344   :  { %v8393_v45 = vld [vmem:[#allocation3_spill] sm:$0xff] }
 0x345   :  { %v6061_v28 = vadd.f32 %v6057_v27, %v5542_v22  ;;  %v6065_v43 = vadd.f32 %v6057_v27, %v5546_v21  ;;  %v6069_v20 = vadd.f32 %v6057_v27, %v5550_v52  ;;  %v6073_v46 = vadd.f32 %v6057_v27, %v5554_v7  ;;  %v8385_v21 = vld [vmem:[#allocation37_spill] sm:$0xff]  ;;  %v8387_v7 = vld [vmem:[#allocation34_spill] sm:$0xff] }
 0x346   :  { %v6077_v19 = vadd.f32 %v6057_v27, %v5558_v31  ;;  %v6081_v30 = vadd.f32 %v6057_v27, %v5562_v4  ;;  %v6085_v10 = vadd.f32 %v6057_v27, %v5566_v0  ;;  %v6089_v22 = vadd.f32 %v6057_v27, %v5570_v32 }
 0x347   :  { %8377 = vst [vmem:[#allocation28_spill] sm:$0xff] %v6061_v28  ;;  %8378 = vst [vmem:[#allocation35_spill] sm:$0xff] %v6065_v43  ;;  %v6093_v52 = vadd.f32 %v6057_v27, %v8385_v21  ;;  %v6097_v31 = vadd.f32 %v6057_v27, %v8387_v7  ;;  %v6101_v4 = vadd.f32 %v6057_v27, %v8389_v56 }
 0x348   :  { %8379 = vst [vmem:[#allocation74_spill] sm:$0xff] %v6069_v20  ;;  %8380 = vst [vmem:[#allocation80_spill] sm:$0xff] %v6073_v46  ;;  %v6105_v0 = vadd.f32 %v6057_v27, %v8391_v16  ;;  %v6109_v32 = vadd.f32 %v6057_v27, %v8393_v45 }
 0x349   :  { %8381 = vst [vmem:[#allocation82_spill] sm:$0xff] %v6077_v19  ;;  %8382 = vst [vmem:[#allocation84_spill] sm:$0xff] %v6081_v30 }
 0x34a   :  { %8383 = vst [vmem:[#allocation81_spill] sm:$0xff] %v6085_v10  ;;  %8384 = vst [vmem:[#allocation83_spill] sm:$0xff] %v6089_v22  ;;  %v8395_v22 = vld [vmem:[#allocation5_spill] sm:$0xff] }
 0x34b   :  { %8386 = vst [vmem:[#allocation86_spill] sm:$0xff] %v6093_v52  ;;  %8388 = vst [vmem:[#allocation88_spill] sm:$0xff] %v6097_v31  ;;  %v6113_v21 = vadd.f32 %v6057_v27, %v8395_v22  ;;  %v8397_v52 = vld [vmem:[#allocation2_spill] sm:$0xff]  ;;  %v8399_v31 = vld [vmem:[#allocation4_spill] sm:$0xff] }
 0x34c   :  { %8390 = vst [vmem:[#allocation85_spill] sm:$0xff] %v6101_v4  ;;  %8392 = vst [vmem:[#allocation87_spill] sm:$0xff] %v6105_v0  ;;  %v6117_v7 = vadd.f32 %v6057_v27, %v8397_v52  ;;  %v6121_v56 = vadd.f32 %v6057_v27, %v8399_v31  ;;  %v8401_v4 = vld [vmem:[#allocation7_spill] sm:$0xff]  ;;  %v8403_v0 = vld [vmem:[#allocation9_spill] sm:$0xff] }
 0x34d   :  { %8394 = vst [vmem:[#allocation90_spill] sm:$0xff] %v6109_v32  ;;  %8396 = vst [vmem:[#allocation92_spill] sm:$0xff] %v6113_v21  ;;  %v6125_v16 = vadd.f32 %v6057_v27, %v8401_v4  ;;  %v6129_v45 = vadd.f32 %v6057_v27, %v8403_v0  ;;  %v8405_v32 = vld [vmem:[#allocation6_spill] sm:$0xff]  ;;  %v8407_v21 = vld [vmem:[#allocation8_spill] sm:$0xff] }
 0x34e   :  { %8398 = vst [vmem:[#allocation89_spill] sm:$0xff] %v6117_v7  ;;  %8400 = vst [vmem:[#allocation91_spill] sm:$0xff] %v6121_v56  ;;  %v6133_v22 = vadd.f32 %v6057_v27, %v8405_v32  ;;  %v6137_v52 = vadd.f32 %v6057_v27, %v8407_v21  ;;  %v8409_v7 = vld [vmem:[#allocation11_spill] sm:$0xff]  ;;  %v8411_v56 = vld [vmem:[#allocation13_spill] sm:$0xff] }
 0x34f   :  { %8402 = vst [vmem:[#allocation37_spill] sm:$0xff] %v6125_v16  ;;  %8404 = vst [vmem:[#allocation34_spill] sm:$0xff] %v6129_v45  ;;  %v6141_v31 = vadd.f32 %v6057_v27, %v8409_v7  ;;  %v6145_v4 = vadd.f32 %v6057_v27, %v8411_v56  ;;  %v8413_v16 = vld [vmem:[#allocation10_spill] sm:$0xff]  ;;  %v8415_v45 = vld [vmem:[#allocation12_spill] sm:$0xff] }
 0x350   :  { %8406 = vst [vmem:[#allocation36_spill] sm:$0xff] %v6133_v22  ;;  %8408 = vst [vmem:[#allocation75_spill] sm:$0xff] %v6137_v52  ;;  %v6149_v0 = vadd.f32 %v6057_v27, %v8413_v16  ;;  %v6153_v32 = vadd.f32 %v6057_v27, %v8415_v45  ;;  %v8417_v22 = vld [vmem:[#allocation15_spill] sm:$0xff]  ;;  %v8419_v52 = vld [vmem:[#allocation17_spill] sm:$0xff] }
 0x351   :  { %8410 = vst [vmem:[#allocation3_spill] sm:$0xff] %v6141_v31  ;;  %8412 = vst [vmem:[#allocation5_spill] sm:$0xff] %v6145_v4  ;;  %v6157_v21 = vadd.f32 %v6057_v27, %v8417_v22  ;;  %v6161_v7 = vadd.f32 %v6057_v27, %v8419_v52  ;;  %v8421_v31 = vld [vmem:[#allocation14_spill] sm:$0xff]  ;;  %v8423_v4 = vld [vmem:[#allocation16_spill] sm:$0xff] }
 0x352   :  { %8414 = vst [vmem:[#allocation2_spill] sm:$0xff] %v6149_v0  ;;  %8416 = vst [vmem:[#allocation4_spill] sm:$0xff] %v6153_v32  ;;  %v6165_v56 = vadd.f32 %v6057_v27, %v8421_v31  ;;  %v6169_v16 = vadd.f32 %v6057_v27, %v8423_v4  ;;  %v8425_v0 = vld [vmem:[#allocation23_spill] sm:$0xff]  ;;  %v8427_v32 = vld [vmem:[#allocation25_spill] sm:$0xff] }
 0x353   :  { %8418 = vst [vmem:[#allocation7_spill] sm:$0xff] %v6157_v21  ;;  %8420 = vst [vmem:[#allocation9_spill] sm:$0xff] %v6161_v7  ;;  %v6173_v45 = vadd.f32 %v6057_v27, %v8425_v0  ;;  %v6177_v22 = vadd.f32 %v6057_v27, %v8427_v32  ;;  %v8429_v21 = vld [vmem:[#allocation22_spill] sm:$0xff]  ;;  %v8431_v7 = vld [vmem:[#allocation24_spill] sm:$0xff] }
 0x354   :  { %8422 = vst [vmem:[#allocation6_spill] sm:$0xff] %v6165_v56  ;;  %8424 = vst [vmem:[#allocation8_spill] sm:$0xff] %v6169_v16  ;;  %v6181_v52 = vadd.f32 %v6057_v27, %v8429_v21  ;;  %v6185_v31 = vadd.f32 %v6057_v27, %v8431_v7  ;;  %v8433_v56 = vld [vmem:[#allocation31_spill] sm:$0xff]  ;;  %v8435_v16 = vld [vmem:[#allocation33_spill] sm:$0xff] }
 0x355   :  { %8426 = vst [vmem:[#allocation11_spill] sm:$0xff] %v6173_v45  ;;  %8428 = vst [vmem:[#allocation13_spill] sm:$0xff] %v6177_v22  ;;  %v6189_v4 = vadd.f32 %v6057_v27, %v8433_v56  ;;  %v6193_v0 = vadd.f32 %v6057_v27, %v8435_v16  ;;  %v8437_v45 = vld [vmem:[#allocation30_spill] sm:$0xff]  ;;  %v8439_v22 = vld [vmem:[#allocation32_spill] sm:$0xff] }
 0x356   :  { %8430 = vst [vmem:[#allocation10_spill] sm:$0xff] %v6181_v52  ;;  %8432 = vst [vmem:[#allocation12_spill] sm:$0xff] %v6185_v31  ;;  %v6197_v32 = vadd.f32 %v6057_v27, %v8437_v45  ;;  %v6201_v21 = vadd.f32 %v6057_v27, %v8439_v22  ;;  %v8441_v52 = vld [vmem:[#allocation39_spill] sm:$0xff]  ;;  %v8443_v31 = vld [vmem:[#allocation41_spill] sm:$0xff] }
 0x357   :  { %8434 = vst [vmem:[#allocation15_spill] sm:$0xff] %v6189_v4  ;;  %8436 = vst [vmem:[#allocation17_spill] sm:$0xff] %v6193_v0  ;;  %v6205_v7 = vadd.f32 %v6057_v27, %v8441_v52  ;;  %v6209_v56 = vadd.f32 %v6057_v27, %v8443_v31  ;;  %v8445_v4 = vld [vmem:[#allocation38_spill] sm:$0xff]  ;;  %v8447_v0 = vld [vmem:[#allocation40_spill] sm:$0xff] }
 0x358   :  { %8438 = vst [vmem:[#allocation14_spill] sm:$0xff] %v6197_v32  ;;  %8440 = vst [vmem:[#allocation16_spill] sm:$0xff] %v6201_v21  ;;  %v6213_v16 = vadd.f32 %v6057_v27, %v8445_v4  ;;  %v6217_v45 = vadd.f32 %v6057_v27, %v8447_v0  ;;  %v8449_v32 = vld [vmem:[#allocation43_spill] sm:$0xff]  ;;  %v8451_v21 = vld [vmem:[#allocation45_spill] sm:$0xff] }
 0x359   :  { %8442 = vst [vmem:[#allocation23_spill] sm:$0xff] %v6205_v7  ;;  %8444 = vst [vmem:[#allocation25_spill] sm:$0xff] %v6209_v56  ;;  %v6221_v22 = vadd.f32 %v6057_v27, %v8449_v32  ;;  %v6225_v52 = vadd.f32 %v6057_v27, %v8451_v21  ;;  %v8453_v7 = vld [vmem:[#allocation42_spill] sm:$0xff]  ;;  %v8455_v56 = vld [vmem:[#allocation44_spill] sm:$0xff] }
 0x35a   :  { %8446 = vst [vmem:[#allocation22_spill] sm:$0xff] %v6213_v16  ;;  %8448 = vst [vmem:[#allocation24_spill] sm:$0xff] %v6217_v45  ;;  %v6229_v31 = vadd.f32 %v6057_v27, %v8453_v7  ;;  %v6233_v4 = vadd.f32 %v6057_v27, %v8455_v56  ;;  %v8457_v16 = vld [vmem:[#allocation47_spill] sm:$0xff]  ;;  %v8459_v45 = vld [vmem:[#allocation49_spill] sm:$0xff] }
 0x35b   :  { %8450 = vst [vmem:[#allocation31_spill] sm:$0xff] %v6221_v22  ;;  %8452 = vst [vmem:[#allocation33_spill] sm:$0xff] %v6225_v52  ;;  %v6237_v0 = vadd.f32 %v6057_v27, %v8457_v16  ;;  %v6241_v32 = vadd.f32 %v6057_v27, %v8459_v45  ;;  %v8461_v22 = vld [vmem:[#allocation46_spill] sm:$0xff]  ;;  %v8463_v52 = vld [vmem:[#allocation48_spill] sm:$0xff] }
 0x35c   :  { %8454 = vst [vmem:[#allocation30_spill] sm:$0xff] %v6229_v31  ;;  %8456 = vst [vmem:[#allocation32_spill] sm:$0xff] %v6233_v4  ;;  %v6245_v21 = vadd.f32 %v6057_v27, %v8461_v22  ;;  %v6249_v7 = vadd.f32 %v6057_v27, %v8463_v52  ;;  %v8465_v31 = vld [vmem:[#allocation51_spill] sm:$0xff]  ;;  %v8467_v4 = vld [vmem:[#allocation53_spill] sm:$0xff] }
 0x35d   :  { %8458 = vst [vmem:[#allocation39_spill] sm:$0xff] %v6237_v0  ;;  %8460 = vst [vmem:[#allocation41_spill] sm:$0xff] %v6241_v32  ;;  %v6253_v56 = vadd.f32 %v6057_v27, %v8465_v31  ;;  %v6257_v16 = vadd.f32 %v6057_v27, %v8467_v4  ;;  %v8469_v0 = vld [vmem:[#allocation50_spill] sm:$0xff]  ;;  %v8471_v32 = vld [vmem:[#allocation52_spill] sm:$0xff] }
 0x35e   :  { %8462 = vst [vmem:[#allocation38_spill] sm:$0xff] %v6245_v21  ;;  %8464 = vst [vmem:[#allocation40_spill] sm:$0xff] %v6249_v7  ;;  %v6261_v45 = vadd.f32 %v6057_v27, %v8469_v0  ;;  %v6265_v22 = vadd.f32 %v6057_v27, %v8471_v32  ;;  %v8473_v21 = vld [vmem:[#allocation55_spill] sm:$0xff]  ;;  %v8475_v7 = vld [vmem:[#allocation57_spill] sm:$0xff] }
 0x35f   :  { %8466 = vst [vmem:[#allocation43_spill] sm:$0xff] %v6253_v56  ;;  %8468 = vst [vmem:[#allocation45_spill] sm:$0xff] %v6257_v16  ;;  %v6269_v52 = vadd.f32 %v6057_v27, %v8473_v21  ;;  %v6273_v31 = vadd.f32 %v6057_v27, %v8475_v7  ;;  %v8477_v56 = vld [vmem:[#allocation54_spill] sm:$0xff]  ;;  %v8479_v16 = vld [vmem:[#allocation56_spill] sm:$0xff] }
 0x360   :  { %8470 = vst [vmem:[#allocation42_spill] sm:$0xff] %v6261_v45  ;;  %8472 = vst [vmem:[#allocation44_spill] sm:$0xff] %v6265_v22  ;;  %v6277_v4 = vadd.f32 %v6057_v27, %v8477_v56  ;;  %v6281_v0 = vadd.f32 %v6057_v27, %v8479_v16  ;;  %v8481_v45 = vld [vmem:[#allocation59_spill] sm:$0xff]  ;;  %v8483_v22 = vld [vmem:[#allocation61_spill] sm:$0xff] }
 0x361   :  { %8474 = vst [vmem:[#allocation47_spill] sm:$0xff] %v6269_v52  ;;  %8476 = vst [vmem:[#allocation49_spill] sm:$0xff] %v6273_v31  ;;  %v6285_v32 = vadd.f32 %v6057_v27, %v8481_v45  ;;  %v6289_v21 = vadd.f32 %v6057_v27, %v8483_v22  ;;  %v8485_v52 = vld [vmem:[#allocation58_spill] sm:$0xff]  ;;  %v8487_v31 = vld [vmem:[#allocation60_spill] sm:$0xff] }
 0x362   :  { %8478 = vst [vmem:[#allocation46_spill] sm:$0xff] %v6277_v4  ;;  %8480 = vst [vmem:[#allocation48_spill] sm:$0xff] %v6281_v0  ;;  %v6293_v7 = vadd.f32 %v6057_v27, %v8485_v52  ;;  %v6297_v56 = vadd.f32 %v6057_v27, %v8487_v31  ;;  %v8489_v4 = vld [vmem:[#allocation63_spill] sm:$0xff]  ;;  %v8491_v0 = vld [vmem:[#allocation65_spill] sm:$0xff] }
 0x363   :  { %8482 = vst [vmem:[#allocation51_spill] sm:$0xff] %v6285_v32  ;;  %8484 = vst [vmem:[#allocation53_spill] sm:$0xff] %v6289_v21  ;;  %v6301_v16 = vadd.f32 %v6057_v27, %v8489_v4  ;;  %v6305_v45 = vadd.f32 %v6057_v27, %v8491_v0  ;;  %v8493_v32 = vld [vmem:[#allocation62_spill] sm:$0xff]  ;;  %v8495_v21 = vld [vmem:[#allocation64_spill] sm:$0xff] }
 0x364   :  { %8486 = vst [vmem:[#allocation50_spill] sm:$0xff] %v6293_v7  ;;  %8488 = vst [vmem:[#allocation52_spill] sm:$0xff] %v6297_v56  ;;  %v6309_v22 = vadd.f32 %v6057_v27, %v8493_v32  ;;  %v6313_v52 = vadd.f32 %v6057_v27, %v8495_v21  ;;  %v8497_v7 = vld [vmem:[#allocation67_spill] sm:$0xff]  ;;  %v8499_v56 = vld [vmem:[#allocation69_spill] sm:$0xff]  ;;  %v6329_v32 = vadd.f32 %v6057_v27, %v5810_v48 }
 0x365   :  { %8490 = vst [vmem:[#allocation55_spill] sm:$0xff] %v6301_v16  ;;  %8492 = vst [vmem:[#allocation57_spill] sm:$0xff] %v6305_v45  ;;  %v6317_v31 = vadd.f32 %v6057_v27, %v8497_v7  ;;  %v6321_v4 = vadd.f32 %v6057_v27, %v8499_v56  ;;  %v8501_v16 = vld [vmem:[#allocation66_spill] sm:$0xff]  ;;  %v6333_v21 = vadd.f32 %v6057_v27, %v5814_v13 }
 0x366   :  { %8494 = vst [vmem:[#allocation54_spill] sm:$0xff] %v6309_v22  ;;  %8496 = vst [vmem:[#allocation56_spill] sm:$0xff] %v6313_v52  ;;  %v6325_v0 = vadd.f32 %v6057_v27, %v8501_v16  ;;  %v6337_v7 = vadd.f32 %v6057_v27, %v5818_v33  ;;  %v6341_v56 = vadd.f32 %v6057_v27, %v5822_v15 }
 0x367   :  { %8498 = vst [vmem:[#allocation59_spill] sm:$0xff] %v6317_v31  ;;  %8500 = vst [vmem:[#allocation61_spill] sm:$0xff] %v6321_v4  ;;  %v6345_v16 = vadd.f32 %v6057_v27, %v5826_v8  ;;  %v6349_v48 = vadd.f32 %v6057_v27, %v5830_v50  ;;  %v6353_v13 = vadd.f32 %v6057_v27, %v5834_v2 }
 0x368   :  { %8502 = vst [vmem:[#allocation58_spill] sm:$0xff] %v6325_v0  ;;  %8503 = vst [vmem:[#allocation60_spill] sm:$0xff] %v6329_v32  ;;  %v6357_v33 = vadd.f32 %v6057_v27, %v5838_v61  ;;  %v6361_v15 = vadd.f32 %v6057_v27, %v5842_v26  ;;  %v6365_v8 = vadd.f32 %v6057_v27, %v5846_v6 }
 0x369   :  { %8504 = vst [vmem:[#allocation63_spill] sm:$0xff] %v6333_v21  ;;  %8505 = vst [vmem:[#allocation65_spill] sm:$0xff] %v6337_v7  ;;  %v6369_v50 = vadd.f32 %v6057_v27, %v5850_v24  ;;  %v6373_v2 = vadd.f32 %v6057_v27, %v5854_v62  ;;  %v6377_v61 = vadd.f32 %v6057_v27, %v5858_v9 }
 0x36a   :  { %8506 = vst [vmem:[#allocation62_spill] sm:$0xff] %v6341_v56  ;;  %8507 = vst [vmem:[#allocation64_spill] sm:$0xff] %v6345_v16  ;;  %v6381_v26 = vadd.f32 %v6057_v27, %v5862_v5  ;;  %v6385_v6 = vadd.f32 %v6057_v27, %v5866_v51  ;;  %v6389_v24 = vadd.f32 %v6057_v27, %v5870_v58 }
 0x36b   :  { %8508 = vst [vmem:[#allocation67_spill] sm:$0xff] %v6349_v48  ;;  %8509 = vst [vmem:[#allocation69_spill] sm:$0xff] %v6353_v13  ;;  %v6393_v62 = vadd.f32 %v6057_v27, %v5874_v47  ;;  %v6397_v9 = vadd.f32 %v6057_v27, %v5878_v54  ;;  %v6401_v5 = vadd.f32 %v6057_v27, %v5882_v29 }
 0x36c   :  { %8510 = vst [vmem:[#allocation66_spill] sm:$0xff] %v6357_v33  ;;  %8511 = vst [vmem:[#allocation93_spill] sm:$0xff] %v6361_v15  ;;  %v6405_v51 = vadd.f32 %v6057_v27, %v5886_v38  ;;  %v6409_v58 = vadd.f32 %v6057_v27, %v5890_v23  ;;  %v6413_v47 = vadd.f32 %v6057_v27, %v5894_v34 }
 0x36d   :  { %8512 = vst [vmem:[#allocation94_spill] sm:$0xff] %v6365_v8  ;;  %8513 = vst [vmem:[#allocation95_spill] sm:$0xff] %v6369_v50  ;;  %v6417_v54 = vadd.f32 %v6057_v27, %v5898_v37  ;;  %v6421_v29 = vadd.f32 %v6057_v27, %v5902_v49  ;;  %v6425_v38 = vadd.f32 %v6057_v27, %v5906_v25 }
 0x36e   :  { %8514 = vst [vmem:[#allocation96_spill] sm:$0xff] %v6373_v2  ;;  %8515 = vst [vmem:[#allocation97_spill] sm:$0xff] %v6377_v61  ;;  %v6429_v23 = vadd.f32 %v6057_v27, %v5910_v1  ;;  %v6433_v34 = vadd.f32 %v6057_v27, %v5914_v42  ;;  %v6437_v37 = vadd.f32 %v6057_v27, %v5918_v60 }
 0x36f   :  { %8516 = vst [vmem:[#allocation98_spill] sm:$0xff] %v6381_v26  ;;  %8517 = vst [vmem:[#allocation99_spill] sm:$0xff] %v6385_v6  ;;  %v6441_v49 = vadd.f32 %v6057_v27, %v5922_v53  ;;  %v6445_v25 = vadd.f32 %v6057_v27, %v5926_v35  ;;  %v6449_v1 = vadd.f32 %v6057_v27, %v5930_v57 }
 0x370   :  { %8518 = vst [vmem:[#allocation100_spill] sm:$0xff] %v6389_v24  ;;  %8519 = vst [vmem:[#allocation101_spill] sm:$0xff] %v6393_v62  ;;  %v6453_v42 = vadd.f32 %v6057_v27, %v5934_v3  ;;  %v6457_v60 = vadd.f32 %v6057_v27, %v5938_v63  ;;  %v6461_v53 = vadd.f32 %v6057_v27, %v5942_v11 }
 0x371   :  { %8520 = vst [vmem:[#allocation102_spill] sm:$0xff] %v6397_v9  ;;  %8521 = vst [vmem:[#allocation103_spill] sm:$0xff] %v6401_v5  ;;  %v6465_v35 = vadd.f32 %v6057_v27, %v5946_v18  ;;  %v6473_v3 = vadd.f32 %v6057_v27, %v5954_v14  ;;  %v6477_v63 = vadd.f32 %v6057_v27, %v5958_v55 }
 0x372   :  { %8522 = vst [vmem:[#allocation104_spill] sm:$0xff] %v6405_v51  ;;  %8523 = vst [vmem:[#allocation105_spill] sm:$0xff] %v6409_v58  ;;  %v6481_v11 = vadd.f32 %v6057_v27, %v5962_v44  ;;  %v6485_v18 = vadd.f32 %v6057_v27, %v5966_v12  ;;  %v6493_v14 = vadd.f32 %v6057_v27, %v5974_v39 }
 0x373   :  { %8524 = vst [vmem:[#allocation106_spill] sm:$0xff] %v6413_v47  ;;  %8525 = vst [vmem:[#allocation107_spill] sm:$0xff] %v6417_v54 }
 0x374   :  { %8526 = vst [vmem:[#allocation108_spill] sm:$0xff] %v6421_v29  ;;  %8527 = vst [vmem:[#allocation109_spill] sm:$0xff] %v6425_v38 }
 0x375   :  { %8528 = vst [vmem:[#allocation110_spill] sm:$0xff] %v6429_v23  ;;  %8529 = vst [vmem:[#allocation111_spill] sm:$0xff] %v6433_v34 }
 0x376   :  { %8530 = vst [vmem:[#allocation112_spill] sm:$0xff] %v6437_v37  ;;  %8531 = vst [vmem:[#allocation113_spill] sm:$0xff] %v6441_v49 }
 0x377   :  { %8532 = vst [vmem:[#allocation114_spill] sm:$0xff] %v6445_v25  ;;  %8533 = vst [vmem:[#allocation115_spill] sm:$0xff] %v6449_v1  ;;  %v8538_v25 = vld [vmem:[#allocation68_spill] sm:$0xff] }
 0x378   :  { %8534 = vst [vmem:[#allocation116_spill] sm:$0xff] %v6453_v42  ;;  %8535 = vst [vmem:[#allocation117_spill] sm:$0xff] %v6457_v60  ;;  %v6469_v57 = vadd.f32 %v6057_v27, %v8538_v25  ;;  %v6489_v25 = vadd.f32 %v6057_v27, %v5970_v41 }
 0x379   :  { %8536 = vst [vmem:[#allocation118_spill] sm:$0xff] %v6461_v53  ;;  %8537 = vst [vmem:[#allocation119_spill] sm:$0xff] %v6465_v35 }
 0x37a   :  { %8539 = vst [vmem:[#allocation68_spill] sm:$0xff] %v6469_v57  ;;  %8540 = vst [vmem:[#allocation120_spill] sm:$0xff] %v6473_v3  ;;  %v8546_v3 = vld [vmem:[#allocation71_spill] sm:$0xff] }
 0x37b   :  { %8541 = vst [vmem:[#allocation121_spill] sm:$0xff] %v6477_v63  ;;  %8542 = vst [vmem:[#allocation122_spill] sm:$0xff] %v6481_v11  ;;  %v6497_v55 = vadd.f32 %v6057_v27, %v8546_v3  ;;  %v8548_v63 = vld [vmem:[#allocation73_spill] sm:$0xff]  ;;  %v8550_v11 = vld [vmem:[#allocation70_spill] sm:$0xff] }
 0x37c   :  { %8543 = vst [vmem:[#allocation123_spill] sm:$0xff] %v6485_v18  ;;  %8544 = vst [vmem:[#allocation124_spill] sm:$0xff] %v6489_v25  ;;  %v6501_v44 = vadd.f32 %v6057_v27, %v8548_v63  ;;  %v6505_v12 = vadd.f32 %v6057_v27, %v8550_v11  ;;  %v8552_v18 = vld [vmem:[#allocation72_spill] sm:$0xff]  ;;  %v8554_v25 = vld [vmem:[#allocation77_spill] sm:$0xff] }
 0x37d   :  { %8545 = vst [vmem:[#allocation125_spill] sm:$0xff] %v6493_v14  ;;  %8547 = vst [vmem:[#allocation71_spill] sm:$0xff] %v6497_v55  ;;  %v6509_v41 = vadd.f32 %v6057_v27, %v8552_v18  ;;  %v6513_v39 = vadd.f32 %v6057_v27, %v8554_v25  ;;  %v8556_v14 = vld [vmem:[#allocation79_spill] sm:$0xff]  ;;  %v8558_v55 = vld [vmem:[#allocation76_spill] sm:$0xff] }
 0x37e   :  { %8549 = vst [vmem:[#allocation73_spill] sm:$0xff] %v6501_v44  ;;  %8551 = vst [vmem:[#allocation70_spill] sm:$0xff] %v6505_v12  ;;  %v6517_v3 = vadd.f32 %v6057_v27, %v8556_v14  ;;  %v6521_v63 = vadd.f32 %v6057_v27, %v8558_v55  ;;  %v8560_v44 = vld [vmem:[#allocation78_spill] sm:$0xff]  ;;  %v8562_v12 = vld [vmem:[#allocation19_spill] sm:$0xff] }
 0x37f   :  { %8553 = vst [vmem:[#allocation72_spill] sm:$0xff] %v6509_v41  ;;  %8555 = vst [vmem:[#allocation77_spill] sm:$0xff] %v6513_v39  ;;  %v6525_v11 = vadd.f32 %v6057_v27, %v8560_v44  ;;  %v6529_v18 = vadd.f32 %v6057_v27, %v8562_v12  ;;  %v8564_v41 = vld [vmem:[#allocation21_spill] sm:$0xff]  ;;  %v8566_v39 = vld [vmem:[#allocation18_spill] sm:$0xff] }
 0x380   :  { %8557 = vst [vmem:[#allocation79_spill] sm:$0xff] %v6517_v3  ;;  %8559 = vst [vmem:[#allocation76_spill] sm:$0xff] %v6521_v63  ;;  %v6533_v25 = vadd.f32 %v6057_v27, %v8564_v41  ;;  %v6537_v14 = vadd.f32 %v6057_v27, %v8566_v39  ;;  %v8568_v3 = vld [vmem:[#allocation20_spill] sm:$0xff]  ;;  %v8570_v63 = vld [vmem:[#allocation27_spill] sm:$0xff]  ;;  %v6557_v39 = vadd.f32 %v6057_v27, %v6038_v36  ;;  %v3435_v36 = vmul.f32 -1.442695, %v6073_v46 }
 0x381   :  { %8561 = vst [vmem:[#allocation78_spill] sm:$0xff] %v6525_v11  ;;  %8563 = vst [vmem:[#allocation19_spill] sm:$0xff] %v6529_v18  ;;  %v6541_v55 = vadd.f32 %v6057_v27, %v8568_v3  ;;  %v6545_v44 = vadd.f32 %v6057_v27, %v8570_v63  ;;  %v8572_v11 = vld [vmem:[#allocation29_spill] sm:$0xff]  ;;  %v8574_v18 = vld [vmem:[#allocation26_spill] sm:$0xff]  ;;  %v6561_v3 = vadd.f32 %v6057_v27, %v6042_v40  ;;  %v3436_v40 = vmul.f32 -1.442695, %v6077_v19 }
 0x382   :  { %8565 = vst [vmem:[#allocation21_spill] sm:$0xff] %v6533_v25  ;;  %8567 = vst [vmem:[#allocation18_spill] sm:$0xff] %v6537_v14  ;;  %v6549_v12 = vadd.f32 %v6057_v27, %v8572_v11  ;;  %v6553_v41 = vadd.f32 %v6057_v27, %v8574_v18  ;;  %v6565_v63 = vadd.f32 %v6057_v27, %v6046_v59  ;;  %v3433_v18 = vmul.f32 -1.442695, %v6065_v43  ;;  %v8582_v43 = vld [vmem:[#allocation88_spill] sm:$0xff]  ;;  %v8583_v46 = vld [vmem:[#allocation85_spill] sm:$0xff] }
 0x383   :  { %8569 = vst [vmem:[#allocation20_spill] sm:$0xff] %v6541_v55  ;;  %8571 = vst [vmem:[#allocation27_spill] sm:$0xff] %v6545_v44  ;;  %v6569_v11 = vadd.f32 %v6057_v27, %v6050_v17  ;;  %v3438_v59 = vmul.f32 -1.442695, %v6085_v10  ;;  %v8580_v27 = vld [vmem:[#allocation83_spill] sm:$0xff]  ;;  %v8586_v10 = vld [vmem:[#allocation92_spill] sm:$0xff] }
 0x384   :  { %8573 = vst [vmem:[#allocation29_spill] sm:$0xff] %v6549_v12  ;;  %8575 = vst [vmem:[#allocation26_spill] sm:$0xff] %v6553_v41  ;;  %v3432_v12 = vmul.f32 -1.442695, %v6061_v28  ;;  %v3434_v41 = vmul.f32 -1.442695, %v6069_v20 }
 0x385   :  { %8576 = vst [vmem:[#allocation126_spill] sm:$0xff] %v6557_v39  ;;  %8577 = vst [vmem:[#allocation127_spill] sm:$0xff] %v6561_v3  ;;  %v3437_v3 = vmul.f32 -1.442695, %v6081_v30  ;;  %v3439_v17 = vmul.f32 -1.442695, %v8580_v27 }
 0x386   :  { %8578 = vst [vmem:[#allocation128_spill] sm:$0xff] %v6565_v63  ;;  %8579 = vst [vmem:[#allocation129_spill] sm:$0xff] %v6569_v11  ;;  %3825 = vpow2.f32 %v3432_v12  ;;  %v8581_v28 = vld [vmem:[#allocation86_spill] sm:$0xff]  ;;  %v3441_v20 = vmul.f32 -1.442695, %v8582_v43  ;;  %v8584_v19 = vld [vmem:[#allocation87_spill] sm:$0xff] }
 0x387   :  { %3827 = vpow2.f32 %v3433_v18  ;;  %v3440_v11 = vmul.f32 -1.442695, %v8581_v28  ;;  %v3442_v12 = vmul.f32 -1.442695, %v8583_v46  ;;  %v3443_v18 = vmul.f32 -1.442695, %v8584_v19 }
 0x388   :  { %3829 = vpow2.f32 %v3434_v41  ;;  %v8585_v30 = vld [vmem:[#allocation90_spill] sm:$0xff] }
 0x389   :  { %3831 = vpow2.f32 %v3435_v36  ;;  %v3444_v41 = vmul.f32 -1.442695, %v8585_v30  ;;  %v3445_v36 = vmul.f32 -1.442695, %v8586_v10 }
 0x38a   :  { %3833 = vpow2.f32 %v3436_v40  ;;  %v8587_v40 = vld [vmem:[#allocation89_spill] sm:$0xff] }
 0x38b   :  { %3835 = vpow2.f32 %v3437_v3  ;;  %v3446_v28 = vmul.f32 -1.442695, %v8587_v40 }
 0x38c   :  { %3837 = vpow2.f32 %v3438_v59  ;;  %v8589_v59 = vld [vmem:[#allocation91_spill] sm:$0xff] }
 0x38d   :  { %3839 = vpow2.f32 %v3439_v17  ;;  %v3447_v43 = vmul.f32 -1.442695, %v8589_v59  ;;  %v8591_v17 = vld [vmem:[#allocation37_spill] sm:$0xff] }
 0x38e   :  { %3841 = vpow2.f32 %v3440_v11  ;;  %v3448_v11 = vmul.f32 -1.442695, %v8591_v17 }
 0x38f   :  { %3843 = vpow2.f32 %v3441_v20  ;;  %v8593_v20 = vld [vmem:[#allocation34_spill] sm:$0xff] }
 0x390   :  { %v6585_v63 = vpop.eup %3825  ;;  %3845 = vpow2.f32 %v3442_v12  ;;  %v3449_v10 = vmul.f32 -1.442695, %v8593_v20  ;;  %v8595_v12 = vld [vmem:[#allocation36_spill] sm:$0xff] }
 0x391   :  { %v6588_v3 = vpop.eup %3827  ;;  %3847 = vpow2.f32 %v3443_v18  ;;  %v3450_v40 = vmul.f32 -1.442695, %v8595_v12  ;;  %v8597_v18 = vld [vmem:[#allocation75_spill] sm:$0xff] }
 0x392   :  { %8588 = vst [vmem:[#allocation130_spill] sm:$0xff] %v6588_v3  ;;  %v6591_v46 = vpop.eup %3829  ;;  %3849 = vpow2.f32 %v3444_v41  ;;  %v3451_v59 = vmul.f32 -1.442695, %v8597_v18  ;;  %v8599_v41 = vld [vmem:[#allocation3_spill] sm:$0xff] }
 0x393   :  { %8590 = vst [vmem:[#allocation131_spill] sm:$0xff] %v6591_v46  ;;  %v6594_v19 = vpop.eup %3831  ;;  %3851 = vpow2.f32 %v3445_v36  ;;  %v3452_v17 = vmul.f32 -1.442695, %v8599_v41  ;;  %v8601_v36 = vld [vmem:[#allocation5_spill] sm:$0xff] }
 0x394   :  { %8592 = vst [vmem:[#allocation132_spill] sm:$0xff] %v6594_v19  ;;  %v6597_v30 = vpop.eup %3833  ;;  %3853 = vpow2.f32 %v3446_v28  ;;  %v3453_v20 = vmul.f32 -1.442695, %v8601_v36  ;;  %v8603_v28 = vld [vmem:[#allocation2_spill] sm:$0xff] }
 0x395   :  { %8594 = vst [vmem:[#allocation133_spill] sm:$0xff] %v6597_v30  ;;  %v6600_v27 = vpop.eup %3835  ;;  %3855 = vpow2.f32 %v3447_v43  ;;  %v3454_v12 = vmul.f32 -1.442695, %v8603_v28  ;;  %v8605_v43 = vld [vmem:[#allocation4_spill] sm:$0xff] }
 0x396   :  { %8596 = vst [vmem:[#allocation134_spill] sm:$0xff] %v6600_v27  ;;  %v6603_v3 = vpop.eup %3837  ;;  %3857 = vpow2.f32 %v3448_v11  ;;  %v3455_v18 = vmul.f32 -1.442695, %v8605_v43  ;;  %v8607_v11 = vld [vmem:[#allocation7_spill] sm:$0xff] }
 0x397   :  { %8598 = vst [vmem:[#allocation135_spill] sm:$0xff] %v6603_v3  ;;  %v6606_v46 = vpop.eup %3839  ;;  %3859 = vpow2.f32 %v3449_v10  ;;  %v3456_v41 = vmul.f32 -1.442695, %v8607_v11  ;;  %v8609_v10 = vld [vmem:[#allocation9_spill] sm:$0xff] }
 0x398   :  { %8600 = vst [vmem:[#allocation136_spill] sm:$0xff] %v6606_v46  ;;  %v6609_v19 = vpop.eup %3841  ;;  %3861 = vpow2.f32 %v3450_v40  ;;  %v3457_v36 = vmul.f32 -1.442695, %v8609_v10  ;;  %v8611_v40 = vld [vmem:[#allocation6_spill] sm:$0xff] }
 0x399   :  { %8602 = vst [vmem:[#allocation137_spill] sm:$0xff] %v6609_v19  ;;  %v6612_v30 = vpop.eup %3843  ;;  %3863 = vpow2.f32 %v3451_v59  ;;  %v3458_v28 = vmul.f32 -1.442695, %v8611_v40  ;;  %v8613_v59 = vld [vmem:[#allocation8_spill] sm:$0xff] }
 0x39a   :  { %8604 = vst [vmem:[#allocation138_spill] sm:$0xff] %v6612_v30  ;;  %v6615_v27 = vpop.eup %3845  ;;  %3865 = vpow2.f32 %v3452_v17  ;;  %v3459_v43 = vmul.f32 -1.442695, %v8613_v59  ;;  %v8615_v17 = vld [vmem:[#allocation11_spill] sm:$0xff] }
 0x39b   :  { %8606 = vst [vmem:[#allocation139_spill] sm:$0xff] %v6615_v27  ;;  %v6618_v3 = vpop.eup %3847  ;;  %3867 = vpow2.f32 %v3453_v20  ;;  %v3460_v11 = vmul.f32 -1.442695, %v8615_v17  ;;  %v8617_v20 = vld [vmem:[#allocation13_spill] sm:$0xff] }
 0x39c   :  { %8608 = vst [vmem:[#allocation140_spill] sm:$0xff] %v6618_v3  ;;  %v6621_v46 = vpop.eup %3849  ;;  %3869 = vpow2.f32 %v3454_v12  ;;  %v3461_v10 = vmul.f32 -1.442695, %v8617_v20  ;;  %v8619_v12 = vld [vmem:[#allocation10_spill] sm:$0xff] }
 0x39d   :  { %8610 = vst [vmem:[#allocation141_spill] sm:$0xff] %v6621_v46  ;;  %v6624_v19 = vpop.eup %3851  ;;  %3871 = vpow2.f32 %v3455_v18  ;;  %v3462_v40 = vmul.f32 -1.442695, %v8619_v12  ;;  %v8621_v18 = vld [vmem:[#allocation12_spill] sm:$0xff] }
 0x39e   :  { %8612 = vst [vmem:[#allocation142_spill] sm:$0xff] %v6624_v19  ;;  %v6627_v30 = vpop.eup %3853  ;;  %3873 = vpow2.f32 %v3456_v41  ;;  %v3463_v59 = vmul.f32 -1.442695, %v8621_v18  ;;  %v8623_v41 = vld [vmem:[#allocation15_spill] sm:$0xff] }
 0x39f   :  { %8614 = vst [vmem:[#allocation143_spill] sm:$0xff] %v6627_v30  ;;  %v6630_v27 = vpop.eup %3855  ;;  %3875 = vpow2.f32 %v3457_v36  ;;  %v3464_v17 = vmul.f32 -1.442695, %v8623_v41  ;;  %v8625_v36 = vld [vmem:[#allocation17_spill] sm:$0xff] }
 0x3a0   :  { %8616 = vst [vmem:[#allocation144_spill] sm:$0xff] %v6630_v27  ;;  %v6633_v3 = vpop.eup %3857  ;;  %3877 = vpow2.f32 %v3458_v28  ;;  %v3465_v20 = vmul.f32 -1.442695, %v8625_v36  ;;  %v8627_v28 = vld [vmem:[#allocation14_spill] sm:$0xff] }
 0x3a1   :  { %8618 = vst [vmem:[#allocation145_spill] sm:$0xff] %v6633_v3  ;;  %v6636_v46 = vpop.eup %3859  ;;  %3879 = vpow2.f32 %v3459_v43  ;;  %v3466_v12 = vmul.f32 -1.442695, %v8627_v28  ;;  %v8629_v43 = vld [vmem:[#allocation16_spill] sm:$0xff] }
 0x3a2   :  { %8620 = vst [vmem:[#allocation146_spill] sm:$0xff] %v6636_v46  ;;  %v6639_v19 = vpop.eup %3861  ;;  %3881 = vpow2.f32 %v3460_v11  ;;  %v3467_v18 = vmul.f32 -1.442695, %v8629_v43  ;;  %v8631_v11 = vld [vmem:[#allocation23_spill] sm:$0xff] }
 0x3a3   :  { %8622 = vst [vmem:[#allocation147_spill] sm:$0xff] %v6639_v19  ;;  %v6642_v30 = vpop.eup %3863  ;;  %3883 = vpow2.f32 %v3461_v10  ;;  %v3468_v41 = vmul.f32 -1.442695, %v8631_v11  ;;  %v8633_v10 = vld [vmem:[#allocation25_spill] sm:$0xff] }
 0x3a4   :  { %8624 = vst [vmem:[#allocation148_spill] sm:$0xff] %v6642_v30  ;;  %v6645_v27 = vpop.eup %3865  ;;  %3885 = vpow2.f32 %v3462_v40  ;;  %v3469_v36 = vmul.f32 -1.442695, %v8633_v10  ;;  %v8635_v40 = vld [vmem:[#allocation22_spill] sm:$0xff] }
 0x3a5   :  { %8626 = vst [vmem:[#allocation149_spill] sm:$0xff] %v6645_v27  ;;  %v6648_v3 = vpop.eup %3867  ;;  %3887 = vpow2.f32 %v3463_v59  ;;  %v3470_v28 = vmul.f32 -1.442695, %v8635_v40  ;;  %v8637_v59 = vld [vmem:[#allocation24_spill] sm:$0xff] }
 0x3a6   :  { %8628 = vst [vmem:[#allocation150_spill] sm:$0xff] %v6648_v3  ;;  %v6651_v46 = vpop.eup %3869  ;;  %3889 = vpow2.f32 %v3464_v17  ;;  %v3471_v43 = vmul.f32 -1.442695, %v8637_v59  ;;  %v8639_v17 = vld [vmem:[#allocation31_spill] sm:$0xff] }
 0x3a7   :  { %8630 = vst [vmem:[#allocation151_spill] sm:$0xff] %v6651_v46  ;;  %v6654_v19 = vpop.eup %3871  ;;  %3891 = vpow2.f32 %v3465_v20  ;;  %v3472_v11 = vmul.f32 -1.442695, %v8639_v17  ;;  %v8641_v20 = vld [vmem:[#allocation33_spill] sm:$0xff] }
 0x3a8   :  { %8632 = vst [vmem:[#allocation152_spill] sm:$0xff] %v6654_v19  ;;  %v6657_v30 = vpop.eup %3873  ;;  %3893 = vpow2.f32 %v3466_v12  ;;  %v3473_v10 = vmul.f32 -1.442695, %v8641_v20  ;;  %v8643_v12 = vld [vmem:[#allocation30_spill] sm:$0xff] }
 0x3a9   :  { %8634 = vst [vmem:[#allocation153_spill] sm:$0xff] %v6657_v30  ;;  %v6660_v27 = vpop.eup %3875  ;;  %3895 = vpow2.f32 %v3467_v18  ;;  %v3474_v40 = vmul.f32 -1.442695, %v8643_v12  ;;  %v8645_v18 = vld [vmem:[#allocation32_spill] sm:$0xff] }
 0x3aa   :  { %8636 = vst [vmem:[#allocation154_spill] sm:$0xff] %v6660_v27  ;;  %v6663_v3 = vpop.eup %3877  ;;  %3897 = vpow2.f32 %v3468_v41  ;;  %v3475_v59 = vmul.f32 -1.442695, %v8645_v18  ;;  %v8647_v41 = vld [vmem:[#allocation39_spill] sm:$0xff] }
 0x3ab   :  { %8638 = vst [vmem:[#allocation155_spill] sm:$0xff] %v6663_v3  ;;  %v6666_v46 = vpop.eup %3879  ;;  %3899 = vpow2.f32 %v3469_v36  ;;  %v3476_v17 = vmul.f32 -1.442695, %v8647_v41  ;;  %v8649_v36 = vld [vmem:[#allocation41_spill] sm:$0xff] }
 0x3ac   :  { %8640 = vst [vmem:[#allocation156_spill] sm:$0xff] %v6666_v46  ;;  %v6669_v19 = vpop.eup %3881  ;;  %3901 = vpow2.f32 %v3470_v28  ;;  %v3477_v20 = vmul.f32 -1.442695, %v8649_v36  ;;  %v8651_v28 = vld [vmem:[#allocation38_spill] sm:$0xff] }
 0x3ad   :  { %8642 = vst [vmem:[#allocation157_spill] sm:$0xff] %v6669_v19  ;;  %v6672_v30 = vpop.eup %3883  ;;  %3903 = vpow2.f32 %v3471_v43  ;;  %v3478_v12 = vmul.f32 -1.442695, %v8651_v28  ;;  %v8653_v43 = vld [vmem:[#allocation40_spill] sm:$0xff] }
 0x3ae   :  { %8644 = vst [vmem:[#allocation158_spill] sm:$0xff] %v6672_v30  ;;  %v6675_v27 = vpop.eup %3885  ;;  %3905 = vpow2.f32 %v3472_v11  ;;  %v3479_v18 = vmul.f32 -1.442695, %v8653_v43  ;;  %v8655_v11 = vld [vmem:[#allocation43_spill] sm:$0xff] }
 0x3af   :  { %8646 = vst [vmem:[#allocation159_spill] sm:$0xff] %v6675_v27  ;;  %v6678_v3 = vpop.eup %3887  ;;  %3907 = vpow2.f32 %v3473_v10  ;;  %v3480_v41 = vmul.f32 -1.442695, %v8655_v11  ;;  %v8657_v10 = vld [vmem:[#allocation45_spill] sm:$0xff] }
 0x3b0   :  { %8648 = vst [vmem:[#allocation160_spill] sm:$0xff] %v6678_v3  ;;  %v6681_v46 = vpop.eup %3889  ;;  %3909 = vpow2.f32 %v3474_v40  ;;  %v3481_v36 = vmul.f32 -1.442695, %v8657_v10  ;;  %v8659_v40 = vld [vmem:[#allocation42_spill] sm:$0xff] }
 0x3b1   :  { %8650 = vst [vmem:[#allocation161_spill] sm:$0xff] %v6681_v46  ;;  %v6684_v19 = vpop.eup %3891  ;;  %3911 = vpow2.f32 %v3475_v59  ;;  %v3482_v28 = vmul.f32 -1.442695, %v8659_v40  ;;  %v8661_v59 = vld [vmem:[#allocation44_spill] sm:$0xff] }
 0x3b2   :  { %8652 = vst [vmem:[#allocation162_spill] sm:$0xff] %v6684_v19  ;;  %v6687_v30 = vpop.eup %3893  ;;  %3913 = vpow2.f32 %v3476_v17  ;;  %v3483_v43 = vmul.f32 -1.442695, %v8661_v59  ;;  %v8663_v17 = vld [vmem:[#allocation47_spill] sm:$0xff] }
 0x3b3   :  { %8654 = vst [vmem:[#allocation163_spill] sm:$0xff] %v6687_v30  ;;  %v6690_v27 = vpop.eup %3895  ;;  %3915 = vpow2.f32 %v3477_v20  ;;  %v3484_v11 = vmul.f32 -1.442695, %v8663_v17  ;;  %v8665_v20 = vld [vmem:[#allocation49_spill] sm:$0xff] }
 0x3b4   :  { %8656 = vst [vmem:[#allocation164_spill] sm:$0xff] %v6690_v27  ;;  %v6693_v3 = vpop.eup %3897  ;;  %3917 = vpow2.f32 %v3478_v12  ;;  %v3485_v10 = vmul.f32 -1.442695, %v8665_v20  ;;  %v8667_v12 = vld [vmem:[#allocation46_spill] sm:$0xff] }
 0x3b5   :  { %8658 = vst [vmem:[#allocation165_spill] sm:$0xff] %v6693_v3  ;;  %v6696_v46 = vpop.eup %3899  ;;  %3919 = vpow2.f32 %v3479_v18  ;;  %v3486_v40 = vmul.f32 -1.442695, %v8667_v12  ;;  %v8669_v18 = vld [vmem:[#allocation48_spill] sm:$0xff] }
 0x3b6   :  { %8660 = vst [vmem:[#allocation166_spill] sm:$0xff] %v6696_v46  ;;  %v6699_v19 = vpop.eup %3901  ;;  %3921 = vpow2.f32 %v3480_v41  ;;  %v3487_v59 = vmul.f32 -1.442695, %v8669_v18  ;;  %v8671_v41 = vld [vmem:[#allocation51_spill] sm:$0xff] }
 0x3b7   :  { %8662 = vst [vmem:[#allocation167_spill] sm:$0xff] %v6699_v19  ;;  %v6702_v30 = vpop.eup %3903  ;;  %3923 = vpow2.f32 %v3481_v36  ;;  %v3488_v17 = vmul.f32 -1.442695, %v8671_v41  ;;  %v8672_v36 = vld [vmem:[#allocation53_spill] sm:$0xff] }
 0x3b8   :  { %8664 = vst [vmem:[#allocation168_spill] sm:$0xff] %v6702_v30  ;;  %v6705_v27 = vpop.eup %3905  ;;  %3925 = vpow2.f32 %v3482_v28  ;;  %v3489_v20 = vmul.f32 -1.442695, %v8672_v36  ;;  %v8673_v28 = vld [vmem:[#allocation50_spill] sm:$0xff] }
 0x3b9   :  { %8666 = vst [vmem:[#allocation169_spill] sm:$0xff] %v6705_v27  ;;  %v6708_v3 = vpop.eup %3907  ;;  %3927 = vpow2.f32 %v3483_v43  ;;  %v3490_v12 = vmul.f32 -1.442695, %v8673_v28  ;;  %v8674_v43 = vld [vmem:[#allocation52_spill] sm:$0xff] }
 0x3ba   :  { %8668 = vst [vmem:[#allocation170_spill] sm:$0xff] %v6708_v3  ;;  %v6711_v46 = vpop.eup %3909  ;;  %3929 = vpow2.f32 %v3484_v11  ;;  %v3491_v18 = vmul.f32 -1.442695, %v8674_v43  ;;  %v8675_v11 = vld [vmem:[#allocation55_spill] sm:$0xff] }
 0x3bb   :  { %8670 = vst [vmem:[#allocation171_spill] sm:$0xff] %v6711_v46  ;;  %v6714_v19 = vpop.eup %3911  ;;  %3931 = vpow2.f32 %v3485_v10  ;;  %v3492_v41 = vmul.f32 -1.442695, %v8675_v11  ;;  %v3493_v10 = vmul.f32 -1.442695, %v6305_v45 }
 0x3bc   :  { %v6717_v30 = vpop.eup %3913  ;;  %3933 = vpow2.f32 %v3486_v40  ;;  %v3494_v40 = vmul.f32 -1.442695, %v6309_v22 }
 0x3bd   :  { %v6720_v27 = vpop.eup %3915  ;;  %3935 = vpow2.f32 %v3487_v59  ;;  %v3495_v59 = vmul.f32 -1.442695, %v6313_v52 }
 0x3be   :  { %v6723_v3 = vpop.eup %3917  ;;  %3937 = vpow2.f32 %v3488_v17  ;;  %v3496_v17 = vmul.f32 -1.442695, %v6317_v31 }
 0x3bf   :  { %v6726_v46 = vpop.eup %3919  ;;  %3939 = vpow2.f32 %v3489_v20  ;;  %v3497_v20 = vmul.f32 -1.442695, %v6321_v4 }
 0x3c0   :  { %v6729_v36 = vpop.eup %3921  ;;  %3941 = vpow2.f32 %v3490_v12  ;;  %v3498_v12 = vmul.f32 -1.442695, %v6325_v0 }
 0x3c1   :  { %v6732_v28 = vpop.eup %3923  ;;  %3943 = vpow2.f32 %v3491_v18  ;;  %v3499_v18 = vmul.f32 -1.442695, %v6329_v32 }
 0x3c2   :  { %v6735_v43 = vpop.eup %3925  ;;  %3945 = vpow2.f32 %v3492_v41  ;;  %v3500_v41 = vmul.f32 -1.442695, %v6333_v21 }
 0x3c3   :  { %v6738_v11 = vpop.eup %3927  ;;  %3947 = vpow2.f32 %v3493_v10  ;;  %v3501_v10 = vmul.f32 -1.442695, %v6337_v7 }
 0x3c4   :  { %v6741_v45 = vpop.eup %3929  ;;  %3949 = vpow2.f32 %v3494_v40  ;;  %v3502_v40 = vmul.f32 -1.442695, %v6341_v56 }
 0x3c5   :  { %v6744_v22 = vpop.eup %3931  ;;  %3951 = vpow2.f32 %v3495_v59  ;;  %v3503_v59 = vmul.f32 -1.442695, %v6345_v16 }
 0x3c6   :  { %v6747_v52 = vpop.eup %3933  ;;  %3953 = vpow2.f32 %v3496_v17  ;;  %v3504_v17 = vmul.f32 -1.442695, %v6349_v48 }
 0x3c7   :  { %v6750_v31 = vpop.eup %3935  ;;  %3955 = vpow2.f32 %v3497_v20  ;;  %v3505_v20 = vmul.f32 -1.442695, %v6353_v13 }
 0x3c8   :  { %v6753_v4 = vpop.eup %3937  ;;  %3957 = vpow2.f32 %v3498_v12  ;;  %v3506_v12 = vmul.f32 -1.442695, %v6357_v33 }
 0x3c9   :  { %v6756_v0 = vpop.eup %3939  ;;  %3959 = vpow2.f32 %v3499_v18  ;;  %v3507_v18 = vmul.f32 -1.442695, %v6361_v15 }
 0x3ca   :  { %v6759_v32 = vpop.eup %3941  ;;  %3961 = vpow2.f32 %v3500_v41  ;;  %v3508_v41 = vmul.f32 -1.442695, %v6365_v8 }
 0x3cb   :  { %v6762_v21 = vpop.eup %3943  ;;  %3963 = vpow2.f32 %v3501_v10  ;;  %v3509_v10 = vmul.f32 -1.442695, %v6369_v50 }
 0x3cc   :  { %v6765_v7 = vpop.eup %3945  ;;  %3965 = vpow2.f32 %v3502_v40  ;;  %v3510_v40 = vmul.f32 -1.442695, %v6373_v2 }
 0x3cd   :  { %v6768_v56 = vpop.eup %3947  ;;  %3967 = vpow2.f32 %v3503_v59  ;;  %v3511_v59 = vmul.f32 -1.442695, %v6377_v61 }
 0x3ce   :  { %v6771_v16 = vpop.eup %3949  ;;  %3969 = vpow2.f32 %v3504_v17  ;;  %v3512_v17 = vmul.f32 -1.442695, %v6381_v26 }
 0x3cf   :  { %v6774_v48 = vpop.eup %3951  ;;  %3971 = vpow2.f32 %v3505_v20  ;;  %v3513_v20 = vmul.f32 -1.442695, %v6385_v6 }
 0x3d0   :  { %v6777_v13 = vpop.eup %3953  ;;  %3973 = vpow2.f32 %v3506_v12  ;;  %v3514_v12 = vmul.f32 -1.442695, %v6389_v24 }
 0x3d1   :  { %v6780_v33 = vpop.eup %3955  ;;  %3975 = vpow2.f32 %v3507_v18  ;;  %v3515_v18 = vmul.f32 -1.442695, %v6393_v62 }
 0x3d2   :  { %v6783_v15 = vpop.eup %3957  ;;  %3977 = vpow2.f32 %v3508_v41  ;;  %v3516_v41 = vmul.f32 -1.442695, %v6397_v9 }
 0x3d3   :  { %v6786_v8 = vpop.eup %3959  ;;  %3979 = vpow2.f32 %v3509_v10  ;;  %v3517_v10 = vmul.f32 -1.442695, %v6401_v5 }
 0x3d4   :  { %v6789_v50 = vpop.eup %3961  ;;  %3981 = vpow2.f32 %v3510_v40  ;;  %v3518_v40 = vmul.f32 -1.442695, %v6405_v51 }
 0x3d5   :  { %v6792_v2 = vpop.eup %3963  ;;  %3983 = vpow2.f32 %v3511_v59  ;;  %v3519_v59 = vmul.f32 -1.442695, %v6409_v58 }
 0x3d6   :  { %v6795_v61 = vpop.eup %3965  ;;  %3985 = vpow2.f32 %v3512_v17  ;;  %v3520_v17 = vmul.f32 -1.442695, %v6413_v47 }
 0x3d7   :  { %v6798_v26 = vpop.eup %3967  ;;  %3987 = vpow2.f32 %v3513_v20  ;;  %v3521_v20 = vmul.f32 -1.442695, %v6417_v54 }
 0x3d8   :  { %v6801_v6 = vpop.eup %3969  ;;  %3989 = vpow2.f32 %v3514_v12  ;;  %v3522_v12 = vmul.f32 -1.442695, %v6421_v29 }
 0x3d9   :  { %v6804_v24 = vpop.eup %3971  ;;  %3991 = vpow2.f32 %v3515_v18  ;;  %v3523_v18 = vmul.f32 -1.442695, %v6425_v38 }
 0x3da   :  { %v6807_v62 = vpop.eup %3973  ;;  %3993 = vpow2.f32 %v3516_v41  ;;  %v3524_v41 = vmul.f32 -1.442695, %v6429_v23 }
 0x3db   :  { %v6810_v9 = vpop.eup %3975  ;;  %3995 = vpow2.f32 %v3517_v10  ;;  %v3525_v10 = vmul.f32 -1.442695, %v6433_v34 }
 0x3dc   :  { %v6813_v5 = vpop.eup %3977  ;;  %3997 = vpow2.f32 %v3518_v40  ;;  %v3526_v40 = vmul.f32 -1.442695, %v6437_v37 }
 0x3dd   :  { %v6816_v51 = vpop.eup %3979  ;;  %3999 = vpow2.f32 %v3519_v59  ;;  %v3527_v59 = vmul.f32 -1.442695, %v6441_v49 }
 0x3de   :  { %v6819_v58 = vpop.eup %3981  ;;  %4001 = vpow2.f32 %v3520_v17  ;;  %v8677_v17 = vld [vmem:[#allocation114_spill] sm:$0xff] }
 0x3df   :  { %8676 = vst [vmem:[#allocation172_spill] sm:$0xff] %v6819_v58  ;;  %v6822_v47 = vpop.eup %3983  ;;  %4003 = vpow2.f32 %v3521_v20  ;;  %v3528_v23 = vmul.f32 -1.442695, %v8677_v17  ;;  %v3529_v20 = vmul.f32 -1.442695, %v6449_v1 }
 0x3e0   :  { %v6825_v54 = vpop.eup %3985  ;;  %4005 = vpow2.f32 %v3522_v12  ;;  %v3530_v12 = vmul.f32 -1.442695, %v6453_v42 }
 0x3e1   :  { %v6828_v29 = vpop.eup %3987  ;;  %4007 = vpow2.f32 %v3523_v18  ;;  %v3531_v18 = vmul.f32 -1.442695, %v6457_v60 }
 0x3e2   :  { %v6831_v38 = vpop.eup %3989  ;;  %4009 = vpow2.f32 %v3524_v41  ;;  %v3532_v41 = vmul.f32 -1.442695, %v6461_v53 }
 0x3e3   :  { %v6834_v58 = vpop.eup %3991  ;;  %4011 = vpow2.f32 %v3525_v10  ;;  %v3533_v10 = vmul.f32 -1.442695, %v6465_v35 }
 0x3e4   :  { %v6837_v34 = vpop.eup %3993  ;;  %4013 = vpow2.f32 %v3526_v40  ;;  %v3534_v40 = vmul.f32 -1.442695, %v6469_v57 }
 0x3e5   :  { %v6840_v37 = vpop.eup %3995  ;;  %4015 = vpow2.f32 %v3527_v59  ;;  %v8683_v59 = vld [vmem:[#allocation120_spill] sm:$0xff] }
 0x3e6   :  { %8678 = vst [vmem:[#allocation173_spill] sm:$0xff] %v6840_v37  ;;  %v6843_v49 = vpop.eup %3997  ;;  %4017 = vpow2.f32 %v3528_v23  ;;  %v3535_v60 = vmul.f32 -1.442695, %v8683_v59  ;;  %v8685_v23 = vld [vmem:[#allocation121_spill] sm:$0xff] }
 0x3e7   :  { %8679 = vst [vmem:[#allocation174_spill] sm:$0xff] %v6843_v49  ;;  %v6846_v17 = vpop.eup %3999  ;;  %4019 = vpow2.f32 %v3529_v20  ;;  %v3536_v53 = vmul.f32 -1.442695, %v8685_v23  ;;  %v8687_v20 = vld [vmem:[#allocation122_spill] sm:$0xff] }
 0x3e8   :  { %8680 = vst [vmem:[#allocation175_spill] sm:$0xff] %v6846_v17  ;;  %v6849_v1 = vpop.eup %4001  ;;  %4021 = vpow2.f32 %v3530_v12  ;;  %v3537_v35 = vmul.f32 -1.442695, %v8687_v20  ;;  %v8689_v12 = vld [vmem:[#allocation123_spill] sm:$0xff] }
 0x3e9   :  { %8681 = vst [vmem:[#allocation176_spill] sm:$0xff] %v6849_v1  ;;  %v6852_v42 = vpop.eup %4003  ;;  %4023 = vpow2.f32 %v3531_v18  ;;  %v3538_v57 = vmul.f32 -1.442695, %v8689_v12  ;;  %v8691_v18 = vld [vmem:[#allocation124_spill] sm:$0xff] }
 0x3ea   :  { %8682 = vst [vmem:[#allocation177_spill] sm:$0xff] %v6852_v42  ;;  %v6855_v37 = vpop.eup %4005  ;;  %4025 = vpow2.f32 %v3532_v41  ;;  %v3539_v59 = vmul.f32 -1.442695, %v8691_v18  ;;  %v8693_v41 = vld [vmem:[#allocation125_spill] sm:$0xff] }
 0x3eb   :  { %8684 = vst [vmem:[#allocation178_spill] sm:$0xff] %v6855_v37  ;;  %v6858_v49 = vpop.eup %4007  ;;  %4027 = vpow2.f32 %v3533_v10  ;;  %v3540_v23 = vmul.f32 -1.442695, %v8693_v41  ;;  %v8695_v10 = vld [vmem:[#allocation71_spill] sm:$0xff] }
 0x3ec   :  { %8686 = vst [vmem:[#allocation179_spill] sm:$0xff] %v6858_v49  ;;  %v6861_v17 = vpop.eup %4009  ;;  %4029 = vpow2.f32 %v3534_v40  ;;  %v3541_v20 = vmul.f32 -1.442695, %v8695_v10  ;;  %v8697_v40 = vld [vmem:[#allocation73_spill] sm:$0xff] }
 0x3ed   :  { %8688 = vst [vmem:[#allocation180_spill] sm:$0xff] %v6861_v17  ;;  %v6864_v1 = vpop.eup %4011  ;;  %4031 = vpow2.f32 %v3535_v60  ;;  %v3542_v12 = vmul.f32 -1.442695, %v8697_v40  ;;  %v8699_v60 = vld [vmem:[#allocation70_spill] sm:$0xff] }
 0x3ee   :  { %8690 = vst [vmem:[#allocation181_spill] sm:$0xff] %v6864_v1  ;;  %v6867_v42 = vpop.eup %4013  ;;  %4033 = vpow2.f32 %v3536_v53  ;;  %v3543_v18 = vmul.f32 -1.442695, %v8699_v60  ;;  %v8701_v53 = vld [vmem:[#allocation72_spill] sm:$0xff] }
 0x3ef   :  { %8692 = vst [vmem:[#allocation182_spill] sm:$0xff] %v6867_v42  ;;  %v6870_v37 = vpop.eup %4015  ;;  %4035 = vpow2.f32 %v3537_v35  ;;  %v3544_v41 = vmul.f32 -1.442695, %v8701_v53  ;;  %v8703_v35 = vld [vmem:[#allocation77_spill] sm:$0xff] }
 0x3f0   :  { %8694 = vst [vmem:[#allocation183_spill] sm:$0xff] %v6870_v37  ;;  %v6873_v49 = vpop.eup %4017  ;;  %4037 = vpow2.f32 %v3538_v57  ;;  %v3545_v10 = vmul.f32 -1.442695, %v8703_v35  ;;  %v8704_v57 = vld [vmem:[#allocation79_spill] sm:$0xff] }
 0x3f1   :  { %8696 = vst [vmem:[#allocation184_spill] sm:$0xff] %v6873_v49  ;;  %v6876_v17 = vpop.eup %4019  ;;  %4039 = vpow2.f32 %v3539_v59  ;;  %v3546_v40 = vmul.f32 -1.442695, %v8704_v57  ;;  %v8706_v59 = vld [vmem:[#allocation76_spill] sm:$0xff] }
 0x3f2   :  { %8698 = vst [vmem:[#allocation185_spill] sm:$0xff] %v6876_v17  ;;  %v6879_v1 = vpop.eup %4021  ;;  %4041 = vpow2.f32 %v3540_v23  ;;  %v3547_v60 = vmul.f32 -1.442695, %v8706_v59  ;;  %v8708_v23 = vld [vmem:[#allocation78_spill] sm:$0xff] }
 0x3f3   :  { %8700 = vst [vmem:[#allocation186_spill] sm:$0xff] %v6879_v1  ;;  %v6882_v42 = vpop.eup %4023  ;;  %4043 = vpow2.f32 %v3541_v20  ;;  %v3548_v53 = vmul.f32 -1.442695, %v8708_v23  ;;  %v8710_v20 = vld [vmem:[#allocation19_spill] sm:$0xff] }
 0x3f4   :  { %8702 = vst [vmem:[#allocation187_spill] sm:$0xff] %v6882_v42  ;;  %v6885_v37 = vpop.eup %4025  ;;  %4045 = vpow2.f32 %v3542_v12  ;;  %v3549_v35 = vmul.f32 -1.442695, %v8710_v20  ;;  %v3550_v12 = vmul.f32 -1.442695, %v6533_v25 }
 0x3f5   :  { %v6888_v49 = vpop.eup %4027  ;;  %4047 = vpow2.f32 %v3543_v18  ;;  %v3551_v18 = vmul.f32 -1.442695, %v6537_v14 }
 0x3f6   :  { %8705 = vst [vmem:[#allocation188_spill] sm:$0xff] %v6888_v49  ;;  %v6891_v17 = vpop.eup %4029  ;;  %4049 = vpow2.f32 %v3544_v41  ;;  %v3552_v41 = vmul.f32 -1.442695, %v6541_v55 }
 0x3f7   :  { %8707 = vst [vmem:[#allocation189_spill] sm:$0xff] %v6891_v17  ;;  %v6894_v1 = vpop.eup %4031  ;;  %4051 = vpow2.f32 %v3545_v10  ;;  %v3553_v10 = vmul.f32 -1.442695, %v6545_v44  ;;  %v8758_v17 = vld [vmem:[#allocation146_spill] sm:$0xff] }
 0x3f8   :  { %8709 = vst [vmem:[#allocation190_spill] sm:$0xff] %v6894_v1  ;;  %v6897_v42 = vpop.eup %4033  ;;  %4053 = vpow2.f32 %v3546_v40  ;;  %v8716_v40 = vld [vmem:[#allocation29_spill] sm:$0xff] }
 0x3f9   :  { %8711 = vst [vmem:[#allocation191_spill] sm:$0xff] %v6897_v42  ;;  %v6900_v57 = vpop.eup %4035  ;;  %4055 = vpow2.f32 %v3547_v60  ;;  %v3554_v25 = vmul.f32 -1.442695, %v8716_v40  ;;  %v8718_v60 = vld [vmem:[#allocation26_spill] sm:$0xff] }
 0x3fa   :  { %8712 = vst [vmem:[#allocation192_spill] sm:$0xff] %v6900_v57  ;;  %v6903_v59 = vpop.eup %4037  ;;  %4057 = vpow2.f32 %v3548_v53  ;;  %v3555_v14 = vmul.f32 -1.442695, %v8718_v60  ;;  %v3556_v53 = vmul.f32 -1.442695, %v6557_v39 }
 0x3fb   :  { %8713 = vst [vmem:[#allocation193_spill] sm:$0xff] %v6903_v59  ;;  %v6906_v23 = vpop.eup %4039  ;;  %4059 = vpow2.f32 %v3549_v35  ;;  %v8721_v35 = vld [vmem:[#allocation127_spill] sm:$0xff] }
 0x3fc   :  { %8714 = vst [vmem:[#allocation194_spill] sm:$0xff] %v6906_v23  ;;  %v6909_v20 = vpop.eup %4041  ;;  %4061 = vpow2.f32 %v3550_v12  ;;  %v3557_v44 = vmul.f32 -1.442695, %v8721_v35  ;;  %v8723_v12 = vld [vmem:[#allocation128_spill] sm:$0xff] }
 0x3fd   :  { %8715 = vst [vmem:[#allocation195_spill] sm:$0xff] %v6909_v20  ;;  %v6912_v42 = vpop.eup %4043  ;;  %4063 = vpow2.f32 %v3551_v18  ;;  %v3558_v40 = vmul.f32 -1.442695, %v8723_v12  ;;  %v8725_v18 = vld [vmem:[#allocation129_spill] sm:$0xff] }
 0x3fe   :  { %8717 = vst [vmem:[#allocation196_spill] sm:$0xff] %v6912_v42  ;;  %v6915_v57 = vpop.eup %4045  ;;  %4065 = vpow2.f32 %v3552_v41  ;;  %v3559_v60 = vmul.f32 -1.442695, %v8725_v18  ;;  %v2659_v41 = vadd.f32 1.0, %v6585_v63 }
 0x3ff   :  { %8719 = vst [vmem:[#allocation197_spill] sm:$0xff] %v6915_v57  ;;  %v6918_v55 = vpop.eup %4047  ;;  %4067 = vpow2.f32 %v3553_v10  ;;  %v8728_v10 = vld [vmem:[#allocation130_spill] sm:$0xff] }
 0x400   :  { %8720 = vst [vmem:[#allocation198_spill] sm:$0xff] %v6918_v55  ;;  %v6921_v23 = vpop.eup %4049  ;;  %4069 = vpow2.f32 %v3554_v25  ;;  %v2660_v35 = vadd.f32 1.0, %v8728_v10  ;;  %v8730_v25 = vld [vmem:[#allocation131_spill] sm:$0xff] }
 0x401   :  { %8722 = vst [vmem:[#allocation199_spill] sm:$0xff] %v6921_v23  ;;  %v6924_v20 = vpop.eup %4051  ;;  %4071 = vpow2.f32 %v3555_v14  ;;  %v2661_v12 = vadd.f32 1.0, %v8730_v25  ;;  %v8732_v14 = vld [vmem:[#allocation132_spill] sm:$0xff] }
 0x402   :  { %8724 = vst [vmem:[#allocation200_spill] sm:$0xff] %v6924_v20  ;;  %v6927_v42 = vpop.eup %4053  ;;  %4073 = vpow2.f32 %v3556_v53  ;;  %v2662_v18 = vadd.f32 1.0, %v8732_v14  ;;  %v8734_v53 = vld [vmem:[#allocation133_spill] sm:$0xff] }
 0x403   :  { %8726 = vst [vmem:[#allocation201_spill] sm:$0xff] %v6927_v42  ;;  %v6930_v39 = vpop.eup %4055  ;;  %4075 = vpow2.f32 %v3557_v44  ;;  %v2663_v42 = vadd.f32 1.0, %v8734_v53  ;;  %v8736_v44 = vld [vmem:[#allocation134_spill] sm:$0xff] }
 0x404   :  { %8727 = vst [vmem:[#allocation202_spill] sm:$0xff] %v6930_v39  ;;  %v6933_v55 = vpop.eup %4057  ;;  %4077 = vpow2.f32 %v3558_v40  ;;  %v2664_v39 = vadd.f32 1.0, %v8736_v44  ;;  %v8738_v40 = vld [vmem:[#allocation135_spill] sm:$0xff] }
 0x405   :  { %8729 = vst [vmem:[#allocation130_spill] sm:$0xff] %v6933_v55  ;;  %v6936_v23 = vpop.eup %4059  ;;  %4079 = vpow2.f32 %v3559_v60  ;;  %v2665_v55 = vadd.f32 1.0, %v8738_v40  ;;  %v8740_v60 = vld [vmem:[#allocation136_spill] sm:$0xff] }
 0x406   :  { %8731 = vst [vmem:[#allocation131_spill] sm:$0xff] %v6936_v23  ;;  %v6939_v20 = vpop.eup %4061  ;;  %4081 = vrcp.f32 %v2659_v41  ;;  %v2666_v23 = vadd.f32 1.0, %v8740_v60 }
 0x407   :  { %8733 = vst [vmem:[#allocation132_spill] sm:$0xff] %v6939_v20  ;;  %v6942_v63 = vpop.eup %4063  ;;  %4083 = vrcp.f32 %v2660_v35  ;;  %v8742_v20 = vld [vmem:[#allocation137_spill] sm:$0xff] }
 0x408   :  { %8735 = vst [vmem:[#allocation133_spill] sm:$0xff] %v6942_v63  ;;  %v6945_v10 = vpop.eup %4065  ;;  %4085 = vrcp.f32 %v2661_v12  ;;  %v2667_v53 = vadd.f32 1.0, %v8742_v20  ;;  %v8744_v63 = vld [vmem:[#allocation138_spill] sm:$0xff] }
 0x409   :  { %8737 = vst [vmem:[#allocation134_spill] sm:$0xff] %v6945_v10  ;;  %v6948_v25 = vpop.eup %4067  ;;  %4087 = vrcp.f32 %v2662_v18  ;;  %v2668_v44 = vadd.f32 1.0, %v8744_v63  ;;  %v8746_v10 = vld [vmem:[#allocation139_spill] sm:$0xff] }
 0x40a   :  { %8739 = vst [vmem:[#allocation135_spill] sm:$0xff] %v6948_v25  ;;  %v6951_v14 = vpop.eup %4069  ;;  %4089 = vrcp.f32 %v2663_v42  ;;  %v2669_v40 = vadd.f32 1.0, %v8746_v10  ;;  %v8748_v25 = vld [vmem:[#allocation140_spill] sm:$0xff] }
 0x40b   :  { %8741 = vst [vmem:[#allocation136_spill] sm:$0xff] %v6951_v14  ;;  %v6954_v41 = vpop.eup %4071  ;;  %4091 = vrcp.f32 %v2664_v39  ;;  %v2670_v60 = vadd.f32 1.0, %v8748_v25  ;;  %v8750_v14 = vld [vmem:[#allocation141_spill] sm:$0xff]  ;;  %v8754_v10 = vld [vmem:[#allocation144_spill] sm:$0xff] }
 0x40c   :  { %8743 = vst [vmem:[#allocation137_spill] sm:$0xff] %v6954_v41  ;;  %v6957_v35 = vpop.eup %4073  ;;  %4093 = vrcp.f32 %v2665_v55  ;;  %v2671_v20 = vadd.f32 1.0, %v8750_v14  ;;  %v8752_v41 = vld [vmem:[#allocation142_spill] sm:$0xff]  ;;  %v8755_v25 = vld [vmem:[#allocation28_spill] sm:$0xff]  ;;  %v8757_v14 = vld [vmem:[#allocation35_spill] sm:$0xff] }
 0x40d   :  { %8745 = vst [vmem:[#allocation138_spill] sm:$0xff] %v6957_v35  ;;  %v6960_v12 = vpop.eup %4075  ;;  %4095 = vrcp.f32 %v2666_v23  ;;  %v2672_v63 = vadd.f32 1.0, %v8752_v41  ;;  %v8753_v35 = vld [vmem:[#allocation143_spill] sm:$0xff]  ;;  %v2676_v41 = vadd.f32 1.0, %v8758_v17 }
 0x40e   :  { %8747 = vst [vmem:[#allocation139_spill] sm:$0xff] %v6960_v12  ;;  %v6963_v18 = vpop.eup %4077  ;;  %4097 = vrcp.f32 %v2667_v53  ;;  %v2673_v57 = vadd.f32 1.0, %v8753_v35  ;;  %v2674_v12 = vadd.f32 1.0, %v8754_v10 }
 0x40f   :  { %8749 = vst [vmem:[#allocation140_spill] sm:$0xff] %v6963_v18  ;;  %v6966_v42 = vpop.eup %4079  ;;  %4099 = vrcp.f32 %v2668_v44  ;;  %v8756_v18 = vld [vmem:[#allocation145_spill] sm:$0xff]  ;;  %v8759_v44 = vld [vmem:[#allocation74_spill] sm:$0xff] }
 0x410   :  { %8751 = vst [vmem:[#allocation141_spill] sm:$0xff] %v6966_v42  ;;  %v4082_v39 = vpop.eup %4081  ;;  %4101 = vrcp.f32 %v2669_v40  ;;  %v2675_v1 = vadd.f32 1.0, %v8756_v18  ;;  %v8760_v40 = vld [vmem:[#allocation147_spill] sm:$0xff] }
 0x411   :  { %v4084_v55 = vpop.eup %4083  ;;  %4103 = vrcp.f32 %v2670_v60  ;;  %v3043_v23 = vmul.f32 %v4082_v39, %v8755_v25  ;;  %v2677_v60 = vadd.f32 1.0, %v8760_v40  ;;  %v8761_v39 = vld [vmem:[#allocation80_spill] sm:$0xff] }
 0x412   :  { %v4086_v59 = vpop.eup %4085  ;;  %4105 = vrcp.f32 %v2671_v20  ;;  %v3044_v53 = vmul.f32 %v4084_v55, %v8757_v14  ;;  %v8762_v20 = vld [vmem:[#allocation148_spill] sm:$0xff] }
 0x413   :  { %v4088_v42 = vpop.eup %4087  ;;  %4107 = vrcp.f32 %v2672_v63  ;;  %v3045_v49 = vmul.f32 %v4086_v59, %v8759_v44  ;;  %3171 = vst.msk [vmem:[%s7727_s4] sm:$0xff] %vm1220_vm3, %v3043_v23  ;;  %v2678_v63 = vadd.f32 1.0, %v8762_v20  ;;  %v8763_v59 = vld [vmem:[#allocation82_spill] sm:$0xff]  ;;  %v8767_v44 = vld [vmem:[#allocation81_spill] sm:$0xff] }
 0x414   :  { %v4090_v35 = vpop.eup %4089  ;;  %4109 = vrcp.f32 %v2673_v57  ;;  %v3046_v18 = vmul.f32 %v4088_v42, %v8761_v39  ;;  %3172 = vst.msk [vmem:[%s7727_s4 + $0x8] sm:$0xff] %vm1220_vm3, %v3044_v53  ;;  %v8764_v57 = vld [vmem:[#allocation149_spill] sm:$0xff]  ;;  %v8765_v42 = vld [vmem:[#allocation84_spill] sm:$0xff]  ;;  %v8769_v39 = vld [vmem:[#allocation83_spill] sm:$0xff] }
 0x415   :  { %v4092_v17 = vpop.eup %4091  ;;  %4111 = vrcp.f32 %v2674_v12  ;;  %v3047_v55 = vmul.f32 %v4090_v35, %v8763_v59  ;;  %3173 = vst.msk [vmem:[%s7727_s4 + $0x10] sm:$0xff] %vm1220_vm3, %v3045_v49  ;;  %v2679_v25 = vadd.f32 1.0, %v8764_v57  ;;  %v8766_v12 = vld [vmem:[#allocation150_spill] sm:$0xff] }
 0x416   :  { %v4094_v10 = vpop.eup %4093  ;;  %4113 = vrcp.f32 %v2675_v1  ;;  %v3048_v23 = vmul.f32 %v4092_v17, %v8765_v42  ;;  %3174 = vst.msk [vmem:[%s7727_s4 + $0x18] sm:$0xff] %vm1220_vm3, %v3046_v18  ;;  %v2680_v53 = vadd.f32 1.0, %v8766_v12  ;;  %v8768_v1 = vld [vmem:[#allocation151_spill] sm:$0xff]  ;;  %v8771_v59 = vld [vmem:[#allocation86_spill] sm:$0xff]  ;;  %v8773_v42 = vld [vmem:[#allocation88_spill] sm:$0xff] }
 0x417   :  { %v4096_v14 = vpop.eup %4095  ;;  %4115 = vrcp.f32 %v2676_v41  ;;  %v3049_v35 = vmul.f32 %v4094_v10, %v8767_v44  ;;  %3175 = vst.msk [vmem:[%s7727_s4 + $0x20] sm:$0xff] %vm1220_vm3, %v3047_v55  ;;  %v2681_v40 = vadd.f32 1.0, %v8768_v1  ;;  %v8770_v41 = vld [vmem:[#allocation152_spill] sm:$0xff]  ;;  %v8775_v44 = vld [vmem:[#allocation85_spill] sm:$0xff] }
 0x418   :  { %v4098_v49 = vpop.eup %4097  ;;  %4117 = vrcp.f32 %v2677_v60  ;;  %v3050_v17 = vmul.f32 %v4096_v14, %v8769_v39  ;;  %3176 = vst.msk [vmem:[%s7727_s4 + $0x28] sm:$0xff] %vm1220_vm3, %v3048_v23  ;;  %v2682_v20 = vadd.f32 1.0, %v8770_v41  ;;  %v8772_v60 = vld [vmem:[#allocation153_spill] sm:$0xff]  ;;  %v8777_v39 = vld [vmem:[#allocation87_spill] sm:$0xff] }
 0x419   :  { %v4100_v18 = vpop.eup %4099  ;;  %4119 = vrcp.f32 %v2678_v63  ;;  %v3051_v10 = vmul.f32 %v4098_v49, %v8771_v59  ;;  %3177 = vst.msk [vmem:[%s7727_s4 + $0x30] sm:$0xff] %vm1220_vm3, %v3049_v35  ;;  %v2683_v57 = vadd.f32 1.0, %v8772_v60  ;;  %v8774_v63 = vld [vmem:[#allocation154_spill] sm:$0xff] }
 0x41a   :  { %v4102_v55 = vpop.eup %4101  ;;  %4121 = vrcp.f32 %v2679_v25  ;;  %v3052_v14 = vmul.f32 %v4100_v18, %v8773_v42  ;;  %3178 = vst.msk [vmem:[%s7727_s4 + $0x38] sm:$0xff] %vm1220_vm3, %v3050_v17  ;;  %v2684_v12 = vadd.f32 1.0, %v8774_v63  ;;  %v8776_v25 = vld [vmem:[#allocation155_spill] sm:$0xff]  ;;  %v8779_v59 = vld [vmem:[#allocation90_spill] sm:$0xff]  ;;  %v8781_v42 = vld [vmem:[#allocation92_spill] sm:$0xff] }
 0x41b   :  { %v4104_v23 = vpop.eup %4103  ;;  %4123 = vrcp.f32 %v2680_v53  ;;  %v3053_v49 = vmul.f32 %v4102_v55, %v8775_v44  ;;  %3179 = vst.msk [vmem:[%s7727_s4 + $0x40] sm:$0xff] %vm1220_vm3, %v3051_v10  ;;  %v2685_v1 = vadd.f32 1.0, %v8776_v25  ;;  %v8778_v53 = vld [vmem:[#allocation156_spill] sm:$0xff]  ;;  %v8783_v44 = vld [vmem:[#allocation89_spill] sm:$0xff] }
 0x41c   :  { %v4106_v35 = vpop.eup %4105  ;;  %4125 = vrcp.f32 %v2681_v40  ;;  %v3054_v18 = vmul.f32 %v4104_v23, %v8777_v39  ;;  %3180 = vst.msk [vmem:[%s7727_s4 + $0x48] sm:$0xff] %vm1220_vm3, %v3052_v14  ;;  %v2686_v41 = vadd.f32 1.0, %v8778_v53  ;;  %v8780_v40 = vld [vmem:[#allocation157_spill] sm:$0xff]  ;;  %v8785_v39 = vld [vmem:[#allocation91_spill] sm:$0xff] }
 0x41d   :  { %v4108_v17 = vpop.eup %4107  ;;  %4127 = vrcp.f32 %v2682_v20  ;;  %v3055_v55 = vmul.f32 %v4106_v35, %v8779_v59  ;;  %3181 = vst.msk [vmem:[%s7727_s4 + $0x50] sm:$0xff] %vm1220_vm3, %v3053_v49  ;;  %v2687_v60 = vadd.f32 1.0, %v8780_v40  ;;  %v8782_v20 = vld [vmem:[#allocation158_spill] sm:$0xff]  ;;  %v8787_v59 = vld [vmem:[#allocation37_spill] sm:$0xff] }
 0x41e   :  { %v4110_v10 = vpop.eup %4109  ;;  %4129 = vrcp.f32 %v2683_v57  ;;  %v3056_v23 = vmul.f32 %v4108_v17, %v8781_v42  ;;  %3182 = vst.msk [vmem:[%s7727_s4 + $0x58] sm:$0xff] %vm1220_vm3, %v3054_v18  ;;  %v2688_v63 = vadd.f32 1.0, %v8782_v20  ;;  %v8784_v57 = vld [vmem:[#allocation159_spill] sm:$0xff]  ;;  %v8789_v42 = vld [vmem:[#allocation34_spill] sm:$0xff] }
 0x41f   :  { %v4112_v14 = vpop.eup %4111  ;;  %4131 = vrcp.f32 %v2684_v12  ;;  %v3057_v35 = vmul.f32 %v4110_v10, %v8783_v44  ;;  %3183 = vst.msk [vmem:[%s7727_s4 + $0x60] sm:$0xff] %vm1220_vm3, %v3055_v55  ;;  %v2689_v25 = vadd.f32 1.0, %v8784_v57  ;;  %v8786_v12 = vld [vmem:[#allocation160_spill] sm:$0xff] }
 0x420   :  { %v4114_v49 = vpop.eup %4113  ;;  %4133 = vrcp.f32 %v2685_v1  ;;  %v3058_v17 = vmul.f32 %v4112_v14, %v8785_v39  ;;  %3184 = vst.msk [vmem:[%s7727_s4 + $0x68] sm:$0xff] %vm1220_vm3, %v3056_v23  ;;  %v2690_v53 = vadd.f32 1.0, %v8786_v12  ;;  %v8788_v1 = vld [vmem:[#allocation161_spill] sm:$0xff]  ;;  %v8791_v44 = vld [vmem:[#allocation36_spill] sm:$0xff]  ;;  %v8793_v39 = vld [vmem:[#allocation75_spill] sm:$0xff] }
 0x421   :  { %v4116_v18 = vpop.eup %4115  ;;  %4135 = vrcp.f32 %v2686_v41  ;;  %v3059_v10 = vmul.f32 %v4114_v49, %v8787_v59  ;;  %3185 = vst.msk [vmem:[%s7727_s4 + $0x70] sm:$0xff] %vm1220_vm3, %v3057_v35  ;;  %v2691_v40 = vadd.f32 1.0, %v8788_v1  ;;  %v8790_v41 = vld [vmem:[#allocation162_spill] sm:$0xff]  ;;  %v8795_v59 = vld [vmem:[#allocation3_spill] sm:$0xff] }
 0x422   :  { %v4118_v55 = vpop.eup %4117  ;;  %4137 = vrcp.f32 %v2687_v60  ;;  %v3060_v14 = vmul.f32 %v4116_v18, %v8789_v42  ;;  %3186 = vst.msk [vmem:[%s7727_s4 + $0x78] sm:$0xff] %vm1220_vm3, %v3058_v17  ;;  %v2692_v20 = vadd.f32 1.0, %v8790_v41  ;;  %v8792_v60 = vld [vmem:[#allocation163_spill] sm:$0xff]  ;;  %v8797_v42 = vld [vmem:[#allocation5_spill] sm:$0xff] }
 0x423   :  { %v4120_v23 = vpop.eup %4119  ;;  %4139 = vrcp.f32 %v2688_v63  ;;  %v3061_v49 = vmul.f32 %v4118_v55, %v8791_v44  ;;  %3187 = vst.msk [vmem:[%s7727_s4 + $0x80] sm:$0xff] %vm1220_vm3, %v3059_v10  ;;  %v2693_v57 = vadd.f32 1.0, %v8792_v60  ;;  %v8794_v63 = vld [vmem:[#allocation164_spill] sm:$0xff]  ;;  %v8799_v44 = vld [vmem:[#allocation2_spill] sm:$0xff] }
 0x424   :  { %v4122_v35 = vpop.eup %4121  ;;  %4141 = vrcp.f32 %v2689_v25  ;;  %v3062_v18 = vmul.f32 %v4120_v23, %v8793_v39  ;;  %3188 = vst.msk [vmem:[%s7727_s4 + $0x88] sm:$0xff] %vm1220_vm3, %v3060_v14  ;;  %v2694_v12 = vadd.f32 1.0, %v8794_v63  ;;  %v8796_v25 = vld [vmem:[#allocation165_spill] sm:$0xff]  ;;  %v8801_v39 = vld [vmem:[#allocation4_spill] sm:$0xff] }
 0x425   :  { %v4124_v17 = vpop.eup %4123  ;;  %4143 = vrcp.f32 %v2690_v53  ;;  %v3063_v55 = vmul.f32 %v4122_v35, %v8795_v59  ;;  %3189 = vst.msk [vmem:[%s7727_s4 + $0x90] sm:$0xff] %vm1220_vm3, %v3061_v49  ;;  %v2695_v1 = vadd.f32 1.0, %v8796_v25  ;;  %v8798_v53 = vld [vmem:[#allocation166_spill] sm:$0xff]  ;;  %v8803_v59 = vld [vmem:[#allocation7_spill] sm:$0xff] }
 0x426   :  { %v4126_v10 = vpop.eup %4125  ;;  %4145 = vrcp.f32 %v2691_v40  ;;  %v3064_v23 = vmul.f32 %v4124_v17, %v8797_v42  ;;  %3190 = vst.msk [vmem:[%s7727_s4 + $0x98] sm:$0xff] %vm1220_vm3, %v3062_v18  ;;  %v2696_v41 = vadd.f32 1.0, %v8798_v53  ;;  %v8800_v40 = vld [vmem:[#allocation167_spill] sm:$0xff]  ;;  %v8805_v42 = vld [vmem:[#allocation9_spill] sm:$0xff] }
 0x427   :  { %v4128_v14 = vpop.eup %4127  ;;  %4147 = vrcp.f32 %v2692_v20  ;;  %v3065_v35 = vmul.f32 %v4126_v10, %v8799_v44  ;;  %3191 = vst.msk [vmem:[%s7727_s4 + $0xa0] sm:$0xff] %vm1220_vm3, %v3063_v55  ;;  %v2697_v60 = vadd.f32 1.0, %v8800_v40  ;;  %v8802_v20 = vld [vmem:[#allocation168_spill] sm:$0xff]  ;;  %v8807_v44 = vld [vmem:[#allocation6_spill] sm:$0xff] }
 0x428   :  { %v4130_v49 = vpop.eup %4129  ;;  %4149 = vrcp.f32 %v2693_v57  ;;  %v3066_v17 = vmul.f32 %v4128_v14, %v8801_v39  ;;  %3192 = vst.msk [vmem:[%s7727_s4 + $0xa8] sm:$0xff] %vm1220_vm3, %v3064_v23  ;;  %v2698_v63 = vadd.f32 1.0, %v8802_v20  ;;  %v8804_v57 = vld [vmem:[#allocation169_spill] sm:$0xff]  ;;  %v8809_v39 = vld [vmem:[#allocation8_spill] sm:$0xff]  ;;  %v8810_v20 = vld [vmem:[#allocation11_spill] sm:$0xff] }
 0x429   :  { %v4132_v18 = vpop.eup %4131  ;;  %4151 = vrcp.f32 %v2694_v12  ;;  %v3067_v10 = vmul.f32 %v4130_v49, %v8803_v59  ;;  %3193 = vst.msk [vmem:[%s7727_s4 + $0xb0] sm:$0xff] %vm1220_vm3, %v3065_v35  ;;  %v2699_v25 = vadd.f32 1.0, %v8804_v57  ;;  %v8806_v12 = vld [vmem:[#allocation170_spill] sm:$0xff] }
 0x42a   :  { %v4134_v55 = vpop.eup %4133  ;;  %4153 = vrcp.f32 %v2695_v1  ;;  %v3068_v14 = vmul.f32 %v4132_v18, %v8805_v42  ;;  %3194 = vst.msk [vmem:[%s7727_s4 + $0xb8] sm:$0xff] %vm1220_vm3, %v3066_v17  ;;  %v2700_v53 = vadd.f32 1.0, %v8806_v12  ;;  %v8808_v1 = vld [vmem:[#allocation171_spill] sm:$0xff]  ;;  %v8812_v42 = vld [vmem:[#allocation10_spill] sm:$0xff] }
 0x42b   :  { %v4136_v23 = vpop.eup %4135  ;;  %4155 = vrcp.f32 %v2696_v41  ;;  %v3069_v49 = vmul.f32 %v4134_v55, %v8807_v44  ;;  %3195 = vst.msk [vmem:[%s7727_s4 + $0xc0] sm:$0xff] %vm1220_vm3, %v3067_v10  ;;  %v2701_v40 = vadd.f32 1.0, %v8808_v1  ;;  %v2702_v41 = vadd.f32 1.0, %v6714_v19  ;;  %v8811_v55 = vld [vmem:[#allocation13_spill] sm:$0xff]  ;;  %v8814_v44 = vld [vmem:[#allocation15_spill] sm:$0xff] }
 0x42c   :  { %v4138_v35 = vpop.eup %4137  ;;  %4157 = vrcp.f32 %v2697_v60  ;;  %v3070_v18 = vmul.f32 %v4136_v23, %v8809_v39  ;;  %3196 = vst.msk [vmem:[%s7727_s4 + $0xc8] sm:$0xff] %vm1220_vm3, %v3068_v14  ;;  %v2703_v60 = vadd.f32 1.0, %v6717_v30  ;;  %v8813_v23 = vld [vmem:[#allocation12_spill] sm:$0xff]  ;;  %v8815_v1 = vld [vmem:[#allocation17_spill] sm:$0xff]  ;;  %v2708_v39 = vadd.f32 1.0, %v6732_v28 }
 0x42d   :  { %v4140_v17 = vpop.eup %4139  ;;  %4159 = vrcp.f32 %v2698_v63  ;;  %v3071_v59 = vmul.f32 %v4138_v35, %v8810_v20  ;;  %3197 = vst.msk [vmem:[%s7727_s4 + $0xd0] sm:$0xff] %vm1220_vm3, %v3069_v49  ;;  %v2704_v63 = vadd.f32 1.0, %v6720_v27  ;;  %v2707_v35 = vadd.f32 1.0, %v6729_v36  ;;  %v8817_v20 = vld [vmem:[#allocation16_spill] sm:$0xff] }
 0x42e   :  { %v4142_v10 = vpop.eup %4141  ;;  %4161 = vrcp.f32 %v2699_v25  ;;  %v3072_v57 = vmul.f32 %v4140_v17, %v8811_v55  ;;  %3198 = vst.msk [vmem:[%s7727_s4 + $0xd8] sm:$0xff] %vm1220_vm3, %v3070_v18  ;;  %v2705_v25 = vadd.f32 1.0, %v6723_v3  ;;  %v8816_v18 = vld [vmem:[#allocation14_spill] sm:$0xff] }
 0x42f   :  { %v4144_v19 = vpop.eup %4143  ;;  %4163 = vrcp.f32 %v2700_v53  ;;  %v3073_v14 = vmul.f32 %v4142_v10, %v8812_v42  ;;  %3199 = vst.msk [vmem:[%s7727_s4 + $0xe0] sm:$0xff] %vm1220_vm3, %v3071_v59  ;;  %v2706_v53 = vadd.f32 1.0, %v6726_v46  ;;  %v2710_v10 = vadd.f32 1.0, %v6738_v11 }
 0x430   :  { %v4146_v30 = vpop.eup %4145  ;;  %4165 = vrcp.f32 %v2701_v40  ;;  %v3074_v12 = vmul.f32 %v4144_v19, %v8813_v23  ;;  %3200 = vst.msk [vmem:[%s7727_s4 + $0xe8] sm:$0xff] %vm1220_vm3, %v3072_v57  ;;  %v2711_v57 = vadd.f32 1.0, %v6741_v45  ;;  %v8819_v19 = vld [vmem:[#allocation25_spill] sm:$0xff]  ;;  %v2712_v42 = vadd.f32 1.0, %v6744_v22  ;;  %v8821_v23 = vld [vmem:[#allocation24_spill] sm:$0xff] }
 0x431   :  { %v4148_v27 = vpop.eup %4147  ;;  %4167 = vrcp.f32 %v2702_v41  ;;  %v3075_v49 = vmul.f32 %v4146_v30, %v8814_v44  ;;  %3201 = vst.msk [vmem:[%s7727_s4 + $0xf0] sm:$0xff] %vm1220_vm3, %v3073_v14  ;;  %v2709_v41 = vadd.f32 1.0, %v6735_v43  ;;  %v8820_v14 = vld [vmem:[#allocation22_spill] sm:$0xff] }
 0x432   :  { %v4150_v3 = vpop.eup %4149  ;;  %4169 = vrcp.f32 %v2703_v60  ;;  %v3076_v40 = vmul.f32 %v4148_v27, %v8815_v1  ;;  %3202 = vst.msk [vmem:[%s7727_s4 + $0xf8] sm:$0xff] %vm1220_vm3, %v3074_v12  ;;  %v8818_v60 = vld [vmem:[#allocation23_spill] sm:$0xff]  ;;  %v2714_v27 = vadd.f32 1.0, %v6750_v31  ;;  %v2716_v1 = vadd.f32 1.0, %v6756_v0 }
 0x433   :  { %v4152_v46 = vpop.eup %4151  ;;  %4171 = vrcp.f32 %v2704_v63  ;;  %v3077_v17 = vmul.f32 %v4150_v3, %v8816_v18  ;;  %3203 = vst.msk [vmem:[%s7727_s4 + $0x100] sm:$0xff] %vm1220_vm3, %v3075_v49  ;;  %v2715_v49 = vadd.f32 1.0, %v6753_v4  ;;  %v8823_v3 = vld [vmem:[#allocation33_spill] sm:$0xff]  ;;  %v8825_v18 = vld [vmem:[#allocation32_spill] sm:$0xff] }
 0x434   :  { %v4154_v36 = vpop.eup %4153  ;;  %4173 = vrcp.f32 %v2705_v25  ;;  %v3078_v59 = vmul.f32 %v4152_v46, %v8817_v20  ;;  %3204 = vst.msk [vmem:[%s7727_s4 + $0x108] sm:$0xff] %vm1220_vm3, %v3076_v40  ;;  %v2713_v25 = vadd.f32 1.0, %v6747_v52  ;;  %v8824_v40 = vld [vmem:[#allocation30_spill] sm:$0xff] }
 0x435   :  { %v4156_v28 = vpop.eup %4155  ;;  %4175 = vrcp.f32 %v2706_v53  ;;  %v3079_v55 = vmul.f32 %v4154_v36, %v8818_v60  ;;  %3205 = vst.msk [vmem:[%s7727_s4 + $0x110] sm:$0xff] %vm1220_vm3, %v3077_v17  ;;  %v8822_v53 = vld [vmem:[#allocation31_spill] sm:$0xff]  ;;  %v2718_v36 = vadd.f32 1.0, %v6762_v21  ;;  %v2720_v60 = vadd.f32 1.0, %v6768_v56 }
 0x436   :  { %v4158_v43 = vpop.eup %4157  ;;  %4177 = vrcp.f32 %v2707_v35  ;;  %v3080_v63 = vmul.f32 %v4156_v28, %v8819_v19  ;;  %3206 = vst.msk [vmem:[%s7727_s4 + $0x118] sm:$0xff] %vm1220_vm3, %v3078_v59  ;;  %v2719_v59 = vadd.f32 1.0, %v6765_v7  ;;  %v8827_v28 = vld [vmem:[#allocation41_spill] sm:$0xff]  ;;  %v8829_v19 = vld [vmem:[#allocation40_spill] sm:$0xff] }
 0x437   :  { %v4160_v11 = vpop.eup %4159  ;;  %4179 = vrcp.f32 %v2708_v39  ;;  %v3081_v30 = vmul.f32 %v4158_v43, %v8820_v14  ;;  %3207 = vst.msk [vmem:[%s7727_s4 + $0x120] sm:$0xff] %vm1220_vm3, %v3079_v55  ;;  %v2717_v39 = vadd.f32 1.0, %v6759_v32  ;;  %v8828_v55 = vld [vmem:[#allocation38_spill] sm:$0xff] }
 0x438   :  { %v4162_v45 = vpop.eup %4161  ;;  %4181 = vrcp.f32 %v2709_v41  ;;  %v3082_v12 = vmul.f32 %v4160_v11, %v8821_v23  ;;  %3208 = vst.msk [vmem:[%s7727_s4 + $0x128] sm:$0xff] %vm1220_vm3, %v3080_v63  ;;  %v8826_v41 = vld [vmem:[#allocation39_spill] sm:$0xff]  ;;  %v2722_v11 = vadd.f32 1.0, %v6774_v48  ;;  %v2724_v23 = vadd.f32 1.0, %v6780_v33 }
 0x439   :  { %v4164_v22 = vpop.eup %4163  ;;  %4183 = vrcp.f32 %v2710_v10  ;;  %v3083_v44 = vmul.f32 %v4162_v45, %v8822_v53  ;;  %3209 = vst.msk [vmem:[%s7727_s4 + $0x130] sm:$0xff] %vm1220_vm3, %v3081_v30  ;;  %v2723_v30 = vadd.f32 1.0, %v6777_v13  ;;  %v8831_v45 = vld [vmem:[#allocation45_spill] sm:$0xff]  ;;  %v8833_v53 = vld [vmem:[#allocation44_spill] sm:$0xff] }
 0x43a   :  { %v4166_v52 = vpop.eup %4165  ;;  %4185 = vrcp.f32 %v2711_v57  ;;  %v3084_v35 = vmul.f32 %v4164_v22, %v8823_v3  ;;  %3210 = vst.msk [vmem:[%s7727_s4 + $0x138] sm:$0xff] %vm1220_vm3, %v3082_v12  ;;  %v2721_v57 = vadd.f32 1.0, %v6771_v16  ;;  %v8832_v12 = vld [vmem:[#allocation42_spill] sm:$0xff] }
 0x43b   :  { %v4168_v31 = vpop.eup %4167  ;;  %4187 = vrcp.f32 %v2712_v42  ;;  %v3085_v46 = vmul.f32 %v4166_v52, %v8824_v40  ;;  %3211 = vst.msk [vmem:[%s7727_s4 + $0x140] sm:$0xff] %vm1220_vm3, %v3083_v44  ;;  %v8830_v42 = vld [vmem:[#allocation43_spill] sm:$0xff]  ;;  %v2726_v52 = vadd.f32 1.0, %v6786_v8  ;;  %v2728_v40 = vadd.f32 1.0, %v6792_v2 }
 0x43c   :  { %v4170_v4 = vpop.eup %4169  ;;  %4189 = vrcp.f32 %v2713_v25  ;;  %v3086_v17 = vmul.f32 %v4168_v31, %v8825_v18  ;;  %3212 = vst.msk [vmem:[%s7727_s4 + $0x148] sm:$0xff] %vm1220_vm3, %v3084_v35  ;;  %v2727_v35 = vadd.f32 1.0, %v6789_v50  ;;  %v8835_v31 = vld [vmem:[#allocation49_spill] sm:$0xff]  ;;  %v8837_v18 = vld [vmem:[#allocation48_spill] sm:$0xff] }
 0x43d   :  { %v4172_v0 = vpop.eup %4171  ;;  %4191 = vrcp.f32 %v2714_v27  ;;  %v3087_v20 = vmul.f32 %v4170_v4, %v8826_v41  ;;  %3213 = vst.msk [vmem:[%s7727_s4 + $0x150] sm:$0xff] %vm1220_vm3, %v3085_v46  ;;  %v2725_v27 = vadd.f32 1.0, %v6783_v15  ;;  %v8836_v46 = vld [vmem:[#allocation46_spill] sm:$0xff] }
 0x43e   :  { %v4174_v32 = vpop.eup %4173  ;;  %4193 = vrcp.f32 %v2715_v49  ;;  %v3088_v10 = vmul.f32 %v4172_v0, %v8827_v28  ;;  %3214 = vst.msk [vmem:[%s7727_s4 + $0x158] sm:$0xff] %vm1220_vm3, %v3086_v17  ;;  %v8834_v49 = vld [vmem:[#allocation47_spill] sm:$0xff]  ;;  %v2730_v0 = vadd.f32 1.0, %v6798_v26  ;;  %v2732_v28 = vadd.f32 1.0, %v6804_v24 }
 0x43f   :  { %v4176_v21 = vpop.eup %4175  ;;  %4195 = vrcp.f32 %v2716_v1  ;;  %v3089_v43 = vmul.f32 %v4174_v32, %v8828_v55  ;;  %3215 = vst.msk [vmem:[%s7727_s4 + $0x160] sm:$0xff] %vm1220_vm3, %v3087_v20  ;;  %v2731_v20 = vadd.f32 1.0, %v6801_v6  ;;  %v8839_v32 = vld [vmem:[#allocation53_spill] sm:$0xff]  ;;  %v8841_v55 = vld [vmem:[#allocation52_spill] sm:$0xff] }
 0x440   :  { %v4178_v7 = vpop.eup %4177  ;;  %4197 = vrcp.f32 %v2717_v39  ;;  %v3090_v63 = vmul.f32 %v4176_v21, %v8829_v19  ;;  %3216 = vst.msk [vmem:[%s7727_s4 + $0x168] sm:$0xff] %vm1220_vm3, %v3088_v10  ;;  %v2729_v39 = vadd.f32 1.0, %v6795_v61  ;;  %v8840_v10 = vld [vmem:[#allocation50_spill] sm:$0xff] }
 0x441   :  { %v4180_v56 = vpop.eup %4179  ;;  %4199 = vrcp.f32 %v2718_v36  ;;  %v3091_v14 = vmul.f32 %v4178_v7, %v8830_v42  ;;  %3217 = vst.msk [vmem:[%s7727_s4 + $0x170] sm:$0xff] %vm1220_vm3, %v3089_v43  ;;  %v8838_v36 = vld [vmem:[#allocation51_spill] sm:$0xff]  ;;  %v2734_v7 = vadd.f32 1.0, %v6810_v9  ;;  %v2736_v42 = vadd.f32 1.0, %v6816_v51 }
 0x442   :  { %v4182_v16 = vpop.eup %4181  ;;  %4201 = vrcp.f32 %v2719_v59  ;;  %v3092_v25 = vmul.f32 %v4180_v56, %v8831_v45  ;;  %3218 = vst.msk [vmem:[%s7727_s4 + $0x178] sm:$0xff] %vm1220_vm3, %v3090_v63  ;;  %v2735_v63 = vadd.f32 1.0, %v6813_v5  ;;  %v8843_v56 = vld [vmem:[#allocation57_spill] sm:$0xff] }
 0x443   :  { %v4184_v48 = vpop.eup %4183  ;;  %4203 = vrcp.f32 %v2720_v60  ;;  %v3093_v22 = vmul.f32 %v4182_v16, %v8832_v12  ;;  %3219 = vst.msk [vmem:[%s7727_s4 + $0x180] sm:$0xff] %vm1220_vm3, %v3091_v14  ;;  %v2733_v60 = vadd.f32 1.0, %v6807_v62  ;;  %v8844_v14 = vld [vmem:[#allocation54_spill] sm:$0xff]  ;;  %v8847_v12 = vld [vmem:[#allocation59_spill] sm:$0xff] }
 0x444   :  { %v4186_v13 = vpop.eup %4185  ;;  %4205 = vrcp.f32 %v2721_v57  ;;  %v3094_v44 = vmul.f32 %v4184_v48, %v8833_v53  ;;  %3220 = vst.msk [vmem:[%s7727_s4 + $0x188] sm:$0xff] %vm1220_vm3, %v3092_v25  ;;  %v8842_v57 = vld [vmem:[#allocation55_spill] sm:$0xff]  ;;  %v8846_v25 = vld [vmem:[#allocation56_spill] sm:$0xff]  ;;  %v8848_v53 = vld [vmem:[#allocation61_spill] sm:$0xff] }
 0x445   :  { %v4188_v33 = vpop.eup %4187  ;;  %4207 = vrcp.f32 %v2722_v11  ;;  %v3095_v3 = vmul.f32 %v4186_v13, %v8834_v49  ;;  %3221 = vst.msk [vmem:[%s7727_s4 + $0x190] sm:$0xff] %vm1220_vm3, %v3093_v22 }
 0x446   :  { %v4190_v15 = vpop.eup %4189  ;;  %4209 = vrcp.f32 %v2723_v30  ;;  %v3096_v1 = vmul.f32 %v4188_v33, %v8835_v31  ;;  %3222 = vst.msk [vmem:[%s7727_s4 + $0x198] sm:$0xff] %vm1220_vm3, %v3094_v44  ;;  %v8845_v30 = vld [vmem:[#allocation172_spill] sm:$0xff]  ;;  %v2740_v33 = vadd.f32 1.0, %v6828_v29  ;;  %v2742_v31 = vadd.f32 1.0, %v6834_v58 }
 0x447   :  { %v4192_v8 = vpop.eup %4191  ;;  %4211 = vrcp.f32 %v2724_v23  ;;  %v3097_v4 = vmul.f32 %v4190_v15, %v8836_v46  ;;  %3223 = vst.msk [vmem:[%s7727_s4 + $0x1a0] sm:$0xff] %vm1220_vm3, %v3095_v3  ;;  %v2737_v45 = vadd.f32 1.0, %v8845_v30  ;;  %v2738_v23 = vadd.f32 1.0, %v6822_v47  ;;  %v8850_v15 = vld [vmem:[#allocation60_spill] sm:$0xff]  ;;  %v8852_v46 = vld [vmem:[#allocation65_spill] sm:$0xff] }
 0x448   :  { %v4194_v50 = vpop.eup %4193  ;;  %4213 = vrcp.f32 %v2725_v27  ;;  %v3098_v17 = vmul.f32 %v4192_v8, %v8837_v18  ;;  %3224 = vst.msk [vmem:[%s7727_s4 + $0x1a8] sm:$0xff] %vm1220_vm3, %v3096_v1  ;;  %v2739_v27 = vadd.f32 1.0, %v6825_v54  ;;  %v2741_v3 = vadd.f32 1.0, %v6831_v38  ;;  %v8851_v1 = vld [vmem:[#allocation63_spill] sm:$0xff]  ;;  %v8854_v18 = vld [vmem:[#allocation62_spill] sm:$0xff] }
 0x449   :  { %v4196_v2 = vpop.eup %4195  ;;  %4215 = vrcp.f32 %v2726_v52  ;;  %v3099_v41 = vmul.f32 %v4194_v50, %v8838_v36  ;;  %3225 = vst.msk [vmem:[%s7727_s4 + $0x1b0] sm:$0xff] %vm1220_vm3, %v3097_v4  ;;  %v8849_v52 = vld [vmem:[#allocation58_spill] sm:$0xff]  ;;  %v8853_v50 = vld [vmem:[#allocation173_spill] sm:$0xff]  ;;  %v8856_v36 = vld [vmem:[#allocation64_spill] sm:$0xff] }
 0x44a   :  { %v4198_v61 = vpop.eup %4197  ;;  %4217 = vrcp.f32 %v2727_v35  ;;  %v3100_v59 = vmul.f32 %v4196_v2, %v8839_v32  ;;  %3226 = vst.msk [vmem:[%s7727_s4 + $0x1b8] sm:$0xff] %vm1220_vm3, %v3098_v17  ;;  %v8855_v2 = vld [vmem:[#allocation174_spill] sm:$0xff] }
 0x44b   :  { %v4200_v26 = vpop.eup %4199  ;;  %4219 = vrcp.f32 %v2728_v40  ;;  %v3101_v21 = vmul.f32 %v4198_v61, %v8840_v10  ;;  %3227 = vst.msk [vmem:[%s7727_s4 + $0x1c0] sm:$0xff] %vm1220_vm3, %v3099_v41  ;;  %v2743_v40 = vadd.f32 1.0, %v6837_v34  ;;  %v8859_v10 = vld [vmem:[#allocation176_spill] sm:$0xff] }
 0x44c   :  { %v4202_v6 = vpop.eup %4201  ;;  %4221 = vrcp.f32 %v2729_v39  ;;  %v3102_v43 = vmul.f32 %v4200_v26, %v8841_v55  ;;  %3228 = vst.msk [vmem:[%s7727_s4 + $0x1c8] sm:$0xff] %vm1220_vm3, %v3100_v59  ;;  %v2744_v39 = vadd.f32 1.0, %v8853_v50  ;;  %v8858_v59 = vld [vmem:[#allocation67_spill] sm:$0xff] }
 0x44d   :  { %v4204_v24 = vpop.eup %4203  ;;  %4223 = vrcp.f32 %v2730_v0  ;;  %v3103_v19 = vmul.f32 %v4202_v6, %v8842_v57  ;;  %3229 = vst.msk [vmem:[%s7727_s4 + $0x1d0] sm:$0xff] %vm1220_vm3, %v3101_v21  ;;  %v2745_v0 = vadd.f32 1.0, %v8855_v2  ;;  %v2747_v21 = vadd.f32 1.0, %v8859_v10  ;;  %v8860_v6 = vld [vmem:[#allocation69_spill] sm:$0xff] }
 0x44e   :  { %v4206_v62 = vpop.eup %4205  ;;  %4225 = vrcp.f32 %v2731_v20  ;;  %v3104_v11 = vmul.f32 %v4204_v24, %v8843_v56  ;;  %3230 = vst.msk [vmem:[%s7727_s4 + $0x1d8] sm:$0xff] %vm1220_vm3, %v3102_v43  ;;  %v8857_v20 = vld [vmem:[#allocation175_spill] sm:$0xff]  ;;  %v8861_v43 = vld [vmem:[#allocation177_spill] sm:$0xff] }
 0x44f   :  { %v4208_v9 = vpop.eup %4207  ;;  %4227 = vrcp.f32 %v2732_v28  ;;  %v3105_v16 = vmul.f32 %v4206_v62, %v8844_v14  ;;  %3231 = vst.msk [vmem:[%s7727_s4 + $0x1e0] sm:$0xff] %vm1220_vm3, %v3103_v19  ;;  %v2746_v32 = vadd.f32 1.0, %v8857_v20  ;;  %v2748_v24 = vadd.f32 1.0, %v8861_v43  ;;  %v8863_v62 = vld [vmem:[#allocation178_spill] sm:$0xff]  ;;  %v8864_v56 = vld [vmem:[#allocation93_spill] sm:$0xff] }
 0x450   :  { %v4210_v5 = vpop.eup %4209  ;;  %4229 = vrcp.f32 %v2733_v60  ;;  %v3106_v48 = vmul.f32 %v4208_v9, %v8846_v25  ;;  %3232 = vst.msk [vmem:[%s7727_s4 + $0x1e8] sm:$0xff] %vm1220_vm3, %v3104_v11  ;;  %v8886_v43 = vld [vmem:[#allocation189_spill] sm:$0xff] }
 0x451   :  { %v4212_v51 = vpop.eup %4211  ;;  %4231 = vrcp.f32 %v2734_v7  ;;  %v3107_v22 = vmul.f32 %v4210_v5, %v8847_v12  ;;  %3233 = vst.msk [vmem:[%s7727_s4 + $0x1f0] sm:$0xff] %vm1220_vm3, %v3105_v16  ;;  %v8862_v7 = vld [vmem:[#allocation66_spill] sm:$0xff]  ;;  %v8869_v12 = vld [vmem:[#allocation181_spill] sm:$0xff] }
 0x452   :  { %v4214_v13 = vpop.eup %4213  ;;  %4233 = vrcp.f32 %v2735_v63  ;;  %v3108_v44 = vmul.f32 %v4212_v51, %v8848_v53  ;;  %3234 = vst.msk [vmem:[%s7727_s4 + $0x1f8] sm:$0xff] %vm1220_vm3, %v3106_v48  ;;  %v2749_v63 = vadd.f32 1.0, %v8863_v62  ;;  %v8866_v16 = vld [vmem:[#allocation94_spill] sm:$0xff]  ;;  %v8868_v48 = vld [vmem:[#allocation95_spill] sm:$0xff] }
 0x453   :  { %v4216_v47 = vpop.eup %4215  ;;  %4235 = vrcp.f32 %v2736_v42  ;;  %v3109_v49 = vmul.f32 %v4214_v13, %v8849_v52  ;;  %3235 = vst.msk [vmem:[%s7727_s4 + $0x200] sm:$0xff] %vm1220_vm3, %v3107_v22  ;;  %v8865_v42 = vld [vmem:[#allocation179_spill] sm:$0xff]  ;;  %v2752_v22 = vadd.f32 1.0, %v8869_v12  ;;  %v8870_v13 = vld [vmem:[#allocation96_spill] sm:$0xff]  ;;  %v8888_v62 = vld [vmem:[#allocation190_spill] sm:$0xff] }
 0x454   :  { %v4218_v54 = vpop.eup %4217  ;;  %4237 = vrcp.f32 %v2737_v45  ;;  %v3110_v35 = vmul.f32 %v4216_v47, %v8850_v15  ;;  %3236 = vst.msk [vmem:[%s7727_s4 + $0x208] sm:$0xff] %vm1220_vm3, %v3108_v44  ;;  %v2750_v14 = vadd.f32 1.0, %v8865_v42  ;;  %v8867_v45 = vld [vmem:[#allocation180_spill] sm:$0xff]  ;;  %v8871_v44 = vld [vmem:[#allocation182_spill] sm:$0xff]  ;;  %v8890_v42 = vld [vmem:[#allocation191_spill] sm:$0xff] }
 0x455   :  { %v4220_v29 = vpop.eup %4219  ;;  %4239 = vrcp.f32 %v2738_v23  ;;  %v3111_v8 = vmul.f32 %v4218_v54, %v8851_v1  ;;  %3237 = vst.msk [vmem:[%s7727_s4 + $0x210] sm:$0xff] %vm1220_vm3, %v3109_v49  ;;  %v2751_v25 = vadd.f32 1.0, %v8867_v45  ;;  %v2753_v47 = vadd.f32 1.0, %v8871_v44  ;;  %v8873_v54 = vld [vmem:[#allocation183_spill] sm:$0xff]  ;;  %v8874_v15 = vld [vmem:[#allocation98_spill] sm:$0xff]  ;;  %v8892_v45 = vld [vmem:[#allocation192_spill] sm:$0xff] }
 0x456   :  { %v4222_v38 = vpop.eup %4221  ;;  %4241 = vrcp.f32 %v2739_v27  ;;  %v3112_v4 = vmul.f32 %v4220_v29, %v8852_v46  ;;  %3238 = vst.msk [vmem:[%s7727_s4 + $0x218] sm:$0xff] %vm1220_vm3, %v3110_v35  ;;  %v8877_v46 = vld [vmem:[#allocation185_spill] sm:$0xff]  ;;  %v8896_v44 = vld [vmem:[#allocation194_spill] sm:$0xff] }
 0x457   :  { %v4224_v58 = vpop.eup %4223  ;;  %4243 = vrcp.f32 %v2740_v33  ;;  %v3113_v17 = vmul.f32 %v4222_v38, %v8854_v18  ;;  %3239 = vst.msk [vmem:[%s7727_s4 + $0x220] sm:$0xff] %vm1220_vm3, %v3111_v8  ;;  %v8872_v33 = vld [vmem:[#allocation97_spill] sm:$0xff]  ;;  %v8876_v8 = vld [vmem:[#allocation99_spill] sm:$0xff]  ;;  %v8879_v18 = vld [vmem:[#allocation186_spill] sm:$0xff] }
 0x458   :  { %v4226_v34 = vpop.eup %4225  ;;  %4245 = vrcp.f32 %v2741_v3  ;;  %v3114_v41 = vmul.f32 %v4224_v58, %v8856_v36  ;;  %3240 = vst.msk [vmem:[%s7727_s4 + $0x228] sm:$0xff] %vm1220_vm3, %v3112_v4  ;;  %v2754_v3 = vadd.f32 1.0, %v8873_v54  ;;  %v2756_v4 = vadd.f32 1.0, %v8877_v46  ;;  %v8878_v58 = vld [vmem:[#allocation100_spill] sm:$0xff]  ;;  %v8881_v36 = vld [vmem:[#allocation187_spill] sm:$0xff]  ;;  %v8894_v12 = vld [vmem:[#allocation193_spill] sm:$0xff] }
 0x459   :  { %v4228_v61 = vpop.eup %4227  ;;  %4247 = vrcp.f32 %v2742_v31  ;;  %v3115_v26 = vmul.f32 %v4226_v34, %v8858_v59  ;;  %3241 = vst.msk [vmem:[%s7727_s4 + $0x230] sm:$0xff] %vm1220_vm3, %v3113_v17  ;;  %v8875_v31 = vld [vmem:[#allocation184_spill] sm:$0xff]  ;;  %v2757_v17 = vadd.f32 1.0, %v8879_v18  ;;  %v8880_v34 = vld [vmem:[#allocation101_spill] sm:$0xff]  ;;  %v2759_v59 = vadd.f32 1.0, %v6885_v37  ;;  %v8898_v54 = vld [vmem:[#allocation195_spill] sm:$0xff] }
 0x45a   :  { %v4230_v28 = vpop.eup %4229  ;;  %4249 = vrcp.f32 %v2743_v40  ;;  %v3116_v60 = vmul.f32 %v4228_v61, %v8860_v6  ;;  %3242 = vst.msk [vmem:[%s7727_s4 + $0x238] sm:$0xff] %vm1220_vm3, %v3114_v41  ;;  %v2755_v1 = vadd.f32 1.0, %v8875_v31  ;;  %v2758_v41 = vadd.f32 1.0, %v8881_v36  ;;  %v8882_v61 = vld [vmem:[#allocation102_spill] sm:$0xff]  ;;  %v8900_v31 = vld [vmem:[#allocation196_spill] sm:$0xff]  ;;  %v8902_v46 = vld [vmem:[#allocation197_spill] sm:$0xff] }
 0x45b   :  { %v4232_v55 = vpop.eup %4231  ;;  %4251 = vrcp.f32 %v2744_v39  ;;  %v3117_v57 = vmul.f32 %v4230_v28, %v8862_v7  ;;  %3243 = vst.msk [vmem:[%s7727_s4 + $0x240] sm:$0xff] %vm1220_vm3, %v3115_v26  ;;  %v8883_v26 = vld [vmem:[#allocation103_spill] sm:$0xff]  ;;  %v8887_v7 = vld [vmem:[#allocation105_spill] sm:$0xff]  ;;  %v8904_v18 = vld [vmem:[#allocation198_spill] sm:$0xff] }
 0x45c   :  { %v4234_v19 = vpop.eup %4233  ;;  %4253 = vrcp.f32 %v2745_v0  ;;  %v3118_v11 = vmul.f32 %v4232_v55, %v8864_v56  ;;  %3244 = vst.msk [vmem:[%s7727_s4 + $0x248] sm:$0xff] %vm1220_vm3, %v3116_v60  ;;  %v8885_v60 = vld [vmem:[#allocation104_spill] sm:$0xff]  ;;  %v8889_v56 = vld [vmem:[#allocation106_spill] sm:$0xff]  ;;  %v8906_v36 = vld [vmem:[#allocation199_spill] sm:$0xff] }
 0x45d   :  { %v4236_v9 = vpop.eup %4235  ;;  %4255 = vrcp.f32 %v2746_v32  ;;  %v3119_v5 = vmul.f32 %v4234_v19, %v8866_v16  ;;  %3245 = vst.msk [vmem:[%s7727_s4 + $0x250] sm:$0xff] %vm1220_vm3, %v3117_v57  ;;  %v8891_v16 = vld [vmem:[#allocation107_spill] sm:$0xff] }
 0x45e   :  { %v4238_v30 = vpop.eup %4237  ;;  %4257 = vrcp.f32 %v2747_v21  ;;  %v3120_v51 = vmul.f32 %v4236_v9, %v8868_v48  ;;  %3246 = vst.msk [vmem:[%s7727_s4 + $0x258] sm:$0xff] %vm1220_vm3, %v3118_v11  ;;  %v8884_v21 = vld [vmem:[#allocation188_spill] sm:$0xff] }
 0x45f   :  { %v4240_v23 = vpop.eup %4239  ;;  %4259 = vrcp.f32 %v2748_v24  ;;  %v3121_v27 = vmul.f32 %v4238_v30, %v8870_v13  ;;  %3247 = vst.msk [vmem:[%s7727_s4 + $0x260] sm:$0xff] %vm1220_vm3, %v3119_v5  ;;  %v2760_v6 = vadd.f32 1.0, %v8884_v21  ;;  %v2761_v24 = vadd.f32 1.0, %v8886_v43  ;;  %v8893_v48 = vld [vmem:[#allocation108_spill] sm:$0xff]  ;;  %v8895_v13 = vld [vmem:[#allocation109_spill] sm:$0xff] }
 0x460   :  { %v4242_v53 = vpop.eup %4241  ;;  %4261 = vrcp.f32 %v2749_v63  ;;  %v3122_v52 = vmul.f32 %v4240_v23, %v8872_v33  ;;  %3248 = vst.msk [vmem:[%s7727_s4 + $0x268] sm:$0xff] %vm1220_vm3, %v3120_v51  ;;  %v2762_v63 = vadd.f32 1.0, %v8888_v62  ;;  %v8897_v33 = vld [vmem:[#allocation110_spill] sm:$0xff] }
 0x461   :  { %v4244_v49 = vpop.eup %4243  ;;  %4263 = vrcp.f32 %v2750_v14  ;;  %v3123_v35 = vmul.f32 %v4242_v53, %v8874_v15  ;;  %3249 = vst.msk [vmem:[%s7727_s4 + $0x270] sm:$0xff] %vm1220_vm3, %v3121_v27  ;;  %v2763_v14 = vadd.f32 1.0, %v8890_v42  ;;  %v8899_v15 = vld [vmem:[#allocation111_spill] sm:$0xff] }
 0x462   :  { %v4246_v29 = vpop.eup %4245  ;;  %4265 = vrcp.f32 %v2751_v25  ;;  %v3124_v38 = vmul.f32 %v4244_v49, %v8876_v8  ;;  %3250 = vst.msk [vmem:[%s7727_s4 + $0x278] sm:$0xff] %vm1220_vm3, %v3122_v52  ;;  %v2764_v25 = vadd.f32 1.0, %v8892_v45  ;;  %v8901_v8 = vld [vmem:[#allocation112_spill] sm:$0xff] }
 0x463   :  { %v4248_v40 = vpop.eup %4247  ;;  %4267 = vrcp.f32 %v2752_v22  ;;  %v3125_v50 = vmul.f32 %v4246_v29, %v8878_v58  ;;  %3251 = vst.msk [vmem:[%s7727_s4 + $0x280] sm:$0xff] %vm1220_vm3, %v3123_v35  ;;  %v2765_v22 = vadd.f32 1.0, %v8894_v12  ;;  %v8903_v58 = vld [vmem:[#allocation113_spill] sm:$0xff] }
 0x464   :  { %v4250_v39 = vpop.eup %4249  ;;  %4269 = vrcp.f32 %v2753_v47  ;;  %v3126_v2 = vmul.f32 %v4248_v40, %v8880_v34  ;;  %3252 = vst.msk [vmem:[%s7727_s4 + $0x288] sm:$0xff] %vm1220_vm3, %v3124_v38  ;;  %v2766_v47 = vadd.f32 1.0, %v8896_v44  ;;  %v8905_v34 = vld [vmem:[#allocation114_spill] sm:$0xff] }
 0x465   :  { %v4252_v0 = vpop.eup %4251  ;;  %4271 = vrcp.f32 %v2754_v3  ;;  %v3127_v20 = vmul.f32 %v4250_v39, %v8882_v61  ;;  %3253 = vst.msk [vmem:[%s7727_s4 + $0x290] sm:$0xff] %vm1220_vm3, %v3125_v50  ;;  %v2767_v3 = vadd.f32 1.0, %v8898_v54  ;;  %v8907_v61 = vld [vmem:[#allocation115_spill] sm:$0xff] }
 0x466   :  { %v4254_v32 = vpop.eup %4253  ;;  %4273 = vrcp.f32 %v2755_v1  ;;  %v3128_v28 = vmul.f32 %v4252_v0, %v8883_v26  ;;  %3254 = vst.msk [vmem:[%s7727_s4 + $0x298] sm:$0xff] %vm1220_vm3, %v3126_v2  ;;  %v2768_v1 = vadd.f32 1.0, %v8900_v31 }
 0x467   :  { %v4256_v10 = vpop.eup %4255  ;;  %4275 = vrcp.f32 %v2756_v4  ;;  %v3129_v55 = vmul.f32 %v4254_v32, %v8885_v60  ;;  %3255 = vst.msk [vmem:[%s7727_s4 + $0x2a0] sm:$0xff] %vm1220_vm3, %v3127_v20  ;;  %v2769_v4 = vadd.f32 1.0, %v8902_v46 }
 0x468   :  { %v4258_v37 = vpop.eup %4257  ;;  %4277 = vrcp.f32 %v2757_v17  ;;  %v3130_v57 = vmul.f32 %v4256_v10, %v8887_v7  ;;  %3256 = vst.msk [vmem:[%s7727_s4 + $0x2a8] sm:$0xff] %vm1220_vm3, %v3128_v28  ;;  %v2770_v17 = vadd.f32 1.0, %v8904_v18  ;;  %v8909_v28 = vld [vmem:[#allocation116_spill] sm:$0xff] }
 0x469   :  { %v4260_v19 = vpop.eup %4259  ;;  %4279 = vrcp.f32 %v2758_v41  ;;  %v3131_v11 = vmul.f32 %v4258_v37, %v8889_v56  ;;  %3257 = vst.msk [vmem:[%s7727_s4 + $0x2b0] sm:$0xff] %vm1220_vm3, %v3129_v55  ;;  %v2771_v41 = vadd.f32 1.0, %v8906_v36  ;;  %v8911_v55 = vld [vmem:[#allocation117_spill] sm:$0xff] }
 0x46a   :  { %v4262_v9 = vpop.eup %4261  ;;  %4281 = vrcp.f32 %v2759_v59  ;;  %v3132_v5 = vmul.f32 %v4260_v19, %v8891_v16  ;;  %3258 = vst.msk [vmem:[%s7727_s4 + $0x2b8] sm:$0xff] %vm1220_vm3, %v3130_v57  ;;  %v8908_v59 = vld [vmem:[#allocation200_spill] sm:$0xff]  ;;  %v8913_v57 = vld [vmem:[#allocation118_spill] sm:$0xff] }
 0x46b   :  { %v4264_v30 = vpop.eup %4263  ;;  %4283 = vrcp.f32 %v2760_v6  ;;  %v3133_v51 = vmul.f32 %v4262_v9, %v8893_v48  ;;  %3259 = vst.msk [vmem:[%s7727_s4 + $0x2c0] sm:$0xff] %vm1220_vm3, %v3131_v11  ;;  %v2772_v26 = vadd.f32 1.0, %v8908_v59  ;;  %v8910_v6 = vld [vmem:[#allocation201_spill] sm:$0xff]  ;;  %v8915_v11 = vld [vmem:[#allocation119_spill] sm:$0xff] }
 0x46c   :  { %v4266_v23 = vpop.eup %4265  ;;  %4285 = vrcp.f32 %v2761_v24  ;;  %v3134_v27 = vmul.f32 %v4264_v30, %v8895_v13  ;;  %3260 = vst.msk [vmem:[%s7727_s4 + $0x2c8] sm:$0xff] %vm1220_vm3, %v3132_v5  ;;  %v2773_v60 = vadd.f32 1.0, %v8910_v6  ;;  %v8912_v24 = vld [vmem:[#allocation202_spill] sm:$0xff]  ;;  %v8917_v5 = vld [vmem:[#allocation68_spill] sm:$0xff] }
 0x46d   :  { %v4268_v53 = vpop.eup %4267  ;;  %4287 = vrcp.f32 %v2762_v63  ;;  %v3135_v52 = vmul.f32 %v4266_v23, %v8897_v33  ;;  %3261 = vst.msk [vmem:[%s7727_s4 + $0x2d0] sm:$0xff] %vm1220_vm3, %v3133_v51  ;;  %v2774_v7 = vadd.f32 1.0, %v8912_v24  ;;  %v8914_v63 = vld [vmem:[#allocation130_spill] sm:$0xff]  ;;  %v8919_v51 = vld [vmem:[#allocation120_spill] sm:$0xff] }
 0x46e   :  { %v4270_v49 = vpop.eup %4269  ;;  %4289 = vrcp.f32 %v2763_v14  ;;  %v3136_v35 = vmul.f32 %v4268_v53, %v8899_v15  ;;  %3262 = vst.msk [vmem:[%s7727_s4 + $0x2d8] sm:$0xff] %vm1220_vm3, %v3134_v27  ;;  %v2775_v56 = vadd.f32 1.0, %v8914_v63  ;;  %v8916_v14 = vld [vmem:[#allocation131_spill] sm:$0xff]  ;;  %v8921_v27 = vld [vmem:[#allocation121_spill] sm:$0xff] }
 0x46f   :  { %v4272_v29 = vpop.eup %4271  ;;  %4291 = vrcp.f32 %v2764_v25  ;;  %v3137_v38 = vmul.f32 %v4270_v49, %v8901_v8  ;;  %3263 = vst.msk [vmem:[%s7727_s4 + $0x2e0] sm:$0xff] %vm1220_vm3, %v3135_v52  ;;  %v2776_v16 = vadd.f32 1.0, %v8916_v14  ;;  %v8918_v25 = vld [vmem:[#allocation132_spill] sm:$0xff]  ;;  %v8923_v52 = vld [vmem:[#allocation122_spill] sm:$0xff] }
 0x470   :  { %v4274_v40 = vpop.eup %4273  ;;  %4293 = vrcp.f32 %v2765_v22  ;;  %v3138_v50 = vmul.f32 %v4272_v29, %v8903_v58  ;;  %3264 = vst.msk [vmem:[%s7727_s4 + $0x2e8] sm:$0xff] %vm1220_vm3, %v3136_v35  ;;  %v2777_v48 = vadd.f32 1.0, %v8918_v25  ;;  %v8920_v22 = vld [vmem:[#allocation133_spill] sm:$0xff]  ;;  %v8925_v35 = vld [vmem:[#allocation123_spill] sm:$0xff]  ;;  %v8941_v14 = vld [vmem:[#allocation78_spill] sm:$0xff] }
 0x471   :  { %v4276_v39 = vpop.eup %4275  ;;  %4295 = vrcp.f32 %v2766_v47  ;;  %v3139_v2 = vmul.f32 %v4274_v40, %v8905_v34  ;;  %3265 = vst.msk [vmem:[%s7727_s4 + $0x2f0] sm:$0xff] %vm1220_vm3, %v3137_v38  ;;  %v2778_v13 = vadd.f32 1.0, %v8920_v22  ;;  %v8922_v47 = vld [vmem:[#allocation134_spill] sm:$0xff]  ;;  %v8927_v38 = vld [vmem:[#allocation124_spill] sm:$0xff] }
 0x472   :  { %v4278_v0 = vpop.eup %4277  ;;  %4297 = vrcp.f32 %v2767_v3  ;;  %v3140_v20 = vmul.f32 %v4276_v39, %v8907_v61  ;;  %3266 = vst.msk [vmem:[%s7727_s4 + $0x2f8] sm:$0xff] %vm1220_vm3, %v3138_v50  ;;  %v2779_v33 = vadd.f32 1.0, %v8922_v47  ;;  %v8924_v3 = vld [vmem:[#allocation135_spill] sm:$0xff]  ;;  %v8929_v50 = vld [vmem:[#allocation125_spill] sm:$0xff] }
 0x473   :  { %v4280_v32 = vpop.eup %4279  ;;  %4299 = vrcp.f32 %v2768_v1  ;;  %v3141_v10 = vmul.f32 %v4278_v0, %v8909_v28  ;;  %3267 = vst.msk [vmem:[%s7727_s4 + $0x300] sm:$0xff] %vm1220_vm3, %v3139_v2  ;;  %v2780_v15 = vadd.f32 1.0, %v8924_v3  ;;  %v8926_v1 = vld [vmem:[#allocation136_spill] sm:$0xff]  ;;  %v8931_v2 = vld [vmem:[#allocation71_spill] sm:$0xff] }
 0x474   :  { %v4282_v21 = vpop.eup %4281  ;;  %4301 = vrcp.f32 %v2769_v4  ;;  %v3142_v37 = vmul.f32 %v4280_v32, %v8911_v55  ;;  %3268 = vst.msk [vmem:[%s7727_s4 + $0x308] sm:$0xff] %vm1220_vm3, %v3140_v20  ;;  %v2781_v8 = vadd.f32 1.0, %v8926_v1  ;;  %v8928_v4 = vld [vmem:[#allocation137_spill] sm:$0xff]  ;;  %v8946_v47 = vld [vmem:[#allocation27_spill] sm:$0xff] }
 0x475   :  { %v4284_v43 = vpop.eup %4283  ;;  %4303 = vrcp.f32 %v2770_v17  ;;  %v3143_v19 = vmul.f32 %v4282_v21, %v8913_v57  ;;  %3269 = vst.msk [vmem:[%s7727_s4 + $0x310] sm:$0xff] %vm1220_vm3, %v3141_v10  ;;  %v2782_v58 = vadd.f32 1.0, %v8928_v4  ;;  %v8930_v17 = vld [vmem:[#allocation138_spill] sm:$0xff]  ;;  %v8933_v20 = vld [vmem:[#allocation73_spill] sm:$0xff]  ;;  %v8951_v4 = vld [vmem:[#allocation128_spill] sm:$0xff] }
 0x476   :  { %v4286_v62 = vpop.eup %4285  ;;  %4305 = vrcp.f32 %v2771_v41  ;;  %v3144_v9 = vmul.f32 %v4284_v43, %v8915_v11  ;;  %3270 = vst.msk [vmem:[%s7727_s4 + $0x318] sm:$0xff] %vm1220_vm3, %v3142_v37  ;;  %v2783_v34 = vadd.f32 1.0, %v8930_v17  ;;  %v8932_v41 = vld [vmem:[#allocation139_spill] sm:$0xff]  ;;  %v8935_v10 = vld [vmem:[#allocation70_spill] sm:$0xff]  ;;  %v8937_v37 = vld [vmem:[#allocation72_spill] sm:$0xff] }
 0x477   :  { %v4288_v42 = vpop.eup %4287  ;;  %4307 = vrcp.f32 %v2772_v26  ;;  %v3145_v30 = vmul.f32 %v4286_v62, %v8917_v5  ;;  %3271 = vst.msk [vmem:[%s7727_s4 + $0x320] sm:$0xff] %vm1220_vm3, %v3143_v19  ;;  %v2784_v61 = vadd.f32 1.0, %v8932_v41  ;;  %v8934_v26 = vld [vmem:[#allocation140_spill] sm:$0xff]  ;;  %v8939_v62 = vld [vmem:[#allocation79_spill] sm:$0xff] }
 0x478   :  { %v4290_v45 = vpop.eup %4289  ;;  %4309 = vrcp.f32 %v2773_v60  ;;  %v3146_v23 = vmul.f32 %v4288_v42, %v8919_v51  ;;  %3272 = vst.msk [vmem:[%s7727_s4 + $0x328] sm:$0xff] %vm1220_vm3, %v3144_v9  ;;  %v2785_v28 = vadd.f32 1.0, %v8934_v26  ;;  %v8936_v60 = vld [vmem:[#allocation141_spill] sm:$0xff]  ;;  %v8940_v11 = vld [vmem:[#allocation76_spill] sm:$0xff] }
 0x479   :  { %v4292_v12 = vpop.eup %4291  ;;  %4311 = vrcp.f32 %v2774_v7  ;;  %v3147_v53 = vmul.f32 %v4290_v45, %v8921_v27  ;;  %3273 = vst.msk [vmem:[%s7727_s4 + $0x330] sm:$0xff] %vm1220_vm3, %v3145_v30  ;;  %v2786_v55 = vadd.f32 1.0, %v8936_v60  ;;  %v8938_v7 = vld [vmem:[#allocation77_spill] sm:$0xff]  ;;  %v8942_v30 = vld [vmem:[#allocation19_spill] sm:$0xff]  ;;  %v8945_v27 = vld [vmem:[#allocation20_spill] sm:$0xff] }
 0x47a   :  { %v4294_v44 = vpop.eup %4293  ;;  %4313 = vrcp.f32 %v2775_v56  ;;  %v3148_v49 = vmul.f32 %v4292_v12, %v8923_v52  ;;  %3274 = vst.msk [vmem:[%s7727_s4 + $0x338] sm:$0xff] %vm1220_vm3, %v3146_v23  ;;  %v8944_v12 = vld [vmem:[#allocation18_spill] sm:$0xff] }
 0x47b   :  { %v4296_v54 = vpop.eup %4295  ;;  %4315 = vrcp.f32 %v2776_v16  ;;  %v3149_v29 = vmul.f32 %v4294_v44, %v8925_v35  ;;  %3275 = vst.msk [vmem:[%s7727_s4 + $0x340] sm:$0xff] %vm1220_vm3, %v3147_v53 }
 0x47c   :  { %v4298_v31 = vpop.eup %4297  ;;  %4317 = vrcp.f32 %v2777_v48  ;;  %v3150_v40 = vmul.f32 %v4296_v54, %v8927_v38  ;;  %3276 = vst.msk [vmem:[%s7727_s4 + $0x348] sm:$0xff] %vm1220_vm3, %v3148_v49  ;;  %v8943_v48 = vld [vmem:[#allocation21_spill] sm:$0xff]  ;;  %v8950_v38 = vld [vmem:[#allocation127_spill] sm:$0xff] }
 0x47d   :  { %v4300_v46 = vpop.eup %4299  ;;  %4319 = vrcp.f32 %v2778_v13  ;;  %v3151_v39 = vmul.f32 %v4298_v31, %v8929_v50  ;;  %3277 = vst.msk [vmem:[%s7727_s4 + $0x350] sm:$0xff] %vm1220_vm3, %v3149_v29  ;;  %v8947_v49 = vld [vmem:[#allocation29_spill] sm:$0xff]  ;;  %v8949_v31 = vld [vmem:[#allocation126_spill] sm:$0xff] }
 0x47e   :  { %v4302_v18 = vpop.eup %4301  ;;  %4321 = vrcp.f32 %v2779_v33  ;;  %v3152_v0 = vmul.f32 %v4300_v46, %v8931_v2  ;;  %3278 = vst.msk [vmem:[%s7727_s4 + $0x358] sm:$0xff] %vm1220_vm3, %v3150_v40  ;;  %v8952_v50 = vld [vmem:[#allocation129_spill] sm:$0xff] }
 0x47f   :  { %v4304_v36 = vpop.eup %4303  ;;  %4323 = vrcp.f32 %v2780_v15  ;;  %v3153_v32 = vmul.f32 %v4302_v18, %v8933_v20  ;;  %3279 = vst.msk [vmem:[%s7727_s4 + $0x360] sm:$0xff] %vm1220_vm3, %v3151_v39  ;;  %v8948_v15 = vld [vmem:[#allocation26_spill] sm:$0xff] }
 0x480   :  { %v4306_v59 = vpop.eup %4305  ;;  %4325 = vrcp.f32 %v2781_v8  ;;  %v3154_v21 = vmul.f32 %v4304_v36, %v8935_v10  ;;  %3280 = vst.msk [vmem:[%s7727_s4 + $0x368] sm:$0xff] %vm1220_vm3, %v3152_v0 }
 0x481   :  { %v4308_v6 = vpop.eup %4307  ;;  %4327 = vrcp.f32 %v2782_v58  ;;  %v3155_v43 = vmul.f32 %v4306_v59, %v8937_v37  ;;  %3281 = vst.msk [vmem:[%s7727_s4 + $0x370] sm:$0xff] %vm1220_vm3, %v3153_v32 }
 0x482   :  { %v4310_v24 = vpop.eup %4309  ;;  %4329 = vrcp.f32 %v2783_v34  ;;  %v3156_v57 = vmul.f32 %v4308_v6, %v8938_v7  ;;  %3282 = vst.msk [vmem:[%s7727_s4 + $0x378] sm:$0xff] %vm1220_vm3, %v3154_v21 }
 0x483   :  { %v4312_v19 = vpop.eup %4311  ;;  %4331 = vrcp.f32 %v2784_v61  ;;  %v3157_v63 = vmul.f32 %v4310_v24, %v8939_v62  ;;  %3283 = vst.msk [vmem:[%s7727_s4 + $0x380] sm:$0xff] %vm1220_vm3, %v3155_v43 }
 0x484   :  { %v4314_v56 = vpop.eup %4313  ;;  %4333 = vrcp.f32 %v2785_v28  ;;  %v3158_v9 = vmul.f32 %v4312_v19, %v8940_v11  ;;  %3284 = vst.msk [vmem:[%s7727_s4 + $0x388] sm:$0xff] %vm1220_vm3, %v3156_v57 }
 0x485   :  { %v4316_v42 = vpop.eup %4315  ;;  %4335 = vrcp.f32 %v2786_v55  ;;  %v3159_v16 = vmul.f32 %v4314_v56, %v8941_v14  ;;  %3285 = vst.msk [vmem:[%s7727_s4 + $0x390] sm:$0xff] %vm1220_vm3, %v3157_v63 }
 0x486   :  { %v4318_v5 = vpop.eup %4317  ;;  %v3160_v45 = vmul.f32 %v4316_v42, %v8942_v30  ;;  %3286 = vst.msk [vmem:[%s7727_s4 + $0x398] sm:$0xff] %vm1220_vm3, %v3158_v9 }
 0x487   :  { %v4320_v25 = vpop.eup %4319  ;;  %v3161_v51 = vmul.f32 %v4318_v5, %v8943_v48  ;;  %3287 = vst.msk [vmem:[%s7727_s4 + $0x3a0] sm:$0xff] %vm1220_vm3, %v3159_v16 }
 0x488   :  { %v4322_v23 = vpop.eup %4321  ;;  %v3162_v22 = vmul.f32 %v4320_v25, %v8944_v12  ;;  %3288 = vst.msk [vmem:[%s7727_s4 + $0x3a8] sm:$0xff] %vm1220_vm3, %v3160_v45 }
 0x489   :  { %v4324_v13 = vpop.eup %4323  ;;  %v3163_v53 = vmul.f32 %v4322_v23, %v8945_v27  ;;  %3289 = vst.msk [vmem:[%s7727_s4 + $0x3b0] sm:$0xff] %vm1220_vm3, %v3161_v51 }
 0x48a   :  { %v4326_v44 = vpop.eup %4325  ;;  %v3164_v33 = vmul.f32 %v4324_v13, %v8946_v47  ;;  %3290 = vst.msk [vmem:[%s7727_s4 + $0x3b8] sm:$0xff] %vm1220_vm3, %v3162_v22 }
 0x48b   :  { %v4328_v52 = vpop.eup %4327  ;;  %v3165_v54 = vmul.f32 %v4326_v44, %v8947_v49  ;;  %3291 = vst.msk [vmem:[%s7727_s4 + $0x3c0] sm:$0xff] %vm1220_vm3, %v3163_v53 }
 0x48c   :  { %v4330_v3 = vpop.eup %4329  ;;  %v3166_v35 = vmul.f32 %v4328_v52, %v8948_v15  ;;  %3292 = vst.msk [vmem:[%s7727_s4 + $0x3c8] sm:$0xff] %vm1220_vm3, %v3164_v33 }
 0x48d   :  { %v4332_v29 = vpop.eup %4331  ;;  %v3167_v1 = vmul.f32 %v4330_v3, %v8949_v31  ;;  %3293 = vst.msk [vmem:[%s7727_s4 + $0x3d0] sm:$0xff] %vm1220_vm3, %v3165_v54 }
 0x48e   :  { %v4334_v8 = vpop.eup %4333  ;;  %v3168_v40 = vmul.f32 %v4332_v29, %v8950_v38  ;;  %3294 = vst.msk [vmem:[%s7727_s4 + $0x3d8] sm:$0xff] %vm1220_vm3, %v3166_v35 }
 0x48f   :  { %v4336_v46 = vpop.eup %4335  ;;  %v3169_v58 = vmul.f32 %v4334_v8, %v8951_v4  ;;  %3295 = vst.msk [vmem:[%s7727_s4 + $0x3e0] sm:$0xff] %vm1220_vm3, %v3167_v1 }
 0x490   :  { %v3170_v39 = vmul.f32 %v4336_v46, %v8952_v50  ;;  %3296 = vst.msk [vmem:[%s7727_s4 + $0x3e8] sm:$0xff] %vm1220_vm3, %v3168_v40 }
 0x491   :  { %3297 = vst.msk [vmem:[%s7727_s4 + $0x3f0] sm:$0xff] %vm1220_vm3, %v3169_v58 }
 0x492   :  { %3298 = vst.msk [vmem:[%s7727_s4 + $0x3f8] sm:$0xff] %vm1220_vm3, %v3170_v39 }

// kernel: _lambda_.7
= control target key start
LH: loop header
LB: loop body
LE: loop exit
PB: predicated region body
PF: predicated region fallthrough
CT: control target
= control target key end

     0   :  { %v1320_v0 = vmov 0   ;;  %vm266_vm0 = vcmask 130048   ;;  %vm478_vm1 = vcmask 261120   ;;  %s2042_s1 = inlined_call_operand.vmem [shape: bf16[144,32], index: 1, kind: input, shape index: {}]   ;;  %s2043_s0 = inlined_call_operand.vmem [shape: bf16[256,144], index: 0, kind: input, shape index: {}]   ;;  %s2044_s2 = inlined_call_operand.vmem [shape: f32[1,32], index: 2, kind: input, shape index: {}]   ;;  %s2045_s3 = inlined_call_operand.vmem [shape: f32[1,32], index: 3, kind: input, shape index: {}]   ;;  %s2046_s4 = inlined_call_operand.vmem [shape: f32[256,32], index: 4, kind: output, shape index: {}]  }
   0x1   :  { %315 = vmatprep.subr.bf16.mxu0 %v1320_v0  ;;  %v1133_v1 = vld [vmem:[%s2042_s1] sm:$0xff]   ;;  %1114 = vmatprep.subr.bf16.mxu1 %v1320_v0  ;;  %v1134_v2 = vld [vmem:[%s2042_s1 + $0x8] sm:$0xff]   ;;  %v1135_v3 = vld [vmem:[%s2042_s1 + $0x10] sm:$0xff]  }
   0x2   :  { %316 = vmatpush1.bf16.msra.mxu0 %v1133_v1  ;;  %1123 = vmatpush1.bf16.msra.mxu1 %v1133_v1  ;;  %v1136_v4 = vld [vmem:[%s2042_s1 + $0x18] sm:$0xff]   ;;  %v1144_v5 = vld [vmem:[%s2043_s0 + $0x4] ss:$8 sps:$4 sm:$0xff]   ;;  %v1139_v9 = vld [vmem:[%s2042_s1 + $0x30] sm:$0xff]  }
   0x3   :  { %317 = vmatprep.subr.bf16.mxu0 %v1320_v0  ;;  %1115 = vmatprep.subr.bf16.mxu1 %v1320_v0  ;;  %v1137_v6 = vld [vmem:[%s2042_s1 + $0x20] sm:$0xff]   ;;  %v1138_v8 = vld [vmem:[%s2042_s1 + $0x28] sm:$0xff]   ;;  %v1140_v10 = vld [vmem:[%s2042_s1 + $0x38] sm:$0xff]  }
   0x4   :  { %1066 = vmatprep.mubr.msk.bf16.mxu0 %vm266_vm0, %v1144_v5  ;;  %v1156_v7 = vld [vmem:[%s2043_s0 + $0x84] ss:$8 sps:$4 sm:$0xff]   ;;  %v1142_v12 = vld [vmem:[%s2043_s0] ss:$8 sps:$4 sm:$0xff]   ;;  %v1145_v14 = vld [vmem:[%s2043_s0 + $0x14] ss:$8 sps:$4 sm:$0xff]  }
   0x5   :  { %1074 = vmatprep.mubr.msk.bf16.mxu1 %vm266_vm0, %v1156_v7  ;;  %v1141_v11 = vld [vmem:[%s2042_s1 + $0x40] sm:$0xff]   ;;  %v1160_v15 = vld [vmem:[%s2043_s0 + $0x94] ss:$8 sps:$4 sm:$0xff]   ;;  %v1147_v16 = vld [vmem:[%s2043_s0 + $0x10] ss:$8 sps:$4 sm:$0xff]  }
   0x6   :  { %318 = vmatpush1.bf16.msra.mxu0 %v1134_v2  ;;  %1124 = vmatpush1.bf16.msra.mxu1 %v1134_v2  ;;  %v1154_v13 = vld [vmem:[%s2043_s0 + $0x80] ss:$8 sps:$4 sm:$0xff]   ;;  %v1162_v17 = vld [vmem:[%s2043_s0 + $0x90] ss:$8 sps:$4 sm:$0xff]   ;;  %v1148_v18 = vld [vmem:[%s2043_s0 + $0x24] ss:$8 sps:$4 sm:$0xff]  }
   0x7   :  { %319 = vmatprep.subr.bf16.mxu0 %v1320_v0  ;;  %1116 = vmatprep.subr.bf16.mxu1 %v1320_v0  ;;  %v1166_v19 = vld [vmem:[%s2043_s0 + $0xa4] ss:$8 sps:$4 sm:$0xff]   ;;  %v1150_v20 = vld [vmem:[%s2043_s0 + $0x20] ss:$8 sps:$4 sm:$0xff]   ;;  %v1151_v22 = vld [vmem:[%s2043_s0 + $0x34] ss:$8 sps:$4 sm:$0xff]  }
   0x8   :  { %v1168_v21 = vld [vmem:[%s2043_s0 + $0xa0] ss:$8 sps:$4 sm:$0xff]   ;;  %v1172_v23 = vld [vmem:[%s2043_s0 + $0xb4] ss:$8 sps:$4 sm:$0xff]   ;;  %v1153_v24 = vld [vmem:[%s2043_s0 + $0x30] ss:$8 sps:$4 sm:$0xff]  }
   0x9   :  { %v1174_v25 = vld [vmem:[%s2043_s0 + $0xb0] ss:$8 sps:$4 sm:$0xff]   ;;  %v1157_v26 = vld [vmem:[%s2043_s0 + $0x44] ss:$8 sps:$4 sm:$0xff]   ;;  %v1159_v28 = vld [vmem:[%s2043_s0 + $0x40] ss:$8 sps:$4 sm:$0xff]  }
   0xa   :  { %320 = vmatpush1.bf16.msra.mxu0 %v1135_v3  ;;  %1125 = vmatpush1.bf16.msra.mxu1 %v1135_v3  ;;  %v1178_v27 = vld [vmem:[%s2043_s0 + $0xc4] ss:$8 sps:$4 sm:$0xff]   ;;  %v1180_v29 = vld [vmem:[%s2043_s0 + $0xc0] ss:$8 sps:$4 sm:$0xff]   ;;  %v1163_v30 = vld [vmem:[%s2043_s0 + $0x54] ss:$8 sps:$4 sm:$0xff]  }
   0xb   :  { %321 = vmatprep.subr.bf16.mxu0 %v1320_v0  ;;  %1117 = vmatprep.subr.bf16.mxu1 %v1320_v0  ;;  %v1181_v31 = vld [vmem:[%s2043_s0 + $0xd4] ss:$8 sps:$4 sm:$0xff]   ;;  %v1165_v32 = vld [vmem:[%s2043_s0 + $0x50] ss:$8 sps:$4 sm:$0xff]   ;;  %v1169_v34 = vld [vmem:[%s2043_s0 + $0x64] ss:$8 sps:$4 sm:$0xff]  }
   0xc   :  { %v1183_v33 = vld [vmem:[%s2043_s0 + $0xd0] ss:$8 sps:$4 sm:$0xff]   ;;  %v1184_v35 = vld [vmem:[%s2043_s0 + $0xe4] ss:$8 sps:$4 sm:$0xff]   ;;  %v1171_v36 = vld [vmem:[%s2043_s0 + $0x60] ss:$8 sps:$4 sm:$0xff]  }
   0xd   :  { %v1186_v37 = vld [vmem:[%s2043_s0 + $0xe0] ss:$8 sps:$4 sm:$0xff]   ;;  %v1175_v38 = vld [vmem:[%s2043_s0 + $0x74] ss:$8 sps:$4 sm:$0xff]   ;;  %v1177_v40 = vld [vmem:[%s2043_s0 + $0x70] ss:$8 sps:$4 sm:$0xff]  }
   0xe   :  { %322 = vmatpush1.bf16.msra.mxu0 %v1136_v4  ;;  %1126 = vmatpush1.bf16.msra.mxu1 %v1136_v4  ;;  %v1187_v39 = vld [vmem:[%s2043_s0 + $0xf4] ss:$8 sps:$4 sm:$0xff]   ;;  %v1189_v41 = vld [vmem:[%s2043_s0 + $0xf0] ss:$8 sps:$4 sm:$0xff]  }
   0xf   :  { %323 = vmatprep.subr.bf16.mxu0 %v1320_v0  ;;  %1118 = vmatprep.subr.bf16.mxu1 %v1320_v0 }
  0x12   :  { %324 = vmatpush1.bf16.msra.mxu0 %v1137_v6  ;;  %1127 = vmatpush1.bf16.msra.mxu1 %v1137_v6 }
  0x13   :  { %325 = vmatprep.subr.bf16.mxu0 %v1320_v0  ;;  %1119 = vmatprep.subr.bf16.mxu1 %v1320_v0 }
  0x16   :  { %326 = vmatpush1.bf16.msra.mxu0 %v1138_v8  ;;  %1128 = vmatpush1.bf16.msra.mxu1 %v1138_v8 }
  0x17   :  { %327 = vmatprep.subr.bf16.mxu0 %v1320_v0  ;;  %1120 = vmatprep.subr.bf16.mxu1 %v1320_v0 }
  0x1a   :  { %328 = vmatpush1.bf16.msra.mxu0 %v1139_v9  ;;  %1129 = vmatpush1.bf16.msra.mxu1 %v1139_v9 }
  0x1b   :  { %329 = vmatprep.subr.bf16.mxu0 %v1320_v0  ;;  %1121 = vmatprep.subr.bf16.mxu1 %v1320_v0 }
  0x1e   :  { %330 = vmatpush1.bf16.msra.mxu0 %v1140_v10  ;;  %1130 = vmatpush1.bf16.msra.mxu1 %v1140_v10 }
  0x1f   :  { %331 = vmatprep.subr.bf16.mxu0 %v1320_v0  ;;  %1122 = vmatprep.subr.bf16.mxu1 %v1320_v0 }
  0x22   :  { %332 = vmatpush1.bf16.msra.mxu0 %v1141_v11  ;;  %1131 = vmatpush1.bf16.msra.mxu1 %v1141_v11 }
  0x25   :  { %348 = vmatmul.mubr.bf16.vlgmr.msra.gmra.mrb[0].mxu0 %v1142_v12  ;;  %412 = vmatmul.mubr.bf16.vlgmr.msra.gmra.mrb[0].mxu1 %v1154_v13 }
  0x26   :  { %1067 = vmatprep.mubr.msk.bf16.mxu0 %vm266_vm0, %v1145_v14  ;;  %1075 = vmatprep.mubr.msk.bf16.mxu1 %vm266_vm0, %v1160_v15 }
  0x2d   :  { %356 = vmatmul.mubr.bf16.gmra.mrb[4].mxu0 %v1147_v16  ;;  %420 = vmatmul.mubr.bf16.gmra.mrb[4].mxu1 %v1162_v17 }
  0x2e   :  { %1068 = vmatprep.mubr.msk.bf16.mxu0 %vm266_vm0, %v1148_v18  ;;  %1076 = vmatprep.mubr.msk.bf16.mxu1 %vm266_vm0, %v1166_v19 }
  0x35   :  { %364 = vmatmul.mubr.bf16.gmra.mrb[8].mxu0 %v1150_v20  ;;  %428 = vmatmul.mubr.bf16.gmra.mrb[8].mxu1 %v1168_v21 }
  0x36   :  { %1069 = vmatprep.mubr.msk.bf16.mxu0 %vm266_vm0, %v1151_v22  ;;  %1077 = vmatprep.mubr.msk.bf16.mxu1 %vm266_vm0, %v1172_v23 }
  0x3d   :  { %372 = vmatmul.mubr.bf16.gmra.mrb[12].mxu0 %v1153_v24  ;;  %436 = vmatmul.mubr.bf16.gmra.mrb[12].mxu1 %v1174_v25 }
  0x3e   :  { %1070 = vmatprep.mubr.msk.bf16.mxu0 %vm266_vm0, %v1157_v26  ;;  %1078 = vmatprep.mubr.msk.bf16.mxu1 %vm266_vm0, %v1178_v27 }
  0x45   :  { %380 = vmatmul.mubr.bf16.gmra.mrb[16].mxu0 %v1159_v28  ;;  %444 = vmatmul.mubr.bf16.gmra.mrb[16].mxu1 %v1180_v29 }
  0x46   :  { %1071 = vmatprep.mubr.msk.bf16.mxu0 %vm266_vm0, %v1163_v30  ;;  %1079 = vmatprep.mubr.msk.bf16.mxu1 %vm266_vm0, %v1181_v31 }
  0x4d   :  { %388 = vmatmul.mubr.bf16.gmra.mrb[20].mxu0 %v1165_v32  ;;  %452 = vmatmul.mubr.bf16.gmra.mrb[20].mxu1 %v1183_v33 }
  0x4e   :  { %1072 = vmatprep.mubr.msk.bf16.mxu0 %vm266_vm0, %v1169_v34  ;;  %1080 = vmatprep.mubr.msk.bf16.mxu1 %vm266_vm0, %v1184_v35 }
  0x55   :  { %396 = vmatmul.mubr.bf16.gmra.mrb[24].mxu0 %v1171_v36  ;;  %460 = vmatmul.mubr.bf16.gmra.mrb[24].mxu1 %v1186_v37 }
  0x56   :  { %1073 = vmatprep.mubr.msk.bf16.mxu0 %vm266_vm0, %v1175_v38  ;;  %1081 = vmatprep.mubr.msk.bf16.mxu1 %vm266_vm0, %v1187_v39 }
  0x5d   :  { %404 = vmatmul.mubr.bf16.gmra.mrb[28].mxu0 %v1177_v40  ;;  %468 = vmatmul.mubr.bf16.gmra.mrb[28].mxu1 %v1189_v41 }
  0xf8   :  { %v1485_v42 = vpop.f32.mrb[0].mxu0  ;;  %v1487_v43 = vpop.f32.mrb[0].mxu1 }
  0xf9   :  { %v351_v44 = vpop.f32.mrb[1].mxu0  ;;  %v415_v45 = vpop.f32.mrb[1].mxu1  ;;  %v479_v48 = vsel %vm478_vm1, %v1485_v42, 0.0 }
  0xfa   :  { %v1489_v46 = vpop.f32.mrb[2].mxu0  ;;  %v1491_v47 = vpop.f32.mrb[2].mxu1 }
  0xfb   :  { %v480_v49 = vsel %vm478_vm1, %v1489_v46, 0.0  ;;  %v354_v50 = vpop.f32.mrb[3].mxu0  ;;  %v418_v51 = vpop.f32.mrb[3].mxu1 }
  0xfc   :  { %v481_v52 = vadd.f32 %v480_v49, %v479_v48 }
 0x100   :  { %v1497_v53 = vpop.f32.mrb[4].mxu0  ;;  %v1499_v54 = vpop.f32.mrb[4].mxu1 }
 0x101   :  { %v482_v55 = vsel %vm478_vm1, %v1497_v53, 0.0  ;;  %v359_v56 = vpop.f32.mrb[5].mxu0  ;;  %v423_v57 = vpop.f32.mrb[5].mxu1 }
 0x102   :  { %v483_v58 = vadd.f32 %v482_v55, %v481_v52  ;;  %v1503_v59 = vpop.f32.mrb[6].mxu0  ;;  %v1505_v60 = vpop.f32.mrb[6].mxu1 }
 0x103   :  { %v484_v61 = vsel %vm478_vm1, %v1503_v59, 0.0  ;;  %v362_v62 = vpop.f32.mrb[7].mxu0  ;;  %v426_v63 = vpop.f32.mrb[7].mxu1 }
 0x104   :  { %v485_v0 = vadd.f32 %v484_v61, %v483_v58 }
 0x108   :  { %v1509_v1 = vpop.f32.mrb[8].mxu0  ;;  %v1511_v2 = vpop.f32.mrb[8].mxu1 }
 0x109   :  { %v486_v3 = vsel %vm478_vm1, %v1509_v1, 0.0  ;;  %v367_v4 = vpop.f32.mrb[9].mxu0  ;;  %v431_v5 = vpop.f32.mrb[9].mxu1 }
 0x10a   :  { %v487_v6 = vadd.f32 %v486_v3, %v485_v0  ;;  %v1515_v7 = vpop.f32.mrb[10].mxu0  ;;  %v1517_v8 = vpop.f32.mrb[10].mxu1 }
 0x10b   :  { %v488_v9 = vsel %vm478_vm1, %v1515_v7, 0.0  ;;  %v370_v10 = vpop.f32.mrb[11].mxu0  ;;  %v434_v11 = vpop.f32.mrb[11].mxu1 }
 0x10c   :  { %v489_v12 = vadd.f32 %v488_v9, %v487_v6 }
 0x110   :  { %v1521_v13 = vpop.f32.mrb[12].mxu0  ;;  %v1523_v14 = vpop.f32.mrb[12].mxu1 }
 0x111   :  { %v490_v15 = vsel %vm478_vm1, %v1521_v13, 0.0  ;;  %v375_v16 = vpop.f32.mrb[13].mxu0  ;;  %v439_v17 = vpop.f32.mrb[13].mxu1 }
 0x112   :  { %v491_v18 = vadd.f32 %v490_v15, %v489_v12  ;;  %v1527_v19 = vpop.f32.mrb[14].mxu0  ;;  %v1529_v20 = vpop.f32.mrb[14].mxu1 }
 0x113   :  { %v492_v21 = vsel %vm478_vm1, %v1527_v19, 0.0  ;;  %v378_v22 = vpop.f32.mrb[15].mxu0  ;;  %v442_v23 = vpop.f32.mrb[15].mxu1 }
 0x114   :  { %v493_v24 = vadd.f32 %v492_v21, %v491_v18 }
 0x118   :  { %v1533_v25 = vpop.f32.mrb[16].mxu0  ;;  %v1535_v26 = vpop.f32.mrb[16].mxu1 }
 0x119   :  { %v494_v27 = vsel %vm478_vm1, %v1533_v25, 0.0  ;;  %v383_v28 = vpop.f32.mrb[17].mxu0  ;;  %v447_v29 = vpop.f32.mrb[17].mxu1 }
 0x11a   :  { %v495_v30 = vadd.f32 %v494_v27, %v493_v24  ;;  %v1539_v31 = vpop.f32.mrb[18].mxu0  ;;  %v1541_v32 = vpop.f32.mrb[18].mxu1  ;;  %v510_v27 = vsel %vm478_vm1, %v1487_v43, 0.0  ;;  %v512_v29 = vsel %vm478_vm1, %v1491_v47, 0.0 }
 0x11b   :  { %v496_v33 = vsel %vm478_vm1, %v1539_v31, 0.0  ;;  %v386_v34 = vpop.f32.mrb[19].mxu0  ;;  %v450_v35 = vpop.f32.mrb[19].mxu1 }
 0x11c   :  { %v497_v36 = vadd.f32 %v496_v33, %v495_v30  ;;  %v514_v33 = vsel %vm478_vm1, %v1499_v54, 0.0  ;;  %v516_v35 = vsel %vm478_vm1, %v1505_v60, 0.0 }
 0x120   :  { %v1545_v37 = vpop.f32.mrb[20].mxu0  ;;  %v1547_v38 = vpop.f32.mrb[20].mxu1 }
 0x121   :  { %v498_v39 = vsel %vm478_vm1, %v1545_v37, 0.0  ;;  %v391_v40 = vpop.f32.mrb[21].mxu0  ;;  %v455_v41 = vpop.f32.mrb[21].mxu1 }
 0x122   :  { %v499_v44 = vadd.f32 %v498_v39, %v497_v36  ;;  %v1551_v45 = vpop.f32.mrb[22].mxu0  ;;  %v1553_v48 = vpop.f32.mrb[22].mxu1  ;;  %v518_v39 = vsel %vm478_vm1, %v1511_v2, 0.0  ;;  %v520_v41 = vsel %vm478_vm1, %v1517_v8, 0.0 }
 0x123   :  { %v500_v49 = vsel %vm478_vm1, %v1551_v45, 0.0  ;;  %v394_v50 = vpop.f32.mrb[23].mxu0  ;;  %v458_v51 = vpop.f32.mrb[23].mxu1 }
 0x124   :  { %v501_v52 = vadd.f32 %v500_v49, %v499_v44  ;;  %v522_v49 = vsel %vm478_vm1, %v1523_v14, 0.0  ;;  %v524_v51 = vsel %vm478_vm1, %v1529_v20, 0.0 }
 0x128   :  { %v1557_v55 = vpop.f32.mrb[24].mxu0  ;;  %v1559_v56 = vpop.f32.mrb[24].mxu1 }
 0x129   :  { %v502_v57 = vsel %vm478_vm1, %v1557_v55, 0.0  ;;  %v399_v58 = vpop.f32.mrb[25].mxu0  ;;  %v463_v61 = vpop.f32.mrb[25].mxu1 }
 0x12a   :  { %v503_v62 = vadd.f32 %v502_v57, %v501_v52  ;;  %v1563_v63 = vpop.f32.mrb[26].mxu0  ;;  %v1565_v0 = vpop.f32.mrb[26].mxu1  ;;  %v526_v57 = vsel %vm478_vm1, %v1535_v26, 0.0  ;;  %v528_v61 = vsel %vm478_vm1, %v1541_v32, 0.0 }
 0x12b   :  { %v504_v3 = vsel %vm478_vm1, %v1563_v63, 0.0  ;;  %v402_v4 = vpop.f32.mrb[27].mxu0  ;;  %v466_v5 = vpop.f32.mrb[27].mxu1 }
 0x12c   :  { %v505_v6 = vadd.f32 %v504_v3, %v503_v62  ;;  %v530_v3 = vsel %vm478_vm1, %v1547_v38, 0.0  ;;  %v532_v5 = vsel %vm478_vm1, %v1553_v48, 0.0 }
 0x130   :  { %v1569_v9 = vpop.f32.mrb[28].mxu0  ;;  %v1571_v10 = vpop.f32.mrb[28].mxu1 }
 0x131   :  { %v506_v11 = vsel %vm478_vm1, %v1569_v9, 0.0  ;;  %v407_v12 = vpop.f32.mrb[29].mxu0  ;;  %v471_v15 = vpop.f32.mrb[29].mxu1 }
 0x132   :  { %v507_v16 = vadd.f32 %v506_v11, %v505_v6  ;;  %v1575_v17 = vpop.f32.mrb[30].mxu0  ;;  %v1577_v18 = vpop.f32.mrb[30].mxu1  ;;  %v534_v11 = vsel %vm478_vm1, %v1559_v56, 0.0  ;;  %v536_v15 = vsel %vm478_vm1, %v1565_v0, 0.0 }
 0x133   :  { %v508_v21 = vsel %vm478_vm1, %v1575_v17, 0.0  ;;  %v410_v22 = vpop.f32.mrb[31].mxu0  ;;  %v474_v23 = vpop.f32.mrb[31].mxu1 }
 0x134   :  { %v509_v24 = vadd.f32 %v508_v21, %v507_v16  ;;  %v538_v16 = vsel %vm478_vm1, %v1571_v10, 0.0  ;;  %v540_v23 = vsel %vm478_vm1, %v1577_v18, 0.0 }
 0x136   :  { %v511_v28 = vadd.f32 %v510_v27, %v509_v24 }
 0x138   :  { %v513_v30 = vadd.f32 %v512_v29, %v511_v28 }
 0x13a   :  { %v515_v34 = vadd.f32 %v514_v33, %v513_v30 }
 0x13c   :  { %v517_v36 = vadd.f32 %v516_v35, %v515_v34 }
 0x13e   :  { %v519_v40 = vadd.f32 %v518_v39, %v517_v36 }
 0x140   :  { %v521_v44 = vadd.f32 %v520_v41, %v519_v40 }
 0x142   :  { %v523_v50 = vadd.f32 %v522_v49, %v521_v44 }
 0x144   :  { %v525_v52 = vadd.f32 %v524_v51, %v523_v50 }
 0x146   :  { %v527_v58 = vadd.f32 %v526_v57, %v525_v52 }
 0x148   :  { %v529_v62 = vadd.f32 %v528_v61, %v527_v58 }
 0x14a   :  { %v531_v4 = vadd.f32 %v530_v3, %v529_v62 }
 0x14c   :  { %v533_v6 = vadd.f32 %v532_v5, %v531_v4 }
 0x14e   :  { %v535_v12 = vadd.f32 %v534_v11, %v533_v6 }
 0x150   :  { %v537_v21 = vadd.f32 %v536_v15, %v535_v12 }
 0x152   :  { %v539_v22 = vadd.f32 %v538_v16, %v537_v21 }
 0x154   :  { %v541_v24 = vadd.f32 %v540_v23, %v539_v22 }
 0x156   :  { %v542_v27 = vrot.slane %v541_v24, 4 }
 0x158   :  { %v543_v28 = vadd.f32 %v542_v27, %v541_v24 }
 0x15a   :  { %v544_v29 = vrot.slane %v543_v28, 2 }
 0x15c   :  { %v545_v30 = vadd.f32 %v544_v29, %v543_v28 }
 0x15e   :  { %v546_v33 = vrot.slane %v545_v30, 1 }
 0x160   :  { %v547_v34 = vadd.f32 %v546_v33, %v545_v30 }
 0x162   :  { %v1613_v35 = vmul.f32 0.00390625, %v547_v34 }
 0x164   :  { %v550_v36 = vsub.f32 %v1485_v42, %v1613_v35  ;;  %v551_v39 = vsub.f32 %v1489_v46, %v1613_v35  ;;  %v552_v40 = vsub.f32 %v1497_v53, %v1613_v35  ;;  %v553_v41 = vsub.f32 %v1503_v59, %v1613_v35 }
 0x165   :  { %v554_v50 = vsub.f32 %v1509_v1, %v1613_v35  ;;  %v555_v52 = vsub.f32 %v1515_v7, %v1613_v35  ;;  %v556_v3 = vsub.f32 %v1521_v13, %v1613_v35  ;;  %v557_v11 = vsub.f32 %v1527_v19, %v1613_v35 }
 0x166   :  { %v582_v44 = vmul.f32 %v550_v36, %v550_v36  ;;  %v583_v49 = vmul.f32 %v551_v39, %v551_v39  ;;  %v584_v51 = vmul.f32 %v552_v40, %v552_v40  ;;  %v585_v57 = vmul.f32 %v553_v41, %v553_v41 }
 0x167   :  { %v586_v4 = vmul.f32 %v554_v50, %v554_v50  ;;  %v587_v12 = vmul.f32 %v555_v52, %v555_v52  ;;  %v558_v21 = vsub.f32 %v1533_v25, %v1613_v35  ;;  %v588_v22 = vmul.f32 %v556_v3, %v556_v3 }
 0x168   :  { %v614_v58 = vsel %vm478_vm1, %v582_v44, 0.0  ;;  %v615_v61 = vsel %vm478_vm1, %v583_v49, 0.0  ;;  %v617_v5 = vsel %vm478_vm1, %v584_v51, 0.0  ;;  %v619_v15 = vsel %vm478_vm1, %v585_v57, 0.0 }
 0x169   :  { %v616_v62 = vadd.f32 %v615_v61, %v614_v58  ;;  %v621_v23 = vsel %vm478_vm1, %v586_v4, 0.0  ;;  %v559_v27 = vsub.f32 %v1539_v31, %v1613_v35  ;;  %v589_v28 = vmul.f32 %v557_v11, %v557_v11 }
 0x16a   :  { %v623_v29 = vsel %vm478_vm1, %v587_v12, 0.0  ;;  %v560_v33 = vsub.f32 %v1545_v37, %v1613_v35  ;;  %v590_v34 = vmul.f32 %v558_v21, %v558_v21  ;;  %v625_v36 = vsel %vm478_vm1, %v588_v22, 0.0 }
 0x16b   :  { %v618_v6 = vadd.f32 %v617_v5, %v616_v62  ;;  %v561_v40 = vsub.f32 %v1551_v45, %v1613_v35  ;;  %v591_v41 = vmul.f32 %v559_v27, %v559_v27  ;;  %v627_v44 = vsel %vm478_vm1, %v589_v28, 0.0 }
 0x16c   :  { %v562_v50 = vsub.f32 %v1557_v55, %v1613_v35  ;;  %v592_v51 = vmul.f32 %v560_v33, %v560_v33  ;;  %v629_v52 = vsel %vm478_vm1, %v590_v34, 0.0  ;;  %v563_v58 = vsub.f32 %v1563_v63, %v1613_v35 }
 0x16d   :  { %v620_v16 = vadd.f32 %v619_v15, %v618_v6  ;;  %v593_v61 = vmul.f32 %v561_v40, %v561_v40  ;;  %v631_v62 = vsel %vm478_vm1, %v591_v41, 0.0  ;;  %v564_v4 = vsub.f32 %v1569_v9, %v1613_v35 }
 0x16e   :  { %v594_v5 = vmul.f32 %v562_v50, %v562_v50  ;;  %v633_v6 = vsel %vm478_vm1, %v592_v51, 0.0  ;;  %v565_v12 = vsub.f32 %v1575_v17, %v1613_v35  ;;  %v595_v15 = vmul.f32 %v563_v58, %v563_v58 }
 0x16f   :  { %v622_v24 = vadd.f32 %v621_v23, %v620_v16  ;;  %v635_v16 = vsel %vm478_vm1, %v593_v61, 0.0  ;;  %v566_v22 = vsub.f32 %v1487_v43, %v1613_v35  ;;  %v596_v23 = vmul.f32 %v564_v4, %v564_v4 }
 0x170   :  { %v567_v28 = vsub.f32 %v1491_v47, %v1613_v35  ;;  %v568_v34 = vsub.f32 %v1499_v54, %v1613_v35  ;;  %v569_v41 = vsub.f32 %v1505_v60, %v1613_v35  ;;  %v570_v51 = vsub.f32 %v1511_v2, %v1613_v35 }
 0x171   :  { %v624_v30 = vadd.f32 %v623_v29, %v622_v24  ;;  %v637_v24 = vsel %vm478_vm1, %v594_v5, 0.0  ;;  %v597_v29 = vmul.f32 %v565_v12, %v565_v12  ;;  %v571_v61 = vsub.f32 %v1517_v8, %v1613_v35 }
 0x172   :  { %v572_v5 = vsub.f32 %v1523_v14, %v1613_v35 }
 0x173   :  { %v626_v39 = vadd.f32 %v625_v36, %v624_v30  ;;  %v639_v30 = vsel %vm478_vm1, %v595_v15, 0.0  ;;  %v598_v36 = vmul.f32 %v566_v22, %v566_v22  ;;  %v573_v15 = vsub.f32 %v1529_v20, %v1613_v35 }
 0x175   :  { %v628_v49 = vadd.f32 %v627_v44, %v626_v39  ;;  %v641_v39 = vsel %vm478_vm1, %v596_v23, 0.0  ;;  %v599_v44 = vmul.f32 %v567_v28, %v567_v28  ;;  %v574_v23 = vsub.f32 %v1535_v26, %v1613_v35 }
 0x177   :  { %v630_v57 = vadd.f32 %v629_v52, %v628_v49  ;;  %v643_v49 = vsel %vm478_vm1, %v597_v29, 0.0  ;;  %v600_v52 = vmul.f32 %v568_v34, %v568_v34  ;;  %v575_v29 = vsub.f32 %v1541_v32, %v1613_v35 }
 0x179   :  { %v632_v3 = vadd.f32 %v631_v62, %v630_v57  ;;  %v645_v57 = vsel %vm478_vm1, %v598_v36, 0.0  ;;  %v601_v62 = vmul.f32 %v569_v41, %v569_v41  ;;  %v576_v36 = vsub.f32 %v1547_v38, %v1613_v35 }
 0x17b   :  { %v634_v11 = vadd.f32 %v633_v6, %v632_v3  ;;  %v647_v3 = vsel %vm478_vm1, %v599_v44, 0.0  ;;  %v602_v6 = vmul.f32 %v570_v51, %v570_v51  ;;  %v577_v44 = vsub.f32 %v1553_v48, %v1613_v35 }
 0x17d   :  { %v636_v21 = vadd.f32 %v635_v16, %v634_v11  ;;  %v649_v11 = vsel %vm478_vm1, %v600_v52, 0.0  ;;  %v603_v16 = vmul.f32 %v571_v61, %v571_v61  ;;  %v578_v52 = vsub.f32 %v1559_v56, %v1613_v35 }
 0x17f   :  { %v638_v27 = vadd.f32 %v637_v24, %v636_v21  ;;  %v651_v21 = vsel %vm478_vm1, %v601_v62, 0.0  ;;  %v604_v24 = vmul.f32 %v572_v5, %v572_v5  ;;  %v579_v62 = vsub.f32 %v1565_v0, %v1613_v35 }
 0x181   :  { %v640_v33 = vadd.f32 %v639_v30, %v638_v27  ;;  %v653_v27 = vsel %vm478_vm1, %v602_v6, 0.0  ;;  %v605_v30 = vmul.f32 %v573_v15, %v573_v15  ;;  %v580_v6 = vsub.f32 %v1571_v10, %v1613_v35 }
 0x183   :  { %v642_v40 = vadd.f32 %v641_v39, %v640_v33  ;;  %v655_v33 = vsel %vm478_vm1, %v603_v16, 0.0  ;;  %v606_v39 = vmul.f32 %v574_v23, %v574_v23  ;;  %v581_v16 = vsub.f32 %v1577_v18, %v1613_v35 }
 0x185   :  { %v644_v50 = vadd.f32 %v643_v49, %v642_v40  ;;  %v657_v40 = vsel %vm478_vm1, %v604_v24, 0.0  ;;  %v607_v49 = vmul.f32 %v575_v29, %v575_v29  ;;  %v612_v24 = vmul.f32 %v580_v6, %v580_v6 }
 0x186   :  { %v613_v29 = vmul.f32 %v581_v16, %v581_v16 }
 0x187   :  { %v646_v58 = vadd.f32 %v645_v57, %v644_v50  ;;  %v659_v50 = vsel %vm478_vm1, %v605_v30, 0.0  ;;  %v608_v57 = vmul.f32 %v576_v36, %v576_v36 }
 0x189   :  { %v648_v4 = vadd.f32 %v647_v3, %v646_v58  ;;  %v661_v58 = vsel %vm478_vm1, %v606_v39, 0.0  ;;  %v609_v3 = vmul.f32 %v577_v44, %v577_v44  ;;  %v675_v39 = vsel %vm478_vm1, %v613_v29, 0.0 }
 0x18b   :  { %v650_v12 = vadd.f32 %v649_v11, %v648_v4  ;;  %v663_v4 = vsel %vm478_vm1, %v607_v49, 0.0  ;;  %v610_v11 = vmul.f32 %v578_v52, %v578_v52 }
 0x18d   :  { %v652_v22 = vadd.f32 %v651_v21, %v650_v12  ;;  %v665_v12 = vsel %vm478_vm1, %v608_v57, 0.0  ;;  %v611_v21 = vmul.f32 %v579_v62, %v579_v62 }
 0x18f   :  { %v654_v28 = vadd.f32 %v653_v27, %v652_v22  ;;  %v667_v22 = vsel %vm478_vm1, %v609_v3, 0.0  ;;  %v669_v27 = vsel %vm478_vm1, %v610_v11, 0.0  ;;  %v671_v30 = vsel %vm478_vm1, %v611_v21, 0.0  ;;  %v476_v3 = vld [vmem:[%s2044_s2] sm:$0x1] }
 0x190   :  { %v477_v11 = vld [vmem:[%s2045_s3] sm:$0x1] }
 0x191   :  { %v656_v34 = vadd.f32 %v655_v33, %v654_v28 }
 0x193   :  { %v658_v41 = vadd.f32 %v657_v40, %v656_v34  ;;  %v673_v34 = vsel %vm478_vm1, %v612_v24, 0.0 }
 0x195   :  { %v660_v51 = vadd.f32 %v659_v50, %v658_v41 }
 0x197   :  { %v662_v61 = vadd.f32 %v661_v58, %v660_v51 }
 0x199   :  { %v664_v5 = vadd.f32 %v663_v4, %v662_v61  ;;  %v690_v61 = vlaneseq }
 0x19b   :  { %v666_v15 = vadd.f32 %v665_v12, %v664_v5  ;;  %v691_v62 = vshrl.u32 %v690_v61, 7 }
 0x19d   :  { %v668_v23 = vadd.f32 %v667_v22, %v666_v15  ;;  %v692_v4 = vsub.s32 0, %v691_v62 }
 0x19f   :  { %v670_v28 = vadd.f32 %v669_v27, %v668_v23 }
 0x1a1   :  { %v672_v33 = vadd.f32 %v671_v30, %v670_v28 }
 0x1a3   :  { %v674_v36 = vadd.f32 %v673_v34, %v672_v33 }
 0x1a5   :  { %v676_v40 = vadd.f32 %v675_v39, %v674_v36 }
 0x1a7   :  { %v677_v41 = vrot.slane %v676_v40, 4 }
 0x1a9   :  { %v678_v44 = vadd.f32 %v677_v41, %v676_v40 }
 0x1ab   :  { %v679_v49 = vrot.slane %v678_v44, 2 }
 0x1ad   :  { %v680_v50 = vadd.f32 %v679_v49, %v678_v44 }
 0x1af   :  { %v681_v51 = vrot.slane %v680_v50, 1 }
 0x1b1   :  { %v682_v52 = vadd.f32 %v681_v51, %v680_v50 }
 0x1b3   :  { %v683_v57 = vmul.f32 0.00390625, %v682_v52 }
 0x1b5   :  { %v684_v58 = vadd.f32 1e-05, %v683_v57 }
 0x1b7   :  { %1190 = vrsqrt.f32 %v684_v58 }
 0x1c1   :  { %v1191_v5 = vpop.eup %1190 }
 0x1c2   :  { %v686_v6 = vmul.f32 %v1191_v5, %v476_v3 }
 0x1c4   :  { %v687_v12 = vmul.f32 %v686_v6, %v1613_v35  ;;  %v693_v15 = vrot.slane %v686_v6, %v692_v4 }
 0x1c6   :  { %v688_v16 = vsub.f32 %v477_v11, %v687_v12  ;;  %v695_v21 = vmul.f32 %v693_v15, %v1485_v42  ;;  %v696_v22 = vmul.f32 %v693_v15, %v1489_v46  ;;  %v697_v23 = vmul.f32 %v693_v15, %v1497_v53 }
 0x1c7   :  { %v698_v24 = vmul.f32 %v693_v15, %v1503_v59  ;;  %v699_v27 = vmul.f32 %v693_v15, %v1509_v1  ;;  %v700_v28 = vmul.f32 %v693_v15, %v1515_v7  ;;  %v701_v29 = vmul.f32 %v693_v15, %v1521_v13 }
 0x1c8   :  { %v702_v30 = vmul.f32 %v693_v15, %v1527_v19  ;;  %v703_v35 = vmul.f32 %v693_v15, %v1533_v25  ;;  %v704_v33 = vmul.f32 %v693_v15, %v1539_v31  ;;  %v705_v42 = vmul.f32 %v693_v15, %v1545_v37 }
 0x1c9   :  { %v706_v46 = vmul.f32 %v693_v15, %v1551_v45  ;;  %v707_v53 = vmul.f32 %v693_v15, %v1557_v55  ;;  %v708_v59 = vmul.f32 %v693_v15, %v1563_v63  ;;  %v709_v1 = vmul.f32 %v693_v15, %v1569_v9 }
 0x1ca   :  { %v710_v7 = vmul.f32 %v693_v15, %v1575_v17  ;;  %v711_v13 = vmul.f32 %v693_v15, %v1487_v43  ;;  %v712_v19 = vmul.f32 %v693_v15, %v1491_v47  ;;  %v713_v25 = vmul.f32 %v693_v15, %v1499_v54 }
 0x1cb   :  { %v714_v31 = vmul.f32 %v693_v15, %v1505_v60  ;;  %v715_v37 = vmul.f32 %v693_v15, %v1511_v2  ;;  %v716_v45 = vmul.f32 %v693_v15, %v1517_v8  ;;  %v717_v55 = vmul.f32 %v693_v15, %v1523_v14 }
 0x1cc   :  { %v718_v63 = vmul.f32 %v693_v15, %v1529_v20  ;;  %v719_v9 = vmul.f32 %v693_v15, %v1535_v26  ;;  %v720_v17 = vmul.f32 %v693_v15, %v1541_v32  ;;  %v721_v43 = vmul.f32 %v693_v15, %v1547_v38 }
 0x1cd   :  { %v722_v47 = vmul.f32 %v693_v15, %v1553_v48  ;;  %v723_v54 = vmul.f32 %v693_v15, %v1559_v56  ;;  %v724_v60 = vmul.f32 %v693_v15, %v1565_v0  ;;  %v725_v2 = vmul.f32 %v693_v15, %v1571_v10 }
 0x1ce   :  { %v726_v8 = vmul.f32 %v693_v15, %v1577_v18  ;;  %v731_v34 = vrot.slane %v688_v16, %v692_v4 }
 0x1d0   :  { %v1750_v14 = vadd.f32 %v731_v34, %v695_v21  ;;  %v1752_v20 = vadd.f32 %v731_v34, %v696_v22  ;;  %v1754_v26 = vadd.f32 %v731_v34, %v697_v23  ;;  %v1756_v32 = vadd.f32 %v731_v34, %v698_v24 }
 0x1d1   :  { %v1758_v38 = vadd.f32 %v731_v34, %v699_v27  ;;  %v1760_v48 = vadd.f32 %v731_v34, %v700_v28  ;;  %v1762_v56 = vadd.f32 %v731_v34, %v701_v29  ;;  %v1764_v0 = vadd.f32 %v731_v34, %v702_v30 }
 0x1d2   :  { %v1766_v10 = vadd.f32 %v731_v34, %v703_v35  ;;  %v1768_v18 = vadd.f32 %v731_v34, %v704_v33  ;;  %v1770_v36 = vadd.f32 %v731_v34, %v705_v42  ;;  %v1772_v39 = vadd.f32 %v731_v34, %v706_v46 }
 0x1d3   :  { %v1774_v40 = vadd.f32 %v731_v34, %v707_v53  ;;  %v1776_v41 = vadd.f32 %v731_v34, %v708_v59  ;;  %v1778_v44 = vadd.f32 %v731_v34, %v709_v1  ;;  %v1780_v49 = vadd.f32 %v731_v34, %v710_v7 }
 0x1d4   :  { %v1782_v50 = vadd.f32 %v731_v34, %v711_v13  ;;  %v1784_v51 = vadd.f32 %v731_v34, %v712_v19  ;;  %v1786_v52 = vadd.f32 %v731_v34, %v713_v25  ;;  %v1788_v57 = vadd.f32 %v731_v34, %v714_v31 }
 0x1d5   :  { %v1790_v58 = vadd.f32 %v731_v34, %v715_v37  ;;  %v1792_v61 = vadd.f32 %v731_v34, %v716_v45  ;;  %v1794_v62 = vadd.f32 %v731_v34, %v717_v55  ;;  %v1796_v3 = vadd.f32 %v731_v34, %v718_v63 }
 0x1d6   :  { %v1798_v4 = vadd.f32 %v731_v34, %v719_v9  ;;  %v1800_v5 = vadd.f32 %v731_v34, %v720_v17  ;;  %v1802_v6 = vadd.f32 %v731_v34, %v721_v43  ;;  %v1804_v11 = vadd.f32 %v731_v34, %v722_v47 }
 0x1d7   :  { %v1806_v12 = vadd.f32 %v731_v34, %v723_v54  ;;  %v1808_v15 = vadd.f32 %v731_v34, %v724_v60  ;;  %v1810_v16 = vadd.f32 %v731_v34, %v725_v2  ;;  %v1812_v21 = vadd.f32 %v731_v34, %v726_v8 }
 0x1d8   :  { %v1082_v22 = vmul.f32 -1.442695, %v1750_v14  ;;  %v1083_v23 = vmul.f32 -1.442695, %v1752_v20  ;;  %v1084_v24 = vmul.f32 -1.442695, %v1754_v26 }
 0x1d9   :  { %2050 = vst [vmem:[#allocation2_spill] sm:$0xff] %v1808_v15  ;;  %2051 = vst [vmem:[#allocation3_spill] sm:$0xff] %v1810_v16  ;;  %v1085_v27 = vmul.f32 -1.442695, %v1756_v32  ;;  %v1086_v28 = vmul.f32 -1.442695, %v1758_v38 }
 0x1da   :  { %2052 = vst [vmem:[#allocation4_spill] sm:$0xff] %v1812_v21  ;;  %1192 = vpow2.f32 %v1082_v22  ;;  %v1087_v29 = vmul.f32 -1.442695, %v1760_v48  ;;  %v1088_v30 = vmul.f32 -1.442695, %v1762_v56 }
 0x1db   :  { %1194 = vpow2.f32 %v1083_v23  ;;  %v1089_v35 = vmul.f32 -1.442695, %v1764_v0  ;;  %v1090_v33 = vmul.f32 -1.442695, %v1766_v10  ;;  %v1091_v42 = vmul.f32 -1.442695, %v1768_v18 }
 0x1dc   :  { %1196 = vpow2.f32 %v1084_v24  ;;  %v1092_v46 = vmul.f32 -1.442695, %v1770_v36  ;;  %v1093_v53 = vmul.f32 -1.442695, %v1772_v39  ;;  %v1094_v59 = vmul.f32 -1.442695, %v1774_v40 }
 0x1dd   :  { %1198 = vpow2.f32 %v1085_v27  ;;  %v1095_v1 = vmul.f32 -1.442695, %v1776_v41  ;;  %v1096_v13 = vmul.f32 -1.442695, %v1778_v44  ;;  %v1097_v25 = vmul.f32 -1.442695, %v1780_v49 }
 0x1de   :  { %1200 = vpow2.f32 %v1086_v28  ;;  %v1098_v37 = vmul.f32 -1.442695, %v1782_v50  ;;  %v1099_v55 = vmul.f32 -1.442695, %v1784_v51  ;;  %v1100_v9 = vmul.f32 -1.442695, %v1786_v52 }
 0x1df   :  { %1202 = vpow2.f32 %v1087_v29  ;;  %v1101_v43 = vmul.f32 -1.442695, %v1788_v57  ;;  %v1102_v54 = vmul.f32 -1.442695, %v1790_v58  ;;  %v1103_v2 = vmul.f32 -1.442695, %v1792_v61 }
 0x1e0   :  { %1204 = vpow2.f32 %v1088_v30  ;;  %v1104_v34 = vmul.f32 -1.442695, %v1794_v62  ;;  %v1105_v23 = vmul.f32 -1.442695, %v1796_v3  ;;  %v1106_v27 = vmul.f32 -1.442695, %v1798_v4 }
 0x1e1   :  { %1206 = vpow2.f32 %v1089_v35  ;;  %v1107_v29 = vmul.f32 -1.442695, %v1800_v5  ;;  %v1108_v35 = vmul.f32 -1.442695, %v1802_v6 }
 0x1e2   :  { %1208 = vpow2.f32 %v1090_v33 }
 0x1e3   :  { %1210 = vpow2.f32 %v1091_v42  ;;  %v1109_v42 = vmul.f32 -1.442695, %v1804_v11 }
 0x1e4   :  { %v1193_v7 = vpop.eup %1192  ;;  %1212 = vpow2.f32 %v1092_v46 }
 0x1e5   :  { %v1195_v19 = vpop.eup %1194  ;;  %1214 = vpow2.f32 %v1093_v53  ;;  %v1110_v53 = vmul.f32 -1.442695, %v1806_v12 }
 0x1e6   :  { %v1197_v31 = vpop.eup %1196  ;;  %1216 = vpow2.f32 %v1094_v59 }
 0x1e7   :  { %v1199_v45 = vpop.eup %1198  ;;  %1218 = vpow2.f32 %v1095_v1  ;;  %v1111_v1 = vmul.f32 -1.442695, %v1808_v15 }
 0x1e8   :  { %v1201_v63 = vpop.eup %1200  ;;  %1220 = vpow2.f32 %v1096_v13 }
 0x1e9   :  { %v1203_v17 = vpop.eup %1202  ;;  %1222 = vpow2.f32 %v1097_v25  ;;  %v1112_v25 = vmul.f32 -1.442695, %v1810_v16  ;;  %v865_v16 = vadd.f32 1.0, %v1201_v63 }
 0x1ea   :  { %v1205_v47 = vpop.eup %1204  ;;  %1224 = vpow2.f32 %v1098_v37 }
 0x1eb   :  { %v1207_v60 = vpop.eup %1206  ;;  %1226 = vpow2.f32 %v1099_v55  ;;  %v1113_v55 = vmul.f32 -1.442695, %v1812_v21  ;;  %v866_v21 = vadd.f32 1.0, %v1203_v17 }
 0x1ec   :  { %v1209_v8 = vpop.eup %1208  ;;  %1228 = vpow2.f32 %v1100_v9 }
 0x1ed   :  { %v1211_v22 = vpop.eup %1210  ;;  %1230 = vpow2.f32 %v1101_v43  ;;  %v861_v43 = vadd.f32 1.0, %v1193_v7 }
 0x1ee   :  { %v1213_v24 = vpop.eup %1212  ;;  %1232 = vpow2.f32 %v1102_v54  ;;  %v870_v63 = vadd.f32 1.0, %v1211_v22 }
 0x1ef   :  { %v1215_v28 = vpop.eup %1214  ;;  %1234 = vpow2.f32 %v1103_v2  ;;  %v862_v2 = vadd.f32 1.0, %v1195_v19  ;;  %v871_v17 = vadd.f32 1.0, %v1213_v24 }
 0x1f0   :  { %v1217_v30 = vpop.eup %1216  ;;  %1236 = vpow2.f32 %v1104_v34 }
 0x1f1   :  { %v1219_v33 = vpop.eup %1218  ;;  %1238 = vpow2.f32 %v1105_v23  ;;  %v863_v23 = vadd.f32 1.0, %v1197_v31 }
 0x1f2   :  { %v1221_v46 = vpop.eup %1220  ;;  %1240 = vpow2.f32 %v1106_v27 }
 0x1f3   :  { %v1223_v59 = vpop.eup %1222  ;;  %1242 = vpow2.f32 %v1107_v29  ;;  %v864_v29 = vadd.f32 1.0, %v1199_v45 }
 0x1f4   :  { %v1225_v13 = vpop.eup %1224  ;;  %1244 = vpow2.f32 %v1108_v35  ;;  %v876_v22 = vadd.f32 1.0, %v1223_v59 }
 0x1f5   :  { %v1227_v37 = vpop.eup %1226  ;;  %1246 = vpow2.f32 %v1109_v42  ;;  %v877_v15 = vadd.f32 1.0, %v1225_v13 }
 0x1f6   :  { %v1229_v9 = vpop.eup %1228  ;;  %1248 = vpow2.f32 %v1110_v53  ;;  %v867_v53 = vadd.f32 1.0, %v1205_v47  ;;  %v872_v47 = vadd.f32 1.0, %v1215_v28 }
 0x1f7   :  { %v1231_v54 = vpop.eup %1230  ;;  %1250 = vpow2.f32 %v1111_v1  ;;  %v868_v1 = vadd.f32 1.0, %v1207_v60  ;;  %v873_v60 = vadd.f32 1.0, %v1217_v30  ;;  %v878_v30 = vadd.f32 1.0, %v1227_v37 }
 0x1f8   :  { %v1846_v34 = vpop.eup %1232  ;;  %1252 = vpow2.f32 %v1112_v25  ;;  %v869_v25 = vadd.f32 1.0, %v1209_v8  ;;  %v874_v8 = vadd.f32 1.0, %v1219_v33  ;;  %v880_v59 = vadd.f32 1.0, %v1231_v54 }
 0x1f9   :  { %v1848_v27 = vpop.eup %1234  ;;  %1254 = vpow2.f32 %v1113_v55  ;;  %v881_v37 = vadd.f32 1.0, %v1846_v34 }
 0x1fa   :  { %v1850_v35 = vpop.eup %1236  ;;  %1256 = vrcp.f32 %v861_v43  ;;  %v882_v54 = vadd.f32 1.0, %v1848_v27 }
 0x1fb   :  { %v1852_v42 = vpop.eup %1238  ;;  %1258 = vrcp.f32 %v862_v2 }
 0x1fc   :  { %v1854_v7 = vpop.eup %1240  ;;  %1260 = vrcp.f32 %v863_v23 }
 0x1fd   :  { %v1856_v19 = vpop.eup %1242  ;;  %1262 = vrcp.f32 %v864_v29  ;;  %v875_v29 = vadd.f32 1.0, %v1221_v46  ;;  %v879_v46 = vadd.f32 1.0, %v1229_v9 }
 0x1fe   :  { %v1858_v31 = vpop.eup %1244  ;;  %1264 = vrcp.f32 %v865_v16 }
 0x1ff   :  { %v1860_v45 = vpop.eup %1246  ;;  %1266 = vrcp.f32 %v866_v21 }
 0x200   :  { %v1862_v55 = vpop.eup %1248  ;;  %1268 = vrcp.f32 %v867_v53 }
 0x201   :  { %v1864_v43 = vpop.eup %1250  ;;  %1270 = vrcp.f32 %v868_v1 }
 0x202   :  { %v1866_v2 = vpop.eup %1252  ;;  %1272 = vrcp.f32 %v869_v25 }
 0x203   :  { %v1868_v23 = vpop.eup %1254  ;;  %1274 = vrcp.f32 %v870_v63  ;;  %v884_v63 = vadd.f32 1.0, %v1852_v42 }
 0x204   :  { %v1257_v16 = vpop.eup %1256  ;;  %1276 = vrcp.f32 %v871_v17  ;;  %v885_v17 = vadd.f32 1.0, %v1854_v7 }
 0x205   :  { %v1259_v21 = vpop.eup %1258  ;;  %1278 = vrcp.f32 %v872_v47  ;;  %v957_v24 = vmul.f32 %v1257_v16, %v1750_v14  ;;  %v886_v47 = vadd.f32 1.0, %v1856_v19  ;;  %v889_v16 = vadd.f32 1.0, %v1862_v55 }
 0x206   :  { %v1261_v53 = vpop.eup %1260  ;;  %1280 = vrcp.f32 %v873_v60  ;;  %v958_v28 = vmul.f32 %v1259_v21, %v1752_v20  ;;  %v887_v60 = vadd.f32 1.0, %v1858_v31  ;;  %v891_v21 = vadd.f32 1.0, %v1866_v2 }
 0x207   :  { %v1263_v1 = vpop.eup %1262  ;;  %1282 = vrcp.f32 %v874_v8  ;;  %v959_v25 = vmul.f32 %v1261_v53, %v1754_v26  ;;  %989 = vst.msk [vmem:[%s2046_s4] sm:$0xff] %vm478_vm1, %v957_v24  ;;  %v888_v8 = vadd.f32 1.0, %v1860_v45 }
 0x208   :  { %v1265_v33 = vpop.eup %1264  ;;  %1284 = vrcp.f32 %v875_v29  ;;  %v960_v14 = vmul.f32 %v1263_v1, %v1756_v32  ;;  %990 = vst.msk [vmem:[%s2046_s4 + $0x8] sm:$0xff] %vm478_vm1, %v958_v28  ;;  %v890_v29 = vadd.f32 1.0, %v1864_v43 }
 0x209   :  { %v1267_v20 = vpop.eup %1266  ;;  %1286 = vrcp.f32 %v876_v22  ;;  %v961_v26 = vmul.f32 %v1265_v33, %v1758_v38  ;;  %991 = vst.msk [vmem:[%s2046_s4 + $0x10] sm:$0xff] %vm478_vm1, %v959_v25  ;;  %v892_v22 = vadd.f32 1.0, %v1868_v23 }
 0x20a   :  { %v1269_v13 = vpop.eup %1268  ;;  %1288 = vrcp.f32 %v877_v15  ;;  %v962_v32 = vmul.f32 %v1267_v20, %v1760_v48  ;;  %992 = vst.msk [vmem:[%s2046_s4 + $0x18] sm:$0xff] %vm478_vm1, %v960_v14  ;;  %v883_v15 = vadd.f32 1.0, %v1850_v35 }
 0x20b   :  { %v1271_v9 = vpop.eup %1270  ;;  %1290 = vrcp.f32 %v878_v30  ;;  %v963_v38 = vmul.f32 %v1269_v13, %v1762_v56  ;;  %993 = vst.msk [vmem:[%s2046_s4 + $0x20] sm:$0xff] %vm478_vm1, %v961_v26  ;;  %v2053_v26 = vld [vmem:[#allocation2_spill] sm:$0xff] }
 0x20c   :  { %v1273_v34 = vpop.eup %1272  ;;  %1292 = vrcp.f32 %v879_v46  ;;  %v964_v48 = vmul.f32 %v1271_v9, %v1764_v0  ;;  %994 = vst.msk [vmem:[%s2046_s4 + $0x28] sm:$0xff] %vm478_vm1, %v962_v32 }
 0x20d   :  { %v1275_v27 = vpop.eup %1274  ;;  %1294 = vrcp.f32 %v880_v59  ;;  %v965_v56 = vmul.f32 %v1273_v34, %v1766_v10  ;;  %995 = vst.msk [vmem:[%s2046_s4 + $0x30] sm:$0xff] %vm478_vm1, %v963_v38 }
 0x20e   :  { %v1277_v35 = vpop.eup %1276  ;;  %1296 = vrcp.f32 %v881_v37  ;;  %v966_v0 = vmul.f32 %v1275_v27, %v1768_v18  ;;  %996 = vst.msk [vmem:[%s2046_s4 + $0x38] sm:$0xff] %vm478_vm1, %v964_v48  ;;  %v2054_v37 = vld [vmem:[#allocation3_spill] sm:$0xff] }
 0x20f   :  { %v1279_v42 = vpop.eup %1278  ;;  %1298 = vrcp.f32 %v882_v54  ;;  %v967_v10 = vmul.f32 %v1277_v35, %v1770_v36  ;;  %997 = vst.msk [vmem:[%s2046_s4 + $0x40] sm:$0xff] %vm478_vm1, %v965_v56 }
 0x210   :  { %v1281_v7 = vpop.eup %1280  ;;  %1300 = vrcp.f32 %v883_v15  ;;  %v968_v18 = vmul.f32 %v1279_v42, %v1772_v39  ;;  %998 = vst.msk [vmem:[%s2046_s4 + $0x48] sm:$0xff] %vm478_vm1, %v966_v0 }
 0x211   :  { %v1283_v19 = vpop.eup %1282  ;;  %1302 = vrcp.f32 %v884_v63  ;;  %v969_v36 = vmul.f32 %v1281_v7, %v1774_v40  ;;  %999 = vst.msk [vmem:[%s2046_s4 + $0x50] sm:$0xff] %vm478_vm1, %v967_v10 }
 0x212   :  { %v1285_v31 = vpop.eup %1284  ;;  %1304 = vrcp.f32 %v885_v17  ;;  %v970_v39 = vmul.f32 %v1283_v19, %v1776_v41  ;;  %1000 = vst.msk [vmem:[%s2046_s4 + $0x58] sm:$0xff] %vm478_vm1, %v968_v18 }
 0x213   :  { %v1287_v45 = vpop.eup %1286  ;;  %1306 = vrcp.f32 %v886_v47  ;;  %v971_v40 = vmul.f32 %v1285_v31, %v1778_v44  ;;  %1001 = vst.msk [vmem:[%s2046_s4 + $0x60] sm:$0xff] %vm478_vm1, %v969_v36 }
 0x214   :  { %v1289_v55 = vpop.eup %1288  ;;  %1308 = vrcp.f32 %v887_v60  ;;  %v972_v41 = vmul.f32 %v1287_v45, %v1780_v49  ;;  %1002 = vst.msk [vmem:[%s2046_s4 + $0x68] sm:$0xff] %vm478_vm1, %v970_v39 }
 0x215   :  { %v1291_v43 = vpop.eup %1290  ;;  %1310 = vrcp.f32 %v888_v8  ;;  %v973_v44 = vmul.f32 %v1289_v55, %v1782_v50  ;;  %1003 = vst.msk [vmem:[%s2046_s4 + $0x70] sm:$0xff] %vm478_vm1, %v971_v40 }
 0x216   :  { %v1293_v2 = vpop.eup %1292  ;;  %1312 = vrcp.f32 %v889_v16  ;;  %v974_v49 = vmul.f32 %v1291_v43, %v1784_v51  ;;  %1004 = vst.msk [vmem:[%s2046_s4 + $0x78] sm:$0xff] %vm478_vm1, %v972_v41 }
 0x217   :  { %v1295_v24 = vpop.eup %1294  ;;  %1314 = vrcp.f32 %v890_v29  ;;  %v975_v23 = vmul.f32 %v1293_v2, %v1786_v52  ;;  %1005 = vst.msk [vmem:[%s2046_s4 + $0x80] sm:$0xff] %vm478_vm1, %v973_v44 }
 0x218   :  { %v1297_v50 = vpop.eup %1296  ;;  %1316 = vrcp.f32 %v891_v21  ;;  %v976_v53 = vmul.f32 %v1295_v24, %v1788_v57  ;;  %1006 = vst.msk [vmem:[%s2046_s4 + $0x88] sm:$0xff] %vm478_vm1, %v974_v49 }
 0x219   :  { %v1299_v51 = vpop.eup %1298  ;;  %1318 = vrcp.f32 %v892_v22  ;;  %v977_v28 = vmul.f32 %v1297_v50, %v1790_v58  ;;  %1007 = vst.msk [vmem:[%s2046_s4 + $0x90] sm:$0xff] %vm478_vm1, %v975_v23 }
 0x21a   :  { %v1301_v52 = vpop.eup %1300  ;;  %v978_v1 = vmul.f32 %v1299_v51, %v1792_v61  ;;  %1008 = vst.msk [vmem:[%s2046_s4 + $0x98] sm:$0xff] %vm478_vm1, %v976_v53 }
 0x21b   :  { %v1303_v57 = vpop.eup %1302  ;;  %v979_v30 = vmul.f32 %v1301_v52, %v1794_v62  ;;  %1009 = vst.msk [vmem:[%s2046_s4 + $0xa0] sm:$0xff] %vm478_vm1, %v977_v28 }
 0x21c   :  { %v1305_v58 = vpop.eup %1304  ;;  %v980_v25 = vmul.f32 %v1303_v57, %v1796_v3  ;;  %1010 = vst.msk [vmem:[%s2046_s4 + $0xa8] sm:$0xff] %vm478_vm1, %v978_v1 }
 0x21d   :  { %v1307_v61 = vpop.eup %1306  ;;  %v981_v33 = vmul.f32 %v1305_v58, %v1798_v4  ;;  %1011 = vst.msk [vmem:[%s2046_s4 + $0xb0] sm:$0xff] %vm478_vm1, %v979_v30 }
 0x21e   :  { %v1309_v62 = vpop.eup %1308  ;;  %v982_v46 = vmul.f32 %v1307_v61, %v1800_v5  ;;  %1012 = vst.msk [vmem:[%s2046_s4 + $0xb8] sm:$0xff] %vm478_vm1, %v980_v25 }
 0x21f   :  { %v1311_v3 = vpop.eup %1310  ;;  %v983_v14 = vmul.f32 %v1309_v62, %v1802_v6  ;;  %1013 = vst.msk [vmem:[%s2046_s4 + $0xc0] sm:$0xff] %vm478_vm1, %v981_v33 }
 0x220   :  { %v1313_v4 = vpop.eup %1312  ;;  %v984_v20 = vmul.f32 %v1311_v3, %v1804_v11  ;;  %1014 = vst.msk [vmem:[%s2046_s4 + $0xc8] sm:$0xff] %vm478_vm1, %v982_v46 }
 0x221   :  { %v1315_v5 = vpop.eup %1314  ;;  %v985_v59 = vmul.f32 %v1313_v4, %v1806_v12  ;;  %1015 = vst.msk [vmem:[%s2046_s4 + $0xd0] sm:$0xff] %vm478_vm1, %v983_v14  ;;  %v2055_v12 = vld [vmem:[#allocation4_spill] sm:$0xff] }
 0x222   :  { %v1317_v6 = vpop.eup %1316  ;;  %v986_v13 = vmul.f32 %v1315_v5, %v2053_v26  ;;  %1016 = vst.msk [vmem:[%s2046_s4 + $0xd8] sm:$0xff] %vm478_vm1, %v984_v20 }
 0x223   :  { %v1319_v11 = vpop.eup %1318  ;;  %v987_v32 = vmul.f32 %v1317_v6, %v2054_v37  ;;  %1017 = vst.msk [vmem:[%s2046_s4 + $0xe0] sm:$0xff] %vm478_vm1, %v985_v59 }
 0x224   :  { %v988_v9 = vmul.f32 %v1319_v11, %v2055_v12  ;;  %1018 = vst.msk [vmem:[%s2046_s4 + $0xe8] sm:$0xff] %vm478_vm1, %v986_v13 }
 0x225   :  { %1019 = vst.msk [vmem:[%s2046_s4 + $0xf0] sm:$0xff] %vm478_vm1, %v987_v32 }
 0x226   :  { %1020 = vst.msk [vmem:[%s2046_s4 + $0xf8] sm:$0xff] %vm478_vm1, %v988_v9 }

// kernel: _lambda_.8
= control target key start
LH: loop header
LB: loop body
LE: loop exit
PB: predicated region body
PF: predicated region fallthrough
CT: control target
= control target key end

     0   :  { %vm238_vm0 = vcmask 261120   ;;  %vm383_vm1 = vcmask 523264   ;;  %s943_s1 = inlined_call_operand.vmem [shape: bf16[288,64], index: 1, kind: input, shape index: {}]   ;;  %s944_s0 = inlined_call_operand.vmem [shape: bf16[64,288], index: 0, kind: input, shape index: {}]   ;;  %s945_s2 = inlined_call_operand.vmem [shape: f32[1,64], index: 2, kind: input, shape index: {}]   ;;  %s946_s3 = inlined_call_operand.vmem [shape: f32[1,64], index: 3, kind: input, shape index: {}]   ;;  %s947_s4 = inlined_call_operand.vmem [shape: f32[64,64], index: 4, kind: output, shape index: {}]  }
   0x1   :  { %v662_v0 = vld [vmem:[%s943_s1 + $0x40] sm:$0xff]   ;;  %v664_v2 = vld [vmem:[%s943_s1 + $0x48] sm:$0xff]   ;;  %v666_v4 = vld [vmem:[%s943_s1 + $0x50] sm:$0xff]  }
   0x2   :  { %v663_v1 = vld [vmem:[%s943_s1] sm:$0xff]   ;;  %588 = vmatprep.subr.bf16.mxu0 %v662_v0  ;;  %646 = vmatprep.subr.bf16.mxu1 %v662_v0  ;;  %v665_v3 = vld [vmem:[%s943_s1 + $0x8] sm:$0xff]   ;;  %v667_v5 = vld [vmem:[%s943_s1 + $0x10] sm:$0xff]  }
   0x3   :  { %589 = vmatpush3.bf16.msra.mxu0 %v663_v1  ;;  %654 = vmatpush3.bf16.msra.mxu1 %v663_v1  ;;  %v668_v6 = vld [vmem:[%s943_s1 + $0x58] sm:$0xff]   ;;  %v670_v8 = vld [vmem:[%s943_s1 + $0x60] sm:$0xff]   ;;  %v672_v10 = vld [vmem:[%s943_s1 + $0x68] sm:$0xff]  }
   0x4   :  { %590 = vmatprep.subr.bf16.mxu0 %v664_v2  ;;  %647 = vmatprep.subr.bf16.mxu1 %v664_v2  ;;  %v669_v7 = vld [vmem:[%s943_s1 + $0x18] sm:$0xff]   ;;  %v671_v9 = vld [vmem:[%s943_s1 + $0x20] sm:$0xff]   ;;  %v673_v13 = vld [vmem:[%s943_s1 + $0x28] sm:$0xff]  }
   0x5   :  { %v680_v11 = vld [vmem:[%s944_s0 + $0x4] ss:$12 sps:$4 sm:$0xff]   ;;  %v683_v12 = vld [vmem:[%s944_s0 + $0x4c] ss:$12 sps:$4 sm:$0xff]   ;;  %v681_v20 = vld [vmem:[%s944_s0 + $0x48] ss:$12 sps:$4 sm:$0xff]  }
   0x6   :  { %v674_v14 = vld [vmem:[%s943_s1 + $0x70] sm:$0xff]   ;;  %283 = vmatprep.mubr.bf16.mxu0 %v680_v11  ;;  %307 = vmatprep.mubr.bf16.mxu1 %v683_v12  ;;  %v676_v16 = vld [vmem:[%s943_s1 + $0x78] sm:$0xff]   ;;  %v684_v18 = vld [vmem:[%s943_s1 + $0x80] sm:$0xff]  }
   0x7   :  { %591 = vmatpush3.bf16.msra.mxu0 %v665_v3  ;;  %655 = vmatpush3.bf16.msra.mxu1 %v665_v3  ;;  %v675_v15 = vld [vmem:[%s943_s1 + $0x30] sm:$0xff]   ;;  %v677_v17 = vld [vmem:[%s943_s1 + $0x38] sm:$0xff]   ;;  %v678_v19 = vld [vmem:[%s944_s0] ss:$12 sps:$4 sm:$0xff]  }
   0x8   :  { %592 = vmatprep.subr.bf16.mxu0 %v666_v4  ;;  %648 = vmatprep.subr.bf16.mxu1 %v666_v4  ;;  %v686_v21 = vld [vmem:[%s944_s0 + $0x1c] ss:$12 sps:$4 sm:$0xff]   ;;  %v689_v24 = vld [vmem:[%s944_s0 + $0x18] ss:$12 sps:$4 sm:$0xff]   ;;  %v690_v25 = vld [vmem:[%s944_s0 + $0x20] ss:$12 sps:$4 sm:$0xff]  }
   0x9   :  { %v685_v22 = vld [vmem:[%s943_s1 + $0x88] sm:$0xff]   ;;  %v691_v26 = vld [vmem:[%s944_s0 + $0x34] ss:$12 sps:$4 sm:$0xff]   ;;  %v693_v27 = vld [vmem:[%s944_s0 + $0x38] ss:$12 sps:$4 sm:$0xff]  }
   0xa   :  { %v688_v23 = vld [vmem:[%s944_s0 + $0x8] ss:$12 sps:$4 sm:$0xff]   ;;  %v694_v28 = vld [vmem:[%s944_s0 + $0x30] ss:$12 sps:$4 sm:$0xff]  }
   0xb   :  { %593 = vmatpush3.bf16.msra.mxu0 %v667_v5  ;;  %656 = vmatpush3.bf16.msra.mxu1 %v667_v5  ;;  %v695_v29 = vld [vmem:[%s944_s0 + $0x50] ss:$12 sps:$4 sm:$0xff]  }
   0xc   :  { %594 = vmatprep.subr.bf16.mxu0 %v668_v6  ;;  %649 = vmatprep.subr.bf16.mxu1 %v668_v6 }
   0xf   :  { %595 = vmatpush3.bf16.msra.mxu0 %v669_v7  ;;  %657 = vmatpush3.bf16.msra.mxu1 %v669_v7 }
  0x10   :  { %596 = vmatprep.subr.bf16.mxu0 %v670_v8  ;;  %650 = vmatprep.subr.bf16.mxu1 %v670_v8 }
  0x13   :  { %597 = vmatpush3.bf16.msra.mxu0 %v671_v9  ;;  %658 = vmatpush3.bf16.msra.mxu1 %v671_v9 }
  0x14   :  { %598 = vmatprep.subr.bf16.mxu0 %v672_v10  ;;  %651 = vmatprep.subr.bf16.mxu1 %v672_v10 }
  0x17   :  { %599 = vmatpush3.bf16.msra.mxu0 %v673_v13  ;;  %659 = vmatpush3.bf16.msra.mxu1 %v673_v13 }
  0x18   :  { %600 = vmatprep.subr.bf16.mxu0 %v674_v14  ;;  %652 = vmatprep.subr.bf16.mxu1 %v674_v14 }
  0x1b   :  { %601 = vmatpush3.bf16.msra.mxu0 %v675_v15  ;;  %660 = vmatpush3.bf16.msra.mxu1 %v675_v15 }
  0x1c   :  { %602 = vmatprep.subr.bf16.mxu0 %v676_v16  ;;  %653 = vmatprep.subr.bf16.mxu1 %v676_v16 }
  0x1f   :  { %603 = vmatpush3.bf16.msra.mxu0 %v677_v17  ;;  %661 = vmatpush3.bf16.msra.mxu1 %v677_v17 }
  0x20   :  { %634 = vmatprep.subr.bf16.mxu1 %v684_v18 }
  0x22   :  { %284 = vmatmul.mubr.bf16.vlgmr.msra.gmra.mrb[0].mxu0 %v678_v19  ;;  %308 = vmatmul.mubr.bf16.vlgmr.msra.gmra.mrb[0].mxu1 %v681_v20 }
  0x23   :  { %635 = vmatpush3.bf16.msra.mxu1 %v684_v18  ;;  %291 = vmatprep.mubr.bf16.mxu0 %v686_v21 }
  0x24   :  { %636 = vmatprep.subr.bf16.mxu1 %v685_v22  ;;  %638 = vmatprep.mubr.msk.bf16.mxu1 %vm238_vm0, %v688_v23 }
  0x27   :  { %637 = vmatpush3.bf16.msra.mxu1 %v685_v22 }
  0x2a   :  { %292 = vmatmul.mubr.bf16.gmra.mrb[4].mxu0 %v689_v24  ;;  %639 = vmatmul.mubr.msk.bf16.vlgmr.msra.gmra.mrb[4].mxu1 %vm238_vm0, %v690_v25 }
  0x2b   :  { %299 = vmatprep.mubr.bf16.mxu0 %v691_v26  ;;  %642 = vmatprep.mubr.msk.bf16.mxu1 %vm238_vm0, %v693_v27 }
  0x32   :  { %300 = vmatmul.mubr.bf16.gmra.mrb[8].mxu0 %v694_v28  ;;  %643 = vmatmul.mubr.msk.bf16.gmra.mrb[8].mxu1 %vm238_vm0, %v695_v29 }
  0xf5   :  { %v604_v30 = vpop.f32.mrb[0].mxu0  ;;  %v622_v31 = vpop.f32.mrb[0].mxu1 }
  0xf6   :  { %v605_v32 = vpop.f32.mrb[1].mxu0  ;;  %v623_v33 = vpop.f32.mrb[1].mxu1 }
  0xf7   :  { %v606_v34 = vadd.f32 %v605_v32, %v604_v30  ;;  %v624_v35 = vadd.f32 %v623_v33, %v622_v31  ;;  %v607_v36 = vpop.f32.mrb[2].mxu0  ;;  %v625_v37 = vpop.f32.mrb[2].mxu1 }
  0xf8   :  { %v608_v38 = vpop.f32.mrb[3].mxu0  ;;  %v626_v39 = vpop.f32.mrb[3].mxu1 }
  0xf9   :  { %v609_v40 = vadd.f32 %v608_v38, %v607_v36  ;;  %v627_v41 = vadd.f32 %v626_v39, %v625_v37 }
  0xfd   :  { %v610_v42 = vpop.f32.mrb[4].mxu0  ;;  %v640_v43 = vpop.f32.mrb[4].mxu1 }
  0xfe   :  { %v611_v44 = vpop.f32.mrb[5].mxu0  ;;  %v350_v45 = vpop.f32.mrb[5].mxu1 }
  0xff   :  { %v612_v46 = vadd.f32 %v611_v44, %v610_v42  ;;  %v849_v47 = vadd.f32 %v606_v34, %v350_v45  ;;  %v613_v48 = vpop.f32.mrb[6].mxu0  ;;  %v641_v49 = vpop.f32.mrb[6].mxu1 }
 0x100   :  { %v614_v50 = vpop.f32.mrb[7].mxu0  ;;  %v353_v51 = vpop.f32.mrb[7].mxu1 }
 0x101   :  { %v851_v52 = vadd.f32 %v640_v43, %v612_v46  ;;  %v615_v53 = vadd.f32 %v614_v50, %v613_v48  ;;  %v853_v54 = vadd.f32 %v609_v40, %v353_v51  ;;  %v384_v55 = vsel %vm383_vm1, %v849_v47, 0.0 }
 0x103   :  { %v857_v56 = vadd.f32 %v641_v49, %v615_v53  ;;  %v385_v57 = vsel %vm383_vm1, %v853_v54, 0.0  ;;  %v387_v59 = vsel %vm383_vm1, %v851_v52, 0.0 }
 0x104   :  { %v386_v58 = vadd.f32 %v385_v57, %v384_v55 }
 0x105   :  { %v616_v60 = vpop.f32.mrb[8].mxu0  ;;  %v644_v61 = vpop.f32.mrb[8].mxu1  ;;  %v389_v8 = vsel %vm383_vm1, %v857_v56, 0.0 }
 0x106   :  { %v388_v62 = vadd.f32 %v387_v59, %v386_v58  ;;  %v863_v63 = vadd.f32 %v644_v61, %v624_v35  ;;  %v617_v0 = vpop.f32.mrb[9].mxu0  ;;  %v366_v1 = vpop.f32.mrb[9].mxu1 }
 0x107   :  { %v618_v2 = vadd.f32 %v617_v0, %v616_v60  ;;  %v619_v3 = vpop.f32.mrb[10].mxu0  ;;  %v645_v4 = vpop.f32.mrb[10].mxu1 }
 0x108   :  { %v865_v5 = vadd.f32 %v645_v4, %v627_v41  ;;  %v620_v6 = vpop.f32.mrb[11].mxu0  ;;  %v369_v7 = vpop.f32.mrb[11].mxu1  ;;  %v390_v11 = vadd.f32 %v389_v8, %v388_v62  ;;  %v395_v17 = vsel %vm383_vm1, %v863_v63, 0.0 }
 0x109   :  { %v869_v9 = vadd.f32 %v618_v2, %v366_v1  ;;  %v621_v10 = vadd.f32 %v620_v6, %v619_v3 }
 0x10a   :  { %v397_v19 = vsel %vm383_vm1, %v865_v5, 0.0 }
 0x10b   :  { %v391_v12 = vsel %vm383_vm1, %v869_v9, 0.0  ;;  %v873_v13 = vadd.f32 %v621_v10, %v369_v7  ;;  %v451_v10 = vlaneseq }
 0x10c   :  { %v392_v14 = vadd.f32 %v391_v12, %v390_v11  ;;  %v381_v12 = vld [vmem:[%s945_s2] sm:$0x1] }
 0x10d   :  { %v393_v15 = vsel %vm383_vm1, %v873_v13, 0.0  ;;  %v452_v11 = vshrl.u32 %v451_v10, 7 }
 0x10e   :  { %v394_v16 = vadd.f32 %v393_v15, %v392_v14 }
 0x10f   :  { %v453_v14 = vsub.s32 0, %v452_v11 }
 0x110   :  { %v396_v18 = vadd.f32 %v395_v17, %v394_v16  ;;  %v382_v17 = vld [vmem:[%s946_s3] sm:$0x1] }
 0x112   :  { %v398_v20 = vadd.f32 %v397_v19, %v396_v18 }
 0x114   :  { %v399_v21 = vrot.slane %v398_v20, 4 }
 0x116   :  { %v400_v22 = vadd.f32 %v399_v21, %v398_v20 }
 0x118   :  { %v401_v23 = vrot.slane %v400_v22, 2 }
 0x11a   :  { %v402_v24 = vadd.f32 %v401_v23, %v400_v22 }
 0x11c   :  { %v403_v25 = vrot.slane %v402_v24, 1 }
 0x11e   :  { %v404_v26 = vadd.f32 %v403_v25, %v402_v24 }
 0x120   :  { %v406_v27 = vmul.f32 0.015625, %v404_v26 }
 0x122   :  { %v407_v28 = vsub.f32 %v849_v47, %v406_v27  ;;  %v408_v29 = vsub.f32 %v853_v54, %v406_v27  ;;  %v409_v30 = vsub.f32 %v851_v52, %v406_v27  ;;  %v410_v31 = vsub.f32 %v857_v56, %v406_v27 }
 0x123   :  { %v411_v32 = vsub.f32 %v869_v9, %v406_v27  ;;  %v412_v36 = vsub.f32 %v873_v13, %v406_v27  ;;  %v413_v41 = vsub.f32 %v863_v63, %v406_v27  ;;  %v414_v45 = vsub.f32 %v865_v5, %v406_v27 }
 0x124   :  { %v415_v33 = vmul.f32 %v407_v28, %v407_v28  ;;  %v416_v34 = vmul.f32 %v408_v29, %v408_v29  ;;  %v417_v35 = vmul.f32 %v409_v30, %v409_v30  ;;  %v418_v37 = vmul.f32 %v410_v31, %v410_v31 }
 0x125   :  { %v419_v42 = vmul.f32 %v411_v32, %v411_v32  ;;  %v420_v46 = vmul.f32 %v412_v36, %v412_v36  ;;  %v421_v50 = vmul.f32 %v413_v41, %v413_v41  ;;  %v422_v55 = vmul.f32 %v414_v45, %v414_v45 }
 0x126   :  { %v423_v38 = vsel %vm383_vm1, %v415_v33, 0.0  ;;  %v424_v39 = vsel %vm383_vm1, %v416_v34, 0.0  ;;  %v426_v43 = vsel %vm383_vm1, %v417_v35, 0.0  ;;  %v428_v48 = vsel %vm383_vm1, %v418_v37, 0.0 }
 0x127   :  { %v425_v40 = vadd.f32 %v424_v39, %v423_v38  ;;  %v430_v51 = vsel %vm383_vm1, %v419_v42, 0.0  ;;  %v432_v57 = vsel %vm383_vm1, %v420_v46, 0.0  ;;  %v434_v59 = vsel %vm383_vm1, %v421_v50, 0.0 }
 0x128   :  { %v436_v61 = vsel %vm383_vm1, %v422_v55, 0.0 }
 0x129   :  { %v427_v44 = vadd.f32 %v426_v43, %v425_v40 }
 0x12b   :  { %v429_v49 = vadd.f32 %v428_v48, %v427_v44 }
 0x12d   :  { %v431_v53 = vadd.f32 %v430_v51, %v429_v49 }
 0x12f   :  { %v433_v58 = vadd.f32 %v432_v57, %v431_v53 }
 0x131   :  { %v435_v60 = vadd.f32 %v434_v59, %v433_v58 }
 0x133   :  { %v437_v62 = vadd.f32 %v436_v61, %v435_v60 }
 0x135   :  { %v438_v0 = vrot.slane %v437_v62, 4 }
 0x137   :  { %v439_v1 = vadd.f32 %v438_v0, %v437_v62 }
 0x139   :  { %v440_v2 = vrot.slane %v439_v1, 2 }
 0x13b   :  { %v441_v3 = vadd.f32 %v440_v2, %v439_v1 }
 0x13d   :  { %v442_v4 = vrot.slane %v441_v3, 1 }
 0x13f   :  { %v443_v6 = vadd.f32 %v442_v4, %v441_v3 }
 0x141   :  { %v444_v7 = vmul.f32 0.015625, %v443_v6 }
 0x143   :  { %v445_v8 = vadd.f32 1e-05, %v444_v7 }
 0x145   :  { %696 = vrsqrt.f32 %v445_v8 }
 0x14f   :  { %v697_v15 = vpop.eup %696 }
 0x150   :  { %v447_v16 = vmul.f32 %v697_v15, %v381_v12 }
 0x152   :  { %v448_v18 = vmul.f32 %v447_v16, %v406_v27  ;;  %v454_v19 = vrot.slane %v447_v16, %v453_v14 }
 0x154   :  { %v449_v20 = vsub.f32 %v382_v17, %v448_v18  ;;  %v456_v21 = vmul.f32 %v454_v19, %v849_v47  ;;  %v457_v22 = vmul.f32 %v454_v19, %v853_v54  ;;  %v458_v23 = vmul.f32 %v454_v19, %v851_v52 }
 0x155   :  { %v459_v24 = vmul.f32 %v454_v19, %v857_v56  ;;  %v460_v26 = vmul.f32 %v454_v19, %v869_v9  ;;  %v461_v28 = vmul.f32 %v454_v19, %v873_v13  ;;  %v462_v29 = vmul.f32 %v454_v19, %v863_v63 }
 0x156   :  { %v468_v25 = vrot.slane %v449_v20, %v453_v14  ;;  %v463_v33 = vmul.f32 %v454_v19, %v865_v5 }
 0x158   :  { %v470_v30 = vadd.f32 %v468_v25, %v456_v21  ;;  %v471_v31 = vadd.f32 %v468_v25, %v457_v22  ;;  %v472_v27 = vadd.f32 %v468_v25, %v458_v23  ;;  %v473_v32 = vadd.f32 %v468_v25, %v459_v24 }
 0x159   :  { %v474_v47 = vadd.f32 %v468_v25, %v460_v26  ;;  %v475_v34 = vadd.f32 %v468_v25, %v461_v28  ;;  %v476_v54 = vadd.f32 %v468_v25, %v462_v29  ;;  %v477_v56 = vadd.f32 %v468_v25, %v463_v33 }
 0x15a   :  { %v580_v35 = vmul.f32 -1.442695, %v470_v30  ;;  %v581_v52 = vmul.f32 -1.442695, %v471_v31  ;;  %v582_v36 = vmul.f32 -1.442695, %v472_v27 }
 0x15b   :  { %v583_v37 = vmul.f32 -1.442695, %v473_v32  ;;  %v584_v9 = vmul.f32 -1.442695, %v474_v47  ;;  %v585_v13 = vmul.f32 -1.442695, %v475_v34 }
 0x15c   :  { %698 = vpow2.f32 %v580_v35  ;;  %v586_v63 = vmul.f32 -1.442695, %v476_v54  ;;  %v587_v38 = vmul.f32 -1.442695, %v477_v56 }
 0x15d   :  { %700 = vpow2.f32 %v581_v52 }
 0x15e   :  { %702 = vpow2.f32 %v582_v36 }
 0x15f   :  { %704 = vpow2.f32 %v583_v37 }
 0x160   :  { %706 = vpow2.f32 %v584_v9 }
 0x161   :  { %708 = vpow2.f32 %v585_v13 }
 0x162   :  { %710 = vpow2.f32 %v586_v63 }
 0x163   :  { %712 = vpow2.f32 %v587_v38 }
 0x166   :  { %v699_v5 = vpop.eup %698 }
 0x167   :  { %v701_v39 = vpop.eup %700  ;;  %v502_v40 = vadd.f32 1.0, %v699_v5 }
 0x168   :  { %v703_v41 = vpop.eup %702  ;;  %v503_v42 = vadd.f32 1.0, %v701_v39 }
 0x169   :  { %v705_v43 = vpop.eup %704  ;;  %v504_v44 = vadd.f32 1.0, %v703_v41  ;;  %714 = vrcp.f32 %v502_v40 }
 0x16a   :  { %v707_v45 = vpop.eup %706  ;;  %v505_v46 = vadd.f32 1.0, %v705_v43  ;;  %716 = vrcp.f32 %v503_v42 }
 0x16b   :  { %v709_v48 = vpop.eup %708  ;;  %v506_v49 = vadd.f32 1.0, %v707_v45  ;;  %718 = vrcp.f32 %v504_v44 }
 0x16c   :  { %v711_v50 = vpop.eup %710  ;;  %v507_v51 = vadd.f32 1.0, %v709_v48  ;;  %720 = vrcp.f32 %v505_v46 }
 0x16d   :  { %v713_v53 = vpop.eup %712  ;;  %v508_v55 = vadd.f32 1.0, %v711_v50  ;;  %722 = vrcp.f32 %v506_v49 }
 0x16e   :  { %v509_v57 = vadd.f32 1.0, %v713_v53  ;;  %724 = vrcp.f32 %v507_v51 }
 0x16f   :  { %726 = vrcp.f32 %v508_v55 }
 0x170   :  { %728 = vrcp.f32 %v509_v57 }
 0x173   :  { %v715_v58 = vpop.eup %714 }
 0x174   :  { %v717_v59 = vpop.eup %716  ;;  %v526_v60 = vmul.f32 %v715_v58, %v470_v30 }
 0x175   :  { %v719_v61 = vpop.eup %718  ;;  %v527_v62 = vmul.f32 %v717_v59, %v471_v31 }
 0x176   :  { %v721_v0 = vpop.eup %720  ;;  %v528_v1 = vmul.f32 %v719_v61, %v472_v27  ;;  %534 = vst.msk [vmem:[%s947_s4] sm:$0xff] %vm383_vm1, %v526_v60 }
 0x177   :  { %v723_v2 = vpop.eup %722  ;;  %v529_v3 = vmul.f32 %v721_v0, %v473_v32  ;;  %535 = vst.msk [vmem:[%s947_s4 + $0x8] sm:$0xff] %vm383_vm1, %v527_v62 }
 0x178   :  { %v725_v4 = vpop.eup %724  ;;  %v530_v6 = vmul.f32 %v723_v2, %v474_v47  ;;  %536 = vst.msk [vmem:[%s947_s4 + $0x10] sm:$0xff] %vm383_vm1, %v528_v1 }
 0x179   :  { %v727_v7 = vpop.eup %726  ;;  %v531_v8 = vmul.f32 %v725_v4, %v475_v34  ;;  %537 = vst.msk [vmem:[%s947_s4 + $0x18] sm:$0xff] %vm383_vm1, %v529_v3 }
 0x17a   :  { %v729_v10 = vpop.eup %728  ;;  %v532_v11 = vmul.f32 %v727_v7, %v476_v54  ;;  %538 = vst.msk [vmem:[%s947_s4 + $0x20] sm:$0xff] %vm383_vm1, %v530_v6 }
 0x17b   :  { %v533_v12 = vmul.f32 %v729_v10, %v477_v56  ;;  %539 = vst.msk [vmem:[%s947_s4 + $0x28] sm:$0xff] %vm383_vm1, %v531_v8 }
 0x17c   :  { %540 = vst.msk [vmem:[%s947_s4 + $0x30] sm:$0xff] %vm383_vm1, %v532_v11 }
 0x17d   :  { %541 = vst.msk [vmem:[%s947_s4 + $0x38] sm:$0xff] %vm383_vm1, %v533_v12 }

// kernel: _lambda_.9
= control target key start
LH: loop header
LB: loop body
LE: loop exit
PB: predicated region body
PF: predicated region fallthrough
CT: control target
= control target key end

     0   :  { %v688_v34 = vmov 0.0   ;;  %vm689_vm0 = vmmov 0   ;;  %vm337_vm1 = vcmask 523264   ;;  %s850_s1 = inlined_call_operand.vmem [shape: bf16[576,128], index: 1, kind: input, shape index: {}]   ;;  %s851_s0 = inlined_call_operand.vmem [shape: bf16[16,576], index: 0, kind: input, shape index: {}]   ;;  %s852_s2 = inlined_call_operand.vmem [shape: f32[1,128], index: 2, kind: input, shape index: {}]   ;;  %s853_s3 = inlined_call_operand.vmem [shape: f32[1,128], index: 3, kind: input, shape index: {}]   ;;  %s854_s4 = inlined_call_operand.vmem [shape: f32[16,128], index: 4, kind: output, shape index: {}]  }
   0x1   :  { %v635_v0 = vld [vmem:[%s850_s1 + $0x40] sm:$0xff]   ;;  %v639_v4 = vld [vmem:[%s850_s1 + $0x48] sm:$0xff]   ;;  %v643_v8 = vld [vmem:[%s850_s1 + $0x50] sm:$0xff]  }
   0x2   :  { %v636_v1 = vld [vmem:[%s850_s1 + $0xc0] sm:$0xff]   ;;  %572 = vmatprep.subr.bf16.mxu0 %v635_v0  ;;  %v640_v5 = vld [vmem:[%s850_s1 + $0xc8] sm:$0xff]   ;;  %v644_v9 = vld [vmem:[%s850_s1 + $0xd0] sm:$0xff]  }
   0x3   :  { %v637_v2 = vld [vmem:[%s850_s1] sm:$0xff]   ;;  %594 = vmatprep.subr.bf16.mxu1 %v636_v1  ;;  %v641_v6 = vld [vmem:[%s850_s1 + $0x8] sm:$0xff]   ;;  %v645_v10 = vld [vmem:[%s850_s1 + $0x10] sm:$0xff]  }
   0x4   :  { %v638_v3 = vld [vmem:[%s850_s1 + $0x80] sm:$0xff]   ;;  %573 = vmatpush3.bf16.msra.mxu0 %v637_v2  ;;  %v642_v7 = vld [vmem:[%s850_s1 + $0x88] sm:$0xff]   ;;  %v646_v11 = vld [vmem:[%s850_s1 + $0x90] sm:$0xff]  }
   0x5   :  { %595 = vmatpush3.bf16.msra.mxu1 %v638_v3  ;;  %574 = vmatprep.subr.bf16.mxu0 %v639_v4  ;;  %v647_v12 = vld [vmem:[%s850_s1 + $0x58] sm:$0xff]   ;;  %v651_v16 = vld [vmem:[%s850_s1 + $0x60] sm:$0xff]   ;;  %v655_v20 = vld [vmem:[%s850_s1 + $0x68] sm:$0xff]  }
   0x6   :  { %596 = vmatprep.subr.bf16.mxu1 %v640_v5  ;;  %v648_v13 = vld [vmem:[%s850_s1 + $0xd8] sm:$0xff]   ;;  %v652_v17 = vld [vmem:[%s850_s1 + $0xe0] sm:$0xff]   ;;  %v656_v21 = vld [vmem:[%s850_s1 + $0xe8] sm:$0xff]  }
   0x7   :  { %v649_v14 = vld [vmem:[%s850_s1 + $0x18] sm:$0xff]   ;;  %v653_v18 = vld [vmem:[%s850_s1 + $0x20] sm:$0xff]   ;;  %v657_v22 = vld [vmem:[%s850_s1 + $0x28] sm:$0xff]  }
   0x8   :  { %575 = vmatpush3.bf16.msra.mxu0 %v641_v6  ;;  %v650_v15 = vld [vmem:[%s850_s1 + $0x98] sm:$0xff]   ;;  %v654_v19 = vld [vmem:[%s850_s1 + $0xa0] sm:$0xff]   ;;  %v658_v23 = vld [vmem:[%s850_s1 + $0xa8] sm:$0xff]  }
   0x9   :  { %597 = vmatpush3.bf16.msra.mxu1 %v642_v7  ;;  %576 = vmatprep.subr.bf16.mxu0 %v643_v8  ;;  %v659_v24 = vld [vmem:[%s850_s1 + $0x70] sm:$0xff]   ;;  %v663_v28 = vld [vmem:[%s850_s1 + $0x78] sm:$0xff]   ;;  %v672_v36 = vld [vmem:[%s851_s0 + $0xc] ss:$20 sps:$4 sm:$0xff]  }
   0xa   :  { %598 = vmatprep.subr.bf16.mxu1 %v644_v9  ;;  %v660_v25 = vld [vmem:[%s850_s1 + $0xf0] sm:$0xff]   ;;  %v664_v29 = vld [vmem:[%s850_s1 + $0xf8] sm:$0xff]   ;;  %v673_v37 = vld [vmem:[%s850_s1 + $0x100] sm:$0xff]   ;;  %414 = vmatprep.mubr.bf16.mxu1 %v672_v36 }
   0xb   :  { %v661_v26 = vld [vmem:[%s850_s1 + $0x30] sm:$0xff]   ;;  %v665_v30 = vld [vmem:[%s850_s1 + $0x38] sm:$0xff]   ;;  %v674_v38 = vld [vmem:[%s850_s1 + $0x108] sm:$0xff]  }
   0xc   :  { %577 = vmatpush3.bf16.msra.mxu0 %v645_v10  ;;  %v662_v27 = vld [vmem:[%s850_s1 + $0xb0] sm:$0xff]   ;;  %v666_v31 = vld [vmem:[%s850_s1 + $0xb8] sm:$0xff]  }
   0xd   :  { %599 = vmatpush3.bf16.msra.mxu1 %v646_v11  ;;  %578 = vmatprep.subr.bf16.mxu0 %v647_v12  ;;  %v667_v32 = vld [vmem:[%s851_s0] ss:$20 sps:$4 sm:$0xff]   ;;  %v669_v33 = vld [vmem:[%s851_s0 + $0x4] ss:$20 sps:$4 sm:$0xff]   ;;  %v670_v35 = vld [vmem:[%s851_s0 + $0x8] ss:$20 sps:$4 sm:$0xff]  }
   0xe   :  { %600 = vmatprep.subr.bf16.mxu1 %v648_v13  ;;  %373 = vmatprep.mubr.bf16.mxu0 %v669_v33  ;;  %v675_v39 = vld [vmem:[%s850_s1 + $0x110] sm:$0xff]   ;;  %v676_v40 = vld [vmem:[%s850_s1 + $0x118] sm:$0xff]  }
   0xf   :  { %v677_v41 = vld [vmem:[%s851_s0 + $0x10] ss:$20 sps:$4 sm:$0xff]  }
  0x10   :  { %579 = vmatpush3.bf16.msra.mxu0 %v649_v14 }
  0x11   :  { %601 = vmatpush3.bf16.msra.mxu1 %v650_v15  ;;  %580 = vmatprep.subr.bf16.mxu0 %v651_v16 }
  0x12   :  { %602 = vmatprep.subr.bf16.mxu1 %v652_v17 }
  0x14   :  { %581 = vmatpush3.bf16.msra.mxu0 %v653_v18 }
  0x15   :  { %603 = vmatpush3.bf16.msra.mxu1 %v654_v19  ;;  %582 = vmatprep.subr.bf16.mxu0 %v655_v20  ;;  %v493_v19 = vlaneseq }
  0x16   :  { %604 = vmatprep.subr.bf16.mxu1 %v656_v21  ;;  %v464_v21 = vld [vmem:[%s852_s2] sm:$0x1] }
  0x17   :  { %v494_v20 = vshrl.u32 %v493_v19, 7 }
  0x18   :  { %583 = vmatpush3.bf16.msra.mxu0 %v657_v22 }
  0x19   :  { %605 = vmatpush3.bf16.msra.mxu1 %v658_v23  ;;  %584 = vmatprep.subr.bf16.mxu0 %v659_v24  ;;  %v495_v22 = vsub.s32 0, %v494_v20 }
  0x1a   :  { %606 = vmatprep.subr.bf16.mxu1 %v660_v25  ;;  %v465_v25 = vld [vmem:[%s853_s3] sm:$0x1] }
  0x1c   :  { %585 = vmatpush3.bf16.msra.mxu0 %v661_v26 }
  0x1d   :  { %607 = vmatpush3.bf16.msra.mxu1 %v662_v27  ;;  %586 = vmatprep.subr.bf16.mxu0 %v663_v28 }
  0x1e   :  { %608 = vmatprep.subr.bf16.mxu1 %v664_v29 }
  0x20   :  { %587 = vmatpush3.bf16.msra.mxu0 %v665_v30 }
  0x21   :  { %609 = vmatpush3.bf16.msra.mxu1 %v666_v31  ;;  %621 = vmatprep.subr.bf16.mxu0 %v688_v34 }
  0x23   :  { %374 = vmatmul.mubr.bf16.vlgmr.msra.gmra.mrb[0].mxu0 %v667_v32 }
  0x24   :  { %415 = vmatmul.mubr.bf16.vlgmr.msra.gmra.mrb[0].mxu1 %v670_v35  ;;  %622 = vmatpush3.bf16.msra.mxu0 %v673_v37 }
  0x25   :  { %623 = vmatprep.subr.bf16.mxu0 %v688_v34  ;;  %629 = vmatprep.mubr.msk.bf16.mxu0 %vm689_vm0, %v688_v34 }
  0x28   :  { %624 = vmatpush3.bf16.msra.mxu0 %v674_v38 }
  0x29   :  { %625 = vmatprep.subr.bf16.mxu0 %v688_v34 }
  0x2c   :  { %626 = vmatpush3.bf16.msra.mxu0 %v675_v39 }
  0x2d   :  { %627 = vmatprep.subr.bf16.mxu0 %v688_v34 }
  0x30   :  { %628 = vmatpush3.bf16.msra.mxu0 %v676_v40 }
  0x33   :  { %630 = vmatmul.mubr.msk.bf16.vlgmr.msra.gmra.mrb[4].mxu0 %vm337_vm1, %v677_v41 }
  0xf6   :  { %v588_v42 = vpop.f32.mrb[0].mxu0 }
  0xf7   :  { %v610_v43 = vpop.f32.mrb[0].mxu1  ;;  %v589_v44 = vpop.f32.mrb[1].mxu0 }
  0xf8   :  { %v590_v45 = vadd.f32 %v589_v44, %v588_v42  ;;  %v611_v46 = vpop.f32.mrb[1].mxu1  ;;  %v591_v47 = vpop.f32.mrb[2].mxu0 }
  0xf9   :  { %v612_v48 = vadd.f32 %v611_v46, %v610_v43  ;;  %v613_v49 = vpop.f32.mrb[2].mxu1  ;;  %v592_v50 = vpop.f32.mrb[3].mxu0 }
  0xfa   :  { %v593_v51 = vadd.f32 %v592_v50, %v591_v47  ;;  %v614_v52 = vpop.f32.mrb[3].mxu1 }
  0xfb   :  { %v615_v53 = vadd.f32 %v614_v52, %v613_v49  ;;  %v417_v54 = vadd.f32 %v612_v48, %v590_v45 }
  0xfd   :  { %v420_v55 = vadd.f32 %v615_v53, %v593_v51 }
 0x106   :  { %v457_v56 = vpop.f32.mrb[4].mxu0 }
 0x107   :  { %v458_v57 = vadd.f32 %v457_v56, %v417_v54  ;;  %v631_v58 = vpop.f32.mrb[5].mxu0 }
 0x108   :  { %v460_v59 = vpop.f32.mrb[6].mxu0 }
 0x109   :  { %v461_v60 = vadd.f32 %v460_v59, %v420_v55  ;;  %v632_v61 = vpop.f32.mrb[7].mxu0 }
 0x10b   :  { %v466_v62 = vadd.f32 %v461_v60, %v458_v57 }
 0x10d   :  { %v467_v63 = vrot.slane %v466_v62, 4 }
 0x10f   :  { %v468_v0 = vadd.f32 %v467_v63, %v466_v62 }
 0x111   :  { %v469_v1 = vrot.slane %v468_v0, 2 }
 0x113   :  { %v470_v2 = vadd.f32 %v469_v1, %v468_v0 }
 0x115   :  { %v471_v3 = vrot.slane %v470_v2, 1 }
 0x117   :  { %v472_v4 = vadd.f32 %v471_v3, %v470_v2 }
 0x119   :  { %v474_v5 = vmul.f32 0.0625, %v472_v4 }
 0x11b   :  { %v475_v6 = vsub.f32 %v458_v57, %v474_v5  ;;  %v476_v7 = vsub.f32 %v461_v60, %v474_v5 }
 0x11d   :  { %v477_v8 = vmul.f32 %v475_v6, %v475_v6  ;;  %v478_v9 = vmul.f32 %v476_v7, %v476_v7 }
 0x11f   :  { %v479_v10 = vadd.f32 %v478_v9, %v477_v8 }
 0x121   :  { %v480_v11 = vrot.slane %v479_v10, 4 }
 0x123   :  { %v481_v12 = vadd.f32 %v480_v11, %v479_v10 }
 0x125   :  { %v482_v13 = vrot.slane %v481_v12, 2 }
 0x127   :  { %v483_v14 = vadd.f32 %v482_v13, %v481_v12 }
 0x129   :  { %v484_v15 = vrot.slane %v483_v14, 1 }
 0x12b   :  { %v485_v16 = vadd.f32 %v484_v15, %v483_v14 }
 0x12d   :  { %v486_v17 = vmul.f32 0.0625, %v485_v16 }
 0x12f   :  { %v487_v18 = vadd.f32 1e-05, %v486_v17 }
 0x131   :  { %678 = vrsqrt.f32 %v487_v18 }
 0x13b   :  { %v679_v23 = vpop.eup %678 }
 0x13c   :  { %v489_v24 = vmul.f32 %v679_v23, %v464_v21 }
 0x13e   :  { %v490_v26 = vmul.f32 %v489_v24, %v474_v5  ;;  %v496_v27 = vrot.slane %v489_v24, %v495_v22 }
 0x140   :  { %v491_v28 = vsub.f32 %v465_v25, %v490_v26  ;;  %v498_v29 = vmul.f32 %v496_v27, %v458_v57  ;;  %v499_v30 = vmul.f32 %v496_v27, %v461_v60 }
 0x142   :  { %v504_v31 = vrot.slane %v491_v28, %v495_v22 }
 0x144   :  { %v506_v32 = vadd.f32 %v504_v31, %v498_v29  ;;  %v507_v33 = vadd.f32 %v504_v31, %v499_v30 }
 0x146   :  { %v570_v34 = vmul.f32 -1.442695, %v506_v32  ;;  %v571_v35 = vmul.f32 -1.442695, %v507_v33 }
 0x148   :  { %680 = vpow2.f32 %v570_v34 }
 0x149   :  { %682 = vpow2.f32 %v571_v35 }
 0x152   :  { %v681_v36 = vpop.eup %680 }
 0x153   :  { %v683_v37 = vpop.eup %682  ;;  %v514_v38 = vadd.f32 1.0, %v681_v36 }
 0x154   :  { %v515_v39 = vadd.f32 1.0, %v683_v37 }
 0x155   :  { %684 = vrcp.f32 %v514_v38 }
 0x156   :  { %686 = vrcp.f32 %v515_v39 }
 0x15f   :  { %v685_v40 = vpop.eup %684 }
 0x160   :  { %v687_v41 = vpop.eup %686  ;;  %v520_v42 = vmul.f32 %v685_v40, %v506_v32 }
 0x161   :  { %v521_v43 = vmul.f32 %v687_v41, %v507_v33 }
 0x162   :  { %522 = vst [vmem:[%s854_s4] sm:$0xff] %v520_v42 }
 0x163   :  { %523 = vst [vmem:[%s854_s4 + $0x8] sm:$0xff] %v521_v43 }

// kernel: _lambda_.11
= control target key start
LH: loop header
LB: loop body
LE: loop exit
PB: predicated region body
PF: predicated region fallthrough
CT: control target
= control target key end

     0   :  { %v1555_v7 = vmov 1983009808   ;;  %v104_v9 = vlaneseq  ;;  %s2016_s0 = inlined_call_operand.vmem [shape: f32[2,512], index: 0, kind: input, shape index: {}]   ;;  %s2017_s1 = inlined_call_operand.vmem [shape: bf16[512,256], index: 1, kind: input, shape index: {}]   ;;  %s2018_s2 = inlined_call_operand.vmem [shape: f32[1,256], index: 2, kind: input, shape index: {}]   ;;  %s2019_s3 = inlined_call_operand.vmem [shape: f32[1,256], index: 3, kind: input, shape index: {}]   ;;  %s2020_s4 = inlined_call_operand.vmem [shape: bf16[256,256], index: 4, kind: input, shape index: {}]   ;;  %s2021_s5 = inlined_call_operand.vmem [shape: f32[1,256], index: 5, kind: input, shape index: {}]   ;;  %s2022_s6 = inlined_call_operand.vmem [shape: f32[1,256], index: 6, kind: input, shape index: {}]   ;;  %s2023_s7 = inlined_call_operand.vmem [shape: bf16[256,128], index: 7, kind: input, shape index: {}]   ;;  %s2024_s8 = inlined_call_operand.vmem [shape: f32[1,128], index: 8, kind: input, shape index: {}]   ;;  %s2025_s9 = inlined_call_operand.hbm [shape: f32[2,128], index: 9, kind: output, shape index: {}]  }
   0x1   :  { %v1346_v0 = vld [vmem:[%s2017_s1 + $0x4] ss:$8 sps:$4 sm:$0xff]   ;;  %v1348_v1 = vld [vmem:[%s2017_s1] ss:$8 sps:$4 sm:$0xff]   ;;  %v1349_v2 = vld [vmem:[%s2017_s1 + $0x14] ss:$8 sps:$4 sm:$0xff]   ;;  %v102_v8 = vunpack.c.l.s4 %v1555_v7 }
   0x2   :  { %445 = vmatprep.subr.bf16.mxu0 %v1346_v0  ;;  %v1351_v3 = vld [vmem:[%s2017_s1 + $0x10] ss:$8 sps:$4 sm:$0xff]   ;;  %v1352_v4 = vld [vmem:[%s2017_s1 + $0x24] ss:$8 sps:$4 sm:$0xff]   ;;  %v1354_v5 = vld [vmem:[%s2017_s1 + $0x20] ss:$8 sps:$4 sm:$0xff]  }
   0x3   :  { %446 = vmatpush1.bf16.msra.mxu0 %v1348_v1  ;;  %v1355_v6 = vld [vmem:[%s2017_s1 + $0x34] ss:$8 sps:$4 sm:$0xff]   ;;  %v1357_v10 = vld [vmem:[%s2017_s1 + $0x30] ss:$8 sps:$4 sm:$0xff]   ;;  %v1358_v11 = vld [vmem:[%s2017_s1 + $0x44] ss:$8 sps:$4 sm:$0xff]   ;;  %v103_v12 = vunpack.c.0.s8 %v102_v8 }
   0x4   :  { %447 = vmatprep.subr.bf16.mxu0 %v1349_v2  ;;  %v1635_v13 = vshrl.u32 %v104_v9, 7  ;;  %v1360_v14 = vld [vmem:[%s2017_s1 + $0x40] ss:$8 sps:$4 sm:$0xff]   ;;  %v1361_v15 = vld [vmem:[%s2017_s1 + $0x54] ss:$8 sps:$4 sm:$0xff]  }
   0x5   :  { %v1363_v17 = vld [vmem:[%s2017_s1 + $0x50] ss:$8 sps:$4 sm:$0xff]   ;;  %v1364_v18 = vld [vmem:[%s2017_s1 + $0x64] ss:$8 sps:$4 sm:$0xff]   ;;  %v1366_v21 = vld [vmem:[%s2017_s1 + $0x60] ss:$8 sps:$4 sm:$0xff]  }
   0x6   :  { %v106_v16 = vsub.s32 %v103_v12, %v1635_v13  ;;  %v34_v19 = vld [vmem:[%s2016_s0] sm:$0xff]  ;;  %v1367_v22 = vld [vmem:[%s2017_s1 + $0x74] ss:$8 sps:$4 sm:$0xff]   ;;  %v1369_v25 = vld [vmem:[%s2017_s1 + $0x70] ss:$8 sps:$4 sm:$0xff]  }
   0x7   :  { %448 = vmatpush1.bf16.msra.mxu0 %v1351_v3  ;;  %v1370_v26 = vld [vmem:[%s2017_s1 + $0x84] ss:$8 sps:$4 sm:$0xff]   ;;  %v1372_v27 = vld [vmem:[%s2017_s1 + $0x80] ss:$8 sps:$4 sm:$0xff]   ;;  %v1373_v28 = vld [vmem:[%s2017_s1 + $0x94] ss:$8 sps:$4 sm:$0xff]   ;;  %v100_v39 = vcombine.high %v34_v19, %v34_v19 }
   0x8   :  { %449 = vmatprep.subr.bf16.mxu0 %v1352_v4  ;;  %v107_v20 = vrot.slane %v34_v19, %v106_v16  ;;  %v1375_v29 = vld [vmem:[%s2017_s1 + $0x90] ss:$8 sps:$4 sm:$0xff]   ;;  %v1376_v30 = vld [vmem:[%s2017_s1 + $0xa4] ss:$8 sps:$4 sm:$0xff]   ;;  %v1378_v31 = vld [vmem:[%s2017_s1 + $0xa0] ss:$8 sps:$4 sm:$0xff]  }
   0x9   :  { %v1379_v32 = vld [vmem:[%s2017_s1 + $0xb4] ss:$8 sps:$4 sm:$0xff]   ;;  %v1381_v33 = vld [vmem:[%s2017_s1 + $0xb0] ss:$8 sps:$4 sm:$0xff]   ;;  %v1382_v34 = vld [vmem:[%s2017_s1 + $0xc4] ss:$8 sps:$4 sm:$0xff]   ;;  %v1707_v42 = vrot.slane %v100_v39, %v106_v16 }
   0xa   :  { %v115_v23 = vcombine.high %v107_v20, %v107_v20  ;;  %v1384_v35 = vld [vmem:[%s2017_s1 + $0xc0] ss:$8 sps:$4 sm:$0xff]   ;;  %v1385_v36 = vld [vmem:[%s2017_s1 + $0xd4] ss:$8 sps:$4 sm:$0xff]   ;;  %v1387_v37 = vld [vmem:[%s2017_s1 + $0xd0] ss:$8 sps:$4 sm:$0xff]   ;;  %v121_v47 = vpack.c.bf16 %v107_v20, %v107_v20 }
   0xb   :  { %450 = vmatpush1.bf16.msra.mxu0 %v1354_v5  ;;  %v1388_v38 = vld [vmem:[%s2017_s1 + $0xe4] ss:$8 sps:$4 sm:$0xff]   ;;  %v1390_v40 = vld [vmem:[%s2017_s1 + $0xe0] ss:$8 sps:$4 sm:$0xff]   ;;  %v1391_v41 = vld [vmem:[%s2017_s1 + $0xf4] ss:$8 sps:$4 sm:$0xff]   ;;  %v116_v45 = vcombine.high %v1707_v42, %v1707_v42 }
   0xc   :  { %451 = vmatprep.subr.bf16.mxu0 %v1355_v6  ;;  %v122_v24 = vpack.c.bf16 %v115_v23, %v115_v23  ;;  %v1393_v43 = vld [vmem:[%s2017_s1 + $0xf0] ss:$8 sps:$4 sm:$0xff]   ;;  %v1397_v44 = vld [vmem:[%s2017_s1 + $0x104] ss:$8 sps:$4 sm:$0xff]   ;;  %v1395_v46 = vld [vmem:[%s2017_s1 + $0x100] ss:$8 sps:$4 sm:$0xff]  }
   0xd   :  { %v124_v48 = vpack.c.bf16 %v116_v45, %v116_v45  ;;  %v1400_v49 = vld [vmem:[%s2017_s1 + $0x114] ss:$8 sps:$4 sm:$0xff]  }
   0xe   :  { %477 = vmatprep.mubr.bf16.mxu0 %v122_v24 }
   0xf   :  { %452 = vmatpush1.bf16.msra.mxu0 %v1357_v10 }
  0x10   :  { %453 = vmatprep.subr.bf16.mxu0 %v1358_v11 }
  0x13   :  { %454 = vmatpush1.bf16.msra.mxu0 %v1360_v14 }
  0x14   :  { %455 = vmatprep.subr.bf16.mxu0 %v1361_v15 }
  0x17   :  { %456 = vmatpush1.bf16.msra.mxu0 %v1363_v17 }
  0x18   :  { %457 = vmatprep.subr.bf16.mxu0 %v1364_v18 }
  0x1b   :  { %458 = vmatpush1.bf16.msra.mxu0 %v1366_v21 }
  0x1c   :  { %459 = vmatprep.subr.bf16.mxu0 %v1367_v22 }
  0x1f   :  { %460 = vmatpush1.bf16.msra.mxu0 %v1369_v25 }
  0x20   :  { %461 = vmatprep.subr.bf16.mxu0 %v1370_v26 }
  0x23   :  { %462 = vmatpush1.bf16.msra.mxu0 %v1372_v27 }
  0x24   :  { %463 = vmatprep.subr.bf16.mxu0 %v1373_v28 }
  0x27   :  { %464 = vmatpush1.bf16.msra.mxu0 %v1375_v29 }
  0x28   :  { %465 = vmatprep.subr.bf16.mxu0 %v1376_v30 }
  0x2b   :  { %466 = vmatpush1.bf16.msra.mxu0 %v1378_v31 }
  0x2c   :  { %467 = vmatprep.subr.bf16.mxu0 %v1379_v32 }
  0x2f   :  { %468 = vmatpush1.bf16.msra.mxu0 %v1381_v33 }
  0x30   :  { %469 = vmatprep.subr.bf16.mxu0 %v1382_v34 }
  0x33   :  { %470 = vmatpush1.bf16.msra.mxu0 %v1384_v35 }
  0x34   :  { %471 = vmatprep.subr.bf16.mxu0 %v1385_v36 }
  0x37   :  { %472 = vmatpush1.bf16.msra.mxu0 %v1387_v37 }
  0x38   :  { %473 = vmatprep.subr.bf16.mxu0 %v1388_v38 }
  0x3b   :  { %474 = vmatpush1.bf16.msra.mxu0 %v1390_v40 }
  0x3c   :  { %475 = vmatprep.subr.bf16.mxu0 %v1391_v41 }
  0x3f   :  { %476 = vmatpush1.bf16.msra.mxu0 %v1393_v43 }
  0x40   :  { %486 = vmatprep.subr.bf16.mxu0 %v1397_v44 }
  0x41   :  { %14 = vsyncpa [#allocation3], 0  ;;  %v1398_v50 = vld [vmem:[%s2017_s1 + $0x110] ss:$8 sps:$4 sm:$0xff]   ;;  %v1403_v51 = vld [vmem:[%s2017_s1 + $0x124] ss:$8 sps:$4 sm:$0xff]   ;;  %v123_v16 = vpack.c.bf16 %v1707_v42, %v1707_v42 }
  0x42   :  { %478 = vmatmul.mubr.bf16.vlgmr.msra.gmra.mrb[0].mxu0 %v121_v47  ;;  %v1401_v52 = vld [vmem:[%s2017_s1 + $0x120] ss:$8 sps:$4 sm:$0xff]   ;;  %v1406_v53 = vld [vmem:[%s2017_s1 + $0x134] ss:$8 sps:$4 sm:$0xff]   ;;  %v1404_v54 = vld [vmem:[%s2017_s1 + $0x130] ss:$8 sps:$4 sm:$0xff]  }
  0x43   :  { %487 = vmatpush1.bf16.msra.mxu0 %v1395_v46  ;;  %518 = vmatprep.mubr.bf16.mxu0 %v124_v48  ;;  %v1409_v55 = vld [vmem:[%s2017_s1 + $0x144] ss:$8 sps:$4 sm:$0xff]   ;;  %v1407_v56 = vld [vmem:[%s2017_s1 + $0x140] ss:$8 sps:$4 sm:$0xff]   ;;  %v1412_v57 = vld [vmem:[%s2017_s1 + $0x154] ss:$8 sps:$4 sm:$0xff]  }
  0x44   :  { %488 = vmatprep.subr.bf16.mxu0 %v1400_v49  ;;  %v1410_v58 = vld [vmem:[%s2017_s1 + $0x150] ss:$8 sps:$4 sm:$0xff]   ;;  %v1415_v59 = vld [vmem:[%s2017_s1 + $0x164] ss:$8 sps:$4 sm:$0xff]   ;;  %v1413_v60 = vld [vmem:[%s2017_s1 + $0x160] ss:$8 sps:$4 sm:$0xff]  }
  0x45   :  { %v1418_v61 = vld [vmem:[%s2017_s1 + $0x174] ss:$8 sps:$4 sm:$0xff]   ;;  %v1416_v62 = vld [vmem:[%s2017_s1 + $0x170] ss:$8 sps:$4 sm:$0xff]   ;;  %v1421_v63 = vld [vmem:[%s2017_s1 + $0x184] ss:$8 sps:$4 sm:$0xff]  }
  0x46   :  { %v1419_v0 = vld [vmem:[%s2017_s1 + $0x180] ss:$8 sps:$4 sm:$0xff]   ;;  %v1424_v1 = vld [vmem:[%s2017_s1 + $0x194] ss:$8 sps:$4 sm:$0xff]   ;;  %v1422_v2 = vld [vmem:[%s2017_s1 + $0x190] ss:$8 sps:$4 sm:$0xff]  }
  0x47   :  { %489 = vmatpush1.bf16.msra.mxu0 %v1398_v50  ;;  %v1427_v3 = vld [vmem:[%s2017_s1 + $0x1a4] ss:$8 sps:$4 sm:$0xff]   ;;  %v1425_v4 = vld [vmem:[%s2017_s1 + $0x1a0] ss:$8 sps:$4 sm:$0xff]   ;;  %v1430_v5 = vld [vmem:[%s2017_s1 + $0x1b4] ss:$8 sps:$4 sm:$0xff]  }
  0x48   :  { %490 = vmatprep.subr.bf16.mxu0 %v1403_v51  ;;  %v1428_v6 = vld [vmem:[%s2017_s1 + $0x1b0] ss:$8 sps:$4 sm:$0xff]   ;;  %v1433_v7 = vld [vmem:[%s2017_s1 + $0x1c4] ss:$8 sps:$4 sm:$0xff]   ;;  %v1431_v8 = vld [vmem:[%s2017_s1 + $0x1c0] ss:$8 sps:$4 sm:$0xff]  }
  0x49   :  { %v1436_v9 = vld [vmem:[%s2017_s1 + $0x1d4] ss:$8 sps:$4 sm:$0xff]   ;;  %v1434_v10 = vld [vmem:[%s2017_s1 + $0x1d0] ss:$8 sps:$4 sm:$0xff]   ;;  %v1439_v11 = vld [vmem:[%s2017_s1 + $0x1e4] ss:$8 sps:$4 sm:$0xff]  }
  0x4a   :  { %v1437_v12 = vld [vmem:[%s2017_s1 + $0x1e0] ss:$8 sps:$4 sm:$0xff]   ;;  %v1442_v14 = vld [vmem:[%s2017_s1 + $0x1f4] ss:$8 sps:$4 sm:$0xff]   ;;  %v1440_v15 = vld [vmem:[%s2017_s1 + $0x1f0] ss:$8 sps:$4 sm:$0xff]  }
  0x4b   :  { %491 = vmatpush1.bf16.msra.mxu0 %v1401_v52  ;;  %v1443_v17 = vld [vmem:[%s2020_s4 + $0x4] ss:$8 sps:$4 sm:$0xff]   ;;  %v1445_v18 = vld [vmem:[%s2020_s4] ss:$8 sps:$4 sm:$0xff]   ;;  %v1446_v19 = vld [vmem:[%s2020_s4 + $0x14] ss:$8 sps:$4 sm:$0xff]  }
  0x4c   :  { %492 = vmatprep.subr.bf16.mxu0 %v1406_v53  ;;  %845 = vmatprep.subr.bf16.mxu1 %v1443_v17  ;;  %v1448_v20 = vld [vmem:[%s2020_s4 + $0x10] ss:$8 sps:$4 sm:$0xff]   ;;  %v1449_v21 = vld [vmem:[%s2020_s4 + $0x24] ss:$8 sps:$4 sm:$0xff]   ;;  %v1451_v22 = vld [vmem:[%s2020_s4 + $0x20] ss:$8 sps:$4 sm:$0xff]  }
  0x4d   :  { %846 = vmatpush1.bf16.msra.mxu1 %v1445_v18  ;;  %v1452_v23 = vld [vmem:[%s2020_s4 + $0x34] ss:$8 sps:$4 sm:$0xff]   ;;  %v1454_v24 = vld [vmem:[%s2020_s4 + $0x30] ss:$8 sps:$4 sm:$0xff]   ;;  %v1455_v25 = vld [vmem:[%s2020_s4 + $0x44] ss:$8 sps:$4 sm:$0xff]  }
  0x4e   :  { %847 = vmatprep.subr.bf16.mxu1 %v1446_v19  ;;  %v1457_v26 = vld [vmem:[%s2020_s4 + $0x40] ss:$8 sps:$4 sm:$0xff]   ;;  %v1458_v27 = vld [vmem:[%s2020_s4 + $0x54] ss:$8 sps:$4 sm:$0xff]   ;;  %v1460_v28 = vld [vmem:[%s2020_s4 + $0x50] ss:$8 sps:$4 sm:$0xff]  }
  0x4f   :  { %493 = vmatpush1.bf16.msra.mxu0 %v1404_v54  ;;  %v1461_v29 = vld [vmem:[%s2020_s4 + $0x64] ss:$8 sps:$4 sm:$0xff]   ;;  %v1463_v30 = vld [vmem:[%s2020_s4 + $0x60] ss:$8 sps:$4 sm:$0xff]   ;;  %v1464_v31 = vld [vmem:[%s2020_s4 + $0x74] ss:$8 sps:$4 sm:$0xff]  }
  0x50   :  { %494 = vmatprep.subr.bf16.mxu0 %v1409_v55  ;;  %v1466_v32 = vld [vmem:[%s2020_s4 + $0x70] ss:$8 sps:$4 sm:$0xff]   ;;  %v1467_v33 = vld [vmem:[%s2020_s4 + $0x84] ss:$8 sps:$4 sm:$0xff]   ;;  %v1469_v34 = vld [vmem:[%s2020_s4 + $0x80] ss:$8 sps:$4 sm:$0xff]  }
  0x51   :  { %848 = vmatpush1.bf16.msra.mxu1 %v1448_v20  ;;  %v1470_v35 = vld [vmem:[%s2020_s4 + $0x94] ss:$8 sps:$4 sm:$0xff]   ;;  %v1472_v36 = vld [vmem:[%s2020_s4 + $0x90] ss:$8 sps:$4 sm:$0xff]   ;;  %v1473_v37 = vld [vmem:[%s2020_s4 + $0xa4] ss:$8 sps:$4 sm:$0xff]  }
  0x52   :  { %849 = vmatprep.subr.bf16.mxu1 %v1449_v21  ;;  %v1475_v38 = vld [vmem:[%s2020_s4 + $0xa0] ss:$8 sps:$4 sm:$0xff]   ;;  %v1476_v39 = vld [vmem:[%s2020_s4 + $0xb4] ss:$8 sps:$4 sm:$0xff]   ;;  %v1478_v40 = vld [vmem:[%s2020_s4 + $0xb0] ss:$8 sps:$4 sm:$0xff]  }
  0x53   :  { %495 = vmatpush1.bf16.msra.mxu0 %v1407_v56  ;;  %v1479_v41 = vld [vmem:[%s2020_s4 + $0xc4] ss:$8 sps:$4 sm:$0xff]   ;;  %v1481_v42 = vld [vmem:[%s2020_s4 + $0xc0] ss:$8 sps:$4 sm:$0xff]   ;;  %v1482_v43 = vld [vmem:[%s2020_s4 + $0xd4] ss:$8 sps:$4 sm:$0xff]  }
  0x54   :  { %496 = vmatprep.subr.bf16.mxu0 %v1412_v57  ;;  %v1484_v44 = vld [vmem:[%s2020_s4 + $0xd0] ss:$8 sps:$4 sm:$0xff]   ;;  %v1485_v45 = vld [vmem:[%s2020_s4 + $0xe4] ss:$8 sps:$4 sm:$0xff]   ;;  %v1487_v46 = vld [vmem:[%s2020_s4 + $0xe0] ss:$8 sps:$4 sm:$0xff]  }
  0x55   :  { %850 = vmatpush1.bf16.msra.mxu1 %v1451_v22  ;;  %v1488_v47 = vld [vmem:[%s2020_s4 + $0xf4] ss:$8 sps:$4 sm:$0xff]   ;;  %v1490_v48 = vld [vmem:[%s2020_s4 + $0xf0] ss:$8 sps:$4 sm:$0xff]   ;;  %vm529_vm0 = vcmask 1041408   ;;  %s1557_s13 = smov [#allocation2]  }
  0x56   :  { %851 = vmatprep.subr.bf16.mxu1 %v1452_v23  ;;  %s1192_s1 = sshll.u32 %s1557_s13, 4  ;;  %s1193_s1 = int_to_ptr.vmem [resolvable:$true] %s1192_s1 }
  0x57   :  { %497 = vmatpush1.bf16.msra.mxu0 %v1410_v58  ;;  %s1531_s14 = scalar_lea.vmem %s1193_s1, 32  ;;  %p1536_p1 = scmp.lt.s32.totalorder %s1193_s1, %s1193_s1 }
  0x58   :  { %498 = vmatprep.subr.bf16.mxu0 %v1415_v59  ;;  %p1532_p0 = scmp.ne.s32.totalorder %s1193_s1, %s1531_s14  ;;  %p1537_p2 = scmp.lt.s32.totalorder %s1531_s14, %s1531_s14 }
  0x59   :  { %852 = vmatpush1.bf16.msra.mxu1 %v1454_v24 }
  0x5a   :  { %853 = vmatprep.subr.bf16.mxu1 %v1455_v25  ;;  %p1538_p3 = por %p1537_p2, %p1536_p1 }
  0x5b   :  { %499 = vmatpush1.bf16.msra.mxu0 %v1413_v60 }
  0x5c   :  { %500 = vmatprep.subr.bf16.mxu0 %v1418_v61  ;;  %p1539_p4 = pnand %p1538_p3, %p1532_p0 }
  0x5d   :  { %854 = vmatpush1.bf16.msra.mxu1 %v1457_v26 }
  0x5e   :  { %855 = vmatprep.subr.bf16.mxu1 %v1458_v27 }
  0x5f   :  { %501 = vmatpush1.bf16.msra.mxu0 %v1416_v62 }
  0x60   :  { %502 = vmatprep.subr.bf16.mxu0 %v1421_v63 }
  0x61   :  { %856 = vmatpush1.bf16.msra.mxu1 %v1460_v28  ;;  %v1556_v28 = vmov 1966171168  }
  0x62   :  { %857 = vmatprep.subr.bf16.mxu1 %v1461_v29  ;;  %v575_v29 = vunpack.c.l.s4 %v1556_v28 }
  0x63   :  { %503 = vmatpush1.bf16.msra.mxu0 %v1419_v0 }
  0x64   :  { %504 = vmatprep.subr.bf16.mxu0 %v1424_v1 }
  0x65   :  { %858 = vmatpush1.bf16.msra.mxu1 %v1463_v30  ;;  %v576_v30 = vunpack.c.0.s8 %v575_v29 }
  0x66   :  { %859 = vmatprep.subr.bf16.mxu1 %v1464_v31 }
  0x67   :  { %505 = vmatpush1.bf16.msra.mxu0 %v1422_v2 }
  0x68   :  { %506 = vmatprep.subr.bf16.mxu0 %v1427_v3 }
  0x69   :  { %860 = vmatpush1.bf16.msra.mxu1 %v1466_v32  ;;  %v1913_v32 = vsub.s32 %v576_v30, %v1635_v13 }
  0x6a   :  { %861 = vmatprep.subr.bf16.mxu1 %v1467_v33 }
  0x6b   :  { %507 = vmatpush1.bf16.msra.mxu0 %v1425_v4 }
  0x6c   :  { %508 = vmatprep.subr.bf16.mxu0 %v1430_v5 }
  0x6d   :  { %862 = vmatpush1.bf16.msra.mxu1 %v1469_v34 }
  0x6e   :  { %863 = vmatprep.subr.bf16.mxu1 %v1470_v35 }
  0x6f   :  { %509 = vmatpush1.bf16.msra.mxu0 %v1428_v6 }
  0x70   :  { %510 = vmatprep.subr.bf16.mxu0 %v1433_v7 }
  0x71   :  { %864 = vmatpush1.bf16.msra.mxu1 %v1472_v36  ;;  %v527_v36 = vld [vmem:[%s2018_s2] sm:$0x3] }
  0x72   :  { %865 = vmatprep.subr.bf16.mxu1 %v1473_v37 }
  0x73   :  { %511 = vmatpush1.bf16.msra.mxu0 %v1431_v8 }
  0x74   :  { %512 = vmatprep.subr.bf16.mxu0 %v1436_v9 }
  0x75   :  { %866 = vmatpush1.bf16.msra.mxu1 %v1475_v38  ;;  %v1921_v38 = vsub.s32 0, %v1635_v13 }
  0x76   :  { %867 = vmatprep.subr.bf16.mxu1 %v1476_v39  ;;  %v1924_v39 = vsub.s32 1, %v1635_v13 }
  0x77   :  { %513 = vmatpush1.bf16.msra.mxu0 %v1434_v10 }
  0x78   :  { %514 = vmatprep.subr.bf16.mxu0 %v1439_v11 }
  0x79   :  { %868 = vmatpush1.bf16.msra.mxu1 %v1478_v40 }
  0x7a   :  { %869 = vmatprep.subr.bf16.mxu1 %v1479_v41 }
  0x7b   :  { %515 = vmatpush1.bf16.msra.mxu0 %v1437_v12 }
  0x7c   :  { %516 = vmatprep.subr.bf16.mxu0 %v1442_v14 }
  0x7d   :  { %870 = vmatpush1.bf16.msra.mxu1 %v1481_v42 }
  0x7e   :  { %871 = vmatprep.subr.bf16.mxu1 %v1482_v43 }
  0x7f   :  { %517 = vmatpush1.bf16.msra.mxu0 %v1440_v15 }
  0x81   :  { %872 = vmatpush1.bf16.msra.mxu1 %v1484_v44 }
  0x82   :  { %519 = vmatmul.mubr.bf16.vlgmr.msra.gmra.mrb[0].mxu0 %v123_v16  ;;  %873 = vmatprep.subr.bf16.mxu1 %v1485_v45 }
  0x85   :  { %874 = vmatpush1.bf16.msra.mxu1 %v1487_v46 }
  0x86   :  { %875 = vmatprep.subr.bf16.mxu1 %v1488_v47 }
  0x89   :  { %876 = vmatpush1.bf16.msra.mxu1 %v1490_v48 }
 0x155   :  { %v520_v49 = vpop.f32.mrb[0].mxu0 }
 0x156   :  { %v530_v50 = vsel %vm529_vm0, %v520_v49, 0.0  ;;  %v522_v51 = vpop.f32.mrb[1].mxu0 }
 0x157   :  { %v531_v52 = vrot.slane %v530_v50, 4  ;;  %v537_v53 = vsel %vm529_vm0, %v522_v51, 0.0  ;;  %v524_v54 = vpop.f32.mrb[2].mxu0 }
 0x158   :  { %v538_v55 = vrot.slane %v537_v53, 4  ;;  %v525_v56 = vpop.f32.mrb[3].mxu0 }
 0x159   :  { %v532_v57 = vadd.f32 %v531_v52, %v530_v50  ;;  %v528_v50 = vld [vmem:[%s2019_s3] sm:$0x3] }
 0x15a   :  { %v539_v58 = vadd.f32 %v538_v55, %v537_v53 }
 0x15b   :  { %v533_v59 = vrot.slane %v532_v57, 2 }
 0x15c   :  { %v540_v60 = vrot.slane %v539_v58, 2 }
 0x15d   :  { %v534_v61 = vadd.f32 %v533_v59, %v532_v57 }
 0x15e   :  { %v541_v62 = vadd.f32 %v540_v60, %v539_v58 }
 0x15f   :  { %v535_v63 = vrot.slane %v534_v61, 1 }
 0x160   :  { %v542_v0 = vrot.slane %v541_v62, 1 }
 0x161   :  { %v536_v1 = vadd.f32 %v535_v63, %v534_v61 }
 0x162   :  { %v543_v2 = vadd.f32 %v542_v0, %v541_v62 }
 0x163   :  { %v545_v3 = vmul.f32 0.5, %v536_v1 }
 0x164   :  { %v546_v4 = vmul.f32 0.5, %v543_v2 }
 0x165   :  { %v547_v5 = vsub.f32 %v520_v49, %v545_v3 }
 0x166   :  { %v548_v6 = vsub.f32 %v522_v51, %v546_v4 }
 0x167   :  { %v549_v7 = vmul.f32 %v547_v5, %v547_v5  ;;  %v1493_v5 = vld [vmem:[%s2023_s7 + $0x48] sm:$0xff]  }
 0x168   :  { %v550_v8 = vmul.f32 %v548_v6, %v548_v6  ;;  %v1494_v6 = vld [vmem:[%s2023_s7 + $0x8] sm:$0xff]  }
 0x169   :  { %v551_v9 = vsel %vm529_vm0, %v549_v7, 0.0  ;;  %v1495_v7 = vld [vmem:[%s2023_s7 + $0x50] sm:$0xff]  }
 0x16a   :  { %v552_v10 = vrot.slane %v551_v9, 4  ;;  %v558_v11 = vsel %vm529_vm0, %v550_v8, 0.0  ;;  %v1496_v8 = vld [vmem:[%s2023_s7 + $0x10] sm:$0xff]  }
 0x16b   :  { %v559_v12 = vrot.slane %v558_v11, 4 }
 0x16c   :  { %v553_v14 = vadd.f32 %v552_v10, %v551_v9  ;;  %v1497_v9 = vld [vmem:[%s2023_s7 + $0x58] sm:$0xff]  }
 0x16d   :  { %v560_v15 = vadd.f32 %v559_v12, %v558_v11  ;;  %v1498_v10 = vld [vmem:[%s2023_s7 + $0x18] sm:$0xff]   ;;  %v1499_v11 = vld [vmem:[%s2023_s7 + $0x60] sm:$0xff]  }
 0x16e   :  { %v554_v16 = vrot.slane %v553_v14, 2  ;;  %v1500_v12 = vld [vmem:[%s2023_s7 + $0x20] sm:$0xff]  }
 0x16f   :  { %v561_v17 = vrot.slane %v560_v15, 2 }
 0x170   :  { %v555_v18 = vadd.f32 %v554_v16, %v553_v14  ;;  %v1501_v14 = vld [vmem:[%s2023_s7 + $0x68] sm:$0xff]   ;;  %v1503_v16 = vld [vmem:[%s2023_s7 + $0x70] sm:$0xff]  }
 0x171   :  { %v562_v19 = vadd.f32 %v561_v17, %v560_v15  ;;  %v1502_v15 = vld [vmem:[%s2023_s7 + $0x28] sm:$0xff]   ;;  %v1504_v17 = vld [vmem:[%s2023_s7 + $0x30] sm:$0xff]  }
 0x172   :  { %v556_v20 = vrot.slane %v555_v18, 1 }
 0x173   :  { %v563_v21 = vrot.slane %v562_v19, 1 }
 0x174   :  { %v557_v22 = vadd.f32 %v556_v20, %v555_v18  ;;  %v1505_v18 = vld [vmem:[%s2023_s7 + $0x78] sm:$0xff]  }
 0x175   :  { %v564_v23 = vadd.f32 %v563_v21, %v562_v19  ;;  %v1506_v19 = vld [vmem:[%s2023_s7 + $0x38] sm:$0xff]  }
 0x176   :  { %v565_v24 = vmul.f32 0.5, %v557_v22 }
 0x177   :  { %v566_v25 = vmul.f32 0.5, %v564_v23 }
 0x178   :  { %v567_v26 = vadd.f32 1e-05, %v565_v24 }
 0x179   :  { %v568_v27 = vadd.f32 1e-05, %v566_v25 }
 0x17a   :  { %1507 = vrsqrt.f32 %v567_v26 }
 0x17b   :  { %1509 = vrsqrt.f32 %v568_v27 }
 0x184   :  { %v1508_v31 = vpop.eup %1507 }
 0x185   :  { %v1510_v33 = vpop.eup %1509 }
 0x186   :  { %v573_v34 = vcombine.low %v1508_v31, %v1510_v33 }
 0x188   :  { %v580_v35 = vrot.slane %v573_v34, %v1913_v32 }
 0x18a   :  { %v587_v37 = vrot.slane %v580_v35, %v1913_v32 }
 0x18c   :  { %v589_v40 = vmul.f32 %v587_v37, %v527_v36 }
 0x18e   :  { %v594_v41 = vrot.slane %v589_v40, %v1921_v38  ;;  %v598_v42 = vrot.slane %v589_v40, %v1924_v39 }
 0x190   :  { %v601_v43 = vmul.f32 %v594_v41, %v545_v3  ;;  %v602_v44 = vmul.f32 %v598_v42, %v546_v4  ;;  %v623_v45 = vmul.f32 %v598_v42, %v522_v51  ;;  %v622_v46 = vmul.f32 %v594_v41, %v520_v49  ;;  %v1491_v3 = vld [vmem:[%s2023_s7 + $0x40] sm:$0xff]  }
 0x191   :  { %v1492_v4 = vld [vmem:[%s2023_s7] sm:$0xff]   ;;  %1317 = vmatprep.subr.bf16.mxu1 %v1491_v3 }
 0x192   :  { %v605_v47 = vcombine.low %v601_v43, %v602_v44 }
 0x194   :  { %v612_v48 = vrot.slane %v605_v47, %v1913_v32 }
 0x196   :  { %v619_v52 = vrot.slane %v612_v48, %v1913_v32 }
 0x198   :  { %v621_v13 = vsub.f32 %v528_v50, %v619_v52 }
 0x19a   :  { %v632_v53 = vrot.slane %v621_v13, %v1924_v39  ;;  %v628_v54 = vrot.slane %v621_v13, %v1921_v38 }
 0x19c   :  { %v636_v55 = vadd.f32 %v632_v53, %v623_v45  ;;  %v635_v56 = vadd.f32 %v628_v54, %v622_v46 }
 0x19e   :  { %v1265_v57 = vmul.f32 -1.442695, %v636_v55  ;;  %v1264_v58 = vmul.f32 -1.442695, %v635_v56 }
 0x1a0   :  { %1511 = vpow2.f32 %v1265_v57 }
 0x1a1   :  { %1513 = vpow2.f32 %v1264_v58 }
 0x1aa   :  { %v1512_v49 = vpop.eup %1511 }
 0x1ab   :  { %v1514_v51 = vpop.eup %1513  ;;  %v644_v59 = vadd.f32 1.0, %v1512_v49 }
 0x1ac   :  { %v643_v60 = vadd.f32 1.0, %v1514_v51 }
 0x1ad   :  { %1515 = vrcp.f32 %v644_v59 }
 0x1ae   :  { %1517 = vrcp.f32 %v643_v60 }
 0x1b7   :  { %v1516_v61 = vpop.eup %1515 }
 0x1b8   :  { %v1518_v62 = vpop.eup %1517  ;;  %v650_v63 = vmul.f32 %v1516_v61, %v636_v55 }
 0x1b9   :  { %v649_v0 = vmul.f32 %v1518_v62, %v635_v56 }
 0x1ba   :  { %v684_v1 = vpack.c.bf16 %v650_v63, %v650_v63 }
 0x1bb   :  { %v683_v2 = vpack.c.bf16 %v649_v0, %v649_v0 }
 0x1bc   :  { %877 = vmatprep.mubr.bf16.mxu1 %v684_v1 }
 0x1bd   :  { %878 = vmatmul.mubr.bf16.vlgmr.msra.gmra.mrb[0].mxu1 %v683_v2 }
 0x1be   :  { %1318 = vmatpush3.bf16.msra.mxu1 %v1492_v4  ;;  %v886_v4 = vld [vmem:[%s2021_s5] sm:$0x3] }
 0x1bf   :  { %1319 = vmatprep.subr.bf16.mxu1 %v1493_v5 }
 0x1c2   :  { %1320 = vmatpush3.bf16.msra.mxu1 %v1494_v6 }
 0x1c3   :  { %1321 = vmatprep.subr.bf16.mxu1 %v1495_v7 }
 0x1c6   :  { %1322 = vmatpush3.bf16.msra.mxu1 %v1496_v8 }
 0x1c7   :  { %1323 = vmatprep.subr.bf16.mxu1 %v1497_v9 }
 0x1ca   :  { %1324 = vmatpush3.bf16.msra.mxu1 %v1498_v10 }
 0x1cb   :  { %1325 = vmatprep.subr.bf16.mxu1 %v1499_v11 }
 0x1ce   :  { %1326 = vmatpush3.bf16.msra.mxu1 %v1500_v12 }
 0x1cf   :  { %1327 = vmatprep.subr.bf16.mxu1 %v1501_v14 }
 0x1d2   :  { %1328 = vmatpush3.bf16.msra.mxu1 %v1502_v15 }
 0x1d3   :  { %1329 = vmatprep.subr.bf16.mxu1 %v1503_v16  ;;  %v887_v16 = vld [vmem:[%s2022_s6] sm:$0x3] }
 0x1d6   :  { %1330 = vmatpush3.bf16.msra.mxu1 %v1504_v17 }
 0x1d7   :  { %1331 = vmatprep.subr.bf16.mxu1 %v1505_v18 }
 0x1da   :  { %1332 = vmatpush3.bf16.msra.mxu1 %v1506_v19 }
 0x290   :  { %v879_v20 = vpop.f32.mrb[0].mxu1 }
 0x291   :  { %v888_v21 = vsel %vm529_vm0, %v879_v20, 0.0  ;;  %v881_v22 = vpop.f32.mrb[1].mxu1 }
 0x292   :  { %v889_v23 = vrot.slane %v888_v21, 4  ;;  %v895_v24 = vsel %vm529_vm0, %v881_v22, 0.0  ;;  %v883_v25 = vpop.f32.mrb[2].mxu1 }
 0x293   :  { %v896_v26 = vrot.slane %v895_v24, 4  ;;  %v884_v27 = vpop.f32.mrb[3].mxu1 }
 0x294   :  { %v890_v28 = vadd.f32 %v889_v23, %v888_v21 }
 0x295   :  { %v897_v29 = vadd.f32 %v896_v26, %v895_v24 }
 0x296   :  { %v891_v30 = vrot.slane %v890_v28, 2 }
 0x297   :  { %v898_v31 = vrot.slane %v897_v29, 2 }
 0x298   :  { %v892_v33 = vadd.f32 %v891_v30, %v890_v28 }
 0x299   :  { %v899_v34 = vadd.f32 %v898_v31, %v897_v29 }
 0x29a   :  { %v893_v35 = vrot.slane %v892_v33, 1 }
 0x29b   :  { %v900_v36 = vrot.slane %v899_v34, 1 }
 0x29c   :  { %v894_v37 = vadd.f32 %v893_v35, %v892_v33  ;;  %v1300_v35 = vld [vmem:[%s2024_s8] ss:$0 sm:$0xff] }
 0x29d   :  { %v901_v40 = vadd.f32 %v900_v36, %v899_v34 }
 0x29e   :  { %v902_v41 = vmul.f32 0.5, %v894_v37 }
 0x29f   :  { %v903_v42 = vmul.f32 0.5, %v901_v40 }
 0x2a0   :  { %v904_v43 = vsub.f32 %v879_v20, %v902_v41 }
 0x2a1   :  { %v905_v44 = vsub.f32 %v881_v22, %v903_v42 }
 0x2a2   :  { %v906_v45 = vmul.f32 %v904_v43, %v904_v43 }
 0x2a3   :  { %v907_v46 = vmul.f32 %v905_v44, %v905_v44 }
 0x2a4   :  { %v908_v47 = vsel %vm529_vm0, %v906_v45, 0.0 }
 0x2a5   :  { %v909_v48 = vrot.slane %v908_v47, 4  ;;  %v915_v50 = vsel %vm529_vm0, %v907_v46, 0.0 }
 0x2a6   :  { %v916_v52 = vrot.slane %v915_v50, 4 }
 0x2a7   :  { %v910_v13 = vadd.f32 %v909_v48, %v908_v47 }
 0x2a8   :  { %v917_v53 = vadd.f32 %v916_v52, %v915_v50 }
 0x2a9   :  { %v911_v54 = vrot.slane %v910_v13, 2 }
 0x2aa   :  { %v918_v55 = vrot.slane %v917_v53, 2 }
 0x2ab   :  { %v912_v56 = vadd.f32 %v911_v54, %v910_v13 }
 0x2ac   :  { %v919_v57 = vadd.f32 %v918_v55, %v917_v53 }
 0x2ad   :  { %v913_v58 = vrot.slane %v912_v56, 1 }
 0x2ae   :  { %v920_v49 = vrot.slane %v919_v57, 1 }
 0x2af   :  { %v914_v51 = vadd.f32 %v913_v58, %v912_v56 }
 0x2b0   :  { %v921_v59 = vadd.f32 %v920_v49, %v919_v57 }
 0x2b1   :  { %v922_v60 = vmul.f32 0.5, %v914_v51 }
 0x2b2   :  { %v923_v61 = vmul.f32 0.5, %v921_v59 }
 0x2b3   :  { %v924_v62 = vadd.f32 1e-05, %v922_v60 }
 0x2b4   :  { %v925_v63 = vadd.f32 1e-05, %v923_v61 }
 0x2b5   :  { %1519 = vrsqrt.f32 %v924_v62 }
 0x2b6   :  { %1521 = vrsqrt.f32 %v925_v63 }
 0x2bf   :  { %v1520_v0 = vpop.eup %1519 }
 0x2c0   :  { %v1522_v1 = vpop.eup %1521 }
 0x2c1   :  { %v930_v2 = vcombine.low %v1520_v0, %v1522_v1 }
 0x2c3   :  { %v937_v3 = vrot.slane %v930_v2, %v1913_v32 }
 0x2c5   :  { %v944_v5 = vrot.slane %v937_v3, %v1913_v32 }
 0x2c7   :  { %v946_v6 = vmul.f32 %v944_v5, %v886_v4 }
 0x2c9   :  { %v951_v7 = vrot.slane %v946_v6, %v1921_v38  ;;  %v955_v8 = vrot.slane %v946_v6, %v1924_v39 }
 0x2cb   :  { %v958_v9 = vmul.f32 %v951_v7, %v902_v41  ;;  %v959_v10 = vmul.f32 %v955_v8, %v903_v42  ;;  %v979_v11 = vmul.f32 %v951_v7, %v879_v20  ;;  %v980_v12 = vmul.f32 %v955_v8, %v881_v22 }
 0x2cd   :  { %v962_v14 = vcombine.low %v958_v9, %v959_v10 }
 0x2cf   :  { %v969_v15 = vrot.slane %v962_v14, %v1913_v32 }
 0x2d1   :  { %v976_v17 = vrot.slane %v969_v15, %v1913_v32 }
 0x2d3   :  { %v978_v18 = vsub.f32 %v887_v16, %v976_v17 }
 0x2d5   :  { %v985_v19 = vrot.slane %v978_v18, %v1921_v38  ;;  %v989_v21 = vrot.slane %v978_v18, %v1924_v39 }
 0x2d7   :  { %v993_v23 = vadd.f32 %v989_v21, %v980_v12  ;;  %v992_v24 = vadd.f32 %v985_v19, %v979_v11 }
 0x2d9   :  { %v1299_v25 = vmul.f32 -1.442695, %v993_v23  ;;  %v1298_v26 = vmul.f32 -1.442695, %v992_v24 }
 0x2db   :  { %1523 = vpow2.f32 %v1299_v25 }
 0x2dc   :  { %1525 = vpow2.f32 %v1298_v26 }
 0x2e5   :  { %v1524_v20 = vpop.eup %1523 }
 0x2e6   :  { %v1526_v22 = vpop.eup %1525  ;;  %v1001_v27 = vadd.f32 1.0, %v1524_v20 }
 0x2e7   :  { %v1000_v28 = vadd.f32 1.0, %v1526_v22 }
 0x2e8   :  { %1527 = vrcp.f32 %v1001_v27 }
 0x2e9   :  { %1529 = vrcp.f32 %v1000_v28 }
 0x2f2   :  { %v1528_v29 = vpop.eup %1527 }
 0x2f3   :  { %v1530_v30 = vpop.eup %1529  ;;  %v1007_v32 = vmul.f32 %v1528_v29, %v993_v23 }
 0x2f4   :  { %v1006_v31 = vmul.f32 %v1530_v30, %v992_v24 }
 0x2f5   :  { %v1041_v33 = vpack.c.bf16 %v1007_v32, %v1007_v32 }
 0x2f6   :  { %v1040_v38 = vpack.c.bf16 %v1006_v31, %v1006_v31 }
 0x2f7   :  { %1177 = vmatprep.mubr.bf16.mxu1 %v1041_v33 }
 0x2f8   :  { %1178 = vmatmul.mubr.bf16.vlgmr.msra.gmra.mrb[4].mxu1 %v1040_v38 }
 0x3cb   :  { %v1333_v39 = vpop.f32.mrb[4].mxu1 }
 0x3cc   :  { %v1334_v34 = vpop.f32.mrb[5].mxu1 }
 0x3cd   :  { %v1335_v36 = vadd.f32 %v1334_v34, %v1333_v39  ;;  %v1336_v37 = vpop.f32.mrb[6].mxu1 }
 0x3ce   :  { %v1337_v40 = vpop.f32.mrb[7].mxu1 }
 0x3cf   :  { %v1180_v41 = vadd.f32 %v1335_v36, %v1300_v35 }
 0x3d1   :  { %1185 = vst [vmem:[#allocation2] sm:$0x3] %v1180_v41 }
 0x3d2   :  { %1542 = shalt.err (!%p1539_p4)
}
 0x3d3   :  { %s1543_s17 = scalar_lea.hbm %s2025_s9, 32 }
 0x3d4   :  { %p1544_p5 = scmp.ne.s32.totalorder %s2025_s9, %s1543_s17  ;;  %p1547_p6 = scmp.lt.u32.totalorder %s1543_s17, %s2025_s9 }
 0x3d6   :  { %p1549_p7 = pnand %p1547_p6, %p1544_p5 }
 0x3d8   :  { %1552 = shalt.err (!%p1549_p7)
}
 0x3d9   :  { %1195 = dma.vmem_to_hbm [thread:$0]  %s1193_s1, 32, %s2025_s9, [#allocation3]  }
 0x3da   :  { %1553 = dma.done.wait [#allocation3], 32  }
 0x3db   :  { %1554 = vsyncadd [#allocation3], 4294967264 }
 0x3dc   :  { %1199 = vsyncpa [#allocation3], 1 }

// kernel: _lambda_.10
= control target key start
LH: loop header
LB: loop body
LE: loop exit
PB: predicated region body
PF: predicated region fallthrough
CT: control target
= control target key end

     0   :  { %v1670_v36 = vmov 1983009808   ;;  %v172_v38 = vlaneseq  ;;  %vm1145_vm0 = vcmask 1043456   ;;  %s2173_s1 = inlined_call_operand.vmem [shape: bf16[1152,256], index: 1, kind: input, shape index: {}]   ;;  %s2174_s0 = inlined_call_operand.vmem [shape: bf16[4,1152], index: 0, kind: input, shape index: {}]   ;;  %s2175_s2 = inlined_call_operand.vmem [shape: f32[1,256], index: 2, kind: input, shape index: {}]   ;;  %s2176_s3 = inlined_call_operand.vmem [shape: f32[1,256], index: 3, kind: input, shape index: {}]   ;;  %s2177_s4 = inlined_call_operand.vmem [shape: f32[4,256], index: 4, kind: output, shape index: {}]  }
   0x1   :  { %v1440_v0 = vld [vmem:[%s2173_s1 + $0x4] ss:$8 sps:$4 sm:$0xff]   ;;  %v1444_v2 = vld [vmem:[%s2173_s1] ss:$8 sps:$4 sm:$0xff]   ;;  %v1446_v4 = vld [vmem:[%s2173_s1 + $0x14] ss:$8 sps:$4 sm:$0xff]   ;;  %v170_v37 = vunpack.c.l.s4 %v1670_v36 }
   0x2   :  { %v1442_v1 = vld [vmem:[%s2173_s1 + $0x204] ss:$8 sps:$4 sm:$0xff]   ;;  %938 = vmatprep.subr.bf16.mxu1 %v1440_v0  ;;  %v1445_v3 = vld [vmem:[%s2173_s1 + $0x200] ss:$8 sps:$4 sm:$0xff]   ;;  %v1448_v5 = vld [vmem:[%s2173_s1 + $0x214] ss:$8 sps:$4 sm:$0xff]  }
   0x3   :  { %1020 = vmatprep.subr.bf16.mxu0 %v1442_v1  ;;  %939 = vmatpush1.bf16.msra.mxu1 %v1444_v2  ;;  %v1450_v6 = vld [vmem:[%s2173_s1 + $0x10] ss:$8 sps:$4 sm:$0xff]   ;;  %v1452_v8 = vld [vmem:[%s2173_s1 + $0x24] ss:$8 sps:$4 sm:$0xff]   ;;  %v1456_v10 = vld [vmem:[%s2173_s1 + $0x20] ss:$8 sps:$4 sm:$0xff]   ;;  %v171_v42 = vunpack.c.0.s8 %v170_v37 }
   0x4   :  { %1021 = vmatpush1.bf16.msra.mxu0 %v1445_v3  ;;  %940 = vmatprep.subr.bf16.mxu1 %v1446_v4  ;;  %v1451_v7 = vld [vmem:[%s2173_s1 + $0x210] ss:$8 sps:$4 sm:$0xff]   ;;  %v1454_v9 = vld [vmem:[%s2173_s1 + $0x224] ss:$8 sps:$4 sm:$0xff]   ;;  %v1457_v11 = vld [vmem:[%s2173_s1 + $0x220] ss:$8 sps:$4 sm:$0xff]  }
   0x5   :  { %1022 = vmatprep.subr.bf16.mxu0 %v1448_v5  ;;  %v1458_v12 = vld [vmem:[%s2173_s1 + $0x34] ss:$8 sps:$4 sm:$0xff]   ;;  %v1462_v14 = vld [vmem:[%s2173_s1 + $0x30] ss:$8 sps:$4 sm:$0xff]   ;;  %v1464_v16 = vld [vmem:[%s2173_s1 + $0x44] ss:$8 sps:$4 sm:$0xff]  }
   0x6   :  { %v1460_v13 = vld [vmem:[%s2173_s1 + $0x234] ss:$8 sps:$4 sm:$0xff]   ;;  %v1463_v15 = vld [vmem:[%s2173_s1 + $0x230] ss:$8 sps:$4 sm:$0xff]   ;;  %v1466_v17 = vld [vmem:[%s2173_s1 + $0x244] ss:$8 sps:$4 sm:$0xff]  }
   0x7   :  { %941 = vmatpush1.bf16.msra.mxu1 %v1450_v6  ;;  %v1468_v18 = vld [vmem:[%s2173_s1 + $0x40] ss:$8 sps:$4 sm:$0xff]   ;;  %v1470_v20 = vld [vmem:[%s2173_s1 + $0x54] ss:$8 sps:$4 sm:$0xff]   ;;  %v1474_v22 = vld [vmem:[%s2173_s1 + $0x50] ss:$8 sps:$4 sm:$0xff]  }
   0x8   :  { %1023 = vmatpush1.bf16.msra.mxu0 %v1451_v7  ;;  %942 = vmatprep.subr.bf16.mxu1 %v1452_v8  ;;  %v1469_v19 = vld [vmem:[%s2173_s1 + $0x240] ss:$8 sps:$4 sm:$0xff]   ;;  %v1472_v21 = vld [vmem:[%s2173_s1 + $0x254] ss:$8 sps:$4 sm:$0xff]   ;;  %v1475_v23 = vld [vmem:[%s2173_s1 + $0x250] ss:$8 sps:$4 sm:$0xff]  }
   0x9   :  { %1024 = vmatprep.subr.bf16.mxu0 %v1454_v9  ;;  %v1476_v24 = vld [vmem:[%s2173_s1 + $0x64] ss:$8 sps:$4 sm:$0xff]   ;;  %v1480_v26 = vld [vmem:[%s2173_s1 + $0x60] ss:$8 sps:$4 sm:$0xff]   ;;  %v1482_v28 = vld [vmem:[%s2173_s1 + $0x74] ss:$8 sps:$4 sm:$0xff]  }
   0xa   :  { %v1478_v25 = vld [vmem:[%s2173_s1 + $0x264] ss:$8 sps:$4 sm:$0xff]   ;;  %v1481_v27 = vld [vmem:[%s2173_s1 + $0x260] ss:$8 sps:$4 sm:$0xff]   ;;  %v1484_v29 = vld [vmem:[%s2173_s1 + $0x274] ss:$8 sps:$4 sm:$0xff]  }
   0xb   :  { %943 = vmatpush1.bf16.msra.mxu1 %v1456_v10  ;;  %v1486_v30 = vld [vmem:[%s2173_s1 + $0x70] ss:$8 sps:$4 sm:$0xff]   ;;  %v1488_v32 = vld [vmem:[%s2173_s1 + $0x84] ss:$8 sps:$4 sm:$0xff]   ;;  %v1492_v34 = vld [vmem:[%s2173_s1 + $0x80] ss:$8 sps:$4 sm:$0xff]  }
   0xc   :  { %1025 = vmatpush1.bf16.msra.mxu0 %v1457_v11  ;;  %944 = vmatprep.subr.bf16.mxu1 %v1458_v12  ;;  %v1487_v31 = vld [vmem:[%s2173_s1 + $0x270] ss:$8 sps:$4 sm:$0xff]   ;;  %v1490_v33 = vld [vmem:[%s2173_s1 + $0x284] ss:$8 sps:$4 sm:$0xff]   ;;  %v1493_v35 = vld [vmem:[%s2173_s1 + $0x280] ss:$8 sps:$4 sm:$0xff]  }
   0xd   :  { %1026 = vmatprep.subr.bf16.mxu0 %v1460_v13  ;;  %v1494_v39 = vld [vmem:[%s2173_s1 + $0x94] ss:$8 sps:$4 sm:$0xff]   ;;  %v1498_v41 = vld [vmem:[%s2173_s1 + $0x90] ss:$8 sps:$4 sm:$0xff]   ;;  %v1815_v43 = vshrl.u32 %v172_v38, 7  ;;  %v18_v52 = vld [vmem:[%s2174_s0] sm:$0xff] }
   0xe   :  { %v1496_v40 = vld [vmem:[%s2173_s1 + $0x294] ss:$8 sps:$4 sm:$0xff]   ;;  %v1499_v44 = vld [vmem:[%s2173_s1 + $0x290] ss:$8 sps:$4 sm:$0xff]   ;;  %v1500_v45 = vld [vmem:[%s2173_s1 + $0xa4] ss:$8 sps:$4 sm:$0xff]   ;;  %v168_v10 = vcombine.high %v18_v52, %v18_v52 }
   0xf   :  { %945 = vmatpush1.bf16.msra.mxu1 %v1462_v14  ;;  %v1502_v46 = vld [vmem:[%s2173_s1 + $0x2a4] ss:$8 sps:$4 sm:$0xff]   ;;  %v1504_v47 = vld [vmem:[%s2173_s1 + $0xa0] ss:$8 sps:$4 sm:$0xff]   ;;  %v174_v49 = vsub.s32 %v171_v42, %v1815_v43  ;;  %v1506_v50 = vld [vmem:[%s2173_s1 + $0xb4] ss:$8 sps:$4 sm:$0xff]  }
  0x10   :  { %1027 = vmatpush1.bf16.msra.mxu0 %v1463_v15  ;;  %946 = vmatprep.subr.bf16.mxu1 %v1464_v16  ;;  %v1505_v48 = vld [vmem:[%s2173_s1 + $0x2a0] ss:$8 sps:$4 sm:$0xff]   ;;  %v1508_v51 = vld [vmem:[%s2173_s1 + $0x2b4] ss:$8 sps:$4 sm:$0xff]   ;;  %v1510_v53 = vld [vmem:[%s2173_s1 + $0xb0] ss:$8 sps:$4 sm:$0xff]  }
  0x11   :  { %1028 = vmatprep.subr.bf16.mxu0 %v1466_v17  ;;  %v175_v54 = vrot.slane %v18_v52, %v174_v49  ;;  %v1511_v55 = vld [vmem:[%s2173_s1 + $0x2b0] ss:$8 sps:$4 sm:$0xff]   ;;  %v19_v56 = vld [vmem:[%s2174_s0 + $0x8] sm:$0xff]  ;;  %v1518_v0 = vld [vmem:[%s2173_s1 + $0xd4] ss:$8 sps:$4 sm:$0xff]   ;;  %v1905_v16 = vrot.slane %v168_v10, %v174_v49 }
  0x12   :  { %v1512_v57 = vld [vmem:[%s2173_s1 + $0xc4] ss:$8 sps:$4 sm:$0xff]   ;;  %v192_v60 = vrot.slane %v19_v56, %v174_v49  ;;  %v1516_v62 = vld [vmem:[%s2173_s1 + $0xc0] ss:$8 sps:$4 sm:$0xff]   ;;  %v1520_v1 = vld [vmem:[%s2173_s1 + $0x2d4] ss:$8 sps:$4 sm:$0xff]   ;;  %v185_v11 = vcombine.high %v19_v56, %v19_v56 }
  0x13   :  { %947 = vmatpush1.bf16.msra.mxu1 %v1468_v18  ;;  %v1514_v58 = vld [vmem:[%s2173_s1 + $0x2c4] ss:$8 sps:$4 sm:$0xff]   ;;  %v183_v59 = vcombine.high %v175_v54, %v175_v54  ;;  %v1517_v63 = vld [vmem:[%s2173_s1 + $0x2c0] ss:$8 sps:$4 sm:$0xff]   ;;  %v1522_v2 = vld [vmem:[%s2173_s1 + $0xd0] ss:$8 sps:$4 sm:$0xff]  }
  0x14   :  { %1029 = vmatpush1.bf16.msra.mxu0 %v1469_v19  ;;  %948 = vmatprep.subr.bf16.mxu1 %v1470_v20  ;;  %v200_v61 = vcombine.high %v192_v60, %v192_v60  ;;  %v1523_v3 = vld [vmem:[%s2173_s1 + $0x2d0] ss:$8 sps:$4 sm:$0xff]   ;;  %v1524_v4 = vld [vmem:[%s2173_s1 + $0xe4] ss:$8 sps:$4 sm:$0xff]   ;;  %v1528_v6 = vld [vmem:[%s2173_s1 + $0xe0] ss:$8 sps:$4 sm:$0xff]   ;;  %v1907_v17 = vrot.slane %v185_v11, %v174_v49 }
  0x15   :  { %1030 = vmatprep.subr.bf16.mxu0 %v1472_v21  ;;  %970 = vmatprep.mubr.bf16.mxu1 %v183_v59  ;;  %v1526_v5 = vld [vmem:[%s2173_s1 + $0x2e4] ss:$8 sps:$4 sm:$0xff]   ;;  %v1529_v7 = vld [vmem:[%s2173_s1 + $0x2e0] ss:$8 sps:$4 sm:$0xff]   ;;  %v1530_v8 = vld [vmem:[%s2173_s1 + $0xf4] ss:$8 sps:$4 sm:$0xff]  }
  0x16   :  { %1052 = vmatprep.mubr.bf16.mxu0 %v200_v61  ;;  %v1532_v9 = vld [vmem:[%s2173_s1 + $0x2f4] ss:$8 sps:$4 sm:$0xff]   ;;  %v1534_v12 = vld [vmem:[%s2173_s1 + $0xf0] ss:$8 sps:$4 sm:$0xff]   ;;  %v1539_v14 = vld [vmem:[%s2173_s1 + $0x104] ss:$8 sps:$4 sm:$0xff]  }
  0x17   :  { %949 = vmatpush1.bf16.msra.mxu1 %v1474_v22  ;;  %v1535_v13 = vld [vmem:[%s2173_s1 + $0x2f0] ss:$8 sps:$4 sm:$0xff]   ;;  %v1543_v15 = vld [vmem:[%s2173_s1 + $0x304] ss:$8 sps:$4 sm:$0xff]   ;;  %v1537_v18 = vld [vmem:[%s2173_s1 + $0x100] ss:$8 sps:$4 sm:$0xff]   ;;  %v184_v22 = vcombine.high %v1905_v16, %v1905_v16 }
  0x18   :  { %1031 = vmatpush1.bf16.msra.mxu0 %v1475_v23  ;;  %950 = vmatprep.subr.bf16.mxu1 %v1476_v24  ;;  %v1541_v19 = vld [vmem:[%s2173_s1 + $0x300] ss:$8 sps:$4 sm:$0xff]   ;;  %v1546_v20 = vld [vmem:[%s2173_s1 + $0x114] ss:$8 sps:$4 sm:$0xff]   ;;  %v201_v23 = vcombine.high %v1907_v17, %v1907_v17  ;;  %v1544_v24 = vld [vmem:[%s2173_s1 + $0x110] ss:$8 sps:$4 sm:$0xff]  }
  0x19   :  { %1032 = vmatprep.subr.bf16.mxu0 %v1478_v25  ;;  %v1549_v21 = vld [vmem:[%s2173_s1 + $0x314] ss:$8 sps:$4 sm:$0xff]   ;;  %v1547_v25 = vld [vmem:[%s2173_s1 + $0x310] ss:$8 sps:$4 sm:$0xff]   ;;  %v1562_v36 = vld [vmem:[%s2173_s1 + $0x140] ss:$8 sps:$4 sm:$0xff]  }
  0x1a   :  { %v1565_v37 = vld [vmem:[%s2173_s1 + $0x340] ss:$8 sps:$4 sm:$0xff]   ;;  %v1570_v38 = vld [vmem:[%s2173_s1 + $0x154] ss:$8 sps:$4 sm:$0xff]   ;;  %v1576_v42 = vld [vmem:[%s2173_s1 + $0x164] ss:$8 sps:$4 sm:$0xff]  }
  0x1b   :  { %951 = vmatpush1.bf16.msra.mxu1 %v1480_v26  ;;  %v1552_v26 = vld [vmem:[%s2173_s1 + $0x124] ss:$8 sps:$4 sm:$0xff]   ;;  %v1580_v49 = vld [vmem:[%s2173_s1 + $0x170] ss:$8 sps:$4 sm:$0xff]   ;;  %v1597_v56 = vld [vmem:[%s2173_s1 + $0x394] ss:$8 sps:$4 sm:$0xff]  }
  0x1c   :  { %1033 = vmatpush1.bf16.msra.mxu0 %v1481_v27  ;;  %952 = vmatprep.subr.bf16.mxu1 %v1482_v28  ;;  %v1555_v27 = vld [vmem:[%s2173_s1 + $0x324] ss:$8 sps:$4 sm:$0xff]   ;;  %v1550_v28 = vld [vmem:[%s2173_s1 + $0x120] ss:$8 sps:$4 sm:$0xff]   ;;  %v1619_v10 = vld [vmem:[%s2173_s1 + $0x3d0] ss:$8 sps:$4 sm:$0xff]  }
  0x1d   :  { %1034 = vmatprep.subr.bf16.mxu0 %v1484_v29  ;;  %v1553_v29 = vld [vmem:[%s2173_s1 + $0x320] ss:$8 sps:$4 sm:$0xff]   ;;  %v1591_v52 = vld [vmem:[%s2173_s1 + $0x384] ss:$8 sps:$4 sm:$0xff]  }
  0x1e   :  { %v1600_v59 = vld [vmem:[%s2173_s1 + $0x1a4] ss:$8 sps:$4 sm:$0xff]   ;;  %v1598_v61 = vld [vmem:[%s2173_s1 + $0x1a0] ss:$8 sps:$4 sm:$0xff]  }
  0x1f   :  { %953 = vmatpush1.bf16.msra.mxu1 %v1486_v30  ;;  %v1558_v30 = vld [vmem:[%s2173_s1 + $0x134] ss:$8 sps:$4 sm:$0xff]   ;;  %v1624_v11 = vld [vmem:[%s2173_s1 + $0x1e4] ss:$8 sps:$4 sm:$0xff]  }
  0x20   :  { %1035 = vmatpush1.bf16.msra.mxu0 %v1487_v31  ;;  %954 = vmatprep.subr.bf16.mxu1 %v1488_v32  ;;  %v1561_v31 = vld [vmem:[%s2173_s1 + $0x334] ss:$8 sps:$4 sm:$0xff]   ;;  %v1556_v32 = vld [vmem:[%s2173_s1 + $0x130] ss:$8 sps:$4 sm:$0xff]  }
  0x21   :  { %1036 = vmatprep.subr.bf16.mxu0 %v1490_v33  ;;  %v1559_v33 = vld [vmem:[%s2173_s1 + $0x330] ss:$8 sps:$4 sm:$0xff]  }
  0x23   :  { %955 = vmatpush1.bf16.msra.mxu1 %v1492_v34  ;;  %v1564_v34 = vld [vmem:[%s2173_s1 + $0x144] ss:$8 sps:$4 sm:$0xff]  }
  0x24   :  { %1037 = vmatpush1.bf16.msra.mxu0 %v1493_v35  ;;  %956 = vmatprep.subr.bf16.mxu1 %v1494_v39  ;;  %v1567_v35 = vld [vmem:[%s2173_s1 + $0x344] ss:$8 sps:$4 sm:$0xff]   ;;  %v1573_v39 = vld [vmem:[%s2173_s1 + $0x354] ss:$8 sps:$4 sm:$0xff]  }
  0x25   :  { %1038 = vmatprep.subr.bf16.mxu0 %v1496_v40  ;;  %v1568_v40 = vld [vmem:[%s2173_s1 + $0x150] ss:$8 sps:$4 sm:$0xff]  }
  0x27   :  { %957 = vmatpush1.bf16.msra.mxu1 %v1498_v41  ;;  %v1571_v41 = vld [vmem:[%s2173_s1 + $0x350] ss:$8 sps:$4 sm:$0xff]  }
  0x28   :  { %1039 = vmatpush1.bf16.msra.mxu0 %v1499_v44  ;;  %958 = vmatprep.subr.bf16.mxu1 %v1500_v45  ;;  %v1579_v44 = vld [vmem:[%s2173_s1 + $0x364] ss:$8 sps:$4 sm:$0xff]   ;;  %v1574_v45 = vld [vmem:[%s2173_s1 + $0x160] ss:$8 sps:$4 sm:$0xff]  }
  0x29   :  { %1040 = vmatprep.subr.bf16.mxu0 %v1502_v46  ;;  %v1577_v46 = vld [vmem:[%s2173_s1 + $0x360] ss:$8 sps:$4 sm:$0xff]  }
  0x2b   :  { %959 = vmatpush1.bf16.msra.mxu1 %v1504_v47  ;;  %v1582_v47 = vld [vmem:[%s2173_s1 + $0x174] ss:$8 sps:$4 sm:$0xff]  }
  0x2c   :  { %1041 = vmatpush1.bf16.msra.mxu0 %v1505_v48  ;;  %960 = vmatprep.subr.bf16.mxu1 %v1506_v50  ;;  %v1585_v48 = vld [vmem:[%s2173_s1 + $0x374] ss:$8 sps:$4 sm:$0xff]   ;;  %v1583_v50 = vld [vmem:[%s2173_s1 + $0x370] ss:$8 sps:$4 sm:$0xff]  }
  0x2d   :  { %1042 = vmatprep.subr.bf16.mxu0 %v1508_v51  ;;  %v1588_v51 = vld [vmem:[%s2173_s1 + $0x184] ss:$8 sps:$4 sm:$0xff]  }
  0x2f   :  { %961 = vmatpush1.bf16.msra.mxu1 %v1510_v53  ;;  %v1586_v53 = vld [vmem:[%s2173_s1 + $0x180] ss:$8 sps:$4 sm:$0xff]  }
  0x30   :  { %1043 = vmatpush1.bf16.msra.mxu0 %v1511_v55  ;;  %962 = vmatprep.subr.bf16.mxu1 %v1512_v57  ;;  %v1594_v55 = vld [vmem:[%s2173_s1 + $0x194] ss:$8 sps:$4 sm:$0xff]   ;;  %v1592_v57 = vld [vmem:[%s2173_s1 + $0x190] ss:$8 sps:$4 sm:$0xff]  }
  0x31   :  { %1044 = vmatprep.subr.bf16.mxu0 %v1514_v58  ;;  %v1595_v58 = vld [vmem:[%s2173_s1 + $0x390] ss:$8 sps:$4 sm:$0xff]  }
  0x33   :  { %963 = vmatpush1.bf16.msra.mxu1 %v1516_v62  ;;  %v1601_v62 = vld [vmem:[%s2173_s1 + $0x3a0] ss:$8 sps:$4 sm:$0xff]  }
  0x34   :  { %1045 = vmatpush1.bf16.msra.mxu0 %v1517_v63  ;;  %964 = vmatprep.subr.bf16.mxu1 %v1518_v0  ;;  %v1606_v63 = vld [vmem:[%s2173_s1 + $0x1b4] ss:$8 sps:$4 sm:$0xff]  }
  0x35   :  { %1046 = vmatprep.subr.bf16.mxu0 %v1520_v1  ;;  %v1609_v0 = vld [vmem:[%s2173_s1 + $0x3b4] ss:$8 sps:$4 sm:$0xff]   ;;  %v1604_v1 = vld [vmem:[%s2173_s1 + $0x1b0] ss:$8 sps:$4 sm:$0xff]  }
  0x37   :  { %965 = vmatpush1.bf16.msra.mxu1 %v1522_v2  ;;  %v1607_v2 = vld [vmem:[%s2173_s1 + $0x3b0] ss:$8 sps:$4 sm:$0xff]  }
  0x38   :  { %1047 = vmatpush1.bf16.msra.mxu0 %v1523_v3  ;;  %966 = vmatprep.subr.bf16.mxu1 %v1524_v4  ;;  %v1612_v3 = vld [vmem:[%s2173_s1 + $0x1c4] ss:$8 sps:$4 sm:$0xff]  }
  0x39   :  { %1048 = vmatprep.subr.bf16.mxu0 %v1526_v5  ;;  %v1615_v4 = vld [vmem:[%s2173_s1 + $0x3c4] ss:$8 sps:$4 sm:$0xff]   ;;  %v1610_v5 = vld [vmem:[%s2173_s1 + $0x1c0] ss:$8 sps:$4 sm:$0xff]  }
  0x3b   :  { %967 = vmatpush1.bf16.msra.mxu1 %v1528_v6  ;;  %v1613_v6 = vld [vmem:[%s2173_s1 + $0x3c0] ss:$8 sps:$4 sm:$0xff]  }
  0x3c   :  { %1049 = vmatpush1.bf16.msra.mxu0 %v1529_v7  ;;  %968 = vmatprep.subr.bf16.mxu1 %v1530_v8  ;;  %v1618_v7 = vld [vmem:[%s2173_s1 + $0x1d4] ss:$8 sps:$4 sm:$0xff]  }
  0x3d   :  { %1050 = vmatprep.subr.bf16.mxu0 %v1532_v9  ;;  %v1621_v8 = vld [vmem:[%s2173_s1 + $0x3d4] ss:$8 sps:$4 sm:$0xff]   ;;  %v1616_v9 = vld [vmem:[%s2173_s1 + $0x1d0] ss:$8 sps:$4 sm:$0xff]  }
  0x3f   :  { %969 = vmatpush1.bf16.msra.mxu1 %v1534_v12  ;;  %v1627_v12 = vld [vmem:[%s2173_s1 + $0x3e4] ss:$8 sps:$4 sm:$0xff]  }
  0x40   :  { %1051 = vmatpush1.bf16.msra.mxu0 %v1535_v13  ;;  %979 = vmatprep.subr.bf16.mxu1 %v1539_v14  ;;  %v1622_v13 = vld [vmem:[%s2173_s1 + $0x1e0] ss:$8 sps:$4 sm:$0xff]  }
  0x41   :  { %1061 = vmatprep.subr.bf16.mxu0 %v1543_v15  ;;  %v1625_v14 = vld [vmem:[%s2173_s1 + $0x3e0] ss:$8 sps:$4 sm:$0xff]   ;;  %v1630_v15 = vld [vmem:[%s2173_s1 + $0x1f4] ss:$8 sps:$4 sm:$0xff]  }
  0x42   :  { %971 = vmatmul.mubr.bf16.vlgmr.msra.gmra.mrb[0].mxu1 %v175_v54  ;;  %v1589_v54 = vld [vmem:[%s2173_s1 + $0x380] ss:$8 sps:$4 sm:$0xff]  }
  0x43   :  { %1053 = vmatmul.mubr.bf16.vlgmr.msra.gmra.mrb[0].mxu0 %v192_v60  ;;  %980 = vmatpush1.bf16.msra.mxu1 %v1537_v18  ;;  %v1603_v60 = vld [vmem:[%s2173_s1 + $0x3a4] ss:$8 sps:$4 sm:$0xff]   ;;  %v1633_v18 = vld [vmem:[%s2173_s1 + $0x3f4] ss:$8 sps:$4 sm:$0xff]  }
  0x44   :  { %1062 = vmatpush1.bf16.msra.mxu0 %v1541_v19  ;;  %981 = vmatprep.subr.bf16.mxu1 %v1546_v20  ;;  %v1628_v19 = vld [vmem:[%s2173_s1 + $0x1f0] ss:$8 sps:$4 sm:$0xff]  }
  0x45   :  { %1063 = vmatprep.subr.bf16.mxu0 %v1549_v21  ;;  %1011 = vmatprep.mubr.bf16.mxu1 %v184_v22  ;;  %v1631_v20 = vld [vmem:[%s2173_s1 + $0x3f0] ss:$8 sps:$4 sm:$0xff]   ;;  %v1636_v21 = vld [vmem:[%s2173_s1 + $0x404] ss:$8 sps:$4 sm:$0xff]   ;;  %v1634_v22 = vld [vmem:[%s2173_s1 + $0x400] ss:$8 sps:$4 sm:$0xff]  }
  0x46   :  { %1093 = vmatprep.mubr.bf16.mxu0 %v201_v23  ;;  %v1639_v23 = vld [vmem:[%s2173_s1 + $0x414] ss:$8 sps:$4 sm:$0xff]  }
  0x47   :  { %982 = vmatpush1.bf16.msra.mxu1 %v1544_v24  ;;  %v1637_v24 = vld [vmem:[%s2173_s1 + $0x410] ss:$8 sps:$4 sm:$0xff]  }
  0x48   :  { %1064 = vmatpush1.bf16.msra.mxu0 %v1547_v25  ;;  %983 = vmatprep.subr.bf16.mxu1 %v1552_v26  ;;  %v1671_v25 = vmov 0   ;;  %v1642_v26 = vld [vmem:[%s2173_s1 + $0x424] ss:$8 sps:$4 sm:$0xff]  }
  0x49   :  { %1065 = vmatprep.subr.bf16.mxu0 %v1555_v27  ;;  %v1640_v27 = vld [vmem:[%s2173_s1 + $0x420] ss:$8 sps:$4 sm:$0xff]  }
  0x4b   :  { %984 = vmatpush1.bf16.msra.mxu1 %v1550_v28  ;;  %v1648_v28 = vld [vmem:[%s2173_s1 + $0x444] ss:$8 sps:$4 sm:$0xff]  }
  0x4c   :  { %1066 = vmatpush1.bf16.msra.mxu0 %v1553_v29  ;;  %985 = vmatprep.subr.bf16.mxu1 %v1558_v30  ;;  %v1646_v29 = vld [vmem:[%s2173_s1 + $0x440] ss:$8 sps:$4 sm:$0xff]   ;;  %v1651_v30 = vld [vmem:[%s2173_s1 + $0x454] ss:$8 sps:$4 sm:$0xff]  }
  0x4d   :  { %1067 = vmatprep.subr.bf16.mxu0 %v1561_v31  ;;  %v1649_v31 = vld [vmem:[%s2173_s1 + $0x450] ss:$8 sps:$4 sm:$0xff]  }
  0x4f   :  { %986 = vmatpush1.bf16.msra.mxu1 %v1556_v32  ;;  %v1654_v32 = vld [vmem:[%s2173_s1 + $0x464] ss:$8 sps:$4 sm:$0xff]  }
  0x50   :  { %1068 = vmatpush1.bf16.msra.mxu0 %v1559_v33  ;;  %987 = vmatprep.subr.bf16.mxu1 %v1564_v34  ;;  %v1652_v33 = vld [vmem:[%s2173_s1 + $0x460] ss:$8 sps:$4 sm:$0xff]   ;;  %v1657_v34 = vld [vmem:[%s2173_s1 + $0x474] ss:$8 sps:$4 sm:$0xff]  }
  0x51   :  { %1069 = vmatprep.subr.bf16.mxu0 %v1567_v35  ;;  %v1655_v35 = vld [vmem:[%s2173_s1 + $0x470] ss:$8 sps:$4 sm:$0xff]  }
  0x53   :  { %988 = vmatpush1.bf16.msra.mxu1 %v1562_v36  ;;  %v1276_v36 = vld.sshfl [vmem:[%s2174_s0 + $0x10] sm:$0x3 pattern:$0x76325410] }
  0x54   :  { %1070 = vmatpush1.bf16.msra.mxu0 %v1565_v37  ;;  %989 = vmatprep.subr.bf16.mxu1 %v1570_v38 }
  0x55   :  { %1071 = vmatprep.subr.bf16.mxu0 %v1573_v39 }
  0x57   :  { %990 = vmatpush1.bf16.msra.mxu1 %v1568_v40 }
  0x58   :  { %1072 = vmatpush1.bf16.msra.mxu0 %v1571_v41  ;;  %991 = vmatprep.subr.bf16.mxu1 %v1576_v42 }
  0x59   :  { %1073 = vmatprep.subr.bf16.mxu0 %v1579_v44 }
  0x5b   :  { %992 = vmatpush1.bf16.msra.mxu1 %v1574_v45 }
  0x5c   :  { %1074 = vmatpush1.bf16.msra.mxu0 %v1577_v46  ;;  %993 = vmatprep.subr.bf16.mxu1 %v1582_v47 }
  0x5d   :  { %1075 = vmatprep.subr.bf16.mxu0 %v1585_v48 }
  0x5f   :  { %994 = vmatpush1.bf16.msra.mxu1 %v1580_v49 }
  0x60   :  { %1076 = vmatpush1.bf16.msra.mxu0 %v1583_v50  ;;  %995 = vmatprep.subr.bf16.mxu1 %v1588_v51 }
  0x61   :  { %1077 = vmatprep.subr.bf16.mxu0 %v1591_v52 }
  0x63   :  { %996 = vmatpush1.bf16.msra.mxu1 %v1586_v53 }
  0x64   :  { %1078 = vmatpush1.bf16.msra.mxu0 %v1589_v54  ;;  %997 = vmatprep.subr.bf16.mxu1 %v1594_v55 }
  0x65   :  { %1079 = vmatprep.subr.bf16.mxu0 %v1597_v56 }
  0x67   :  { %998 = vmatpush1.bf16.msra.mxu1 %v1592_v57 }
  0x68   :  { %1080 = vmatpush1.bf16.msra.mxu0 %v1595_v58  ;;  %999 = vmatprep.subr.bf16.mxu1 %v1600_v59 }
  0x69   :  { %1081 = vmatprep.subr.bf16.mxu0 %v1603_v60 }
  0x6b   :  { %1000 = vmatpush1.bf16.msra.mxu1 %v1598_v61 }
  0x6c   :  { %1082 = vmatpush1.bf16.msra.mxu0 %v1601_v62  ;;  %1001 = vmatprep.subr.bf16.mxu1 %v1606_v63 }
  0x6d   :  { %1083 = vmatprep.subr.bf16.mxu0 %v1609_v0 }
  0x6f   :  { %1002 = vmatpush1.bf16.msra.mxu1 %v1604_v1 }
  0x70   :  { %1084 = vmatpush1.bf16.msra.mxu0 %v1607_v2  ;;  %1003 = vmatprep.subr.bf16.mxu1 %v1612_v3 }
  0x71   :  { %1085 = vmatprep.subr.bf16.mxu0 %v1615_v4 }
  0x73   :  { %1004 = vmatpush1.bf16.msra.mxu1 %v1610_v5 }
  0x74   :  { %1086 = vmatpush1.bf16.msra.mxu0 %v1613_v6  ;;  %1005 = vmatprep.subr.bf16.mxu1 %v1618_v7 }
  0x75   :  { %1087 = vmatprep.subr.bf16.mxu0 %v1621_v8 }
  0x77   :  { %1006 = vmatpush1.bf16.msra.mxu1 %v1616_v9 }
  0x78   :  { %1088 = vmatpush1.bf16.msra.mxu0 %v1619_v10  ;;  %1007 = vmatprep.subr.bf16.mxu1 %v1624_v11 }
  0x79   :  { %1089 = vmatprep.subr.bf16.mxu0 %v1627_v12 }
  0x7b   :  { %1008 = vmatpush1.bf16.msra.mxu1 %v1622_v13 }
  0x7c   :  { %1090 = vmatpush1.bf16.msra.mxu0 %v1625_v14  ;;  %1009 = vmatprep.subr.bf16.mxu1 %v1630_v15 }
  0x7d   :  { %1091 = vmatprep.subr.bf16.mxu0 %v1633_v18 }
  0x7f   :  { %1010 = vmatpush1.bf16.msra.mxu1 %v1628_v19 }
  0x80   :  { %1092 = vmatpush1.bf16.msra.mxu0 %v1631_v20 }
  0x81   :  { %1102 = vmatprep.subr.bf16.mxu0 %v1636_v21 }
  0x82   :  { %1012 = vmatmul.mubr.bf16.vlgmr.msra.gmra.mrb[0].mxu1 %v1905_v16  ;;  %v1645_v16 = vld [vmem:[%s2173_s1 + $0x434] ss:$8 sps:$4 sm:$0xff]  }
  0x83   :  { %1094 = vmatmul.mubr.bf16.vlgmr.msra.gmra.mrb[0].mxu0 %v1907_v17  ;;  %v1643_v17 = vld [vmem:[%s2173_s1 + $0x430] ss:$8 sps:$4 sm:$0xff]  }
  0x84   :  { %1103 = vmatpush1.bf16.msra.mxu0 %v1634_v22  ;;  %1134 = vmatprep.mubr.bf16.mxu0 %v1671_v25 }
  0x85   :  { %1104 = vmatprep.subr.bf16.mxu0 %v1639_v23 }
  0x88   :  { %1105 = vmatpush1.bf16.msra.mxu0 %v1637_v24  ;;  %v1672_v24 = vmov 1966171168  }
  0x89   :  { %1106 = vmatprep.subr.bf16.mxu0 %v1642_v26  ;;  %v1191_v25 = vunpack.c.l.s4 %v1672_v24 }
  0x8b   :  { %v1192_v26 = vunpack.c.0.s8 %v1191_v25 }
  0x8c   :  { %1107 = vmatpush1.bf16.msra.mxu0 %v1640_v27 }
  0x8d   :  { %1108 = vmatprep.subr.bf16.mxu0 %v1645_v16  ;;  %v1195_v16 = vsub.s32 %v1192_v26, %v1815_v43 }
  0x90   :  { %1109 = vmatpush1.bf16.msra.mxu0 %v1643_v17 }
  0x91   :  { %1110 = vmatprep.subr.bf16.mxu0 %v1648_v28 }
  0x94   :  { %1111 = vmatpush1.bf16.msra.mxu0 %v1646_v29 }
  0x95   :  { %1112 = vmatprep.subr.bf16.mxu0 %v1651_v30  ;;  %v1143_v30 = vld [vmem:[%s2175_s2] sm:$0x3] }
  0x98   :  { %1113 = vmatpush1.bf16.msra.mxu0 %v1649_v31 }
  0x99   :  { %1114 = vmatprep.subr.bf16.mxu0 %v1654_v32  ;;  %v1209_v32 = vsub.s32 0, %v1815_v43 }
  0x9c   :  { %1115 = vmatpush1.bf16.msra.mxu0 %v1652_v33  ;;  %v1213_v33 = vsub.s32 1, %v1815_v43 }
  0x9d   :  { %1116 = vmatprep.subr.bf16.mxu0 %v1657_v34 }
  0xa0   :  { %1117 = vmatpush1.bf16.msra.mxu0 %v1655_v35 }
  0xa3   :  { %1135 = vmatmul.mubr.bf16.vlgmr.msra.gmra.mrb[0].mxu0 %v1276_v36 }
 0x155   :  { %v1013_v37 = vpop.f32.mrb[0].mxu1 }
 0x156   :  { %v1015_v38 = vpop.f32.mrb[1].mxu1 }
 0x157   :  { %v1017_v39 = vpop.f32.mrb[2].mxu1 }
 0x158   :  { %v1018_v40 = vpop.f32.mrb[3].mxu1 }
 0x176   :  { %v1136_v41 = vpop.f32.mrb[0].mxu0 }
 0x177   :  { %v2152_v42 = vadd.f32 %v1136_v41, %v1013_v37  ;;  %v1138_v44 = vpop.f32.mrb[1].mxu0 }
 0x178   :  { %v1424_v45 = vadd.f32 %v1138_v44, %v1015_v38  ;;  %v1140_v46 = vpop.f32.mrb[2].mxu0 }
 0x179   :  { %v1146_v47 = vsel %vm1145_vm0, %v2152_v42, 0.0  ;;  %v1141_v48 = vpop.f32.mrb[3].mxu0  ;;  %v1144_v46 = vld [vmem:[%s2176_s3] sm:$0x3] }
 0x17a   :  { %v1147_v49 = vrot.slane %v1146_v47, 4  ;;  %v1153_v50 = vsel %vm1145_vm0, %v1424_v45, 0.0 }
 0x17b   :  { %v1154_v51 = vrot.slane %v1153_v50, 4 }
 0x17c   :  { %v1148_v52 = vadd.f32 %v1147_v49, %v1146_v47 }
 0x17d   :  { %v1155_v53 = vadd.f32 %v1154_v51, %v1153_v50 }
 0x17e   :  { %v1149_v54 = vrot.slane %v1148_v52, 2 }
 0x17f   :  { %v1156_v55 = vrot.slane %v1155_v53, 2 }
 0x180   :  { %v1150_v56 = vadd.f32 %v1149_v54, %v1148_v52 }
 0x181   :  { %v1157_v57 = vadd.f32 %v1156_v55, %v1155_v53 }
 0x182   :  { %v1151_v58 = vrot.slane %v1150_v56, 1 }
 0x183   :  { %v1158_v59 = vrot.slane %v1157_v57, 1 }
 0x184   :  { %v1152_v60 = vadd.f32 %v1151_v58, %v1150_v56 }
 0x185   :  { %v1159_v61 = vadd.f32 %v1158_v59, %v1157_v57 }
 0x186   :  { %v1161_v62 = vmul.f32 0.25, %v1152_v60 }
 0x187   :  { %v1162_v63 = vmul.f32 0.25, %v1159_v61 }
 0x188   :  { %v1163_v0 = vsub.f32 %v2152_v42, %v1161_v62 }
 0x189   :  { %v1164_v1 = vsub.f32 %v1424_v45, %v1162_v63 }
 0x18a   :  { %v1165_v2 = vmul.f32 %v1163_v0, %v1163_v0 }
 0x18b   :  { %v1166_v3 = vmul.f32 %v1164_v1, %v1164_v1 }
 0x18c   :  { %v1167_v4 = vsel %vm1145_vm0, %v1165_v2, 0.0 }
 0x18d   :  { %v1168_v5 = vrot.slane %v1167_v4, 4  ;;  %v1174_v6 = vsel %vm1145_vm0, %v1166_v3, 0.0 }
 0x18e   :  { %v1175_v7 = vrot.slane %v1174_v6, 4 }
 0x18f   :  { %v1169_v8 = vadd.f32 %v1168_v5, %v1167_v4 }
 0x190   :  { %v1176_v9 = vadd.f32 %v1175_v7, %v1174_v6 }
 0x191   :  { %v1170_v10 = vrot.slane %v1169_v8, 2 }
 0x192   :  { %v1177_v11 = vrot.slane %v1176_v9, 2 }
 0x193   :  { %v1171_v12 = vadd.f32 %v1170_v10, %v1169_v8 }
 0x194   :  { %v1178_v13 = vadd.f32 %v1177_v11, %v1176_v9 }
 0x195   :  { %v1172_v14 = vrot.slane %v1171_v12, 1 }
 0x196   :  { %v1179_v15 = vrot.slane %v1178_v13, 1 }
 0x197   :  { %v1173_v18 = vadd.f32 %v1172_v14, %v1171_v12 }
 0x198   :  { %v1180_v19 = vadd.f32 %v1179_v15, %v1178_v13 }
 0x199   :  { %v1181_v20 = vmul.f32 0.25, %v1173_v18 }
 0x19a   :  { %v1182_v21 = vmul.f32 0.25, %v1180_v19 }
 0x19b   :  { %v1183_v22 = vadd.f32 1e-05, %v1181_v20 }
 0x19c   :  { %v1184_v23 = vadd.f32 1e-05, %v1182_v21 }
 0x19d   :  { %1658 = vrsqrt.f32 %v1183_v22 }
 0x19e   :  { %1660 = vrsqrt.f32 %v1184_v23 }
 0x1a7   :  { %v1659_v27 = vpop.eup %1658 }
 0x1a8   :  { %v1661_v17 = vpop.eup %1660 }
 0x1a9   :  { %v1189_v28 = vcombine.low %v1659_v27, %v1661_v17 }
 0x1ab   :  { %v1196_v29 = vrot.slane %v1189_v28, %v1195_v16 }
 0x1ad   :  { %v1203_v31 = vrot.slane %v1196_v29, %v1195_v16 }
 0x1af   :  { %v1205_v34 = vmul.f32 %v1203_v31, %v1143_v30 }
 0x1b1   :  { %v1210_v35 = vrot.slane %v1205_v34, %v1209_v32  ;;  %v1214_v36 = vrot.slane %v1205_v34, %v1213_v33 }
 0x1b3   :  { %v1217_v37 = vmul.f32 %v1210_v35, %v1161_v62  ;;  %v1218_v38 = vmul.f32 %v1214_v36, %v1162_v63  ;;  %v1238_v39 = vmul.f32 %v2152_v42, %v1210_v35  ;;  %v1239_v40 = vmul.f32 %v1424_v45, %v1214_v36 }
 0x1b5   :  { %v1221_v41 = vcombine.low %v1217_v37, %v1218_v38 }
 0x1b7   :  { %v1228_v44 = vrot.slane %v1221_v41, %v1195_v16 }
 0x1b9   :  { %v1235_v47 = vrot.slane %v1228_v44, %v1195_v16 }
 0x1bb   :  { %v1237_v48 = vsub.f32 %v1144_v46, %v1235_v47 }
 0x1bd   :  { %v1244_v49 = vrot.slane %v1237_v48, %v1209_v32  ;;  %v1248_v50 = vrot.slane %v1237_v48, %v1213_v33 }
 0x1bf   :  { %v1251_v51 = vadd.f32 %v1244_v49, %v1238_v39  ;;  %v1252_v43 = vadd.f32 %v1248_v50, %v1239_v40 }
 0x1c1   :  { %v1421_v52 = vmul.f32 -1.442695, %v1251_v51  ;;  %v1422_v53 = vmul.f32 -1.442695, %v1252_v43 }
 0x1c3   :  { %1662 = vpow2.f32 %v1421_v52 }
 0x1c4   :  { %1664 = vpow2.f32 %v1422_v53 }
 0x1cd   :  { %v1663_v54 = vpop.eup %1662 }
 0x1ce   :  { %v1665_v55 = vpop.eup %1664  ;;  %v1259_v42 = vadd.f32 1.0, %v1663_v54 }
 0x1cf   :  { %v1260_v45 = vadd.f32 1.0, %v1665_v55 }
 0x1d0   :  { %1666 = vrcp.f32 %v1259_v42 }
 0x1d1   :  { %1668 = vrcp.f32 %v1260_v45 }
 0x1da   :  { %v1667_v56 = vpop.eup %1666 }
 0x1db   :  { %v1669_v57 = vpop.eup %1668  ;;  %v1265_v58 = vmul.f32 %v1667_v56, %v1251_v51 }
 0x1dc   :  { %v1266_v59 = vmul.f32 %v1669_v57, %v1252_v43 }
 0x1de   :  { %v1269_v60 = vcombine.low %v1265_v58, %v1266_v59 }
 0x1e0   :  { %1271 = vst [vmem:[%s2177_s4] sm:$0xff] %v1269_v60 }

</bundles_post_ra>
